<compile_context>
chip_gen: v7x
topology: tpu7x:2x2x1
jax: 0.10.0
libtpu: 0.0.40
codegen_flags: <defaults>
</compile_context>

<pallas_src>
import functools
import math

import jax
import jax.numpy as jnp
import numpy as np
from jax import lax
from jax.experimental import pallas as pl
from jax.experimental.pallas import tpu as pltpu


def _round_up(x, m):
    return (x + m - 1) // m * m


@functools.lru_cache(maxsize=1)
def _tile_prefs():
    """(tm_pref, tn_pref).  Single-TC chips (v5e/v6e): one big program per call.
    v7x (2 TensorCores): keep >=2 parallel programs per grid axis."""
    try:
        kind = jax.devices()[0].device_kind.lower()
    except Exception:
        kind = ""
    if "v7" in kind or "tpu7" in kind:
        return 256, 128
    return 512, 256


# --------------------------------------------------------------------------
# Pallas GEMM with fused (folded-BN) bias + ReLU epilogue.
# Full-K single block: no reduction grid axis, no accumulator init/finalize.
# --------------------------------------------------------------------------
def _gemm_bias_relu_kernel(a_ref, b_ref, bias_ref, o_ref):
    acc = jnp.dot(a_ref[...], b_ref[...], preferred_element_type=jnp.float32)
    o_ref[...] = jnp.maximum(acc + bias_ref[...], 0.0).astype(o_ref.dtype)


@functools.lru_cache(maxsize=None)
def _gemm_call(Mp, K, Np, tm, tn, out_dtype_name):
    out_dtype = jnp.dtype(out_dtype_name)
    return pl.pallas_call(
        _gemm_bias_relu_kernel,
        out_shape=jax.ShapeDtypeStruct((Mp, Np), out_dtype),
        grid_spec=pltpu.PrefetchScalarGridSpec(
            num_scalar_prefetch=0,
            grid=(Mp // tm, Np // tn),
            in_specs=[
                pl.BlockSpec((tm, K), lambda i, j: (i, 0)),   # A (bf16, full K)
                pl.BlockSpec((K, tn), lambda i, j: (0, j)),   # W (bf16, scale folded)
                pl.BlockSpec((1, tn), lambda i, j: (0, j)),   # bias (f32)
            ],
            out_specs=pl.BlockSpec((tm, tn), lambda i, j: (i, j)),
        ),
        compiler_params=pltpu.CompilerParams(
            dimension_semantics=("parallel", "parallel")),
    )


def gemm_fused(cols, entry, out_dtype):
    """relu(cols @ W_folded + bias) -> (M, Np) in out_dtype (Np lane-padded)."""
    M, K = cols.shape
    Kw, Np = entry['w_pad'].shape
    assert K == Kw, (K, Kw)
    tm_pref, _ = _tile_prefs()
    tm = min(tm_pref, _round_up(M, 8))
    Mp = _round_up(M, tm)
    a = cols if Mp == M else jnp.pad(cols, ((0, Mp - M), (0, 0)))
    out = _gemm_call(Mp, K, Np, tm, entry['tn'], jnp.dtype(out_dtype).name)(
        a, entry['w_pad'], entry['bias_pad'])
    return out if Mp == M else out[:M]


# --------------------------------------------------------------------------
# im2col glue (fuses inside the jitted forward; all convs here are stride 1)
# --------------------------------------------------------------------------
def _im2col(x, ksize, pad):
    N, H, W, C = x.shape
    if ksize == 1 and pad == 0:
        return x.reshape(N * H * W, C), (N, H, W)
    xp = jnp.pad(x, ((0, 0), (pad, pad), (pad, pad), (0, 0)))
    Ho = H + 2 * pad - ksize + 1
    Wo = W + 2 * pad - ksize + 1
    cols = []
    for dh in range(ksize):
        for dw in range(ksize):
            cols.append(xp[:, dh:dh + Ho, dw:dw + Wo, :])
    cols = jnp.concatenate(cols, axis=-1)          # (N, Ho, Wo, k*k*C)
    return cols.reshape(N * Ho * Wo, ksize * ksize * C), (N, Ho, Wo)


def conv_forward(x, entry, out_dtype):
    cols, (n, ho, wo) = _im2col(x.astype(jnp.bfloat16), entry['ksize'], entry['pad'])
    y = gemm_fused(cols, entry, out_dtype)
    return y.reshape(n, ho, wo, y.shape[-1])       # channels stay lane-padded (Np)


def _avgpool_inv_count(h, w):
    """1 / (number of valid taps) for AvgPool2d(3,1,1,count_include_pad=False)."""
    hh = jnp.arange(h)
    ww = jnp.arange(w)
    ch = (jnp.minimum(hh + 1, h - 1) - jnp.maximum(hh - 1, 0) + 1).astype(jnp.float32)
    cw = (jnp.minimum(ww + 1, w - 1) - jnp.maximum(ww - 1, 0) + 1).astype(jnp.float32)
    return 1.0 / (ch[:, None] * cw[None, :])


def _avgpool3(x):
    """AvgPool2d(3, stride=1, pad=1, count_include_pad=False) in f32 (XLA glue)."""
    n, h, w, _ = x.shape
    xp = jnp.pad(x, ((0, 0), (1, 1), (1, 1), (0, 0)))
    s = jnp.zeros_like(x)
    for dh in range(3):
        for dw in range(3):
            s = s + xp[:, dh:dh + h, dw:dw + w, :]
    return s * _avgpool_inv_count(h, w)[None, :, :, None]


# --------------------------------------------------------------------------
# Deterministic synthetic parameters for Mixed_5b (eval-mode folded BN)
# --------------------------------------------------------------------------
class _KeyGen:
    def __init__(self, key):
        self._key = key
        self._i = 0

    def __call__(self):
        self._i += 1
        return jax.random.fold_in(self._key, self._i)


def _init_basic_conv(kg, cin, cout, ksize):
    w = jax.random.normal(kg(), (cout, cin, ksize, ksize), jnp.float32)
    w = w * (1.0 / math.sqrt(cin * ksize * ksize))
    gamma = 1.0 + 0.1 * jax.random.normal(kg(), (cout,), jnp.float32)
    beta = 0.1 * jax.random.normal(kg(), (cout,), jnp.float32)
    mean = 0.1 * jax.random.normal(kg(), (cout,), jnp.float32)
    var = 0.5 + jax.random.uniform(kg(), (cout,), jnp.float32)
    eps = 1e-3                                     # BatchNorm2d(eps=0.001)
    scale = gamma / jnp.sqrt(var + eps)
    bias = beta - mean * scale
    return w, scale, bias


def _folded_wmat(w, scale, cin_pad=None):
    """(k*k*cin[, padded], cout) GEMM weight with the BN scale folded in (f32)."""
    cout, cin, k, _ = w.shape
    if cin_pad is not None and cin_pad > cin:
        w = jnp.pad(w, ((0, 0), (0, cin_pad - cin), (0, 0), (0, 0)))
        cin = cin_pad
    wm = jnp.transpose(w, (2, 3, 1, 0)).reshape(k * k * cin, cout)
    return wm * scale[None, :]


def _gemm_entry(w_mat, bias, *, ksize, pad):
    """Pre-fold / pre-pad / pre-cast GEMM operands once at init."""
    K, N = w_mat.shape
    _, tn_pref = _tile_prefs()
    Np = _round_up(N, 128)
    tn = min(tn_pref, Np)
    return {
        'w_pad': jnp.pad(w_mat, ((0, 0), (0, Np - N))).astype(jnp.bfloat16),
        'bias_pad': jnp.pad(bias.reshape(1, -1),
                            ((0, 0), (0, Np - N))).astype(jnp.float32),
        'N': N, 'ksize': ksize, 'pad': pad, 'tn': tn,
    }


def init_mixed5b_params(seed=0):
    kg = _KeyGen(jax.random.PRNGKey(seed))
    raw = {
        'c0':  _init_basic_conv(kg, 192, 96, 1),   # branch0
        'c1a': _init_basic_conv(kg, 192, 48, 1),   # branch1[0]
        'c1b': _init_basic_conv(kg, 48, 64, 5),    # branch1[1]
        'c2a': _init_basic_conv(kg, 192, 64, 1),   # branch2[0]
        'c2b': _init_basic_conv(kg, 64, 96, 3),    # branch2[1]
        'c2c': _init_basic_conv(kg, 96, 96, 3),    # branch2[2]
        'c3':  _init_basic_conv(kg, 192, 64, 1),   # branch3[1]
    }
    # Fuse the three 1x1 convs on the shared input along N: [b0 96 | b1 48 | b2 64].
    stem_w = jnp.concatenate([_folded_wmat(raw['c0'][0], raw['c0'][1]),
                              _folded_wmat(raw['c1a'][0], raw['c1a'][1]),
                              _folded_wmat(raw['c2a'][0], raw['c2a'][1])], axis=1)
    stem_b = jnp.concatenate([raw['c0'][2], raw['c1a'][2], raw['c2a'][2]])
    gemm = {
        'stem1x1': _gemm_entry(stem_w, stem_b, ksize=1, pad=0),
        'b1_5x5':  _gemm_entry(_folded_wmat(raw['c1b'][0], raw['c1b'][1]),
                               raw['c1b'][2], ksize=5, pad=2),
        'b2_3x3a': _gemm_entry(_folded_wmat(raw['c2b'][0], raw['c2b'][1]),
                               raw['c2b'][2], ksize=3, pad=1),
        # 3x3b consumes the lane-padded (128ch, zero-padded) output of 3x3a.
        'b2_3x3b': _gemm_entry(_folded_wmat(raw['c2c'][0], raw['c2c'][1], cin_pad=128),
                               raw['c2c'][2], ksize=3, pad=1),
        'b3_1x1':  _gemm_entry(_folded_wmat(raw['c3'][0], raw['c3'][1]),
                               raw['c3'][2], ksize=1, pad=0),
    }
    return {'raw': raw, 'gemm': gemm}


# --------------------------------------------------------------------------
# Full forward (mirrors Mixed_5b.forward), run under a single jax.jit
# --------------------------------------------------------------------------
def mixed5b_forward(params, x_nchw):
    g = params['gemm']
    x = jnp.transpose(x_nchw, (0, 2, 3, 1)).astype(jnp.float32)   # NCHW -> NHWC

    # Fused branch0 / branch1[0] / branch2[0] 1x1 convs (bf16 intermediate).
    y = conv_forward(x, g['stem1x1'], jnp.bfloat16)               # (n,h,w,256)
    x0 = y[..., 0:96]                                             # branch0 output
    x1 = conv_forward(y[..., 96:144], g['b1_5x5'], jnp.float32)[..., :64]
    t2 = conv_forward(y[..., 144:208], g['b2_3x3a'], jnp.bfloat16)  # 128ch, lanes 96: are 0
    x2 = conv_forward(t2, g['b2_3x3b'], jnp.float32)[..., :96]

    # branch3: avg-pool (f32 XLA glue) -> 1x1 conv GEMM.
    x3 = conv_forward(_avgpool3(x), g['b3_1x1'], jnp.float32)[..., :64]

    out = jnp.concatenate([x0.astype(jnp.float32), x1, x2, x3], axis=-1)
    return jnp.transpose(out, (0, 3, 1, 2))                       # back to NCHW


# --------------------------------------------------------------------------
# Plain-JAX reference (f32, Precision.HIGHEST) for validation
# --------------------------------------------------------------------------
def _ref_basic_conv(x_nhwc, w_oihw, scale, bias, pad):
    w_hwio = jnp.transpose(w_oihw, (2, 3, 1, 0))
    out = lax.conv_general_dilated(
        x_nhwc, w_hwio, window_strides=(1, 1), padding=[(pad, pad), (pad, pad)],
        dimension_numbers=('NHWC', 'HWIO', 'NHWC'), precision=lax.Precision.HIGHEST)
    return jnp.maximum(out * scale + bias, 0.0)


def mixed5b_reference(params, x_nchw):
    raw = params['raw']
    x = jnp.transpose(x_nchw, (0, 2, 3, 1)).astype(jnp.float32)

    def bc(t, p, pad):
        return _ref_basic_conv(t, p[0], p[1], p[2], pad)

    x0 = bc(x, raw['c0'], 0)
    x1 = bc(bc(x, raw['c1a'], 0), raw['c1b'], 2)
    x2 = bc(bc(bc(x, raw['c2a'], 0), raw['c2b'], 1), raw['c2c'], 1)
    x3 = bc(_avgpool3(x), raw['c3'], 0)
    out = jnp.concatenate([x0, x1, x2, x3], axis=-1)
    return jnp.transpose(out, (0, 3, 1, 2))


if __name__ == "__main__":
    key = jax.random.PRNGKey(0)
    x = jax.random.normal(key, (2, 192, 16, 16), jnp.float32)     # NCHW like PyTorch
    params = init_mixed5b_params(seed=0)

    fwd = jax.jit(functools.partial(mixed5b_forward, params))
    out = jax.block_until_ready(fwd(x))
    assert out.shape == (2, 320, 16, 16), out.shape
    assert bool(jnp.all(jnp.isfinite(out)))

    ref = mixed5b_reference(params, x)
    out_np, ref_np = np.asarray(out), np.asarray(ref)
    rel_l2 = np.linalg.norm(out_np - ref_np) / max(np.linalg.norm(ref_np), 1e-6)
    assert rel_l2 < 2e-2, rel_l2                      # bf16 GEMM vs f32 reference
    np.testing.assert_allclose(out_np, ref_np, rtol=1e-1, atol=1e-1)

    print("KERNEL_OK")
</pallas_src>

<mosaic_0001>
module attributes {stable_mosaic.version = 11 : i64} {
  func.func @_gemm_bias_relu_kernel(%arg0: i32, %arg1: i32, %arg2: memref<512x192xbf16, #tpu.memory_space<vmem>>, %arg3: memref<192x256xbf16, #tpu.memory_space<vmem>>, %arg4: memref<1x256xf32, #tpu.memory_space<vmem>>, %arg5: memref<512x256xbf16, #tpu.memory_space<vmem>>) attributes {dimension_semantics = [#tpu.dimension_semantics<parallel>, #tpu.dimension_semantics<parallel>], iteration_bounds = array<i64: 1, 1>, scalar_prefetch = 0 : i64, scratch_operands = 0 : i64, tpu.core_type = #tpu.core_type<tc>, window_params = [{transform_indices = @transform_0, window_bounds = array<i64: 512, 192>}, {transform_indices = @transform_1, window_bounds = array<i64: 192, 256>}, {transform_indices = @transform_2, window_bounds = array<i64: 1, 256>}, {transform_indices = @transform_3, window_bounds = array<i64: 512, 256>}]} {
    %c0 = arith.constant 0 : index
    %c0_0 = arith.constant 0 : index
    %0 = vector.load %arg2[%c0, %c0_0] : memref<512x192xbf16, #tpu.memory_space<vmem>>, vector<512x192xbf16>
    %c0_1 = arith.constant 0 : index
    %c0_2 = arith.constant 0 : index
    %1 = vector.load %arg3[%c0_1, %c0_2] : memref<192x256xbf16, #tpu.memory_space<vmem>>, vector<192x256xbf16>
    %cst = arith.constant dense<0.000000e+00> : vector<512x256xf32>
    %2 = tpu.matmul %0, %1, %cst {dimension_numbers = #tpu.dot_dimension_numbers<[1], [0], [0], [1], [0, 0, 1, 1], [], []>} : vector<512x192xbf16>, vector<192x256xbf16>, vector<512x256xf32> -> vector<512x256xf32>
    %c0_3 = arith.constant 0 : index
    %c0_4 = arith.constant 0 : index
    %3 = vector.load %arg4[%c0_3, %c0_4] : memref<1x256xf32, #tpu.memory_space<vmem>>, vector<1x256xf32>
    %4 = vector.broadcast %3 : vector<1x256xf32> to vector<512x256xf32>
    %5 = arith.addf %2, %4 : vector<512x256xf32>
    %cst_5 = arith.constant 0.000000e+00 : f32
    %6 = vector.broadcast %cst_5 : f32 to vector<512x256xf32>
    %7 = arith.maximumf %5, %6 : vector<512x256xf32>
    %8 = arith.truncf %7 : vector<512x256xf32> to vector<512x256xbf16>
    %c0_6 = arith.constant 0 : index
    %c0_7 = arith.constant 0 : index
    %9 = vector.load %arg5[%c0_6, %c0_7] : memref<512x256xbf16, #tpu.memory_space<vmem>>, vector<512x256xbf16>
    tpu.vector_store %arg5[%c0_6, %c0_7], %8 {strides = array<i32>} : memref<512x256xbf16, #tpu.memory_space<vmem>>, vector<512x256xbf16>,
    return
  }
  func.func @transform_0(%arg0: i32, %arg1: i32) -> (i32, i32) {
    %c0_i32 = arith.constant 0 : i32
    %c0_i32_0 = arith.constant 0 : i32
    return %arg0, %c0_i32 : i32, i32
  }
  func.func @transform_1(%arg0: i32, %arg1: i32) -> (i32, i32) {
    %c0_i32 = arith.constant 0 : i32
    %c0_i32_0 = arith.constant 0 : i32
    return %c0_i32, %arg1 : i32, i32
  }
  func.func @transform_2(%arg0: i32, %arg1: i32) -> (i32, i32) {
    %c0_i32 = arith.constant 0 : i32
    %c0_i32_0 = arith.constant 0 : i32
    return %c0_i32, %arg1 : i32, i32
  }
  func.func @transform_3(%arg0: i32, %arg1: i32) -> (i32, i32) {
    %c0_i32 = arith.constant 0 : i32
    return %arg0, %arg1 : i32, i32
  }
}

module attributes {stable_mosaic.version = 11 : i64} {
  func.func @_gemm_bias_relu_kernel(%arg0: i32, %arg1: i32, %arg2: memref<512x1200xbf16, #tpu.memory_space<vmem>>, %arg3: memref<1200x128xbf16, #tpu.memory_space<vmem>>, %arg4: memref<1x128xf32, #tpu.memory_space<vmem>>, %arg5: memref<512x128xf32, #tpu.memory_space<vmem>>) attributes {dimension_semantics = [#tpu.dimension_semantics<parallel>, #tpu.dimension_semantics<parallel>], iteration_bounds = array<i64: 1, 1>, scalar_prefetch = 0 : i64, scratch_operands = 0 : i64, tpu.core_type = #tpu.core_type<tc>, window_params = [{transform_indices = @transform_0, window_bounds = array<i64: 512, 1200>}, {transform_indices = @transform_1, window_bounds = array<i64: 1200, 128>}, {transform_indices = @transform_2, window_bounds = array<i64: 1, 128>}, {transform_indices = @transform_3, window_bounds = array<i64: 512, 128>}]} {
    %c0 = arith.constant 0 : index
    %c0_0 = arith.constant 0 : index
    %0 = vector.load %arg2[%c0, %c0_0] : memref<512x1200xbf16, #tpu.memory_space<vmem>>, vector<512x1200xbf16>
    %c0_1 = arith.constant 0 : index
    %c0_2 = arith.constant 0 : index
    %1 = vector.load %arg3[%c0_1, %c0_2] : memref<1200x128xbf16, #tpu.memory_space<vmem>>, vector<1200x128xbf16>
    %cst = arith.constant dense<0.000000e+00> : vector<512x128xf32>
    %2 = tpu.matmul %0, %1, %cst {dimension_numbers = #tpu.dot_dimension_numbers<[1], [0], [0], [1], [0, 0, 1, 1], [], []>} : vector<512x1200xbf16>, vector<1200x128xbf16>, vector<512x128xf32> -> vector<512x128xf32>
    %c0_3 = arith.constant 0 : index
    %c0_4 = arith.constant 0 : index
    %3 = vector.load %arg4[%c0_3, %c0_4] : memref<1x128xf32, #tpu.memory_space<vmem>>, vector<1x128xf32>
    %4 = vector.broadcast %3 : vector<1x128xf32> to vector<512x128xf32>
    %5 = arith.addf %2, %4 : vector<512x128xf32>
    %cst_5 = arith.constant 0.000000e+00 : f32
    %6 = vector.broadcast %cst_5 : f32 to vector<512x128xf32>
    %7 = arith.maximumf %5, %6 : vector<512x128xf32>
    %c0_6 = arith.constant 0 : index
    %c0_7 = arith.constant 0 : index
    %8 = vector.load %arg5[%c0_6, %c0_7] : memref<512x128xf32, #tpu.memory_space<vmem>>, vector<512x128xf32>
    tpu.vector_store %arg5[%c0_6, %c0_7], %7 {strides = array<i32>} : memref<512x128xf32, #tpu.memory_space<vmem>>, vector<512x128xf32>,
    return
  }
  func.func @transform_0(%arg0: i32, %arg1: i32) -> (i32, i32) {
    %c0_i32 = arith.constant 0 : i32
    %c0_i32_0 = arith.constant 0 : i32
    return %arg0, %c0_i32 : i32, i32
  }
  func.func @transform_1(%arg0: i32, %arg1: i32) -> (i32, i32) {
    %c0_i32 = arith.constant 0 : i32
    %c0_i32_0 = arith.constant 0 : i32
    return %c0_i32, %arg1 : i32, i32
  }
  func.func @transform_2(%arg0: i32, %arg1: i32) -> (i32, i32) {
    %c0_i32 = arith.constant 0 : i32
    %c0_i32_0 = arith.constant 0 : i32
    return %c0_i32, %arg1 : i32, i32
  }
  func.func @transform_3(%arg0: i32, %arg1: i32) -> (i32, i32) {
    %c0_i32 = arith.constant 0 : i32
    return %arg0, %arg1 : i32, i32
  }
}

module attributes {stable_mosaic.version = 11 : i64} {
  func.func @_gemm_bias_relu_kernel(%arg0: i32, %arg1: i32, %arg2: memref<512x576xbf16, #tpu.memory_space<vmem>>, %arg3: memref<576x128xbf16, #tpu.memory_space<vmem>>, %arg4: memref<1x128xf32, #tpu.memory_space<vmem>>, %arg5: memref<512x128xbf16, #tpu.memory_space<vmem>>) attributes {dimension_semantics = [#tpu.dimension_semantics<parallel>, #tpu.dimension_semantics<parallel>], iteration_bounds = array<i64: 1, 1>, scalar_prefetch = 0 : i64, scratch_operands = 0 : i64, tpu.core_type = #tpu.core_type<tc>, window_params = [{transform_indices = @transform_0, window_bounds = array<i64: 512, 576>}, {transform_indices = @transform_1, window_bounds = array<i64: 576, 128>}, {transform_indices = @transform_2, window_bounds = array<i64: 1, 128>}, {transform_indices = @transform_3, window_bounds = array<i64: 512, 128>}]} {
    %c0 = arith.constant 0 : index
    %c0_0 = arith.constant 0 : index
    %0 = vector.load %arg2[%c0, %c0_0] : memref<512x576xbf16, #tpu.memory_space<vmem>>, vector<512x576xbf16>
    %c0_1 = arith.constant 0 : index
    %c0_2 = arith.constant 0 : index
    %1 = vector.load %arg3[%c0_1, %c0_2] : memref<576x128xbf16, #tpu.memory_space<vmem>>, vector<576x128xbf16>
    %cst = arith.constant dense<0.000000e+00> : vector<512x128xf32>
    %2 = tpu.matmul %0, %1, %cst {dimension_numbers = #tpu.dot_dimension_numbers<[1], [0], [0], [1], [0, 0, 1, 1], [], []>} : vector<512x576xbf16>, vector<576x128xbf16>, vector<512x128xf32> -> vector<512x128xf32>
    %c0_3 = arith.constant 0 : index
    %c0_4 = arith.constant 0 : index
    %3 = vector.load %arg4[%c0_3, %c0_4] : memref<1x128xf32, #tpu.memory_space<vmem>>, vector<1x128xf32>
    %4 = vector.broadcast %3 : vector<1x128xf32> to vector<512x128xf32>
    %5 = arith.addf %2, %4 : vector<512x128xf32>
    %cst_5 = arith.constant 0.000000e+00 : f32
    %6 = vector.broadcast %cst_5 : f32 to vector<512x128xf32>
    %7 = arith.maximumf %5, %6 : vector<512x128xf32>
    %8 = arith.truncf %7 : vector<512x128xf32> to vector<512x128xbf16>
    %c0_6 = arith.constant 0 : index
    %c0_7 = arith.constant 0 : index
    %9 = vector.load %arg5[%c0_6, %c0_7] : memref<512x128xbf16, #tpu.memory_space<vmem>>, vector<512x128xbf16>
    tpu.vector_store %arg5[%c0_6, %c0_7], %8 {strides = array<i32>} : memref<512x128xbf16, #tpu.memory_space<vmem>>, vector<512x128xbf16>,
    return
  }
  func.func @transform_0(%arg0: i32, %arg1: i32) -> (i32, i32) {
    %c0_i32 = arith.constant 0 : i32
    %c0_i32_0 = arith.constant 0 : i32
    return %arg0, %c0_i32 : i32, i32
  }
  func.func @transform_1(%arg0: i32, %arg1: i32) -> (i32, i32) {
    %c0_i32 = arith.constant 0 : i32
    %c0_i32_0 = arith.constant 0 : i32
    return %c0_i32, %arg1 : i32, i32
  }
  func.func @transform_2(%arg0: i32, %arg1: i32) -> (i32, i32) {
    %c0_i32 = arith.constant 0 : i32
    %c0_i32_0 = arith.constant 0 : i32
    return %c0_i32, %arg1 : i32, i32
  }
  func.func @transform_3(%arg0: i32, %arg1: i32) -> (i32, i32) {
    %c0_i32 = arith.constant 0 : i32
    return %arg0, %arg1 : i32, i32
  }
}

module attributes {stable_mosaic.version = 11 : i64} {
  func.func @_gemm_bias_relu_kernel(%arg0: i32, %arg1: i32, %arg2: memref<512x1152xbf16, #tpu.memory_space<vmem>>, %arg3: memref<1152x128xbf16, #tpu.memory_space<vmem>>, %arg4: memref<1x128xf32, #tpu.memory_space<vmem>>, %arg5: memref<512x128xf32, #tpu.memory_space<vmem>>) attributes {dimension_semantics = [#tpu.dimension_semantics<parallel>, #tpu.dimension_semantics<parallel>], iteration_bounds = array<i64: 1, 1>, scalar_prefetch = 0 : i64, scratch_operands = 0 : i64, tpu.core_type = #tpu.core_type<tc>, window_params = [{transform_indices = @transform_0, window_bounds = array<i64: 512, 1152>}, {transform_indices = @transform_1, window_bounds = array<i64: 1152, 128>}, {transform_indices = @transform_2, window_bounds = array<i64: 1, 128>}, {transform_indices = @transform_3, window_bounds = array<i64: 512, 128>}]} {
    %c0 = arith.constant 0 : index
    %c0_0 = arith.constant 0 : index
    %0 = vector.load %arg2[%c0, %c0_0] : memref<512x1152xbf16, #tpu.memory_space<vmem>>, vector<512x1152xbf16>
    %c0_1 = arith.constant 0 : index
    %c0_2 = arith.constant 0 : index
    %1 = vector.load %arg3[%c0_1, %c0_2] : memref<1152x128xbf16, #tpu.memory_space<vmem>>, vector<1152x128xbf16>
    %cst = arith.constant dense<0.000000e+00> : vector<512x128xf32>
    %2 = tpu.matmul %0, %1, %cst {dimension_numbers = #tpu.dot_dimension_numbers<[1], [0], [0], [1], [0, 0, 1, 1], [], []>} : vector<512x1152xbf16>, vector<1152x128xbf16>, vector<512x128xf32> -> vector<512x128xf32>
    %c0_3 = arith.constant 0 : index
    %c0_4 = arith.constant 0 : index
    %3 = vector.load %arg4[%c0_3, %c0_4] : memref<1x128xf32, #tpu.memory_space<vmem>>, vector<1x128xf32>
    %4 = vector.broadcast %3 : vector<1x128xf32> to vector<512x128xf32>
    %5 = arith.addf %2, %4 : vector<512x128xf32>
    %cst_5 = arith.constant 0.000000e+00 : f32
    %6 = vector.broadcast %cst_5 : f32 to vector<512x128xf32>
    %7 = arith.maximumf %5, %6 : vector<512x128xf32>
    %c0_6 = arith.constant 0 : index
    %c0_7 = arith.constant 0 : index
    %8 = vector.load %arg5[%c0_6, %c0_7] : memref<512x128xf32, #tpu.memory_space<vmem>>, vector<512x128xf32>
    tpu.vector_store %arg5[%c0_6, %c0_7], %7 {strides = array<i32>} : memref<512x128xf32, #tpu.memory_space<vmem>>, vector<512x128xf32>,
    return
  }
  func.func @transform_0(%arg0: i32, %arg1: i32) -> (i32, i32) {
    %c0_i32 = arith.constant 0 : i32
    %c0_i32_0 = arith.constant 0 : i32
    return %arg0, %c0_i32 : i32, i32
  }
  func.func @transform_1(%arg0: i32, %arg1: i32) -> (i32, i32) {
    %c0_i32 = arith.constant 0 : i32
    %c0_i32_0 = arith.constant 0 : i32
    return %c0_i32, %arg1 : i32, i32
  }
  func.func @transform_2(%arg0: i32, %arg1: i32) -> (i32, i32) {
    %c0_i32 = arith.constant 0 : i32
    %c0_i32_0 = arith.constant 0 : i32
    return %c0_i32, %arg1 : i32, i32
  }
  func.func @transform_3(%arg0: i32, %arg1: i32) -> (i32, i32) {
    %c0_i32 = arith.constant 0 : i32
    return %arg0, %arg1 : i32, i32
  }
}

module attributes {stable_mosaic.version = 11 : i64} {
  func.func @_gemm_bias_relu_kernel(%arg0: i32, %arg1: i32, %arg2: memref<512x192xbf16, #tpu.memory_space<vmem>>, %arg3: memref<192x128xbf16, #tpu.memory_space<vmem>>, %arg4: memref<1x128xf32, #tpu.memory_space<vmem>>, %arg5: memref<512x128xf32, #tpu.memory_space<vmem>>) attributes {dimension_semantics = [#tpu.dimension_semantics<parallel>, #tpu.dimension_semantics<parallel>], iteration_bounds = array<i64: 1, 1>, scalar_prefetch = 0 : i64, scratch_operands = 0 : i64, tpu.core_type = #tpu.core_type<tc>, window_params = [{transform_indices = @transform_0, window_bounds = array<i64: 512, 192>}, {transform_indices = @transform_1, window_bounds = array<i64: 192, 128>}, {transform_indices = @transform_2, window_bounds = array<i64: 1, 128>}, {transform_indices = @transform_3, window_bounds = array<i64: 512, 128>}]} {
    %c0 = arith.constant 0 : index
    %c0_0 = arith.constant 0 : index
    %0 = vector.load %arg2[%c0, %c0_0] : memref<512x192xbf16, #tpu.memory_space<vmem>>, vector<512x192xbf16>
    %c0_1 = arith.constant 0 : index
    %c0_2 = arith.constant 0 : index
    %1 = vector.load %arg3[%c0_1, %c0_2] : memref<192x128xbf16, #tpu.memory_space<vmem>>, vector<192x128xbf16>
    %cst = arith.constant dense<0.000000e+00> : vector<512x128xf32>
    %2 = tpu.matmul %0, %1, %cst {dimension_numbers = #tpu.dot_dimension_numbers<[1], [0], [0], [1], [0, 0, 1, 1], [], []>} : vector<512x192xbf16>, vector<192x128xbf16>, vector<512x128xf32> -> vector<512x128xf32>
    %c0_3 = arith.constant 0 : index
    %c0_4 = arith.constant 0 : index
    %3 = vector.load %arg4[%c0_3, %c0_4] : memref<1x128xf32, #tpu.memory_space<vmem>>, vector<1x128xf32>
    %4 = vector.broadcast %3 : vector<1x128xf32> to vector<512x128xf32>
    %5 = arith.addf %2, %4 : vector<512x128xf32>
    %cst_5 = arith.constant 0.000000e+00 : f32
    %6 = vector.broadcast %cst_5 : f32 to vector<512x128xf32>
    %7 = arith.maximumf %5, %6 : vector<512x128xf32>
    %c0_6 = arith.constant 0 : index
    %c0_7 = arith.constant 0 : index
    %8 = vector.load %arg5[%c0_6, %c0_7] : memref<512x128xf32, #tpu.memory_space<vmem>>, vector<512x128xf32>
    tpu.vector_store %arg5[%c0_6, %c0_7], %7 {strides = array<i32>} : memref<512x128xf32, #tpu.memory_space<vmem>>, vector<512x128xf32>,
    return
  }
  func.func @transform_0(%arg0: i32, %arg1: i32) -> (i32, i32) {
    %c0_i32 = arith.constant 0 : i32
    %c0_i32_0 = arith.constant 0 : i32
    return %arg0, %c0_i32 : i32, i32
  }
  func.func @transform_1(%arg0: i32, %arg1: i32) -> (i32, i32) {
    %c0_i32 = arith.constant 0 : i32
    %c0_i32_0 = arith.constant 0 : i32
    return %c0_i32, %arg1 : i32, i32
  }
  func.func @transform_2(%arg0: i32, %arg1: i32) -> (i32, i32) {
    %c0_i32 = arith.constant 0 : i32
    %c0_i32_0 = arith.constant 0 : i32
    return %c0_i32, %arg1 : i32, i32
  }
  func.func @transform_3(%arg0: i32, %arg1: i32) -> (i32, i32) {
    %c0_i32 = arith.constant 0 : i32
    return %arg0, %arg1 : i32, i32
  }
}

</mosaic_0001>

<bundles_post_ra>
// kernel: mixed5b_forward.5
= control target key start
LH: loop header
LB: loop body
LE: loop exit
PB: predicated region body
PF: predicated region fallthrough
CT: control target
= control target key end

     0   :  { %8 = vsyncpa [#allocation3], 0  ;;  %s1995_s12 = smov [#allocation2]   ;;  %s2648_s0 = inlined_call_operand.vmem [shape: bf16[512,192], index: 0, kind: input, shape index: {}]   ;;  %s2649_s1 = inlined_call_operand.vmem [shape: bf16[192,256], index: 1, kind: input, shape index: {}]   ;;  %s2650_s2 = inlined_call_operand.hbm [shape: f32[1,256], index: 2, kind: input, shape index: {}]   ;;  %s2651_s3 = inlined_call_operand.vmem [shape: bf16[512,256], index: 3, kind: output, shape index: {}]  }
   0x1   :  { %s19_s13 = sshll.u32 %s1995_s12, 4  ;;  %s1971_s16 = scalar_lea.hbm %s2650_s2, 32  ;;  %s20_s13 = int_to_ptr.vmem [resolvable:$true] %s19_s13 }
   0x2   :  { %p1972_p0 = scmp.ne.s32.totalorder %s2650_s2, %s1971_s16  ;;  %p1975_p1 = scmp.lt.u32.totalorder %s1971_s16, %s2650_s2 }
   0x4   :  { %p1977_p2 = pnand %p1975_p1, %p1972_p0 }
   0x6   :  { %1980 = shalt.err (!%p1977_p2)
}
   0x7   :  { %s1981_s21 = scalar_lea.vmem %s20_s13, 32  ;;  %p1986_p4 = scmp.lt.s32.totalorder %s20_s13, %s20_s13 }
   0x8   :  { %p1982_p3 = scmp.ne.s32.totalorder %s20_s13, %s1981_s21  ;;  %p1987_p5 = scmp.lt.s32.totalorder %s1981_s21, %s1981_s21 }
   0xa   :  { %p1988_p6 = por %p1987_p5, %p1986_p4 }
   0xc   :  { %p1989_p7 = pnand %p1988_p6, %p1982_p3 }
   0xe   :  { %1992 = shalt.err (!%p1989_p7)
}
   0xf   :  { %22 = dma.hbm_to_vmem [thread:$0]  %s2650_s2, 32, %s20_s13, [#allocation3]  }
  0x10   :  { %1993 = dma.done.wait [#allocation3], 32  }
  0x11   :  { %1994 = vsyncadd [#allocation3], 4294967264  ;;  %v1839_v0 = vld [vmem:[%s2649_s1 + $0x4] ss:$8 sps:$4 sm:$0xff]   ;;  %v1841_v1 = vld [vmem:[%s2649_s1] ss:$8 sps:$4 sm:$0xff]  }
  0x12   :  { %632 = vmatprep.subr.bf16.mxu0 %v1839_v0  ;;  %1814 = vmatprep.subr.bf16.mxu1 %v1839_v0  ;;  %v1842_v2 = vld [vmem:[%s2649_s1 + $0x14] ss:$8 sps:$4 sm:$0xff]   ;;  %v1844_v3 = vld [vmem:[%s2649_s1 + $0x10] ss:$8 sps:$4 sm:$0xff]   ;;  %v1845_v4 = vld [vmem:[%s2649_s1 + $0x24] ss:$8 sps:$4 sm:$0xff]  }
  0x13   :  { %633 = vmatpush1.bf16.msra.mxu0 %v1841_v1  ;;  %1826 = vmatpush1.bf16.msra.mxu1 %v1841_v1  ;;  %v1847_v5 = vld [vmem:[%s2649_s1 + $0x20] ss:$8 sps:$4 sm:$0xff]   ;;  %v1848_v6 = vld [vmem:[%s2649_s1 + $0x34] ss:$8 sps:$4 sm:$0xff]   ;;  %v1850_v7 = vld [vmem:[%s2649_s1 + $0x30] ss:$8 sps:$4 sm:$0xff]  }
  0x14   :  { %634 = vmatprep.subr.bf16.mxu0 %v1842_v2  ;;  %1815 = vmatprep.subr.bf16.mxu1 %v1842_v2  ;;  %v1851_v8 = vld [vmem:[%s2649_s1 + $0x44] ss:$8 sps:$4 sm:$0xff]   ;;  %v1853_v9 = vld [vmem:[%s2649_s1 + $0x40] ss:$8 sps:$4 sm:$0xff]   ;;  %v1854_v10 = vld [vmem:[%s2649_s1 + $0x54] ss:$8 sps:$4 sm:$0xff]  }
  0x15   :  { %v1877_v11 = vld [vmem:[%s2648_s0 + $0x4] ss:$8 sps:$4 sm:$0xff]   ;;  %vm535_vm0 = vcmask 523264   ;;  %v1856_v13 = vld [vmem:[%s2649_s1 + $0x50] ss:$8 sps:$4 sm:$0xff]  }
  0x16   :  { %v1880_v12 = vld [vmem:[%s2648_s0 + $0x104] ss:$8 sps:$4 sm:$0xff]   ;;  %1654 = vmatprep.mubr.msk.bf16.mxu0 %vm535_vm0, %v1877_v11  ;;  %v1859_v15 = vld [vmem:[%s2649_s1 + $0x60] ss:$8 sps:$4 sm:$0xff]   ;;  %v1860_v16 = vld [vmem:[%s2649_s1 + $0x74] ss:$8 sps:$4 sm:$0xff]  }
  0x17   :  { %635 = vmatpush1.bf16.msra.mxu0 %v1844_v3  ;;  %1827 = vmatpush1.bf16.msra.mxu1 %v1844_v3  ;;  %v1857_v14 = vld [vmem:[%s2649_s1 + $0x64] ss:$8 sps:$4 sm:$0xff]   ;;  %v1862_v17 = vld [vmem:[%s2649_s1 + $0x70] ss:$8 sps:$4 sm:$0xff]   ;;  %v1865_v19 = vld [vmem:[%s2649_s1 + $0x80] ss:$8 sps:$4 sm:$0xff]  }
  0x18   :  { %636 = vmatprep.subr.bf16.mxu0 %v1845_v4  ;;  %1816 = vmatprep.subr.bf16.mxu1 %v1845_v4  ;;  %v1863_v18 = vld [vmem:[%s2649_s1 + $0x84] ss:$8 sps:$4 sm:$0xff]   ;;  %v1866_v20 = vld [vmem:[%s2649_s1 + $0x94] ss:$8 sps:$4 sm:$0xff]   ;;  %v1868_v21 = vld [vmem:[%s2649_s1 + $0x90] ss:$8 sps:$4 sm:$0xff]  }
  0x19   :  { %1670 = vmatprep.mubr.msk.bf16.mxu1 %vm535_vm0, %v1880_v12  ;;  %v1869_v22 = vld [vmem:[%s2649_s1 + $0xa4] ss:$8 sps:$4 sm:$0xff]   ;;  %v1871_v23 = vld [vmem:[%s2649_s1 + $0xa0] ss:$8 sps:$4 sm:$0xff]   ;;  %v1872_v24 = vld [vmem:[%s2649_s1 + $0xb4] ss:$8 sps:$4 sm:$0xff]  }
  0x1a   :  { %v1874_v25 = vld [vmem:[%s2649_s1 + $0xb0] ss:$8 sps:$4 sm:$0xff]   ;;  %v1875_v26 = vld [vmem:[%s2648_s0] ss:$8 sps:$4 sm:$0xff]   ;;  %v1881_v28 = vld [vmem:[%s2648_s0 + $0x14] ss:$8 sps:$4 sm:$0xff]  }
  0x1b   :  { %637 = vmatpush1.bf16.msra.mxu0 %v1847_v5  ;;  %1828 = vmatpush1.bf16.msra.mxu1 %v1847_v5  ;;  %v1878_v27 = vld [vmem:[%s2648_s0 + $0x100] ss:$8 sps:$4 sm:$0xff]   ;;  %v1883_v29 = vld [vmem:[%s2648_s0 + $0x114] ss:$8 sps:$4 sm:$0xff]   ;;  %v1885_v30 = vld [vmem:[%s2648_s0 + $0x10] ss:$8 sps:$4 sm:$0xff]  }
  0x1c   :  { %638 = vmatprep.subr.bf16.mxu0 %v1848_v6  ;;  %1817 = vmatprep.subr.bf16.mxu1 %v1848_v6  ;;  %v1886_v31 = vld [vmem:[%s2648_s0 + $0x110] ss:$8 sps:$4 sm:$0xff]   ;;  %v1887_v32 = vld [vmem:[%s2648_s0 + $0x24] ss:$8 sps:$4 sm:$0xff]   ;;  %v1891_v34 = vld [vmem:[%s2648_s0 + $0x20] ss:$8 sps:$4 sm:$0xff]  }
  0x1d   :  { %v1889_v33 = vld [vmem:[%s2648_s0 + $0x124] ss:$8 sps:$4 sm:$0xff]   ;;  %v1892_v35 = vld [vmem:[%s2648_s0 + $0x120] ss:$8 sps:$4 sm:$0xff]   ;;  %v1893_v36 = vld [vmem:[%s2648_s0 + $0x34] ss:$8 sps:$4 sm:$0xff]  }
  0x1e   :  { %v1895_v37 = vld [vmem:[%s2648_s0 + $0x134] ss:$8 sps:$4 sm:$0xff]   ;;  %v1897_v38 = vld [vmem:[%s2648_s0 + $0x30] ss:$8 sps:$4 sm:$0xff]   ;;  %v1899_v40 = vld [vmem:[%s2648_s0 + $0x44] ss:$8 sps:$4 sm:$0xff]  }
  0x1f   :  { %639 = vmatpush1.bf16.msra.mxu0 %v1850_v7  ;;  %1829 = vmatpush1.bf16.msra.mxu1 %v1850_v7  ;;  %v1898_v39 = vld [vmem:[%s2648_s0 + $0x130] ss:$8 sps:$4 sm:$0xff]   ;;  %v1901_v41 = vld [vmem:[%s2648_s0 + $0x144] ss:$8 sps:$4 sm:$0xff]   ;;  %v1903_v42 = vld [vmem:[%s2648_s0 + $0x40] ss:$8 sps:$4 sm:$0xff]  }
  0x20   :  { %640 = vmatprep.subr.bf16.mxu0 %v1851_v8  ;;  %1818 = vmatprep.subr.bf16.mxu1 %v1851_v8  ;;  %v1904_v43 = vld [vmem:[%s2648_s0 + $0x140] ss:$8 sps:$4 sm:$0xff]   ;;  %v1905_v44 = vld [vmem:[%s2648_s0 + $0x54] ss:$8 sps:$4 sm:$0xff]   ;;  %v1909_v46 = vld [vmem:[%s2648_s0 + $0x50] ss:$8 sps:$4 sm:$0xff]  }
  0x21   :  { %v1907_v45 = vld [vmem:[%s2648_s0 + $0x154] ss:$8 sps:$4 sm:$0xff]   ;;  %v1910_v47 = vld [vmem:[%s2648_s0 + $0x150] ss:$8 sps:$4 sm:$0xff]   ;;  %v1911_v48 = vld [vmem:[%s2648_s0 + $0x64] ss:$8 sps:$4 sm:$0xff]  }
  0x22   :  { %v1913_v49 = vld [vmem:[%s2648_s0 + $0x164] ss:$8 sps:$4 sm:$0xff]   ;;  %v1915_v50 = vld [vmem:[%s2648_s0 + $0x60] ss:$8 sps:$4 sm:$0xff]   ;;  %v1917_v52 = vld [vmem:[%s2648_s0 + $0x74] ss:$8 sps:$4 sm:$0xff]  }
  0x23   :  { %641 = vmatpush1.bf16.msra.mxu0 %v1853_v9  ;;  %1830 = vmatpush1.bf16.msra.mxu1 %v1853_v9  ;;  %v1916_v51 = vld [vmem:[%s2648_s0 + $0x160] ss:$8 sps:$4 sm:$0xff]   ;;  %v1919_v53 = vld [vmem:[%s2648_s0 + $0x174] ss:$8 sps:$4 sm:$0xff]   ;;  %v1921_v54 = vld [vmem:[%s2648_s0 + $0x70] ss:$8 sps:$4 sm:$0xff]  }
  0x24   :  { %642 = vmatprep.subr.bf16.mxu0 %v1854_v10  ;;  %1819 = vmatprep.subr.bf16.mxu1 %v1854_v10  ;;  %v1922_v55 = vld [vmem:[%s2648_s0 + $0x170] ss:$8 sps:$4 sm:$0xff]   ;;  %v1923_v56 = vld [vmem:[%s2648_s0 + $0x84] ss:$8 sps:$4 sm:$0xff]   ;;  %v1927_v58 = vld [vmem:[%s2648_s0 + $0x80] ss:$8 sps:$4 sm:$0xff]  }
  0x25   :  { %v1925_v57 = vld [vmem:[%s2648_s0 + $0x184] ss:$8 sps:$4 sm:$0xff]   ;;  %v1928_v59 = vld [vmem:[%s2648_s0 + $0x180] ss:$8 sps:$4 sm:$0xff]   ;;  %v1929_v60 = vld [vmem:[%s2648_s0 + $0x94] ss:$8 sps:$4 sm:$0xff]  }
  0x26   :  { %v1931_v61 = vld [vmem:[%s2648_s0 + $0x194] ss:$8 sps:$4 sm:$0xff]   ;;  %v1933_v62 = vld [vmem:[%s2648_s0 + $0x90] ss:$8 sps:$4 sm:$0xff]   ;;  %v1935_v0 = vld [vmem:[%s2648_s0 + $0xa4] ss:$8 sps:$4 sm:$0xff]  }
  0x27   :  { %643 = vmatpush1.bf16.msra.mxu0 %v1856_v13  ;;  %1831 = vmatpush1.bf16.msra.mxu1 %v1856_v13  ;;  %v1934_v63 = vld [vmem:[%s2648_s0 + $0x190] ss:$8 sps:$4 sm:$0xff]   ;;  %v1937_v1 = vld [vmem:[%s2648_s0 + $0x1a4] ss:$8 sps:$4 sm:$0xff]   ;;  %v1939_v2 = vld [vmem:[%s2648_s0 + $0xa0] ss:$8 sps:$4 sm:$0xff]  }
  0x28   :  { %644 = vmatprep.subr.bf16.mxu0 %v1857_v14  ;;  %1820 = vmatprep.subr.bf16.mxu1 %v1857_v14  ;;  %v1940_v3 = vld [vmem:[%s2648_s0 + $0x1a0] ss:$8 sps:$4 sm:$0xff]   ;;  %v1941_v4 = vld [vmem:[%s2648_s0 + $0xb4] ss:$8 sps:$4 sm:$0xff]   ;;  %v1945_v6 = vld [vmem:[%s2648_s0 + $0xb0] ss:$8 sps:$4 sm:$0xff]  }
  0x29   :  { %v1943_v5 = vld [vmem:[%s2648_s0 + $0x1b4] ss:$8 sps:$4 sm:$0xff]   ;;  %v1946_v7 = vld [vmem:[%s2648_s0 + $0x1b0] ss:$8 sps:$4 sm:$0xff]   ;;  %v1947_v8 = vld [vmem:[%s2648_s0 + $0xc4] ss:$8 sps:$4 sm:$0xff]  }
  0x2a   :  { %v1949_v9 = vld [vmem:[%s2648_s0 + $0x1c4] ss:$8 sps:$4 sm:$0xff]   ;;  %v1951_v10 = vld [vmem:[%s2648_s0 + $0xc0] ss:$8 sps:$4 sm:$0xff]   ;;  %v1953_v12 = vld [vmem:[%s2648_s0 + $0xd4] ss:$8 sps:$4 sm:$0xff]  }
  0x2b   :  { %645 = vmatpush1.bf16.msra.mxu0 %v1859_v15  ;;  %1832 = vmatpush1.bf16.msra.mxu1 %v1859_v15  ;;  %v1952_v11 = vld [vmem:[%s2648_s0 + $0x1c0] ss:$8 sps:$4 sm:$0xff]   ;;  %v1955_v13 = vld [vmem:[%s2648_s0 + $0x1d4] ss:$8 sps:$4 sm:$0xff]   ;;  %v1957_v14 = vld [vmem:[%s2648_s0 + $0xd0] ss:$8 sps:$4 sm:$0xff]  }
  0x2c   :  { %646 = vmatprep.subr.bf16.mxu0 %v1860_v16  ;;  %1821 = vmatprep.subr.bf16.mxu1 %v1860_v16  ;;  %v1958_v15 = vld [vmem:[%s2648_s0 + $0x1d0] ss:$8 sps:$4 sm:$0xff]   ;;  %v1959_v16 = vld [vmem:[%s2648_s0 + $0xe4] ss:$8 sps:$4 sm:$0xff]  }
  0x2f   :  { %647 = vmatpush1.bf16.msra.mxu0 %v1862_v17  ;;  %1833 = vmatpush1.bf16.msra.mxu1 %v1862_v17  ;;  %v1961_v17 = vld [vmem:[%s2648_s0 + $0x1e4] ss:$8 sps:$4 sm:$0xff]  }
  0x30   :  { %648 = vmatprep.subr.bf16.mxu0 %v1863_v18  ;;  %1822 = vmatprep.subr.bf16.mxu1 %v1863_v18  ;;  %v1963_v18 = vld [vmem:[%s2648_s0 + $0xe0] ss:$8 sps:$4 sm:$0xff]  }
  0x33   :  { %649 = vmatpush1.bf16.msra.mxu0 %v1865_v19  ;;  %1834 = vmatpush1.bf16.msra.mxu1 %v1865_v19  ;;  %v1964_v19 = vld [vmem:[%s2648_s0 + $0x1e0] ss:$8 sps:$4 sm:$0xff]  }
  0x34   :  { %650 = vmatprep.subr.bf16.mxu0 %v1866_v20  ;;  %1823 = vmatprep.subr.bf16.mxu1 %v1866_v20  ;;  %v1965_v20 = vld [vmem:[%s2648_s0 + $0xf4] ss:$8 sps:$4 sm:$0xff]  }
  0x37   :  { %651 = vmatpush1.bf16.msra.mxu0 %v1868_v21  ;;  %1835 = vmatpush1.bf16.msra.mxu1 %v1868_v21  ;;  %v1967_v21 = vld [vmem:[%s2648_s0 + $0x1f4] ss:$8 sps:$4 sm:$0xff]  }
  0x38   :  { %652 = vmatprep.subr.bf16.mxu0 %v1869_v22  ;;  %1824 = vmatprep.subr.bf16.mxu1 %v1869_v22  ;;  %v1969_v22 = vld [vmem:[%s2648_s0 + $0xf0] ss:$8 sps:$4 sm:$0xff]  }
  0x3b   :  { %653 = vmatpush1.bf16.msra.mxu0 %v1871_v23  ;;  %1836 = vmatpush1.bf16.msra.mxu1 %v1871_v23  ;;  %v1970_v23 = vld [vmem:[%s2648_s0 + $0x1f0] ss:$8 sps:$4 sm:$0xff]  }
  0x3c   :  { %654 = vmatprep.subr.bf16.mxu0 %v1872_v24  ;;  %1825 = vmatprep.subr.bf16.mxu1 %v1872_v24  ;;  %v117_v24 = vlaneseq }
  0x3f   :  { %655 = vmatpush1.bf16.msra.mxu0 %v1874_v25  ;;  %1837 = vmatpush1.bf16.msra.mxu1 %v1874_v25  ;;  %v118_v25 = vshrl.u32 %v117_v24, 7 }
  0x42   :  { %665 = vmatmul.mubr.bf16.vlgmr.msra.gmra.mrb[0].mxu0 %v1875_v26  ;;  %825 = vmatmul.mubr.bf16.vlgmr.msra.gmra.mrb[0].mxu1 %v1878_v27  ;;  %v119_v26 = vsub.s32 0, %v118_v25  ;;  %v115_v27 = vld [vmem:[#allocation2] sm:$0x3] }
  0x43   :  { %1655 = vmatprep.mubr.msk.bf16.mxu0 %vm535_vm0, %v1881_v28  ;;  %1671 = vmatprep.mubr.msk.bf16.mxu1 %vm535_vm0, %v1883_v29  ;;  %v123_v28 = vsub.s32 1, %v118_v25 }
  0x44   :  { %v2324_v29 = vrot.slane %v115_v27, %v119_v26 }
  0x4a   :  { %675 = vmatmul.mubr.bf16.gmra.mrb[4].mxu0 %v1885_v30  ;;  %835 = vmatmul.mubr.bf16.gmra.mrb[4].mxu1 %v1886_v31  ;;  %v2326_v30 = vrot.slane %v115_v27, %v123_v28 }
  0x4b   :  { %1656 = vmatprep.mubr.msk.bf16.mxu0 %vm535_vm0, %v1887_v32  ;;  %1672 = vmatprep.mubr.msk.bf16.mxu1 %vm535_vm0, %v1889_v33 }
  0x52   :  { %685 = vmatmul.mubr.bf16.gmra.mrb[8].mxu0 %v1891_v34  ;;  %845 = vmatmul.mubr.bf16.gmra.mrb[8].mxu1 %v1892_v35 }
  0x53   :  { %1657 = vmatprep.mubr.msk.bf16.mxu0 %vm535_vm0, %v1893_v36  ;;  %1673 = vmatprep.mubr.msk.bf16.mxu1 %vm535_vm0, %v1895_v37 }
  0x5a   :  { %695 = vmatmul.mubr.bf16.gmra.mrb[12].mxu0 %v1897_v38  ;;  %855 = vmatmul.mubr.bf16.gmra.mrb[12].mxu1 %v1898_v39 }
  0x5b   :  { %1658 = vmatprep.mubr.msk.bf16.mxu0 %vm535_vm0, %v1899_v40  ;;  %1674 = vmatprep.mubr.msk.bf16.mxu1 %vm535_vm0, %v1901_v41 }
  0x62   :  { %705 = vmatmul.mubr.bf16.gmra.mrb[16].mxu0 %v1903_v42  ;;  %865 = vmatmul.mubr.bf16.gmra.mrb[16].mxu1 %v1904_v43 }
  0x63   :  { %1659 = vmatprep.mubr.msk.bf16.mxu0 %vm535_vm0, %v1905_v44  ;;  %1675 = vmatprep.mubr.msk.bf16.mxu1 %vm535_vm0, %v1907_v45 }
  0x6a   :  { %715 = vmatmul.mubr.bf16.gmra.mrb[20].mxu0 %v1909_v46  ;;  %875 = vmatmul.mubr.bf16.gmra.mrb[20].mxu1 %v1910_v47 }
  0x6b   :  { %1660 = vmatprep.mubr.msk.bf16.mxu0 %vm535_vm0, %v1911_v48  ;;  %1676 = vmatprep.mubr.msk.bf16.mxu1 %vm535_vm0, %v1913_v49 }
  0x72   :  { %725 = vmatmul.mubr.bf16.gmra.mrb[24].mxu0 %v1915_v50  ;;  %885 = vmatmul.mubr.bf16.gmra.mrb[24].mxu1 %v1916_v51 }
  0x73   :  { %1661 = vmatprep.mubr.msk.bf16.mxu0 %vm535_vm0, %v1917_v52  ;;  %1677 = vmatprep.mubr.msk.bf16.mxu1 %vm535_vm0, %v1919_v53 }
  0x7a   :  { %735 = vmatmul.mubr.bf16.gmra.mrb[28].mxu0 %v1921_v54  ;;  %895 = vmatmul.mubr.bf16.gmra.mrb[28].mxu1 %v1922_v55 }
  0x7b   :  { %1662 = vmatprep.mubr.msk.bf16.mxu0 %vm535_vm0, %v1923_v56  ;;  %1678 = vmatprep.mubr.msk.bf16.mxu1 %vm535_vm0, %v1925_v57 }
  0x82   :  { %745 = vmatmul.mubr.bf16.gmra.mrb[32].mxu0 %v1927_v58  ;;  %905 = vmatmul.mubr.bf16.gmra.mrb[32].mxu1 %v1928_v59 }
  0x83   :  { %1663 = vmatprep.mubr.msk.bf16.mxu0 %vm535_vm0, %v1929_v60  ;;  %1679 = vmatprep.mubr.msk.bf16.mxu1 %vm535_vm0, %v1931_v61 }
  0x8a   :  { %755 = vmatmul.mubr.bf16.gmra.mrb[36].mxu0 %v1933_v62  ;;  %915 = vmatmul.mubr.bf16.gmra.mrb[36].mxu1 %v1934_v63 }
  0x8b   :  { %1664 = vmatprep.mubr.msk.bf16.mxu0 %vm535_vm0, %v1935_v0  ;;  %1680 = vmatprep.mubr.msk.bf16.mxu1 %vm535_vm0, %v1937_v1 }
  0x92   :  { %765 = vmatmul.mubr.bf16.gmra.mrb[40].mxu0 %v1939_v2  ;;  %925 = vmatmul.mubr.bf16.gmra.mrb[40].mxu1 %v1940_v3 }
  0x93   :  { %1665 = vmatprep.mubr.msk.bf16.mxu0 %vm535_vm0, %v1941_v4  ;;  %1681 = vmatprep.mubr.msk.bf16.mxu1 %vm535_vm0, %v1943_v5 }
  0x9a   :  { %775 = vmatmul.mubr.bf16.gmra.mrb[44].mxu0 %v1945_v6  ;;  %935 = vmatmul.mubr.bf16.gmra.mrb[44].mxu1 %v1946_v7 }
  0x9b   :  { %1666 = vmatprep.mubr.msk.bf16.mxu0 %vm535_vm0, %v1947_v8  ;;  %1682 = vmatprep.mubr.msk.bf16.mxu1 %vm535_vm0, %v1949_v9 }
  0xa2   :  { %785 = vmatmul.mubr.bf16.gmra.mrb[48].mxu0 %v1951_v10  ;;  %945 = vmatmul.mubr.bf16.gmra.mrb[48].mxu1 %v1952_v11 }
  0xa3   :  { %1667 = vmatprep.mubr.msk.bf16.mxu0 %vm535_vm0, %v1953_v12  ;;  %1683 = vmatprep.mubr.msk.bf16.mxu1 %vm535_vm0, %v1955_v13 }
  0xaa   :  { %795 = vmatmul.mubr.bf16.gmra.mrb[52].mxu0 %v1957_v14  ;;  %955 = vmatmul.mubr.bf16.gmra.mrb[52].mxu1 %v1958_v15 }
  0xab   :  { %1668 = vmatprep.mubr.msk.bf16.mxu0 %vm535_vm0, %v1959_v16  ;;  %1684 = vmatprep.mubr.msk.bf16.mxu1 %vm535_vm0, %v1961_v17 }
  0xb2   :  { %805 = vmatmul.mubr.bf16.gmra.mrb[56].mxu0 %v1963_v18  ;;  %965 = vmatmul.mubr.bf16.gmra.mrb[56].mxu1 %v1964_v19 }
  0xb3   :  { %1669 = vmatprep.mubr.msk.bf16.mxu0 %vm535_vm0, %v1965_v20  ;;  %1685 = vmatprep.mubr.msk.bf16.mxu1 %vm535_vm0, %v1967_v21 }
  0xba   :  { %815 = vmatmul.mubr.bf16.gmra.mrb[60].mxu0 %v1969_v22  ;;  %975 = vmatmul.mubr.bf16.gmra.mrb[60].mxu1 %v1970_v23 }
 0x115   :  { %v666_v31 = vpop.f32.mrb[0].mxu0  ;;  %v826_v32 = vpop.f32.mrb[0].mxu1 }
 0x116   :  { %v667_v33 = vadd.f32 %v666_v31, %v2324_v29  ;;  %v827_v34 = vadd.f32 %v826_v32, %v2324_v29  ;;  %v668_v35 = vpop.f32.mrb[1].mxu0  ;;  %v828_v36 = vpop.f32.mrb[1].mxu1 }
 0x117   :  { %v669_v37 = vadd.f32 %v668_v35, %v2326_v30  ;;  %v829_v38 = vadd.f32 %v828_v36, %v2326_v30  ;;  %v670_v39 = vpop.f32.mrb[2].mxu0  ;;  %v830_v40 = vpop.f32.mrb[2].mxu1 }
 0x118   :  { %v985_v41 = vmax.f32 %v667_v33, 0.0  ;;  %v1049_v42 = vmax.f32 %v827_v34, 0.0  ;;  %v671_v43 = vadd.f32 %v670_v39, %v2324_v29  ;;  %v831_v44 = vadd.f32 %v830_v40, %v2324_v29  ;;  %v672_v45 = vpop.f32.mrb[3].mxu0  ;;  %v832_v46 = vpop.f32.mrb[3].mxu1 }
 0x119   :  { %v986_v47 = vmax.f32 %v669_v37, 0.0  ;;  %v1050_v48 = vmax.f32 %v829_v38, 0.0  ;;  %v673_v49 = vadd.f32 %v672_v45, %v2326_v30  ;;  %v833_v50 = vadd.f32 %v832_v46, %v2326_v30 }
 0x11a   :  { %v987_v51 = vmax.f32 %v671_v43, 0.0  ;;  %v1051_v52 = vmax.f32 %v831_v44, 0.0 }
 0x11b   :  { %v1750_v53 = vpack.c.bf16 %v986_v47, %v985_v41  ;;  %v1782_v54 = vpack.c.bf16 %v1050_v48, %v1049_v42  ;;  %v988_v55 = vmax.f32 %v673_v49, 0.0  ;;  %v1052_v56 = vmax.f32 %v833_v50, 0.0 }
 0x11d   :  { %1497 = vst [vmem:[%s2651_s3] sm:$0xff] %v1750_v53  ;;  %1529 = vst [vmem:[%s2651_s3 + $0x100] sm:$0xff] %v1782_v54  ;;  %v1751_v57 = vpack.c.bf16 %v988_v55, %v987_v51  ;;  %v1783_v58 = vpack.c.bf16 %v1052_v56, %v1051_v52  ;;  %v676_v59 = vpop.f32.mrb[4].mxu0  ;;  %v836_v60 = vpop.f32.mrb[4].mxu1 }
 0x11e   :  { %v677_v61 = vadd.f32 %v676_v59, %v2324_v29  ;;  %v837_v62 = vadd.f32 %v836_v60, %v2324_v29  ;;  %v678_v63 = vpop.f32.mrb[5].mxu0  ;;  %v838_v0 = vpop.f32.mrb[5].mxu1 }
 0x11f   :  { %1498 = vst [vmem:[%s2651_s3 + $0x8] sm:$0xff] %v1751_v57  ;;  %1530 = vst [vmem:[%s2651_s3 + $0x108] sm:$0xff] %v1783_v58  ;;  %v679_v1 = vadd.f32 %v678_v63, %v2326_v30  ;;  %v839_v2 = vadd.f32 %v838_v0, %v2326_v30  ;;  %v680_v3 = vpop.f32.mrb[6].mxu0  ;;  %v840_v4 = vpop.f32.mrb[6].mxu1 }
 0x120   :  { %v989_v5 = vmax.f32 %v677_v61, 0.0  ;;  %v1053_v6 = vmax.f32 %v837_v62, 0.0  ;;  %v681_v7 = vadd.f32 %v680_v3, %v2324_v29  ;;  %v841_v8 = vadd.f32 %v840_v4, %v2324_v29  ;;  %v682_v9 = vpop.f32.mrb[7].mxu0  ;;  %v842_v10 = vpop.f32.mrb[7].mxu1 }
 0x121   :  { %v990_v11 = vmax.f32 %v679_v1, 0.0  ;;  %v1054_v12 = vmax.f32 %v839_v2, 0.0  ;;  %v683_v13 = vadd.f32 %v682_v9, %v2326_v30  ;;  %v843_v14 = vadd.f32 %v842_v10, %v2326_v30 }
 0x122   :  { %v991_v15 = vmax.f32 %v681_v7, 0.0  ;;  %v1055_v16 = vmax.f32 %v841_v8, 0.0 }
 0x123   :  { %v1752_v17 = vpack.c.bf16 %v990_v11, %v989_v5  ;;  %v1784_v18 = vpack.c.bf16 %v1054_v12, %v1053_v6  ;;  %v992_v19 = vmax.f32 %v683_v13, 0.0  ;;  %v1056_v20 = vmax.f32 %v843_v14, 0.0 }
 0x125   :  { %1499 = vst [vmem:[%s2651_s3 + $0x10] sm:$0xff] %v1752_v17  ;;  %1531 = vst [vmem:[%s2651_s3 + $0x110] sm:$0xff] %v1784_v18  ;;  %v1753_v21 = vpack.c.bf16 %v992_v19, %v991_v15  ;;  %v1785_v22 = vpack.c.bf16 %v1056_v20, %v1055_v16  ;;  %v686_v23 = vpop.f32.mrb[8].mxu0  ;;  %v846_v24 = vpop.f32.mrb[8].mxu1 }
 0x126   :  { %v687_v25 = vadd.f32 %v686_v23, %v2324_v29  ;;  %v847_v26 = vadd.f32 %v846_v24, %v2324_v29  ;;  %v688_v27 = vpop.f32.mrb[9].mxu0  ;;  %v848_v28 = vpop.f32.mrb[9].mxu1 }
 0x127   :  { %1500 = vst [vmem:[%s2651_s3 + $0x18] sm:$0xff] %v1753_v21  ;;  %1532 = vst [vmem:[%s2651_s3 + $0x118] sm:$0xff] %v1785_v22  ;;  %v689_v31 = vadd.f32 %v688_v27, %v2326_v30  ;;  %v849_v32 = vadd.f32 %v848_v28, %v2326_v30  ;;  %v690_v33 = vpop.f32.mrb[10].mxu0  ;;  %v850_v34 = vpop.f32.mrb[10].mxu1 }
 0x128   :  { %v993_v35 = vmax.f32 %v687_v25, 0.0  ;;  %v1057_v36 = vmax.f32 %v847_v26, 0.0  ;;  %v691_v37 = vadd.f32 %v690_v33, %v2324_v29  ;;  %v851_v38 = vadd.f32 %v850_v34, %v2324_v29  ;;  %v692_v39 = vpop.f32.mrb[11].mxu0  ;;  %v852_v40 = vpop.f32.mrb[11].mxu1 }
 0x129   :  { %v994_v41 = vmax.f32 %v689_v31, 0.0  ;;  %v1058_v42 = vmax.f32 %v849_v32, 0.0  ;;  %v693_v43 = vadd.f32 %v692_v39, %v2326_v30  ;;  %v853_v44 = vadd.f32 %v852_v40, %v2326_v30 }
 0x12a   :  { %v995_v45 = vmax.f32 %v691_v37, 0.0  ;;  %v1059_v46 = vmax.f32 %v851_v38, 0.0 }
 0x12b   :  { %v1754_v47 = vpack.c.bf16 %v994_v41, %v993_v35  ;;  %v1786_v48 = vpack.c.bf16 %v1058_v42, %v1057_v36  ;;  %v996_v49 = vmax.f32 %v693_v43, 0.0  ;;  %v1060_v50 = vmax.f32 %v853_v44, 0.0 }
 0x12d   :  { %1501 = vst [vmem:[%s2651_s3 + $0x20] sm:$0xff] %v1754_v47  ;;  %1533 = vst [vmem:[%s2651_s3 + $0x120] sm:$0xff] %v1786_v48  ;;  %v1755_v51 = vpack.c.bf16 %v996_v49, %v995_v45  ;;  %v1787_v52 = vpack.c.bf16 %v1060_v50, %v1059_v46  ;;  %v696_v53 = vpop.f32.mrb[12].mxu0  ;;  %v856_v54 = vpop.f32.mrb[12].mxu1 }
 0x12e   :  { %v697_v55 = vadd.f32 %v696_v53, %v2324_v29  ;;  %v857_v56 = vadd.f32 %v856_v54, %v2324_v29  ;;  %v698_v57 = vpop.f32.mrb[13].mxu0  ;;  %v858_v58 = vpop.f32.mrb[13].mxu1 }
 0x12f   :  { %1502 = vst [vmem:[%s2651_s3 + $0x28] sm:$0xff] %v1755_v51  ;;  %1534 = vst [vmem:[%s2651_s3 + $0x128] sm:$0xff] %v1787_v52  ;;  %v699_v59 = vadd.f32 %v698_v57, %v2326_v30  ;;  %v859_v60 = vadd.f32 %v858_v58, %v2326_v30  ;;  %v700_v61 = vpop.f32.mrb[14].mxu0  ;;  %v860_v62 = vpop.f32.mrb[14].mxu1 }
 0x130   :  { %v997_v63 = vmax.f32 %v697_v55, 0.0  ;;  %v1061_v0 = vmax.f32 %v857_v56, 0.0  ;;  %v701_v1 = vadd.f32 %v700_v61, %v2324_v29  ;;  %v861_v2 = vadd.f32 %v860_v62, %v2324_v29  ;;  %v702_v3 = vpop.f32.mrb[15].mxu0  ;;  %v862_v4 = vpop.f32.mrb[15].mxu1 }
 0x131   :  { %v998_v5 = vmax.f32 %v699_v59, 0.0  ;;  %v1062_v6 = vmax.f32 %v859_v60, 0.0  ;;  %v703_v7 = vadd.f32 %v702_v3, %v2326_v30  ;;  %v863_v8 = vadd.f32 %v862_v4, %v2326_v30 }
 0x132   :  { %v999_v9 = vmax.f32 %v701_v1, 0.0  ;;  %v1063_v10 = vmax.f32 %v861_v2, 0.0 }
 0x133   :  { %v1756_v11 = vpack.c.bf16 %v998_v5, %v997_v63  ;;  %v1788_v12 = vpack.c.bf16 %v1062_v6, %v1061_v0  ;;  %v1000_v13 = vmax.f32 %v703_v7, 0.0  ;;  %v1064_v14 = vmax.f32 %v863_v8, 0.0 }
 0x135   :  { %1503 = vst [vmem:[%s2651_s3 + $0x30] sm:$0xff] %v1756_v11  ;;  %1535 = vst [vmem:[%s2651_s3 + $0x130] sm:$0xff] %v1788_v12  ;;  %v1757_v15 = vpack.c.bf16 %v1000_v13, %v999_v9  ;;  %v1789_v16 = vpack.c.bf16 %v1064_v14, %v1063_v10  ;;  %v706_v17 = vpop.f32.mrb[16].mxu0  ;;  %v866_v18 = vpop.f32.mrb[16].mxu1 }
 0x136   :  { %v707_v19 = vadd.f32 %v706_v17, %v2324_v29  ;;  %v867_v20 = vadd.f32 %v866_v18, %v2324_v29  ;;  %v708_v21 = vpop.f32.mrb[17].mxu0  ;;  %v868_v22 = vpop.f32.mrb[17].mxu1 }
 0x137   :  { %1504 = vst [vmem:[%s2651_s3 + $0x38] sm:$0xff] %v1757_v15  ;;  %1536 = vst [vmem:[%s2651_s3 + $0x138] sm:$0xff] %v1789_v16  ;;  %v709_v23 = vadd.f32 %v708_v21, %v2326_v30  ;;  %v869_v24 = vadd.f32 %v868_v22, %v2326_v30  ;;  %v710_v25 = vpop.f32.mrb[18].mxu0  ;;  %v870_v26 = vpop.f32.mrb[18].mxu1 }
 0x138   :  { %v1001_v27 = vmax.f32 %v707_v19, 0.0  ;;  %v1065_v28 = vmax.f32 %v867_v20, 0.0  ;;  %v711_v31 = vadd.f32 %v710_v25, %v2324_v29  ;;  %v871_v32 = vadd.f32 %v870_v26, %v2324_v29  ;;  %v712_v33 = vpop.f32.mrb[19].mxu0  ;;  %v872_v34 = vpop.f32.mrb[19].mxu1 }
 0x139   :  { %v1002_v35 = vmax.f32 %v709_v23, 0.0  ;;  %v1066_v36 = vmax.f32 %v869_v24, 0.0  ;;  %v713_v37 = vadd.f32 %v712_v33, %v2326_v30  ;;  %v873_v38 = vadd.f32 %v872_v34, %v2326_v30 }
 0x13a   :  { %v1003_v39 = vmax.f32 %v711_v31, 0.0  ;;  %v1067_v40 = vmax.f32 %v871_v32, 0.0 }
 0x13b   :  { %v1758_v41 = vpack.c.bf16 %v1002_v35, %v1001_v27  ;;  %v1790_v42 = vpack.c.bf16 %v1066_v36, %v1065_v28  ;;  %v1004_v43 = vmax.f32 %v713_v37, 0.0  ;;  %v1068_v44 = vmax.f32 %v873_v38, 0.0 }
 0x13d   :  { %1505 = vst [vmem:[%s2651_s3 + $0x40] sm:$0xff] %v1758_v41  ;;  %1537 = vst [vmem:[%s2651_s3 + $0x140] sm:$0xff] %v1790_v42  ;;  %v1759_v45 = vpack.c.bf16 %v1004_v43, %v1003_v39  ;;  %v1791_v46 = vpack.c.bf16 %v1068_v44, %v1067_v40  ;;  %v716_v47 = vpop.f32.mrb[20].mxu0  ;;  %v876_v48 = vpop.f32.mrb[20].mxu1 }
 0x13e   :  { %v717_v49 = vadd.f32 %v716_v47, %v2324_v29  ;;  %v877_v50 = vadd.f32 %v876_v48, %v2324_v29  ;;  %v718_v51 = vpop.f32.mrb[21].mxu0  ;;  %v878_v52 = vpop.f32.mrb[21].mxu1 }
 0x13f   :  { %1506 = vst [vmem:[%s2651_s3 + $0x48] sm:$0xff] %v1759_v45  ;;  %1538 = vst [vmem:[%s2651_s3 + $0x148] sm:$0xff] %v1791_v46  ;;  %v719_v53 = vadd.f32 %v718_v51, %v2326_v30  ;;  %v879_v54 = vadd.f32 %v878_v52, %v2326_v30  ;;  %v720_v55 = vpop.f32.mrb[22].mxu0  ;;  %v880_v56 = vpop.f32.mrb[22].mxu1 }
 0x140   :  { %v1005_v57 = vmax.f32 %v717_v49, 0.0  ;;  %v1069_v58 = vmax.f32 %v877_v50, 0.0  ;;  %v721_v59 = vadd.f32 %v720_v55, %v2324_v29  ;;  %v881_v60 = vadd.f32 %v880_v56, %v2324_v29  ;;  %v722_v61 = vpop.f32.mrb[23].mxu0  ;;  %v882_v62 = vpop.f32.mrb[23].mxu1 }
 0x141   :  { %v1006_v63 = vmax.f32 %v719_v53, 0.0  ;;  %v1070_v0 = vmax.f32 %v879_v54, 0.0  ;;  %v723_v1 = vadd.f32 %v722_v61, %v2326_v30  ;;  %v883_v2 = vadd.f32 %v882_v62, %v2326_v30 }
 0x142   :  { %v1007_v3 = vmax.f32 %v721_v59, 0.0  ;;  %v1071_v4 = vmax.f32 %v881_v60, 0.0 }
 0x143   :  { %v1760_v5 = vpack.c.bf16 %v1006_v63, %v1005_v57  ;;  %v1792_v6 = vpack.c.bf16 %v1070_v0, %v1069_v58  ;;  %v1008_v7 = vmax.f32 %v723_v1, 0.0  ;;  %v1072_v8 = vmax.f32 %v883_v2, 0.0 }
 0x145   :  { %1507 = vst [vmem:[%s2651_s3 + $0x50] sm:$0xff] %v1760_v5  ;;  %1539 = vst [vmem:[%s2651_s3 + $0x150] sm:$0xff] %v1792_v6  ;;  %v1761_v9 = vpack.c.bf16 %v1008_v7, %v1007_v3  ;;  %v1793_v10 = vpack.c.bf16 %v1072_v8, %v1071_v4  ;;  %v726_v11 = vpop.f32.mrb[24].mxu0  ;;  %v886_v12 = vpop.f32.mrb[24].mxu1 }
 0x146   :  { %v727_v13 = vadd.f32 %v726_v11, %v2324_v29  ;;  %v887_v14 = vadd.f32 %v886_v12, %v2324_v29  ;;  %v728_v15 = vpop.f32.mrb[25].mxu0  ;;  %v888_v16 = vpop.f32.mrb[25].mxu1 }
 0x147   :  { %1508 = vst [vmem:[%s2651_s3 + $0x58] sm:$0xff] %v1761_v9  ;;  %1540 = vst [vmem:[%s2651_s3 + $0x158] sm:$0xff] %v1793_v10  ;;  %v729_v17 = vadd.f32 %v728_v15, %v2326_v30  ;;  %v889_v18 = vadd.f32 %v888_v16, %v2326_v30  ;;  %v730_v19 = vpop.f32.mrb[26].mxu0  ;;  %v890_v20 = vpop.f32.mrb[26].mxu1 }
 0x148   :  { %v1009_v21 = vmax.f32 %v727_v13, 0.0  ;;  %v1073_v22 = vmax.f32 %v887_v14, 0.0  ;;  %v731_v23 = vadd.f32 %v730_v19, %v2324_v29  ;;  %v891_v24 = vadd.f32 %v890_v20, %v2324_v29  ;;  %v732_v25 = vpop.f32.mrb[27].mxu0  ;;  %v892_v26 = vpop.f32.mrb[27].mxu1 }
 0x149   :  { %v1010_v27 = vmax.f32 %v729_v17, 0.0  ;;  %v1074_v28 = vmax.f32 %v889_v18, 0.0  ;;  %v733_v31 = vadd.f32 %v732_v25, %v2326_v30  ;;  %v893_v32 = vadd.f32 %v892_v26, %v2326_v30 }
 0x14a   :  { %v1011_v33 = vmax.f32 %v731_v23, 0.0  ;;  %v1075_v34 = vmax.f32 %v891_v24, 0.0 }
 0x14b   :  { %v1762_v35 = vpack.c.bf16 %v1010_v27, %v1009_v21  ;;  %v1794_v36 = vpack.c.bf16 %v1074_v28, %v1073_v22  ;;  %v1012_v37 = vmax.f32 %v733_v31, 0.0  ;;  %v1076_v38 = vmax.f32 %v893_v32, 0.0 }
 0x14d   :  { %1509 = vst [vmem:[%s2651_s3 + $0x60] sm:$0xff] %v1762_v35  ;;  %1541 = vst [vmem:[%s2651_s3 + $0x160] sm:$0xff] %v1794_v36  ;;  %v1763_v39 = vpack.c.bf16 %v1012_v37, %v1011_v33  ;;  %v1795_v40 = vpack.c.bf16 %v1076_v38, %v1075_v34  ;;  %v736_v41 = vpop.f32.mrb[28].mxu0  ;;  %v896_v42 = vpop.f32.mrb[28].mxu1 }
 0x14e   :  { %v737_v43 = vadd.f32 %v736_v41, %v2324_v29  ;;  %v897_v44 = vadd.f32 %v896_v42, %v2324_v29  ;;  %v738_v45 = vpop.f32.mrb[29].mxu0  ;;  %v898_v46 = vpop.f32.mrb[29].mxu1 }
 0x14f   :  { %1510 = vst [vmem:[%s2651_s3 + $0x68] sm:$0xff] %v1763_v39  ;;  %1542 = vst [vmem:[%s2651_s3 + $0x168] sm:$0xff] %v1795_v40  ;;  %v739_v47 = vadd.f32 %v738_v45, %v2326_v30  ;;  %v899_v48 = vadd.f32 %v898_v46, %v2326_v30  ;;  %v740_v49 = vpop.f32.mrb[30].mxu0  ;;  %v900_v50 = vpop.f32.mrb[30].mxu1 }
 0x150   :  { %v1013_v51 = vmax.f32 %v737_v43, 0.0  ;;  %v1077_v52 = vmax.f32 %v897_v44, 0.0  ;;  %v741_v53 = vadd.f32 %v740_v49, %v2324_v29  ;;  %v901_v54 = vadd.f32 %v900_v50, %v2324_v29  ;;  %v742_v55 = vpop.f32.mrb[31].mxu0  ;;  %v902_v56 = vpop.f32.mrb[31].mxu1 }
 0x151   :  { %v1014_v57 = vmax.f32 %v739_v47, 0.0  ;;  %v1078_v58 = vmax.f32 %v899_v48, 0.0  ;;  %v743_v59 = vadd.f32 %v742_v55, %v2326_v30  ;;  %v903_v60 = vadd.f32 %v902_v56, %v2326_v30 }
 0x152   :  { %v1015_v61 = vmax.f32 %v741_v53, 0.0  ;;  %v1079_v62 = vmax.f32 %v901_v54, 0.0 }
 0x153   :  { %v1764_v63 = vpack.c.bf16 %v1014_v57, %v1013_v51  ;;  %v1796_v0 = vpack.c.bf16 %v1078_v58, %v1077_v52  ;;  %v1016_v1 = vmax.f32 %v743_v59, 0.0  ;;  %v1080_v2 = vmax.f32 %v903_v60, 0.0 }
 0x155   :  { %1511 = vst [vmem:[%s2651_s3 + $0x70] sm:$0xff] %v1764_v63  ;;  %1543 = vst [vmem:[%s2651_s3 + $0x170] sm:$0xff] %v1796_v0  ;;  %v1765_v3 = vpack.c.bf16 %v1016_v1, %v1015_v61  ;;  %v1797_v4 = vpack.c.bf16 %v1080_v2, %v1079_v62  ;;  %v746_v5 = vpop.f32.mrb[32].mxu0  ;;  %v906_v6 = vpop.f32.mrb[32].mxu1 }
 0x156   :  { %v747_v7 = vadd.f32 %v746_v5, %v2324_v29  ;;  %v907_v8 = vadd.f32 %v906_v6, %v2324_v29  ;;  %v748_v9 = vpop.f32.mrb[33].mxu0  ;;  %v908_v10 = vpop.f32.mrb[33].mxu1 }
 0x157   :  { %1512 = vst [vmem:[%s2651_s3 + $0x78] sm:$0xff] %v1765_v3  ;;  %1544 = vst [vmem:[%s2651_s3 + $0x178] sm:$0xff] %v1797_v4  ;;  %v749_v11 = vadd.f32 %v748_v9, %v2326_v30  ;;  %v909_v12 = vadd.f32 %v908_v10, %v2326_v30  ;;  %v750_v13 = vpop.f32.mrb[34].mxu0  ;;  %v910_v14 = vpop.f32.mrb[34].mxu1 }
 0x158   :  { %v1017_v15 = vmax.f32 %v747_v7, 0.0  ;;  %v1081_v16 = vmax.f32 %v907_v8, 0.0  ;;  %v751_v17 = vadd.f32 %v750_v13, %v2324_v29  ;;  %v911_v18 = vadd.f32 %v910_v14, %v2324_v29  ;;  %v752_v19 = vpop.f32.mrb[35].mxu0  ;;  %v912_v20 = vpop.f32.mrb[35].mxu1 }
 0x159   :  { %v1018_v21 = vmax.f32 %v749_v11, 0.0  ;;  %v1082_v22 = vmax.f32 %v909_v12, 0.0  ;;  %v753_v23 = vadd.f32 %v752_v19, %v2326_v30  ;;  %v913_v24 = vadd.f32 %v912_v20, %v2326_v30 }
 0x15a   :  { %v1019_v25 = vmax.f32 %v751_v17, 0.0  ;;  %v1083_v26 = vmax.f32 %v911_v18, 0.0 }
 0x15b   :  { %v1766_v27 = vpack.c.bf16 %v1018_v21, %v1017_v15  ;;  %v1798_v28 = vpack.c.bf16 %v1082_v22, %v1081_v16  ;;  %v1020_v31 = vmax.f32 %v753_v23, 0.0  ;;  %v1084_v32 = vmax.f32 %v913_v24, 0.0 }
 0x15d   :  { %1513 = vst [vmem:[%s2651_s3 + $0x80] sm:$0xff] %v1766_v27  ;;  %1545 = vst [vmem:[%s2651_s3 + $0x180] sm:$0xff] %v1798_v28  ;;  %v1767_v33 = vpack.c.bf16 %v1020_v31, %v1019_v25  ;;  %v1799_v34 = vpack.c.bf16 %v1084_v32, %v1083_v26  ;;  %v756_v35 = vpop.f32.mrb[36].mxu0  ;;  %v916_v36 = vpop.f32.mrb[36].mxu1 }
 0x15e   :  { %v757_v37 = vadd.f32 %v756_v35, %v2324_v29  ;;  %v917_v38 = vadd.f32 %v916_v36, %v2324_v29  ;;  %v758_v39 = vpop.f32.mrb[37].mxu0  ;;  %v918_v40 = vpop.f32.mrb[37].mxu1 }
 0x15f   :  { %1514 = vst [vmem:[%s2651_s3 + $0x88] sm:$0xff] %v1767_v33  ;;  %1546 = vst [vmem:[%s2651_s3 + $0x188] sm:$0xff] %v1799_v34  ;;  %v759_v41 = vadd.f32 %v758_v39, %v2326_v30  ;;  %v919_v42 = vadd.f32 %v918_v40, %v2326_v30  ;;  %v760_v43 = vpop.f32.mrb[38].mxu0  ;;  %v920_v44 = vpop.f32.mrb[38].mxu1 }
 0x160   :  { %v1021_v45 = vmax.f32 %v757_v37, 0.0  ;;  %v1085_v46 = vmax.f32 %v917_v38, 0.0  ;;  %v761_v47 = vadd.f32 %v760_v43, %v2324_v29  ;;  %v921_v48 = vadd.f32 %v920_v44, %v2324_v29  ;;  %v762_v49 = vpop.f32.mrb[39].mxu0  ;;  %v922_v50 = vpop.f32.mrb[39].mxu1 }
 0x161   :  { %v1022_v51 = vmax.f32 %v759_v41, 0.0  ;;  %v1086_v52 = vmax.f32 %v919_v42, 0.0  ;;  %v763_v53 = vadd.f32 %v762_v49, %v2326_v30  ;;  %v923_v54 = vadd.f32 %v922_v50, %v2326_v30 }
 0x162   :  { %v1023_v55 = vmax.f32 %v761_v47, 0.0  ;;  %v1087_v56 = vmax.f32 %v921_v48, 0.0 }
 0x163   :  { %v1768_v57 = vpack.c.bf16 %v1022_v51, %v1021_v45  ;;  %v1800_v58 = vpack.c.bf16 %v1086_v52, %v1085_v46  ;;  %v1024_v59 = vmax.f32 %v763_v53, 0.0  ;;  %v1088_v60 = vmax.f32 %v923_v54, 0.0 }
 0x165   :  { %1515 = vst [vmem:[%s2651_s3 + $0x90] sm:$0xff] %v1768_v57  ;;  %1547 = vst [vmem:[%s2651_s3 + $0x190] sm:$0xff] %v1800_v58  ;;  %v1769_v61 = vpack.c.bf16 %v1024_v59, %v1023_v55  ;;  %v1801_v62 = vpack.c.bf16 %v1088_v60, %v1087_v56  ;;  %v766_v63 = vpop.f32.mrb[40].mxu0  ;;  %v926_v0 = vpop.f32.mrb[40].mxu1 }
 0x166   :  { %v767_v1 = vadd.f32 %v766_v63, %v2324_v29  ;;  %v927_v2 = vadd.f32 %v926_v0, %v2324_v29  ;;  %v768_v3 = vpop.f32.mrb[41].mxu0  ;;  %v928_v4 = vpop.f32.mrb[41].mxu1 }
 0x167   :  { %1516 = vst [vmem:[%s2651_s3 + $0x98] sm:$0xff] %v1769_v61  ;;  %1548 = vst [vmem:[%s2651_s3 + $0x198] sm:$0xff] %v1801_v62  ;;  %v769_v5 = vadd.f32 %v768_v3, %v2326_v30  ;;  %v929_v6 = vadd.f32 %v928_v4, %v2326_v30  ;;  %v770_v7 = vpop.f32.mrb[42].mxu0  ;;  %v930_v8 = vpop.f32.mrb[42].mxu1 }
 0x168   :  { %v1025_v9 = vmax.f32 %v767_v1, 0.0  ;;  %v1089_v10 = vmax.f32 %v927_v2, 0.0  ;;  %v771_v11 = vadd.f32 %v770_v7, %v2324_v29  ;;  %v931_v12 = vadd.f32 %v930_v8, %v2324_v29  ;;  %v772_v13 = vpop.f32.mrb[43].mxu0  ;;  %v932_v14 = vpop.f32.mrb[43].mxu1 }
 0x169   :  { %v1026_v15 = vmax.f32 %v769_v5, 0.0  ;;  %v1090_v16 = vmax.f32 %v929_v6, 0.0  ;;  %v773_v17 = vadd.f32 %v772_v13, %v2326_v30  ;;  %v933_v18 = vadd.f32 %v932_v14, %v2326_v30 }
 0x16a   :  { %v1027_v19 = vmax.f32 %v771_v11, 0.0  ;;  %v1091_v20 = vmax.f32 %v931_v12, 0.0 }
 0x16b   :  { %v1770_v21 = vpack.c.bf16 %v1026_v15, %v1025_v9  ;;  %v1802_v22 = vpack.c.bf16 %v1090_v16, %v1089_v10  ;;  %v1028_v23 = vmax.f32 %v773_v17, 0.0  ;;  %v1092_v24 = vmax.f32 %v933_v18, 0.0 }
 0x16d   :  { %1517 = vst [vmem:[%s2651_s3 + $0xa0] sm:$0xff] %v1770_v21  ;;  %1549 = vst [vmem:[%s2651_s3 + $0x1a0] sm:$0xff] %v1802_v22  ;;  %v1771_v25 = vpack.c.bf16 %v1028_v23, %v1027_v19  ;;  %v1803_v26 = vpack.c.bf16 %v1092_v24, %v1091_v20  ;;  %v776_v27 = vpop.f32.mrb[44].mxu0  ;;  %v936_v28 = vpop.f32.mrb[44].mxu1 }
 0x16e   :  { %v777_v31 = vadd.f32 %v776_v27, %v2324_v29  ;;  %v937_v32 = vadd.f32 %v936_v28, %v2324_v29  ;;  %v778_v33 = vpop.f32.mrb[45].mxu0  ;;  %v938_v34 = vpop.f32.mrb[45].mxu1 }
 0x16f   :  { %1518 = vst [vmem:[%s2651_s3 + $0xa8] sm:$0xff] %v1771_v25  ;;  %1550 = vst [vmem:[%s2651_s3 + $0x1a8] sm:$0xff] %v1803_v26  ;;  %v779_v35 = vadd.f32 %v778_v33, %v2326_v30  ;;  %v939_v36 = vadd.f32 %v938_v34, %v2326_v30  ;;  %v780_v37 = vpop.f32.mrb[46].mxu0  ;;  %v940_v38 = vpop.f32.mrb[46].mxu1 }
 0x170   :  { %v1029_v39 = vmax.f32 %v777_v31, 0.0  ;;  %v1093_v40 = vmax.f32 %v937_v32, 0.0  ;;  %v781_v41 = vadd.f32 %v780_v37, %v2324_v29  ;;  %v941_v42 = vadd.f32 %v940_v38, %v2324_v29  ;;  %v782_v43 = vpop.f32.mrb[47].mxu0  ;;  %v942_v44 = vpop.f32.mrb[47].mxu1 }
 0x171   :  { %v1030_v45 = vmax.f32 %v779_v35, 0.0  ;;  %v1094_v46 = vmax.f32 %v939_v36, 0.0  ;;  %v783_v47 = vadd.f32 %v782_v43, %v2326_v30  ;;  %v943_v48 = vadd.f32 %v942_v44, %v2326_v30 }
 0x172   :  { %v1031_v49 = vmax.f32 %v781_v41, 0.0  ;;  %v1095_v50 = vmax.f32 %v941_v42, 0.0 }
 0x173   :  { %v1772_v51 = vpack.c.bf16 %v1030_v45, %v1029_v39  ;;  %v1804_v52 = vpack.c.bf16 %v1094_v46, %v1093_v40  ;;  %v1032_v53 = vmax.f32 %v783_v47, 0.0  ;;  %v1096_v54 = vmax.f32 %v943_v48, 0.0 }
 0x175   :  { %1519 = vst [vmem:[%s2651_s3 + $0xb0] sm:$0xff] %v1772_v51  ;;  %1551 = vst [vmem:[%s2651_s3 + $0x1b0] sm:$0xff] %v1804_v52  ;;  %v1773_v55 = vpack.c.bf16 %v1032_v53, %v1031_v49  ;;  %v1805_v56 = vpack.c.bf16 %v1096_v54, %v1095_v50  ;;  %v786_v57 = vpop.f32.mrb[48].mxu0  ;;  %v946_v58 = vpop.f32.mrb[48].mxu1 }
 0x176   :  { %v787_v59 = vadd.f32 %v786_v57, %v2324_v29  ;;  %v947_v60 = vadd.f32 %v946_v58, %v2324_v29  ;;  %v788_v61 = vpop.f32.mrb[49].mxu0  ;;  %v948_v62 = vpop.f32.mrb[49].mxu1 }
 0x177   :  { %1520 = vst [vmem:[%s2651_s3 + $0xb8] sm:$0xff] %v1773_v55  ;;  %1552 = vst [vmem:[%s2651_s3 + $0x1b8] sm:$0xff] %v1805_v56  ;;  %v789_v63 = vadd.f32 %v788_v61, %v2326_v30  ;;  %v949_v0 = vadd.f32 %v948_v62, %v2326_v30  ;;  %v790_v1 = vpop.f32.mrb[50].mxu0  ;;  %v950_v2 = vpop.f32.mrb[50].mxu1 }
 0x178   :  { %v1033_v3 = vmax.f32 %v787_v59, 0.0  ;;  %v1097_v4 = vmax.f32 %v947_v60, 0.0  ;;  %v791_v5 = vadd.f32 %v790_v1, %v2324_v29  ;;  %v951_v6 = vadd.f32 %v950_v2, %v2324_v29  ;;  %v792_v7 = vpop.f32.mrb[51].mxu0  ;;  %v952_v8 = vpop.f32.mrb[51].mxu1 }
 0x179   :  { %v1034_v9 = vmax.f32 %v789_v63, 0.0  ;;  %v1098_v10 = vmax.f32 %v949_v0, 0.0  ;;  %v793_v11 = vadd.f32 %v792_v7, %v2326_v30  ;;  %v953_v12 = vadd.f32 %v952_v8, %v2326_v30 }
 0x17a   :  { %v1035_v13 = vmax.f32 %v791_v5, 0.0  ;;  %v1099_v14 = vmax.f32 %v951_v6, 0.0 }
 0x17b   :  { %v1774_v15 = vpack.c.bf16 %v1034_v9, %v1033_v3  ;;  %v1806_v16 = vpack.c.bf16 %v1098_v10, %v1097_v4  ;;  %v1036_v17 = vmax.f32 %v793_v11, 0.0  ;;  %v1100_v18 = vmax.f32 %v953_v12, 0.0 }
 0x17d   :  { %1521 = vst [vmem:[%s2651_s3 + $0xc0] sm:$0xff] %v1774_v15  ;;  %1553 = vst [vmem:[%s2651_s3 + $0x1c0] sm:$0xff] %v1806_v16  ;;  %v1775_v19 = vpack.c.bf16 %v1036_v17, %v1035_v13  ;;  %v1807_v20 = vpack.c.bf16 %v1100_v18, %v1099_v14  ;;  %v796_v21 = vpop.f32.mrb[52].mxu0  ;;  %v956_v22 = vpop.f32.mrb[52].mxu1 }
 0x17e   :  { %v797_v23 = vadd.f32 %v796_v21, %v2324_v29  ;;  %v957_v24 = vadd.f32 %v956_v22, %v2324_v29  ;;  %v798_v25 = vpop.f32.mrb[53].mxu0  ;;  %v958_v26 = vpop.f32.mrb[53].mxu1 }
 0x17f   :  { %1522 = vst [vmem:[%s2651_s3 + $0xc8] sm:$0xff] %v1775_v19  ;;  %1554 = vst [vmem:[%s2651_s3 + $0x1c8] sm:$0xff] %v1807_v20  ;;  %v799_v27 = vadd.f32 %v798_v25, %v2326_v30  ;;  %v959_v28 = vadd.f32 %v958_v26, %v2326_v30  ;;  %v800_v31 = vpop.f32.mrb[54].mxu0  ;;  %v960_v32 = vpop.f32.mrb[54].mxu1 }
 0x180   :  { %v1037_v33 = vmax.f32 %v797_v23, 0.0  ;;  %v1101_v34 = vmax.f32 %v957_v24, 0.0  ;;  %v801_v35 = vadd.f32 %v800_v31, %v2324_v29  ;;  %v961_v36 = vadd.f32 %v960_v32, %v2324_v29  ;;  %v802_v37 = vpop.f32.mrb[55].mxu0  ;;  %v962_v38 = vpop.f32.mrb[55].mxu1 }
 0x181   :  { %v1038_v39 = vmax.f32 %v799_v27, 0.0  ;;  %v1102_v40 = vmax.f32 %v959_v28, 0.0  ;;  %v803_v41 = vadd.f32 %v802_v37, %v2326_v30  ;;  %v963_v42 = vadd.f32 %v962_v38, %v2326_v30 }
 0x182   :  { %v1039_v43 = vmax.f32 %v801_v35, 0.0  ;;  %v1103_v44 = vmax.f32 %v961_v36, 0.0 }
 0x183   :  { %v1776_v45 = vpack.c.bf16 %v1038_v39, %v1037_v33  ;;  %v1808_v46 = vpack.c.bf16 %v1102_v40, %v1101_v34  ;;  %v1040_v47 = vmax.f32 %v803_v41, 0.0  ;;  %v1104_v48 = vmax.f32 %v963_v42, 0.0 }
 0x185   :  { %1523 = vst [vmem:[%s2651_s3 + $0xd0] sm:$0xff] %v1776_v45  ;;  %1555 = vst [vmem:[%s2651_s3 + $0x1d0] sm:$0xff] %v1808_v46  ;;  %v1777_v49 = vpack.c.bf16 %v1040_v47, %v1039_v43  ;;  %v1809_v50 = vpack.c.bf16 %v1104_v48, %v1103_v44  ;;  %v806_v51 = vpop.f32.mrb[56].mxu0  ;;  %v966_v52 = vpop.f32.mrb[56].mxu1 }
 0x186   :  { %v807_v53 = vadd.f32 %v806_v51, %v2324_v29  ;;  %v967_v54 = vadd.f32 %v966_v52, %v2324_v29  ;;  %v808_v55 = vpop.f32.mrb[57].mxu0  ;;  %v968_v56 = vpop.f32.mrb[57].mxu1 }
 0x187   :  { %1524 = vst [vmem:[%s2651_s3 + $0xd8] sm:$0xff] %v1777_v49  ;;  %1556 = vst [vmem:[%s2651_s3 + $0x1d8] sm:$0xff] %v1809_v50  ;;  %v809_v57 = vadd.f32 %v808_v55, %v2326_v30  ;;  %v969_v58 = vadd.f32 %v968_v56, %v2326_v30  ;;  %v810_v59 = vpop.f32.mrb[58].mxu0  ;;  %v970_v60 = vpop.f32.mrb[58].mxu1 }
 0x188   :  { %v1041_v61 = vmax.f32 %v807_v53, 0.0  ;;  %v1105_v62 = vmax.f32 %v967_v54, 0.0  ;;  %v811_v63 = vadd.f32 %v810_v59, %v2324_v29  ;;  %v971_v0 = vadd.f32 %v970_v60, %v2324_v29  ;;  %v812_v1 = vpop.f32.mrb[59].mxu0  ;;  %v972_v2 = vpop.f32.mrb[59].mxu1 }
 0x189   :  { %v1042_v3 = vmax.f32 %v809_v57, 0.0  ;;  %v1106_v4 = vmax.f32 %v969_v58, 0.0  ;;  %v813_v5 = vadd.f32 %v812_v1, %v2326_v30  ;;  %v973_v6 = vadd.f32 %v972_v2, %v2326_v30 }
 0x18a   :  { %v1043_v7 = vmax.f32 %v811_v63, 0.0  ;;  %v1107_v8 = vmax.f32 %v971_v0, 0.0 }
 0x18b   :  { %v1778_v9 = vpack.c.bf16 %v1042_v3, %v1041_v61  ;;  %v1810_v10 = vpack.c.bf16 %v1106_v4, %v1105_v62  ;;  %v1044_v11 = vmax.f32 %v813_v5, 0.0  ;;  %v1108_v12 = vmax.f32 %v973_v6, 0.0 }
 0x18d   :  { %1525 = vst [vmem:[%s2651_s3 + $0xe0] sm:$0xff] %v1778_v9  ;;  %1557 = vst [vmem:[%s2651_s3 + $0x1e0] sm:$0xff] %v1810_v10  ;;  %v1779_v13 = vpack.c.bf16 %v1044_v11, %v1043_v7  ;;  %v1811_v14 = vpack.c.bf16 %v1108_v12, %v1107_v8  ;;  %v816_v15 = vpop.f32.mrb[60].mxu0  ;;  %v976_v16 = vpop.f32.mrb[60].mxu1 }
 0x18e   :  { %v817_v17 = vadd.f32 %v816_v15, %v2324_v29  ;;  %v977_v18 = vadd.f32 %v976_v16, %v2324_v29  ;;  %v818_v19 = vpop.f32.mrb[61].mxu0  ;;  %v978_v20 = vpop.f32.mrb[61].mxu1 }
 0x18f   :  { %1526 = vst [vmem:[%s2651_s3 + $0xe8] sm:$0xff] %v1779_v13  ;;  %1558 = vst [vmem:[%s2651_s3 + $0x1e8] sm:$0xff] %v1811_v14  ;;  %v819_v21 = vadd.f32 %v818_v19, %v2326_v30  ;;  %v979_v22 = vadd.f32 %v978_v20, %v2326_v30  ;;  %v820_v23 = vpop.f32.mrb[62].mxu0  ;;  %v980_v24 = vpop.f32.mrb[62].mxu1 }
 0x190   :  { %v1045_v25 = vmax.f32 %v817_v17, 0.0  ;;  %v1109_v26 = vmax.f32 %v977_v18, 0.0  ;;  %v821_v27 = vadd.f32 %v820_v23, %v2324_v29  ;;  %v981_v28 = vadd.f32 %v980_v24, %v2324_v29  ;;  %v822_v31 = vpop.f32.mrb[63].mxu0  ;;  %v982_v32 = vpop.f32.mrb[63].mxu1 }
 0x191   :  { %v1046_v33 = vmax.f32 %v819_v21, 0.0  ;;  %v1110_v34 = vmax.f32 %v979_v22, 0.0  ;;  %v823_v35 = vadd.f32 %v822_v31, %v2326_v30  ;;  %v983_v36 = vadd.f32 %v982_v32, %v2326_v30 }
 0x192   :  { %v1047_v37 = vmax.f32 %v821_v27, 0.0  ;;  %v1111_v38 = vmax.f32 %v981_v28, 0.0 }
 0x193   :  { %v1780_v39 = vpack.c.bf16 %v1046_v33, %v1045_v25  ;;  %v1812_v40 = vpack.c.bf16 %v1110_v34, %v1109_v26  ;;  %v1048_v41 = vmax.f32 %v823_v35, 0.0  ;;  %v1112_v42 = vmax.f32 %v983_v36, 0.0 }
 0x195   :  { %1527 = vst [vmem:[%s2651_s3 + $0xf0] sm:$0xff] %v1780_v39  ;;  %1559 = vst [vmem:[%s2651_s3 + $0x1f0] sm:$0xff] %v1812_v40  ;;  %v1781_v29 = vpack.c.bf16 %v1048_v41, %v1047_v37  ;;  %v1813_v43 = vpack.c.bf16 %v1112_v42, %v1111_v38 }
 0x197   :  { %1528 = vst [vmem:[%s2651_s3 + $0xf8] sm:$0xff] %v1781_v29  ;;  %1560 = vst [vmem:[%s2651_s3 + $0x1f8] sm:$0xff] %v1813_v43 }
 0x198   :  { %1565 = vsyncpa [#allocation3], 1 }

// kernel: mixed5b_forward.6
= control target key start
LH: loop header
LB: loop body
LE: loop exit
PB: predicated region body
PF: predicated region fallthrough
CT: control target
= control target key end

     0   :  { %v5728_v0 = vmov 0   ;;  %vm2510_vm0 = vcmask 392192   ;;  %s7462_s1 = inlined_call_operand.vmem [shape: bf16[1200,128], index: 1, kind: input, shape index: {}]   ;;  %s7463_s0 = inlined_call_operand.vmem [shape: bf16[512,1200], index: 0, kind: input, shape index: {}]   ;;  %s7464_s2 = inlined_call_operand.vmem [shape: f32[1,128], index: 2, kind: input, shape index: {}]   ;;  %s7465_s3 = inlined_call_operand.vmem [shape: f32[512,128], index: 3, kind: output, shape index: {}]  }
   0x1   :  { %2607 = vmatprep.subr.bf16.mxu1 %v5728_v0  ;;  %3185 = vmatprep.subr.bf16.mxu0 %v5728_v0  ;;  %v5157_v1 = vld [vmem:[%s7462_s1] sm:$0xff]   ;;  %v5159_v3 = vld [vmem:[%s7462_s1 + $0x8] sm:$0xff]   ;;  %v5161_v5 = vld [vmem:[%s7462_s1 + $0x10] sm:$0xff]  }
   0x2   :  { %v5158_v2 = vld [vmem:[%s7462_s1 + $0x100] sm:$0xff]   ;;  %2608 = vmatpush1.bf16.msra.mxu1 %v5157_v1  ;;  %v5160_v4 = vld [vmem:[%s7462_s1 + $0x108] sm:$0xff]   ;;  %v5162_v6 = vld [vmem:[%s7462_s1 + $0x110] sm:$0xff]  }
   0x3   :  { %3186 = vmatpush1.bf16.msra.mxu0 %v5158_v2  ;;  %2609 = vmatprep.subr.bf16.mxu1 %v5728_v0  ;;  %v5163_v7 = vld [vmem:[%s7462_s1 + $0x18] sm:$0xff]   ;;  %v5165_v9 = vld [vmem:[%s7462_s1 + $0x20] sm:$0xff]   ;;  %v5167_v11 = vld [vmem:[%s7462_s1 + $0x28] sm:$0xff]  }
   0x4   :  { %3187 = vmatprep.subr.bf16.mxu0 %v5728_v0  ;;  %v5164_v8 = vld [vmem:[%s7462_s1 + $0x118] sm:$0xff]   ;;  %v5166_v10 = vld [vmem:[%s7462_s1 + $0x120] sm:$0xff]   ;;  %v5168_v12 = vld [vmem:[%s7462_s1 + $0x128] sm:$0xff]  }
   0x5   :  { %v5169_v13 = vld [vmem:[%s7462_s1 + $0x30] sm:$0xff]   ;;  %v5171_v15 = vld [vmem:[%s7462_s1 + $0x38] sm:$0xff]   ;;  %v5173_v17 = vld [vmem:[%s7462_s1 + $0x40] sm:$0xff]  }
   0x6   :  { %2610 = vmatpush1.bf16.msra.mxu1 %v5159_v3  ;;  %v5170_v14 = vld [vmem:[%s7462_s1 + $0x130] sm:$0xff]   ;;  %v5172_v16 = vld [vmem:[%s7462_s1 + $0x138] sm:$0xff]   ;;  %v5174_v18 = vld [vmem:[%s7462_s1 + $0x140] sm:$0xff]  }
   0x7   :  { %3188 = vmatpush1.bf16.msra.mxu0 %v5160_v4  ;;  %2611 = vmatprep.subr.bf16.mxu1 %v5728_v0  ;;  %v5191_v19 = vld [vmem:[%s7463_s0 + $0x4] ss:$40 sps:$4 sm:$0xff]   ;;  %v5194_v21 = vld [vmem:[%s7463_s0 + $0x14] ss:$40 sps:$4 sm:$0xff]   ;;  %v5189_v35 = vld [vmem:[%s7463_s0] ss:$40 sps:$4 sm:$0xff]  }
   0x8   :  { %3189 = vmatprep.subr.bf16.mxu0 %v5728_v0  ;;  %v5175_v20 = vld [vmem:[%s7462_s1 + $0x48] sm:$0xff]   ;;  %2639 = vmatprep.mubr.bf16.mxu1 %v5191_v19  ;;  %v5177_v23 = vld [vmem:[%s7462_s1 + $0x50] sm:$0xff]   ;;  %v5179_v25 = vld [vmem:[%s7462_s1 + $0x58] sm:$0xff]  }
   0x9   :  { %v5176_v22 = vld [vmem:[%s7462_s1 + $0x148] sm:$0xff]   ;;  %3217 = vmatprep.mubr.bf16.mxu0 %v5194_v21  ;;  %v5178_v24 = vld [vmem:[%s7462_s1 + $0x150] sm:$0xff]   ;;  %v5180_v26 = vld [vmem:[%s7462_s1 + $0x158] sm:$0xff]  }
   0xa   :  { %2612 = vmatpush1.bf16.msra.mxu1 %v5161_v5  ;;  %v5181_v27 = vld [vmem:[%s7462_s1 + $0x60] sm:$0xff]   ;;  %v5183_v29 = vld [vmem:[%s7462_s1 + $0x68] sm:$0xff]   ;;  %v5185_v31 = vld [vmem:[%s7462_s1 + $0x70] sm:$0xff]  }
   0xb   :  { %3190 = vmatpush1.bf16.msra.mxu0 %v5162_v6  ;;  %2613 = vmatprep.subr.bf16.mxu1 %v5728_v0  ;;  %v5182_v28 = vld [vmem:[%s7462_s1 + $0x160] sm:$0xff]   ;;  %v5184_v30 = vld [vmem:[%s7462_s1 + $0x168] sm:$0xff]   ;;  %v5186_v32 = vld [vmem:[%s7462_s1 + $0x170] sm:$0xff]  }
   0xc   :  { %3191 = vmatprep.subr.bf16.mxu0 %v5728_v0  ;;  %v5187_v33 = vld [vmem:[%s7462_s1 + $0x78] sm:$0xff]   ;;  %v5195_v37 = vld [vmem:[%s7462_s1 + $0x80] sm:$0xff]   ;;  %v5210_v41 = vld [vmem:[%s7462_s1 + $0x88] sm:$0xff]  }
   0xd   :  { %v5188_v34 = vld [vmem:[%s7462_s1 + $0x178] sm:$0xff]   ;;  %v5196_v38 = vld [vmem:[%s7462_s1 + $0x180] sm:$0xff]   ;;  %v5203_v43 = vld [vmem:[%s7462_s1 + $0x188] sm:$0xff]  }
   0xe   :  { %2614 = vmatpush1.bf16.msra.mxu1 %v5163_v7  ;;  %v5192_v36 = vld [vmem:[%s7463_s0 + $0x10] ss:$40 sps:$4 sm:$0xff]   ;;  %v5197_v39 = vld [vmem:[%s7463_s0 + $0x54] ss:$40 sps:$4 sm:$0xff]   ;;  %v5199_v40 = vld [vmem:[%s7463_s0 + $0x64] ss:$40 sps:$4 sm:$0xff]  }
   0xf   :  { %3192 = vmatpush1.bf16.msra.mxu0 %v5164_v8  ;;  %2615 = vmatprep.subr.bf16.mxu1 %v5728_v0  ;;  %v5201_v42 = vld [vmem:[%s7463_s0 + $0x50] ss:$40 sps:$4 sm:$0xff]   ;;  %v5202_v44 = vld [vmem:[%s7463_s0 + $0x60] ss:$40 sps:$4 sm:$0xff]   ;;  %v5204_v45 = vld [vmem:[%s7463_s0 + $0xa4] ss:$40 sps:$4 sm:$0xff]  }
  0x10   :  { %3193 = vmatprep.subr.bf16.mxu0 %v5728_v0  ;;  %v5206_v46 = vld [vmem:[%s7463_s0 + $0xb4] ss:$40 sps:$4 sm:$0xff]   ;;  %v5208_v49 = vld [vmem:[%s7463_s0 + $0xa0] ss:$40 sps:$4 sm:$0xff]   ;;  %v5209_v51 = vld [vmem:[%s7463_s0 + $0xb0] ss:$40 sps:$4 sm:$0xff]  }
  0x11   :  { %v5211_v47 = vld [vmem:[%s7462_s1 + $0x190] sm:$0xff]   ;;  %v5218_v50 = vld [vmem:[%s7462_s1 + $0x198] sm:$0xff]   ;;  %v5214_v54 = vld [vmem:[%s7463_s0 + $0x104] ss:$40 sps:$4 sm:$0xff]  }
  0x12   :  { %2616 = vmatpush1.bf16.msra.mxu1 %v5165_v9  ;;  %v5225_v48 = vld [vmem:[%s7462_s1 + $0x90] sm:$0xff]   ;;  %v5240_v52 = vld [vmem:[%s7462_s1 + $0x98] sm:$0xff]   ;;  %v5226_v55 = vld [vmem:[%s7462_s1 + $0x1a0] sm:$0xff]  }
  0x13   :  { %3194 = vmatpush1.bf16.msra.mxu0 %v5166_v10  ;;  %2617 = vmatprep.subr.bf16.mxu1 %v5728_v0  ;;  %v5212_v53 = vld [vmem:[%s7463_s0 + $0xf4] ss:$40 sps:$4 sm:$0xff]   ;;  %v5255_v56 = vld [vmem:[%s7462_s1 + $0xa0] sm:$0xff]   ;;  %v5216_v57 = vld [vmem:[%s7463_s0 + $0xf0] ss:$40 sps:$4 sm:$0xff]  }
  0x14   :  { %3195 = vmatprep.subr.bf16.mxu0 %v5728_v0  ;;  %v5233_v58 = vld [vmem:[%s7462_s1 + $0x1a8] sm:$0xff]   ;;  %v5221_v62 = vld [vmem:[%s7463_s0 + $0x154] ss:$40 sps:$4 sm:$0xff]   ;;  %v5224_v4 = vld [vmem:[%s7463_s0 + $0x150] ss:$40 sps:$4 sm:$0xff]  }
  0x15   :  { %v5217_v59 = vld [vmem:[%s7463_s0 + $0x100] ss:$40 sps:$4 sm:$0xff]   ;;  %v5219_v61 = vld [vmem:[%s7463_s0 + $0x144] ss:$40 sps:$4 sm:$0xff]   ;;  %v5241_v63 = vld [vmem:[%s7462_s1 + $0x1b0] sm:$0xff]  }
  0x16   :  { %2618 = vmatpush1.bf16.msra.mxu1 %v5167_v11  ;;  %v5270_v60 = vld [vmem:[%s7462_s1 + $0xa8] sm:$0xff]   ;;  %v5285_v1 = vld [vmem:[%s7462_s1 + $0xb0] sm:$0xff]   ;;  %v5248_v2 = vld [vmem:[%s7462_s1 + $0x1b8] sm:$0xff]  }
  0x17   :  { %3196 = vmatpush1.bf16.msra.mxu0 %v5168_v12  ;;  %2619 = vmatprep.subr.bf16.mxu1 %v5728_v0  ;;  %v5223_v3 = vld [vmem:[%s7463_s0 + $0x140] ss:$40 sps:$4 sm:$0xff]   ;;  %v5227_v5 = vld [vmem:[%s7463_s0 + $0x194] ss:$40 sps:$4 sm:$0xff]   ;;  %v5229_v7 = vld [vmem:[%s7463_s0 + $0x1a4] ss:$40 sps:$4 sm:$0xff]  }
  0x18   :  { %3197 = vmatprep.subr.bf16.mxu0 %v5728_v0  ;;  %v5300_v6 = vld [vmem:[%s7462_s1 + $0xb8] sm:$0xff]   ;;  %v5256_v8 = vld [vmem:[%s7462_s1 + $0x1c0] sm:$0xff]   ;;  %v5263_v10 = vld [vmem:[%s7462_s1 + $0x1c8] sm:$0xff]  }
  0x19   :  { %v5231_v9 = vld [vmem:[%s7463_s0 + $0x190] ss:$40 sps:$4 sm:$0xff]   ;;  %v5232_v11 = vld [vmem:[%s7463_s0 + $0x1a0] ss:$40 sps:$4 sm:$0xff]   ;;  %v5234_v12 = vld [vmem:[%s7463_s0 + $0x1e4] ss:$40 sps:$4 sm:$0xff]  }
  0x1a   :  { %2620 = vmatpush1.bf16.msra.mxu1 %v5169_v13  ;;  %v5236_v13 = vld [vmem:[%s7463_s0 + $0x1f4] ss:$40 sps:$4 sm:$0xff]   ;;  %v5329_v19 = vld [vmem:[%s7462_s1 + $0xc8] sm:$0xff]  }
  0x1b   :  { %3198 = vmatpush1.bf16.msra.mxu0 %v5170_v14  ;;  %2621 = vmatprep.subr.bf16.mxu1 %v5728_v0  ;;  %v5315_v14 = vld [vmem:[%s7462_s1 + $0xc0] sm:$0xff]  }
  0x1c   :  { %3199 = vmatprep.subr.bf16.mxu0 %v5728_v0  ;;  %v5244_v21 = vld [vmem:[%s7463_s0 + $0x244] ss:$40 sps:$4 sm:$0xff]  }
  0x1e   :  { %2622 = vmatpush1.bf16.msra.mxu1 %v5171_v15  ;;  %v5271_v15 = vld [vmem:[%s7462_s1 + $0x1d0] sm:$0xff]  }
  0x1f   :  { %3200 = vmatpush1.bf16.msra.mxu0 %v5172_v16  ;;  %2623 = vmatprep.subr.bf16.mxu1 %v5728_v0  ;;  %v5278_v16 = vld [vmem:[%s7462_s1 + $0x1d8] sm:$0xff]  }
  0x20   :  { %3201 = vmatprep.subr.bf16.mxu0 %v5728_v0 }
  0x22   :  { %2624 = vmatpush1.bf16.msra.mxu1 %v5173_v17  ;;  %v5238_v17 = vld [vmem:[%s7463_s0 + $0x1e0] ss:$40 sps:$4 sm:$0xff]  }
  0x23   :  { %3202 = vmatpush1.bf16.msra.mxu0 %v5174_v18  ;;  %2625 = vmatprep.subr.bf16.mxu1 %v5728_v0  ;;  %v5239_v18 = vld [vmem:[%s7463_s0 + $0x1f0] ss:$40 sps:$4 sm:$0xff]  }
  0x24   :  { %3203 = vmatprep.subr.bf16.mxu0 %v5728_v0 }
  0x26   :  { %2626 = vmatpush1.bf16.msra.mxu1 %v5175_v20  ;;  %v5242_v20 = vld [vmem:[%s7463_s0 + $0x234] ss:$40 sps:$4 sm:$0xff]  }
  0x27   :  { %3204 = vmatpush1.bf16.msra.mxu0 %v5176_v22  ;;  %2627 = vmatprep.subr.bf16.mxu1 %v5728_v0  ;;  %v5286_v22 = vld [vmem:[%s7462_s1 + $0x1e0] sm:$0xff]  }
  0x28   :  { %3205 = vmatprep.subr.bf16.mxu0 %v5728_v0 }
  0x2a   :  { %2628 = vmatpush1.bf16.msra.mxu1 %v5177_v23  ;;  %v5246_v23 = vld [vmem:[%s7463_s0 + $0x230] ss:$40 sps:$4 sm:$0xff]  }
  0x2b   :  { %3206 = vmatpush1.bf16.msra.mxu0 %v5178_v24  ;;  %2629 = vmatprep.subr.bf16.mxu1 %v5728_v0  ;;  %v5293_v24 = vld [vmem:[%s7462_s1 + $0x1e8] sm:$0xff]  }
  0x2c   :  { %3207 = vmatprep.subr.bf16.mxu0 %v5728_v0 }
  0x2e   :  { %2630 = vmatpush1.bf16.msra.mxu1 %v5179_v25  ;;  %v5343_v25 = vld [vmem:[%s7462_s1 + $0xd0] sm:$0xff]  }
  0x2f   :  { %3208 = vmatpush1.bf16.msra.mxu0 %v5180_v26  ;;  %2631 = vmatprep.subr.bf16.mxu1 %v5728_v0  ;;  %v5247_v26 = vld [vmem:[%s7463_s0 + $0x240] ss:$40 sps:$4 sm:$0xff]  }
  0x30   :  { %3209 = vmatprep.subr.bf16.mxu0 %v5728_v0 }
  0x32   :  { %2632 = vmatpush1.bf16.msra.mxu1 %v5181_v27  ;;  %v5249_v27 = vld [vmem:[%s7463_s0 + $0x284] ss:$40 sps:$4 sm:$0xff]  }
  0x33   :  { %3210 = vmatpush1.bf16.msra.mxu0 %v5182_v28  ;;  %2633 = vmatprep.subr.bf16.mxu1 %v5728_v0  ;;  %v5251_v28 = vld [vmem:[%s7463_s0 + $0x294] ss:$40 sps:$4 sm:$0xff]  }
  0x34   :  { %3211 = vmatprep.subr.bf16.mxu0 %v5728_v0 }
  0x36   :  { %2634 = vmatpush1.bf16.msra.mxu1 %v5183_v29  ;;  %v5301_v29 = vld [vmem:[%s7462_s1 + $0x1f0] sm:$0xff]  }
  0x37   :  { %3212 = vmatpush1.bf16.msra.mxu0 %v5184_v30  ;;  %2635 = vmatprep.subr.bf16.mxu1 %v5728_v0  ;;  %v5308_v30 = vld [vmem:[%s7462_s1 + $0x1f8] sm:$0xff]  }
  0x38   :  { %3213 = vmatprep.subr.bf16.mxu0 %v5728_v0 }
  0x3a   :  { %2636 = vmatpush1.bf16.msra.mxu1 %v5185_v31  ;;  %v5356_v31 = vld [vmem:[%s7462_s1 + $0xd8] sm:$0xff]  }
  0x3b   :  { %3214 = vmatpush1.bf16.msra.mxu0 %v5186_v32  ;;  %2637 = vmatprep.subr.bf16.mxu1 %v5728_v0  ;;  %v5253_v32 = vld [vmem:[%s7463_s0 + $0x280] ss:$40 sps:$4 sm:$0xff]  }
  0x3c   :  { %3215 = vmatprep.subr.bf16.mxu0 %v5728_v0 }
  0x3e   :  { %2638 = vmatpush1.bf16.msra.mxu1 %v5187_v33  ;;  %v5254_v33 = vld [vmem:[%s7463_s0 + $0x290] ss:$40 sps:$4 sm:$0xff]  }
  0x3f   :  { %3216 = vmatpush1.bf16.msra.mxu0 %v5188_v34  ;;  %2896 = vmatprep.subr.bf16.mxu1 %v5728_v0  ;;  %v5257_v34 = vld [vmem:[%s7463_s0 + $0x2d4] ss:$40 sps:$4 sm:$0xff]  }
  0x40   :  { %3474 = vmatprep.subr.bf16.mxu0 %v5728_v0 }
  0x41   :  { %2640 = vmatmul.mubr.bf16.vlgmr.msra.gmra.mrb[0].mxu1 %v5189_v35  ;;  %v5259_v35 = vld [vmem:[%s7463_s0 + $0x2e4] ss:$40 sps:$4 sm:$0xff]  }
  0x42   :  { %3218 = vmatmul.mubr.bf16.vlgmr.msra.gmra.mrb[0].mxu0 %v5192_v36  ;;  %2897 = vmatpush1.bf16.msra.mxu1 %v5195_v37  ;;  %v5370_v36 = vld [vmem:[%s7462_s1 + $0xe0] sm:$0xff]   ;;  %v5261_v37 = vld [vmem:[%s7463_s0 + $0x2d0] ss:$40 sps:$4 sm:$0xff]  }
  0x43   :  { %3475 = vmatpush1.bf16.msra.mxu0 %v5196_v38  ;;  %2647 = vmatprep.mubr.bf16.mxu1 %v5197_v39  ;;  %v5262_v38 = vld [vmem:[%s7463_s0 + $0x2e0] ss:$40 sps:$4 sm:$0xff]   ;;  %v5264_v39 = vld [vmem:[%s7463_s0 + $0x324] ss:$40 sps:$4 sm:$0xff]  }
  0x44   :  { %3225 = vmatprep.mubr.bf16.mxu0 %v5199_v40  ;;  %3476 = vmatprep.subr.bf16.mxu0 %v5728_v0  ;;  %v5266_v40 = vld [vmem:[%s7463_s0 + $0x334] ss:$40 sps:$4 sm:$0xff]  }
  0x45   :  { %2898 = vmatprep.subr.bf16.mxu1 %v5728_v0 }
  0x46   :  { %2899 = vmatpush1.bf16.msra.mxu1 %v5210_v41  ;;  %v5268_v41 = vld [vmem:[%s7463_s0 + $0x320] ss:$40 sps:$4 sm:$0xff]  }
  0x47   :  { %3477 = vmatpush1.bf16.msra.mxu0 %v5203_v43  ;;  %2900 = vmatprep.subr.bf16.mxu1 %v5728_v0  ;;  %v5272_v43 = vld [vmem:[%s7463_s0 + $0x374] ss:$40 sps:$4 sm:$0xff]  }
  0x48   :  { %3478 = vmatprep.subr.bf16.mxu0 %v5728_v0 }
  0x49   :  { %2648 = vmatmul.mubr.bf16.gmra.mrb[4].mxu1 %v5201_v42  ;;  %v5269_v42 = vld [vmem:[%s7463_s0 + $0x330] ss:$40 sps:$4 sm:$0xff]  }
  0x4a   :  { %3226 = vmatmul.mubr.bf16.gmra.mrb[4].mxu0 %v5202_v44  ;;  %2655 = vmatprep.mubr.bf16.mxu1 %v5204_v45  ;;  %v5274_v44 = vld [vmem:[%s7463_s0 + $0x384] ss:$40 sps:$4 sm:$0xff]  }
  0x4b   :  { %3233 = vmatprep.mubr.bf16.mxu0 %v5206_v46  ;;  %3479 = vmatpush1.bf16.msra.mxu0 %v5211_v47  ;;  %v5384_v45 = vld [vmem:[%s7462_s1 + $0xe8] sm:$0xff]   ;;  %v5276_v46 = vld [vmem:[%s7463_s0 + $0x370] ss:$40 sps:$4 sm:$0xff]  }
  0x4c   :  { %3480 = vmatprep.subr.bf16.mxu0 %v5728_v0  ;;  %2901 = vmatpush1.bf16.msra.mxu1 %v5225_v48  ;;  %v5277_v47 = vld [vmem:[%s7463_s0 + $0x380] ss:$40 sps:$4 sm:$0xff]   ;;  %v5279_v48 = vld [vmem:[%s7463_s0 + $0x3c4] ss:$40 sps:$4 sm:$0xff]  }
  0x4d   :  { %2902 = vmatprep.subr.bf16.mxu1 %v5728_v0 }
  0x4f   :  { %3481 = vmatpush1.bf16.msra.mxu0 %v5218_v50  ;;  %v5283_v50 = vld [vmem:[%s7463_s0 + $0x3c0] ss:$40 sps:$4 sm:$0xff]  }
  0x50   :  { %3482 = vmatprep.subr.bf16.mxu0 %v5728_v0  ;;  %2903 = vmatpush1.bf16.msra.mxu1 %v5240_v52  ;;  %v5287_v52 = vld [vmem:[%s7463_s0 + $0x414] ss:$40 sps:$4 sm:$0xff]  }
  0x51   :  { %2656 = vmatmul.mubr.bf16.gmra.mrb[8].mxu1 %v5208_v49  ;;  %2904 = vmatprep.subr.bf16.mxu1 %v5728_v0  ;;  %v5281_v49 = vld [vmem:[%s7463_s0 + $0x3d4] ss:$40 sps:$4 sm:$0xff]  }
  0x52   :  { %3234 = vmatmul.mubr.bf16.gmra.mrb[8].mxu0 %v5209_v51  ;;  %2663 = vmatprep.mubr.bf16.mxu1 %v5212_v53  ;;  %v5284_v51 = vld [vmem:[%s7463_s0 + $0x3d0] ss:$40 sps:$4 sm:$0xff]   ;;  %v5289_v53 = vld [vmem:[%s7463_s0 + $0x424] ss:$40 sps:$4 sm:$0xff]  }
  0x53   :  { %3241 = vmatprep.mubr.bf16.mxu0 %v5214_v54  ;;  %3483 = vmatpush1.bf16.msra.mxu0 %v5226_v55  ;;  %v5397_v54 = vld [vmem:[%s7462_s1 + $0xf0] sm:$0xff]  }
  0x54   :  { %3484 = vmatprep.subr.bf16.mxu0 %v5728_v0  ;;  %2905 = vmatpush1.bf16.msra.mxu1 %v5255_v56  ;;  %v5291_v55 = vld [vmem:[%s7463_s0 + $0x410] ss:$40 sps:$4 sm:$0xff]   ;;  %v5292_v56 = vld [vmem:[%s7463_s0 + $0x420] ss:$40 sps:$4 sm:$0xff]  }
  0x55   :  { %2906 = vmatprep.subr.bf16.mxu1 %v5728_v0 }
  0x57   :  { %3485 = vmatpush1.bf16.msra.mxu0 %v5233_v58  ;;  %v5296_v58 = vld [vmem:[%s7463_s0 + $0x474] ss:$40 sps:$4 sm:$0xff]  }
  0x58   :  { %3486 = vmatprep.subr.bf16.mxu0 %v5728_v0  ;;  %2907 = vmatpush1.bf16.msra.mxu1 %v5270_v60  ;;  %v5299_v60 = vld [vmem:[%s7463_s0 + $0x470] ss:$40 sps:$4 sm:$0xff]  }
  0x59   :  { %2664 = vmatmul.mubr.bf16.gmra.mrb[12].mxu1 %v5216_v57  ;;  %2908 = vmatprep.subr.bf16.mxu1 %v5728_v0  ;;  %v5294_v57 = vld [vmem:[%s7463_s0 + $0x464] ss:$40 sps:$4 sm:$0xff]  }
  0x5a   :  { %3242 = vmatmul.mubr.bf16.gmra.mrb[12].mxu0 %v5217_v59  ;;  %2671 = vmatprep.mubr.bf16.mxu1 %v5219_v61  ;;  %v5298_v59 = vld [vmem:[%s7463_s0 + $0x460] ss:$40 sps:$4 sm:$0xff]   ;;  %v5302_v61 = vld [vmem:[%s7463_s0 + $0x4b4] ss:$40 sps:$4 sm:$0xff]  }
  0x5b   :  { %3249 = vmatprep.mubr.bf16.mxu0 %v5221_v62  ;;  %3487 = vmatpush1.bf16.msra.mxu0 %v5241_v63  ;;  %v5304_v62 = vld [vmem:[%s7463_s0 + $0x4c4] ss:$40 sps:$4 sm:$0xff]   ;;  %v5411_v63 = vld [vmem:[%s7462_s1 + $0xf8] sm:$0xff]  }
  0x5c   :  { %3488 = vmatprep.subr.bf16.mxu0 %v5728_v0  ;;  %2909 = vmatpush1.bf16.msra.mxu1 %v5285_v1  ;;  %v5306_v1 = vld [vmem:[%s7463_s0 + $0x4b0] ss:$40 sps:$4 sm:$0xff]  }
  0x5d   :  { %2910 = vmatprep.subr.bf16.mxu1 %v5728_v0 }
  0x5f   :  { %3489 = vmatpush1.bf16.msra.mxu0 %v5248_v2  ;;  %v5307_v2 = vld [vmem:[%s7463_s0 + $0x4c0] ss:$40 sps:$4 sm:$0xff]  }
  0x60   :  { %3490 = vmatprep.subr.bf16.mxu0 %v5728_v0  ;;  %2911 = vmatpush1.bf16.msra.mxu1 %v5300_v6  ;;  %v5311_v6 = vld [vmem:[%s7463_s0 + $0x18] ss:$40 sps:$4 sm:$0xff]  }
  0x61   :  { %2672 = vmatmul.mubr.bf16.gmra.mrb[16].mxu1 %v5223_v3  ;;  %2912 = vmatprep.subr.bf16.mxu1 %v5728_v0  ;;  %v5309_v3 = vld [vmem:[%s7463_s0 + $0x504] ss:$40 sps:$4 sm:$0xff]  }
  0x62   :  { %3250 = vmatmul.mubr.bf16.gmra.mrb[16].mxu0 %v5224_v4  ;;  %2679 = vmatprep.mubr.bf16.mxu1 %v5227_v5  ;;  %v5313_v4 = vld [vmem:[%s7463_s0 + $0x1c] ss:$40 sps:$4 sm:$0xff]   ;;  %v5314_v5 = vld [vmem:[%s7463_s0 + $0x500] ss:$40 sps:$4 sm:$0xff]  }
  0x63   :  { %3257 = vmatprep.mubr.bf16.mxu0 %v5229_v7  ;;  %3491 = vmatpush1.bf16.msra.mxu0 %v5256_v8  ;;  %v5317_v7 = vld [vmem:[%s7463_s0 + $0x554] ss:$40 sps:$4 sm:$0xff]   ;;  %v5316_v8 = vld [vmem:[%s7462_s1 + $0x200] sm:$0xff]  }
  0x64   :  { %3492 = vmatprep.subr.bf16.mxu0 %v5728_v0  ;;  %2913 = vmatpush1.bf16.msra.mxu1 %v5315_v14  ;;  %v5325_v14 = vld [vmem:[%s7463_s0 + $0xbc] ss:$40 sps:$4 sm:$0xff]  }
  0x65   :  { %2914 = vmatprep.subr.bf16.mxu1 %v5728_v0 }
  0x67   :  { %3493 = vmatpush1.bf16.msra.mxu0 %v5263_v10  ;;  %v5321_v10 = vld [vmem:[%s7463_s0 + $0x550] ss:$40 sps:$4 sm:$0xff]  }
  0x68   :  { %3494 = vmatprep.subr.bf16.mxu0 %v5728_v0  ;;  %2915 = vmatpush1.bf16.msra.mxu1 %v5329_v19  ;;  %v5330_v19 = vld [vmem:[%s7463_s0 + $0x5f4] ss:$40 sps:$4 sm:$0xff]  }
  0x69   :  { %2680 = vmatmul.mubr.bf16.gmra.mrb[20].mxu1 %v5231_v9  ;;  %2916 = vmatprep.subr.bf16.mxu1 %v5728_v0  ;;  %v5319_v9 = vld [vmem:[%s7463_s0 + $0x6c] ss:$40 sps:$4 sm:$0xff]  }
  0x6a   :  { %3258 = vmatmul.mubr.bf16.gmra.mrb[20].mxu0 %v5232_v11  ;;  %2687 = vmatprep.mubr.bf16.mxu1 %v5234_v12  ;;  %v5336_v11 = vld [vmem:[%s7462_s1 + $0x208] sm:$0xff]  }
  0x6b   :  { %3265 = vmatprep.mubr.bf16.mxu0 %v5236_v13  ;;  %3495 = vmatpush1.bf16.msra.mxu0 %v5271_v15  ;;  %v5322_v12 = vld [vmem:[%s7463_s0 + $0x68] ss:$40 sps:$4 sm:$0xff]   ;;  %v5323_v13 = vld [vmem:[%s7463_s0 + $0x5a4] ss:$40 sps:$4 sm:$0xff]  }
  0x6c   :  { %3496 = vmatprep.subr.bf16.mxu0 %v5728_v0  ;;  %2917 = vmatpush1.bf16.msra.mxu1 %v5343_v25  ;;  %v5357_v15 = vld [vmem:[%s7462_s1 + $0x210] sm:$0xff]   ;;  %v5337_v25 = vld [vmem:[%s7463_s0 + $0x644] ss:$40 sps:$4 sm:$0xff]  }
  0x6d   :  { %2918 = vmatprep.subr.bf16.mxu1 %v5728_v0 }
  0x6f   :  { %3497 = vmatpush1.bf16.msra.mxu0 %v5278_v16  ;;  %v5327_v16 = vld [vmem:[%s7463_s0 + $0x5a0] ss:$40 sps:$4 sm:$0xff]  }
  0x70   :  { %3498 = vmatprep.subr.bf16.mxu0 %v5728_v0  ;;  %2919 = vmatpush1.bf16.msra.mxu1 %v5356_v31  ;;  %v5346_v31 = vld [vmem:[%s7463_s0 + $0x1ac] ss:$40 sps:$4 sm:$0xff]  }
  0x71   :  { %2688 = vmatmul.mubr.bf16.gmra.mrb[24].mxu1 %v5238_v17  ;;  %2920 = vmatprep.subr.bf16.mxu1 %v5728_v0  ;;  %v5377_v17 = vld [vmem:[%s7462_s1 + $0x218] sm:$0xff]  }
  0x72   :  { %3266 = vmatmul.mubr.bf16.gmra.mrb[24].mxu0 %v5239_v18  ;;  %2695 = vmatprep.mubr.bf16.mxu1 %v5242_v20  ;;  %v5328_v18 = vld [vmem:[%s7463_s0 + $0xb8] ss:$40 sps:$4 sm:$0xff]   ;;  %v5332_v20 = vld [vmem:[%s7463_s0 + $0x10c] ss:$40 sps:$4 sm:$0xff]  }
  0x73   :  { %3273 = vmatprep.mubr.bf16.mxu0 %v5244_v21  ;;  %3499 = vmatpush1.bf16.msra.mxu0 %v5286_v22  ;;  %v5398_v21 = vld [vmem:[%s7462_s1 + $0x220] sm:$0xff]   ;;  %v5334_v22 = vld [vmem:[%s7463_s0 + $0x5f0] ss:$40 sps:$4 sm:$0xff]  }
  0x74   :  { %3500 = vmatprep.subr.bf16.mxu0 %v5728_v0  ;;  %2921 = vmatpush1.bf16.msra.mxu1 %v5370_v36  ;;  %v5352_v36 = vld [vmem:[%s7463_s0 + $0x1fc] ss:$40 sps:$4 sm:$0xff]  }
  0x75   :  { %2922 = vmatprep.subr.bf16.mxu1 %v5728_v0 }
  0x77   :  { %3501 = vmatpush1.bf16.msra.mxu0 %v5293_v24  ;;  %v5335_v24 = vld [vmem:[%s7463_s0 + $0x108] ss:$40 sps:$4 sm:$0xff]  }
  0x78   :  { %3502 = vmatprep.subr.bf16.mxu0 %v5728_v0  ;;  %2923 = vmatpush1.bf16.msra.mxu1 %v5384_v45  ;;  %v5469_v45 = vld [vmem:[%s7462_s1 + $0x240] sm:$0xff]  }
  0x79   :  { %2696 = vmatmul.mubr.bf16.gmra.mrb[28].mxu1 %v5246_v23  ;;  %2924 = vmatprep.subr.bf16.mxu1 %v5728_v0  ;;  %v5418_v23 = vld [vmem:[%s7462_s1 + $0x228] sm:$0xff]  }
  0x7a   :  { %3274 = vmatmul.mubr.bf16.gmra.mrb[28].mxu0 %v5247_v26  ;;  %2703 = vmatprep.mubr.bf16.mxu1 %v5249_v27  ;;  %v5339_v26 = vld [vmem:[%s7463_s0 + $0x15c] ss:$40 sps:$4 sm:$0xff]   ;;  %v5435_v27 = vld [vmem:[%s7462_s1 + $0x230] sm:$0xff]  }
  0x7b   :  { %3281 = vmatprep.mubr.bf16.mxu0 %v5251_v28  ;;  %3503 = vmatpush1.bf16.msra.mxu0 %v5301_v29  ;;  %v5341_v28 = vld [vmem:[%s7463_s0 + $0x640] ss:$40 sps:$4 sm:$0xff]  }
  0x7c   :  { %3504 = vmatprep.subr.bf16.mxu0 %v5728_v0  ;;  %2925 = vmatpush1.bf16.msra.mxu1 %v5397_v54  ;;  %v5342_v29 = vld [vmem:[%s7463_s0 + $0x158] ss:$40 sps:$4 sm:$0xff]  }
  0x7d   :  { %2926 = vmatprep.subr.bf16.mxu1 %v5728_v0  ;;  %v5382_v54 = vld [vmem:[%s7463_s0 + $0x820] ss:$40 sps:$4 sm:$0xff]  }
  0x7f   :  { %3505 = vmatpush1.bf16.msra.mxu0 %v5308_v30  ;;  %v5344_v30 = vld [vmem:[%s7463_s0 + $0x694] ss:$40 sps:$4 sm:$0xff]  }
  0x80   :  { %3763 = vmatprep.subr.bf16.mxu0 %v5728_v0  ;;  %2927 = vmatpush1.bf16.msra.mxu1 %v5411_v63  ;;  %v5395_v63 = vld [vmem:[%s7463_s0 + $0x8c0] ss:$40 sps:$4 sm:$0xff]  }
  0x81   :  { %2704 = vmatmul.mubr.bf16.gmra.mrb[32].mxu1 %v5253_v32  ;;  %4612 = vmatprep.subr.bf16.mxu1 %v5728_v0  ;;  %v5450_v32 = vld [vmem:[%s7462_s1 + $0x238] sm:$0xff]  }
  0x82   :  { %3282 = vmatmul.mubr.bf16.gmra.mrb[32].mxu0 %v5254_v33  ;;  %2711 = vmatprep.mubr.bf16.mxu1 %v5257_v34  ;;  %v5348_v33 = vld [vmem:[%s7463_s0 + $0x690] ss:$40 sps:$4 sm:$0xff]  }
  0x83   :  { %3289 = vmatprep.mubr.bf16.mxu0 %v5259_v35  ;;  %v5349_v34 = vld [vmem:[%s7463_s0 + $0x1a8] ss:$40 sps:$4 sm:$0xff]   ;;  %v5350_v35 = vld [vmem:[%s7463_s0 + $0x6e4] ss:$40 sps:$4 sm:$0xff]  }
  0x89   :  { %2712 = vmatmul.mubr.bf16.gmra.mrb[36].mxu1 %v5261_v37  ;;  %v5354_v37 = vld [vmem:[%s7463_s0 + $0x6e0] ss:$40 sps:$4 sm:$0xff]  }
  0x8a   :  { %3290 = vmatmul.mubr.bf16.gmra.mrb[36].mxu0 %v5262_v38  ;;  %2719 = vmatprep.mubr.bf16.mxu1 %v5264_v39  ;;  %v5355_v38 = vld [vmem:[%s7463_s0 + $0x1f8] ss:$40 sps:$4 sm:$0xff]   ;;  %v5358_v39 = vld [vmem:[%s7463_s0 + $0x734] ss:$40 sps:$4 sm:$0xff]  }
  0x8b   :  { %3297 = vmatprep.mubr.bf16.mxu0 %v5266_v40  ;;  %v5360_v40 = vld [vmem:[%s7463_s0 + $0x24c] ss:$40 sps:$4 sm:$0xff]  }
  0x91   :  { %2720 = vmatmul.mubr.bf16.gmra.mrb[40].mxu1 %v5268_v41  ;;  %v5362_v41 = vld [vmem:[%s7463_s0 + $0x730] ss:$40 sps:$4 sm:$0xff]  }
  0x92   :  { %3298 = vmatmul.mubr.bf16.gmra.mrb[40].mxu0 %v5269_v42  ;;  %2727 = vmatprep.mubr.bf16.mxu1 %v5272_v43  ;;  %v5363_v42 = vld [vmem:[%s7463_s0 + $0x248] ss:$40 sps:$4 sm:$0xff]   ;;  %v5364_v43 = vld [vmem:[%s7463_s0 + $0x784] ss:$40 sps:$4 sm:$0xff]  }
  0x93   :  { %3305 = vmatprep.mubr.bf16.mxu0 %v5274_v44  ;;  %v5366_v44 = vld [vmem:[%s7463_s0 + $0x29c] ss:$40 sps:$4 sm:$0xff]  }
  0x99   :  { %2728 = vmatmul.mubr.bf16.gmra.mrb[44].mxu1 %v5276_v46  ;;  %v5368_v46 = vld [vmem:[%s7463_s0 + $0x780] ss:$40 sps:$4 sm:$0xff]  }
  0x9a   :  { %3306 = vmatmul.mubr.bf16.gmra.mrb[44].mxu0 %v5277_v47  ;;  %2735 = vmatprep.mubr.bf16.mxu1 %v5279_v48  ;;  %v5369_v47 = vld [vmem:[%s7463_s0 + $0x298] ss:$40 sps:$4 sm:$0xff]   ;;  %v5371_v48 = vld [vmem:[%s7463_s0 + $0x7d4] ss:$40 sps:$4 sm:$0xff]  }
  0x9b   :  { %3313 = vmatprep.mubr.bf16.mxu0 %v5281_v49  ;;  %v5373_v49 = vld [vmem:[%s7463_s0 + $0x2ec] ss:$40 sps:$4 sm:$0xff]  }
  0xa1   :  { %2736 = vmatmul.mubr.bf16.gmra.mrb[48].mxu1 %v5283_v50  ;;  %v5375_v50 = vld [vmem:[%s7463_s0 + $0x7d0] ss:$40 sps:$4 sm:$0xff]  }
  0xa2   :  { %3314 = vmatmul.mubr.bf16.gmra.mrb[48].mxu0 %v5284_v51  ;;  %2743 = vmatprep.mubr.bf16.mxu1 %v5287_v52  ;;  %v5376_v51 = vld [vmem:[%s7463_s0 + $0x2e8] ss:$40 sps:$4 sm:$0xff]   ;;  %v5378_v52 = vld [vmem:[%s7463_s0 + $0x824] ss:$40 sps:$4 sm:$0xff]  }
  0xa3   :  { %3321 = vmatprep.mubr.bf16.mxu0 %v5289_v53  ;;  %v5380_v53 = vld [vmem:[%s7463_s0 + $0x33c] ss:$40 sps:$4 sm:$0xff]  }
  0xa9   :  { %2744 = vmatmul.mubr.bf16.gmra.mrb[52].mxu1 %v5291_v55  ;;  %v5383_v55 = vld [vmem:[%s7463_s0 + $0x338] ss:$40 sps:$4 sm:$0xff]  }
  0xaa   :  { %3322 = vmatmul.mubr.bf16.gmra.mrb[52].mxu0 %v5292_v56  ;;  %2751 = vmatprep.mubr.bf16.mxu1 %v5294_v57  ;;  %v5385_v56 = vld [vmem:[%s7463_s0 + $0x874] ss:$40 sps:$4 sm:$0xff]  }
  0xab   :  { %3329 = vmatprep.mubr.bf16.mxu0 %v5296_v58  ;;  %v5387_v57 = vld [vmem:[%s7463_s0 + $0x38c] ss:$40 sps:$4 sm:$0xff]  }
  0xac   :  { %v5488_v58 = vld [vmem:[%s7462_s1 + $0x248] sm:$0xff]  }
  0xb1   :  { %2752 = vmatmul.mubr.bf16.gmra.mrb[56].mxu1 %v5298_v59  ;;  %v5389_v59 = vld [vmem:[%s7463_s0 + $0x870] ss:$40 sps:$4 sm:$0xff]  }
  0xb2   :  { %3330 = vmatmul.mubr.bf16.gmra.mrb[56].mxu0 %v5299_v60  ;;  %2759 = vmatprep.mubr.bf16.mxu1 %v5302_v61  ;;  %v5390_v60 = vld [vmem:[%s7463_s0 + $0x388] ss:$40 sps:$4 sm:$0xff]   ;;  %v5391_v61 = vld [vmem:[%s7463_s0 + $0x8c4] ss:$40 sps:$4 sm:$0xff]  }
  0xb3   :  { %3337 = vmatprep.mubr.bf16.mxu0 %v5304_v62  ;;  %v5393_v62 = vld [vmem:[%s7463_s0 + $0x3dc] ss:$40 sps:$4 sm:$0xff]  }
  0xb9   :  { %2760 = vmatmul.mubr.bf16.gmra.mrb[60].mxu1 %v5306_v1  ;;  %v5396_v1 = vld [vmem:[%s7463_s0 + $0x3d8] ss:$40 sps:$4 sm:$0xff]  }
  0xba   :  { %3338 = vmatmul.mubr.bf16.gmra.mrb[60].mxu0 %v5307_v2  ;;  %2767 = vmatprep.mubr.bf16.mxu1 %v5309_v3  ;;  %v5399_v2 = vld [vmem:[%s7463_s0 + $0x914] ss:$40 sps:$4 sm:$0xff]  }
  0xbb   :  { %3506 = vmatprep.mubr.bf16.mxu0 %v5313_v4  ;;  %v5401_v3 = vld [vmem:[%s7463_s0 + $0x42c] ss:$40 sps:$4 sm:$0xff]   ;;  %v5403_v4 = vld [vmem:[%s7463_s0 + $0x910] ss:$40 sps:$4 sm:$0xff]  }
  0xc1   :  { %2768 = vmatmul.mubr.bf16.gmra.mrb[64].mxu1 %v5314_v5  ;;  %v5404_v5 = vld [vmem:[%s7463_s0 + $0x428] ss:$40 sps:$4 sm:$0xff]  }
  0xc2   :  { %3507 = vmatmul.mubr.bf16.vlgmr.msra.gmra.mrb[0].mxu0 %v5311_v6  ;;  %2775 = vmatprep.mubr.bf16.mxu1 %v5317_v7  ;;  %v5405_v6 = vld [vmem:[%s7463_s0 + $0x964] ss:$40 sps:$4 sm:$0xff]  }
  0xc3   :  { %3764 = vmatpush1.bf16.msra.mxu0 %v5316_v8  ;;  %3514 = vmatprep.mubr.bf16.mxu0 %v5319_v9  ;;  %v5407_v7 = vld [vmem:[%s7463_s0 + $0x47c] ss:$40 sps:$4 sm:$0xff]   ;;  %v5507_v8 = vld [vmem:[%s7462_s1 + $0x250] sm:$0xff]   ;;  %v5409_v9 = vld [vmem:[%s7463_s0 + $0x960] ss:$40 sps:$4 sm:$0xff]  }
  0xc4   :  { %3765 = vmatprep.subr.bf16.mxu0 %v5728_v0 }
  0xc7   :  { %3766 = vmatpush1.bf16.msra.mxu0 %v5336_v11  ;;  %v5412_v11 = vld [vmem:[%s7463_s0 + $0x9b4] ss:$40 sps:$4 sm:$0xff]  }
  0xc8   :  { %3767 = vmatprep.subr.bf16.mxu0 %v5728_v0 }
  0xc9   :  { %2776 = vmatmul.mubr.bf16.gmra.mrb[68].mxu1 %v5321_v10  ;;  %v5410_v10 = vld [vmem:[%s7463_s0 + $0x478] ss:$40 sps:$4 sm:$0xff]  }
  0xca   :  { %3515 = vmatmul.mubr.bf16.gmra.mrb[4].mxu0 %v5322_v12  ;;  %2783 = vmatprep.mubr.bf16.mxu1 %v5323_v13  ;;  %v5414_v12 = vld [vmem:[%s7463_s0 + $0x4cc] ss:$40 sps:$4 sm:$0xff]   ;;  %v5416_v13 = vld [vmem:[%s7463_s0 + $0x9b0] ss:$40 sps:$4 sm:$0xff]  }
  0xcb   :  { %3522 = vmatprep.mubr.bf16.mxu0 %v5325_v14  ;;  %3768 = vmatpush1.bf16.msra.mxu0 %v5357_v15  ;;  %v5417_v14 = vld [vmem:[%s7463_s0 + $0x4c8] ss:$40 sps:$4 sm:$0xff]   ;;  %v5421_v15 = vld [vmem:[%s7463_s0 + $0xc] ss:$40 sps:$4 sm:$0xff]  }
  0xcc   :  { %3769 = vmatprep.subr.bf16.mxu0 %v5728_v0 }
  0xcf   :  { %3770 = vmatpush1.bf16.msra.mxu0 %v5377_v17  ;;  %v5419_v17 = vld [vmem:[%s7463_s0 + $0x8] ss:$40 sps:$4 sm:$0xff]  }
  0xd0   :  { %3771 = vmatprep.subr.bf16.mxu0 %v5728_v0 }
  0xd1   :  { %2784 = vmatmul.mubr.bf16.gmra.mrb[72].mxu1 %v5327_v16  ;;  %v5422_v16 = vld [vmem:[%s7463_s0 + $0x51c] ss:$40 sps:$4 sm:$0xff]  }
  0xd2   :  { %3523 = vmatmul.mubr.bf16.gmra.mrb[8].mxu0 %v5328_v18  ;;  %2791 = vmatprep.mubr.bf16.mxu1 %v5330_v19  ;;  %v5424_v18 = vld [vmem:[%s7463_s0 + $0x518] ss:$40 sps:$4 sm:$0xff]   ;;  %v5425_v19 = vld [vmem:[%s7463_s0 + $0x5c] ss:$40 sps:$4 sm:$0xff]  }
  0xd3   :  { %3530 = vmatprep.mubr.bf16.mxu0 %v5332_v20  ;;  %3772 = vmatpush1.bf16.msra.mxu0 %v5398_v21  ;;  %v5427_v20 = vld [vmem:[%s7463_s0 + $0x56c] ss:$40 sps:$4 sm:$0xff]   ;;  %v5712_v21 = vld [vmem:[%s7462_s1 + $0x100] sm:$0xff]  }
  0xd4   :  { %3773 = vmatprep.subr.bf16.mxu0 %v5728_v0 }
  0xd7   :  { %3774 = vmatpush1.bf16.msra.mxu0 %v5418_v23  ;;  %v5430_v23 = vld [vmem:[%s7463_s0 + $0x568] ss:$40 sps:$4 sm:$0xff]  }
  0xd8   :  { %3775 = vmatprep.subr.bf16.mxu0 %v5728_v0 }
  0xd9   :  { %2792 = vmatmul.mubr.bf16.gmra.mrb[76].mxu1 %v5334_v22  ;;  %v5429_v22 = vld [vmem:[%s7463_s0 + $0x58] ss:$40 sps:$4 sm:$0xff]  }
  0xda   :  { %3531 = vmatmul.mubr.bf16.gmra.mrb[12].mxu0 %v5335_v24  ;;  %2799 = vmatprep.mubr.bf16.mxu1 %v5337_v25  ;;  %v5431_v24 = vld [vmem:[%s7463_s0 + $0xac] ss:$40 sps:$4 sm:$0xff]  }
  0xdb   :  { %3538 = vmatprep.mubr.bf16.mxu0 %v5339_v26  ;;  %3776 = vmatpush1.bf16.msra.mxu0 %v5435_v27  ;;  %v5713_v25 = vld [vmem:[%s7462_s1 + $0x108] sm:$0xff]   ;;  %v5433_v26 = vld [vmem:[%s7463_s0 + $0x5bc] ss:$40 sps:$4 sm:$0xff]   ;;  %v5714_v27 = vld [vmem:[%s7462_s1 + $0x110] sm:$0xff]  }
  0xdc   :  { %3777 = vmatprep.subr.bf16.mxu0 %v5728_v0 }
  0xdf   :  { %3778 = vmatpush1.bf16.msra.mxu0 %v5450_v32  ;;  %v5715_v32 = vld [vmem:[%s7462_s1 + $0x118] sm:$0xff]  }
  0xe0   :  { %3779 = vmatprep.subr.bf16.mxu0 %v5728_v0 }
  0xe1   :  { %2800 = vmatmul.mubr.bf16.gmra.mrb[80].mxu1 %v5341_v28  ;;  %v5436_v28 = vld [vmem:[%s7463_s0 + $0xa8] ss:$40 sps:$4 sm:$0xff]  }
  0xe2   :  { %3539 = vmatmul.mubr.bf16.gmra.mrb[16].mxu0 %v5342_v29  ;;  %2807 = vmatprep.mubr.bf16.mxu1 %v5344_v30  ;;  %v5437_v29 = vld [vmem:[%s7463_s0 + $0x5b8] ss:$40 sps:$4 sm:$0xff]   ;;  %v5438_v30 = vld [vmem:[%s7463_s0 + $0xfc] ss:$40 sps:$4 sm:$0xff]  }
  0xe3   :  { %3546 = vmatprep.mubr.bf16.mxu0 %v5346_v31  ;;  %3780 = vmatpush1.bf16.msra.mxu0 %v5469_v45  ;;  %v5440_v31 = vld [vmem:[%s7463_s0 + $0x60c] ss:$40 sps:$4 sm:$0xff]   ;;  %v5720_v45 = vld [vmem:[%s7462_s1 + $0x140] sm:$0xff]  }
  0xe4   :  { %3781 = vmatprep.subr.bf16.mxu0 %v5728_v0 }
  0xe7   :  { %3782 = vmatpush1.bf16.msra.mxu0 %v5488_v58  ;;  %v5467_v58 = vld [vmem:[%s7463_s0 + $0x238] ss:$40 sps:$4 sm:$0xff]  }
  0xe8   :  { %3783 = vmatprep.subr.bf16.mxu0 %v5728_v0 }
  0xe9   :  { %2808 = vmatmul.mubr.bf16.gmra.mrb[84].mxu1 %v5348_v33  ;;  %v5716_v33 = vld [vmem:[%s7462_s1 + $0x120] sm:$0xff]  }
  0xea   :  { %3547 = vmatmul.mubr.bf16.gmra.mrb[20].mxu0 %v5349_v34  ;;  %2815 = vmatprep.mubr.bf16.mxu1 %v5350_v35  ;;  %v5442_v34 = vld [vmem:[%s7463_s0 + $0xf8] ss:$40 sps:$4 sm:$0xff]   ;;  %v5443_v35 = vld [vmem:[%s7463_s0 + $0x608] ss:$40 sps:$4 sm:$0xff]  }
  0xeb   :  { %3554 = vmatprep.mubr.bf16.mxu0 %v5352_v36  ;;  %3784 = vmatpush1.bf16.msra.mxu0 %v5507_v8  ;;  %v5444_v36 = vld [vmem:[%s7463_s0 + $0x14c] ss:$40 sps:$4 sm:$0xff]   ;;  %v5484_v8 = vld [vmem:[%s7463_s0 + $0x83c] ss:$40 sps:$4 sm:$0xff]  }
  0xf1   :  { %2816 = vmatmul.mubr.bf16.gmra.mrb[88].mxu1 %v5354_v37  ;;  %v5446_v37 = vld [vmem:[%s7463_s0 + $0x65c] ss:$40 sps:$4 sm:$0xff]  }
  0xf2   :  { %3555 = vmatmul.mubr.bf16.gmra.mrb[24].mxu0 %v5355_v38  ;;  %2823 = vmatprep.mubr.bf16.mxu1 %v5358_v39  ;;  %v5717_v38 = vld [vmem:[%s7462_s1 + $0x128] sm:$0xff]   ;;  %v5718_v39 = vld [vmem:[%s7462_s1 + $0x130] sm:$0xff]  }
  0xf3   :  { %3562 = vmatprep.mubr.bf16.mxu0 %v5360_v40  ;;  %v5448_v40 = vld [vmem:[%s7463_s0 + $0x148] ss:$40 sps:$4 sm:$0xff]  }
  0xf9   :  { %2824 = vmatmul.mubr.bf16.gmra.mrb[92].mxu1 %v5362_v41  ;;  %v5449_v41 = vld [vmem:[%s7463_s0 + $0x658] ss:$40 sps:$4 sm:$0xff]  }
  0xfa   :  { %3563 = vmatmul.mubr.bf16.gmra.mrb[28].mxu0 %v5363_v42  ;;  %2831 = vmatprep.mubr.bf16.mxu1 %v5364_v43  ;;  %v5451_v42 = vld [vmem:[%s7463_s0 + $0x19c] ss:$40 sps:$4 sm:$0xff]   ;;  %v5453_v43 = vld [vmem:[%s7463_s0 + $0x6ac] ss:$40 sps:$4 sm:$0xff]  }
  0xfb   :  { %3570 = vmatprep.mubr.bf16.mxu0 %v5366_v44  ;;  %v5719_v44 = vld [vmem:[%s7462_s1 + $0x138] sm:$0xff]  }
 0x101   :  { %2832 = vmatmul.mubr.bf16.gmra.mrb[96].mxu1 %v5368_v46  ;;  %v5455_v46 = vld [vmem:[%s7463_s0 + $0x198] ss:$40 sps:$4 sm:$0xff]  }
 0x102   :  { %3571 = vmatmul.mubr.bf16.gmra.mrb[32].mxu0 %v5369_v47  ;;  %2839 = vmatprep.mubr.bf16.mxu1 %v5371_v48  ;;  %v5456_v47 = vld [vmem:[%s7463_s0 + $0x6a8] ss:$40 sps:$4 sm:$0xff]   ;;  %v5457_v48 = vld [vmem:[%s7463_s0 + $0x1ec] ss:$40 sps:$4 sm:$0xff]  }
 0x103   :  { %3578 = vmatprep.mubr.bf16.mxu0 %v5373_v49  ;;  %v5459_v49 = vld [vmem:[%s7463_s0 + $0x6fc] ss:$40 sps:$4 sm:$0xff]  }
 0x109   :  { %2840 = vmatmul.mubr.bf16.gmra.mrb[100].mxu1 %v5375_v50  ;;  %v5721_v50 = vld [vmem:[%s7462_s1 + $0x148] sm:$0xff]  }
 0x10a   :  { %3579 = vmatmul.mubr.bf16.gmra.mrb[36].mxu0 %v5376_v51  ;;  %2847 = vmatprep.mubr.bf16.mxu1 %v5378_v52  ;;  %v5722_v51 = vld [vmem:[%s7462_s1 + $0x150] sm:$0xff]  }
 0x10b   :  { %3586 = vmatprep.mubr.bf16.mxu0 %v5380_v53  ;;  %v5461_v52 = vld [vmem:[%s7463_s0 + $0x1e8] ss:$40 sps:$4 sm:$0xff]   ;;  %v5462_v53 = vld [vmem:[%s7463_s0 + $0x6f8] ss:$40 sps:$4 sm:$0xff]  }
 0x111   :  { %2848 = vmatmul.mubr.bf16.gmra.mrb[104].mxu1 %v5382_v54  ;;  %v5463_v54 = vld [vmem:[%s7463_s0 + $0x23c] ss:$40 sps:$4 sm:$0xff]  }
 0x112   :  { %3587 = vmatmul.mubr.bf16.gmra.mrb[40].mxu0 %v5383_v55  ;;  %2855 = vmatprep.mubr.bf16.mxu1 %v5385_v56  ;;  %v5465_v55 = vld [vmem:[%s7463_s0 + $0x74c] ss:$40 sps:$4 sm:$0xff]   ;;  %v5723_v56 = vld [vmem:[%s7462_s1 + $0x158] sm:$0xff]  }
 0x113   :  { %3594 = vmatprep.mubr.bf16.mxu0 %v5387_v57  ;;  %v5724_v57 = vld [vmem:[%s7462_s1 + $0x160] sm:$0xff]  }
 0x119   :  { %2856 = vmatmul.mubr.bf16.gmra.mrb[108].mxu1 %v5389_v59  ;;  %v5468_v59 = vld [vmem:[%s7463_s0 + $0x748] ss:$40 sps:$4 sm:$0xff]  }
 0x11a   :  { %3595 = vmatmul.mubr.bf16.gmra.mrb[44].mxu0 %v5390_v60  ;;  %2863 = vmatprep.mubr.bf16.mxu1 %v5391_v61  ;;  %v5470_v60 = vld [vmem:[%s7463_s0 + $0x28c] ss:$40 sps:$4 sm:$0xff]   ;;  %v5472_v61 = vld [vmem:[%s7463_s0 + $0x79c] ss:$40 sps:$4 sm:$0xff]  }
 0x11b   :  { %3602 = vmatprep.mubr.bf16.mxu0 %v5393_v62  ;;  %v5725_v62 = vld [vmem:[%s7462_s1 + $0x168] sm:$0xff]  }
 0x121   :  { %2864 = vmatmul.mubr.bf16.gmra.mrb[112].mxu1 %v5395_v63  ;;  %v5726_v63 = vld [vmem:[%s7462_s1 + $0x170] sm:$0xff]  }
 0x122   :  { %3603 = vmatmul.mubr.bf16.gmra.mrb[48].mxu0 %v5396_v1  ;;  %2871 = vmatprep.mubr.bf16.mxu1 %v5399_v2  ;;  %v5474_v1 = vld [vmem:[%s7463_s0 + $0x288] ss:$40 sps:$4 sm:$0xff]   ;;  %v5475_v2 = vld [vmem:[%s7463_s0 + $0x798] ss:$40 sps:$4 sm:$0xff]  }
 0x123   :  { %3610 = vmatprep.mubr.bf16.mxu0 %v5401_v3  ;;  %v5476_v3 = vld [vmem:[%s7463_s0 + $0x2dc] ss:$40 sps:$4 sm:$0xff]  }
 0x129   :  { %2872 = vmatmul.mubr.bf16.gmra.mrb[116].mxu1 %v5403_v4  ;;  %v5478_v4 = vld [vmem:[%s7463_s0 + $0x7ec] ss:$40 sps:$4 sm:$0xff]  }
 0x12a   :  { %3611 = vmatmul.mubr.bf16.gmra.mrb[52].mxu0 %v5404_v5  ;;  %2879 = vmatprep.mubr.bf16.mxu1 %v5405_v6  ;;  %v5480_v5 = vld [vmem:[%s7463_s0 + $0x2d8] ss:$40 sps:$4 sm:$0xff]   ;;  %v5481_v6 = vld [vmem:[%s7463_s0 + $0x7e8] ss:$40 sps:$4 sm:$0xff]  }
 0x12b   :  { %3618 = vmatprep.mubr.bf16.mxu0 %v5407_v7  ;;  %v5482_v7 = vld [vmem:[%s7463_s0 + $0x32c] ss:$40 sps:$4 sm:$0xff]  }
 0x131   :  { %2880 = vmatmul.mubr.bf16.gmra.mrb[120].mxu1 %v5409_v9  ;;  %v5486_v9 = vld [vmem:[%s7463_s0 + $0x328] ss:$40 sps:$4 sm:$0xff]  }
 0x132   :  { %3619 = vmatmul.mubr.bf16.gmra.mrb[56].mxu0 %v5410_v10  ;;  %2887 = vmatprep.mubr.bf16.mxu1 %v5412_v11  ;;  %v5487_v10 = vld [vmem:[%s7463_s0 + $0x838] ss:$40 sps:$4 sm:$0xff]   ;;  %v5489_v11 = vld [vmem:[%s7463_s0 + $0x37c] ss:$40 sps:$4 sm:$0xff]  }
 0x133   :  { %3626 = vmatprep.mubr.bf16.mxu0 %v5414_v12  ;;  %v5491_v12 = vld [vmem:[%s7463_s0 + $0x88c] ss:$40 sps:$4 sm:$0xff]  }
 0x139   :  { %2888 = vmatmul.mubr.bf16.gmra.mrb[124].mxu1 %v5416_v13  ;;  %v5493_v13 = vld [vmem:[%s7463_s0 + $0x378] ss:$40 sps:$4 sm:$0xff]  }
 0x13a   :  { %3627 = vmatmul.mubr.bf16.gmra.mrb[60].mxu0 %v5417_v14  ;;  %2928 = vmatprep.mubr.bf16.mxu1 %v5421_v15  ;;  %v5494_v14 = vld [vmem:[%s7463_s0 + $0x888] ss:$40 sps:$4 sm:$0xff]   ;;  %v5495_v15 = vld [vmem:[%s7463_s0 + $0x3cc] ss:$40 sps:$4 sm:$0xff]  }
 0x13b   :  { %3634 = vmatprep.mubr.bf16.mxu0 %v5422_v16  ;;  %v5497_v16 = vld [vmem:[%s7463_s0 + $0x8dc] ss:$40 sps:$4 sm:$0xff]  }
 0x141   :  { %2929 = vmatmul.mubr.bf16.vlgmr.msra.gmra.mrb[0].mxu1 %v5419_v17  ;;  %v5499_v17 = vld [vmem:[%s7463_s0 + $0x3c8] ss:$40 sps:$4 sm:$0xff]  }
 0x142   :  { %3635 = vmatmul.mubr.bf16.gmra.mrb[64].mxu0 %v5424_v18  ;;  %4628 = vmatpush1.bf16.msra.mxu1 %v5712_v21  ;;  %v5500_v18 = vld [vmem:[%s7463_s0 + $0x8d8] ss:$40 sps:$4 sm:$0xff]  }
 0x143   :  { %2936 = vmatprep.mubr.bf16.mxu1 %v5425_v19  ;;  %3642 = vmatprep.mubr.bf16.mxu0 %v5427_v20  ;;  %v5501_v19 = vld [vmem:[%s7463_s0 + $0x41c] ss:$40 sps:$4 sm:$0xff]   ;;  %v5503_v20 = vld [vmem:[%s7463_s0 + $0x92c] ss:$40 sps:$4 sm:$0xff]   ;;  %v5505_v21 = vld [vmem:[%s7463_s0 + $0x418] ss:$40 sps:$4 sm:$0xff]  }
 0x144   :  { %4613 = vmatprep.subr.bf16.mxu1 %v5728_v0 }
 0x146   :  { %4629 = vmatpush1.bf16.msra.mxu1 %v5713_v25  ;;  %v5512_v25 = vld [vmem:[%s7463_s0 + $0x468] ss:$40 sps:$4 sm:$0xff]  }
 0x147   :  { %4614 = vmatprep.subr.bf16.mxu1 %v5728_v0 }
 0x149   :  { %2937 = vmatmul.mubr.bf16.gmra.mrb[4].mxu1 %v5429_v22  ;;  %v5506_v22 = vld [vmem:[%s7463_s0 + $0x928] ss:$40 sps:$4 sm:$0xff]  }
 0x14a   :  { %3643 = vmatmul.mubr.bf16.gmra.mrb[68].mxu0 %v5430_v23  ;;  %2944 = vmatprep.mubr.bf16.mxu1 %v5431_v24  ;;  %v5508_v23 = vld [vmem:[%s7463_s0 + $0x46c] ss:$40 sps:$4 sm:$0xff]   ;;  %v5510_v24 = vld [vmem:[%s7463_s0 + $0x97c] ss:$40 sps:$4 sm:$0xff]  }
 0x14b   :  { %3650 = vmatprep.mubr.bf16.mxu0 %v5433_v26  ;;  %4630 = vmatpush1.bf16.msra.mxu1 %v5714_v27  ;;  %v5513_v26 = vld [vmem:[%s7463_s0 + $0x978] ss:$40 sps:$4 sm:$0xff]   ;;  %v5514_v27 = vld [vmem:[%s7463_s0 + $0x4bc] ss:$40 sps:$4 sm:$0xff]  }
 0x14c   :  { %4615 = vmatprep.subr.bf16.mxu1 %v5728_v0 }
 0x14f   :  { %4631 = vmatpush1.bf16.msra.mxu1 %v5715_v32  ;;  %v5524_v32 = vld [vmem:[%s7463_s0 + $0x24] ss:$40 sps:$4 sm:$0xff]  }
 0x150   :  { %4616 = vmatprep.subr.bf16.mxu1 %v5728_v0 }
 0x151   :  { %2945 = vmatmul.mubr.bf16.gmra.mrb[8].mxu1 %v5436_v28  ;;  %v5516_v28 = vld [vmem:[%s7463_s0 + $0x9cc] ss:$40 sps:$4 sm:$0xff]  }
 0x152   :  { %3651 = vmatmul.mubr.bf16.gmra.mrb[72].mxu0 %v5437_v29  ;;  %2952 = vmatprep.mubr.bf16.mxu1 %v5438_v30  ;;  %v5518_v29 = vld [vmem:[%s7463_s0 + $0x4b8] ss:$40 sps:$4 sm:$0xff]   ;;  %v5519_v30 = vld [vmem:[%s7463_s0 + $0x9c8] ss:$40 sps:$4 sm:$0xff]  }
 0x153   :  { %3658 = vmatprep.mubr.bf16.mxu0 %v5440_v31  ;;  %4632 = vmatpush1.bf16.msra.mxu1 %v5716_v33  ;;  %v5520_v31 = vld [vmem:[%s7463_s0 + $0x50c] ss:$40 sps:$4 sm:$0xff]   ;;  %v5525_v33 = vld [vmem:[%s7463_s0 + $0x508] ss:$40 sps:$4 sm:$0xff]  }
 0x154   :  { %4617 = vmatprep.subr.bf16.mxu1 %v5728_v0 }
 0x157   :  { %4633 = vmatpush1.bf16.msra.mxu1 %v5717_v38  ;;  %v5531_v38 = vld [vmem:[%s7463_s0 + $0x70] ss:$40 sps:$4 sm:$0xff]  }
 0x158   :  { %4618 = vmatprep.subr.bf16.mxu1 %v5728_v0 }
 0x159   :  { %2953 = vmatmul.mubr.bf16.gmra.mrb[12].mxu1 %v5442_v34  ;;  %v5522_v34 = vld [vmem:[%s7463_s0 + $0x20] ss:$40 sps:$4 sm:$0xff]  }
 0x15a   :  { %3659 = vmatmul.mubr.bf16.gmra.mrb[76].mxu0 %v5443_v35  ;;  %2960 = vmatprep.mubr.bf16.mxu1 %v5444_v36  ;;  %v5526_v35 = vld [vmem:[%s7463_s0 + $0x55c] ss:$40 sps:$4 sm:$0xff]  }
 0x15b   :  { %3666 = vmatprep.mubr.bf16.mxu0 %v5446_v37  ;;  %4634 = vmatpush1.bf16.msra.mxu1 %v5718_v39  ;;  %v5528_v36 = vld [vmem:[%s7463_s0 + $0x74] ss:$40 sps:$4 sm:$0xff]   ;;  %v5530_v37 = vld [vmem:[%s7463_s0 + $0x558] ss:$40 sps:$4 sm:$0xff]  }
 0x15c   :  { %4619 = vmatprep.subr.bf16.mxu1 %v5728_v0  ;;  %v5532_v39 = vld [vmem:[%s7463_s0 + $0x5ac] ss:$40 sps:$4 sm:$0xff]  }
 0x15f   :  { %4635 = vmatpush1.bf16.msra.mxu1 %v5719_v44  ;;  %v5540_v44 = vld [vmem:[%s7463_s0 + $0x114] ss:$40 sps:$4 sm:$0xff]  }
 0x160   :  { %4620 = vmatprep.subr.bf16.mxu1 %v5728_v0 }
 0x161   :  { %2961 = vmatmul.mubr.bf16.gmra.mrb[16].mxu1 %v5448_v40  ;;  %v5534_v40 = vld [vmem:[%s7463_s0 + $0xc4] ss:$40 sps:$4 sm:$0xff]  }
 0x162   :  { %3667 = vmatmul.mubr.bf16.gmra.mrb[80].mxu0 %v5449_v41  ;;  %2968 = vmatprep.mubr.bf16.mxu1 %v5451_v42  ;;  %v5536_v41 = vld [vmem:[%s7463_s0 + $0x5a8] ss:$40 sps:$4 sm:$0xff]  }
 0x163   :  { %3674 = vmatprep.mubr.bf16.mxu0 %v5453_v43  ;;  %4636 = vmatpush1.bf16.msra.mxu1 %v5720_v45  ;;  %v5537_v42 = vld [vmem:[%s7463_s0 + $0xc0] ss:$40 sps:$4 sm:$0xff]   ;;  %v5538_v43 = vld [vmem:[%s7463_s0 + $0x5fc] ss:$40 sps:$4 sm:$0xff]  }
 0x164   :  { %4621 = vmatprep.subr.bf16.mxu1 %v5728_v0  ;;  %v5542_v45 = vld [vmem:[%s7463_s0 + $0x5f8] ss:$40 sps:$4 sm:$0xff]  }
 0x167   :  { %4637 = vmatpush1.bf16.msra.mxu1 %v5721_v50  ;;  %v5549_v50 = vld [vmem:[%s7463_s0 + $0x160] ss:$40 sps:$4 sm:$0xff]  }
 0x168   :  { %4622 = vmatprep.subr.bf16.mxu1 %v5728_v0 }
 0x169   :  { %2969 = vmatmul.mubr.bf16.gmra.mrb[20].mxu1 %v5455_v46  ;;  %v5543_v46 = vld [vmem:[%s7463_s0 + $0x110] ss:$40 sps:$4 sm:$0xff]  }
 0x16a   :  { %3675 = vmatmul.mubr.bf16.gmra.mrb[84].mxu0 %v5456_v47  ;;  %2976 = vmatprep.mubr.bf16.mxu1 %v5457_v48  ;;  %v5544_v47 = vld [vmem:[%s7463_s0 + $0x64c] ss:$40 sps:$4 sm:$0xff]  }
 0x16b   :  { %3682 = vmatprep.mubr.bf16.mxu0 %v5459_v49  ;;  %4638 = vmatpush1.bf16.msra.mxu1 %v5722_v51  ;;  %v5546_v48 = vld [vmem:[%s7463_s0 + $0x164] ss:$40 sps:$4 sm:$0xff]   ;;  %v5548_v49 = vld [vmem:[%s7463_s0 + $0x648] ss:$40 sps:$4 sm:$0xff]  }
 0x16c   :  { %4623 = vmatprep.subr.bf16.mxu1 %v5728_v0  ;;  %v5550_v51 = vld [vmem:[%s7463_s0 + $0x69c] ss:$40 sps:$4 sm:$0xff]  }
 0x16f   :  { %4639 = vmatpush1.bf16.msra.mxu1 %v5723_v56  ;;  %v5558_v56 = vld [vmem:[%s7463_s0 + $0x204] ss:$40 sps:$4 sm:$0xff]  }
 0x170   :  { %4624 = vmatprep.subr.bf16.mxu1 %v5728_v0 }
 0x171   :  { %2977 = vmatmul.mubr.bf16.gmra.mrb[24].mxu1 %v5461_v52  ;;  %v5552_v52 = vld [vmem:[%s7463_s0 + $0x1b4] ss:$40 sps:$4 sm:$0xff]  }
 0x172   :  { %3683 = vmatmul.mubr.bf16.gmra.mrb[88].mxu0 %v5462_v53  ;;  %2984 = vmatprep.mubr.bf16.mxu1 %v5463_v54  ;;  %v5554_v53 = vld [vmem:[%s7463_s0 + $0x698] ss:$40 sps:$4 sm:$0xff]  }
 0x173   :  { %3690 = vmatprep.mubr.bf16.mxu0 %v5465_v55  ;;  %4640 = vmatpush1.bf16.msra.mxu1 %v5724_v57  ;;  %v5555_v54 = vld [vmem:[%s7463_s0 + $0x1b0] ss:$40 sps:$4 sm:$0xff]   ;;  %v5556_v55 = vld [vmem:[%s7463_s0 + $0x6ec] ss:$40 sps:$4 sm:$0xff]  }
 0x174   :  { %4625 = vmatprep.subr.bf16.mxu1 %v5728_v0  ;;  %v5560_v57 = vld [vmem:[%s7463_s0 + $0x6e8] ss:$40 sps:$4 sm:$0xff]  }
 0x177   :  { %4641 = vmatpush1.bf16.msra.mxu1 %v5725_v62  ;;  %v5567_v62 = vld [vmem:[%s7463_s0 + $0x250] ss:$40 sps:$4 sm:$0xff]  }
 0x178   :  { %4626 = vmatprep.subr.bf16.mxu1 %v5728_v0 }
 0x179   :  { %2985 = vmatmul.mubr.bf16.gmra.mrb[28].mxu1 %v5467_v58  ;;  %v5561_v58 = vld [vmem:[%s7463_s0 + $0x200] ss:$40 sps:$4 sm:$0xff]  }
 0x17a   :  { %3691 = vmatmul.mubr.bf16.gmra.mrb[92].mxu0 %v5468_v59  ;;  %2992 = vmatprep.mubr.bf16.mxu1 %v5470_v60  ;;  %v5562_v59 = vld [vmem:[%s7463_s0 + $0x73c] ss:$40 sps:$4 sm:$0xff]  }
 0x17b   :  { %3698 = vmatprep.mubr.bf16.mxu0 %v5472_v61  ;;  %4642 = vmatpush1.bf16.msra.mxu1 %v5726_v63  ;;  %v5564_v60 = vld [vmem:[%s7463_s0 + $0x254] ss:$40 sps:$4 sm:$0xff]   ;;  %v5566_v61 = vld [vmem:[%s7463_s0 + $0x738] ss:$40 sps:$4 sm:$0xff]  }
 0x17c   :  { %4627 = vmatprep.subr.bf16.mxu1 %v5728_v0  ;;  %v5727_v0 = vld [vmem:[%s7462_s1 + $0x178] sm:$0xff]   ;;  %v5568_v63 = vld [vmem:[%s7463_s0 + $0x78c] ss:$40 sps:$4 sm:$0xff]  }
 0x17f   :  { %4643 = vmatpush1.bf16.msra.mxu1 %v5727_v0  ;;  %v5576_v0 = vld [vmem:[%s7463_s0 + $0x2f4] ss:$40 sps:$4 sm:$0xff]  }
 0x181   :  { %2993 = vmatmul.mubr.bf16.gmra.mrb[32].mxu1 %v5474_v1  ;;  %v5570_v1 = vld [vmem:[%s7463_s0 + $0x2a4] ss:$40 sps:$4 sm:$0xff]  }
 0x182   :  { %3699 = vmatmul.mubr.bf16.gmra.mrb[96].mxu0 %v5475_v2  ;;  %3000 = vmatprep.mubr.bf16.mxu1 %v5476_v3  ;;  %v5572_v2 = vld [vmem:[%s7463_s0 + $0x788] ss:$40 sps:$4 sm:$0xff]  }
 0x183   :  { %3706 = vmatprep.mubr.bf16.mxu0 %v5478_v4  ;;  %v5573_v3 = vld [vmem:[%s7463_s0 + $0x2a0] ss:$40 sps:$4 sm:$0xff]   ;;  %v5574_v4 = vld [vmem:[%s7463_s0 + $0x7dc] ss:$40 sps:$4 sm:$0xff]  }
 0x189   :  { %3001 = vmatmul.mubr.bf16.gmra.mrb[36].mxu1 %v5480_v5  ;;  %v5578_v5 = vld [vmem:[%s7463_s0 + $0x7d8] ss:$40 sps:$4 sm:$0xff]  }
 0x18a   :  { %3707 = vmatmul.mubr.bf16.gmra.mrb[100].mxu0 %v5481_v6  ;;  %3008 = vmatprep.mubr.bf16.mxu1 %v5482_v7  ;;  %v5579_v6 = vld [vmem:[%s7463_s0 + $0x2f0] ss:$40 sps:$4 sm:$0xff]   ;;  %v5580_v7 = vld [vmem:[%s7463_s0 + $0x82c] ss:$40 sps:$4 sm:$0xff]  }
 0x18b   :  { %3714 = vmatprep.mubr.bf16.mxu0 %v5484_v8  ;;  %v5582_v8 = vld [vmem:[%s7463_s0 + $0x344] ss:$40 sps:$4 sm:$0xff]  }
 0x191   :  { %3009 = vmatmul.mubr.bf16.gmra.mrb[40].mxu1 %v5486_v9  ;;  %v5584_v9 = vld [vmem:[%s7463_s0 + $0x828] ss:$40 sps:$4 sm:$0xff]  }
 0x192   :  { %3715 = vmatmul.mubr.bf16.gmra.mrb[104].mxu0 %v5487_v10  ;;  %3016 = vmatprep.mubr.bf16.mxu1 %v5489_v11  ;;  %v5585_v10 = vld [vmem:[%s7463_s0 + $0x340] ss:$40 sps:$4 sm:$0xff]   ;;  %v5586_v11 = vld [vmem:[%s7463_s0 + $0x87c] ss:$40 sps:$4 sm:$0xff]  }
 0x193   :  { %3722 = vmatprep.mubr.bf16.mxu0 %v5491_v12  ;;  %v5588_v12 = vld [vmem:[%s7463_s0 + $0x394] ss:$40 sps:$4 sm:$0xff]  }
 0x199   :  { %3017 = vmatmul.mubr.bf16.gmra.mrb[44].mxu1 %v5493_v13 }
 0x19a   :  { %3723 = vmatmul.mubr.bf16.gmra.mrb[108].mxu0 %v5494_v14  ;;  %3024 = vmatprep.mubr.bf16.mxu1 %v5495_v15  ;;  %v5590_v15 = vld [vmem:[%s7463_s0 + $0x878] ss:$40 sps:$4 sm:$0xff]  }
 0x19b   :  { %3730 = vmatprep.mubr.bf16.mxu0 %v5497_v16 }
 0x1a1   :  { %3025 = vmatmul.mubr.bf16.gmra.mrb[48].mxu1 %v5499_v17  ;;  %v5591_v17 = vld [vmem:[%s7463_s0 + $0x390] ss:$40 sps:$4 sm:$0xff]  }
 0x1a2   :  { %3731 = vmatmul.mubr.bf16.gmra.mrb[112].mxu0 %v5500_v18  ;;  %3032 = vmatprep.mubr.bf16.mxu1 %v5501_v19  ;;  %v5592_v18 = vld [vmem:[%s7463_s0 + $0x8cc] ss:$40 sps:$4 sm:$0xff]  }
 0x1a3   :  { %3738 = vmatprep.mubr.bf16.mxu0 %v5503_v20  ;;  %v5594_v20 = vld [vmem:[%s7463_s0 + $0x3e4] ss:$40 sps:$4 sm:$0xff]  }
 0x1a9   :  { %3033 = vmatmul.mubr.bf16.gmra.mrb[52].mxu1 %v5505_v21 }
 0x1aa   :  { %3739 = vmatmul.mubr.bf16.gmra.mrb[116].mxu0 %v5506_v22  ;;  %3040 = vmatprep.mubr.bf16.mxu1 %v5508_v23  ;;  %v5596_v23 = vld [vmem:[%s7463_s0 + $0x8c8] ss:$40 sps:$4 sm:$0xff]  }
 0x1ab   :  { %3746 = vmatprep.mubr.bf16.mxu0 %v5510_v24 }
 0x1b1   :  { %3041 = vmatmul.mubr.bf16.gmra.mrb[56].mxu1 %v5512_v25  ;;  %v5597_v25 = vld [vmem:[%s7463_s0 + $0x3e0] ss:$40 sps:$4 sm:$0xff]  }
 0x1b2   :  { %3747 = vmatmul.mubr.bf16.gmra.mrb[120].mxu0 %v5513_v26  ;;  %3048 = vmatprep.mubr.bf16.mxu1 %v5514_v27  ;;  %v5598_v26 = vld [vmem:[%s7463_s0 + $0x91c] ss:$40 sps:$4 sm:$0xff]  }
 0x1b3   :  { %3754 = vmatprep.mubr.bf16.mxu0 %v5516_v28  ;;  %v5600_v28 = vld [vmem:[%s7463_s0 + $0x434] ss:$40 sps:$4 sm:$0xff]  }
 0x1b9   :  { %3049 = vmatmul.mubr.bf16.gmra.mrb[60].mxu1 %v5518_v29 }
 0x1ba   :  { %3755 = vmatmul.mubr.bf16.gmra.mrb[124].mxu0 %v5519_v30  ;;  %3056 = vmatprep.mubr.bf16.mxu1 %v5520_v31  ;;  %v5602_v31 = vld [vmem:[%s7463_s0 + $0x918] ss:$40 sps:$4 sm:$0xff]  }
 0x1bb   :  { %4580 = vmatprep.mubr.msk.bf16.mxu0 %vm2510_vm0, %v5524_v32 }
 0x1c1   :  { %3057 = vmatmul.mubr.bf16.gmra.mrb[64].mxu1 %v5525_v33  ;;  %v5603_v33 = vld [vmem:[%s7463_s0 + $0x430] ss:$40 sps:$4 sm:$0xff]  }
 0x1c2   :  { %3796 = vmatmul.mubr.bf16.vlgmr.msra.gmra.mrb[0].mxu0 %v5522_v34  ;;  %3064 = vmatprep.mubr.bf16.mxu1 %v5526_v35  ;;  %v5604_v34 = vld [vmem:[%s7463_s0 + $0x96c] ss:$40 sps:$4 sm:$0xff]  }
 0x1c3   :  { %4581 = vmatprep.mubr.msk.bf16.mxu0 %vm2510_vm0, %v5528_v36  ;;  %v5606_v36 = vld [vmem:[%s7463_s0 + $0x484] ss:$40 sps:$4 sm:$0xff]  }
 0x1c9   :  { %3065 = vmatmul.mubr.bf16.gmra.mrb[68].mxu1 %v5530_v37 }
 0x1ca   :  { %3804 = vmatmul.mubr.bf16.gmra.mrb[4].mxu0 %v5531_v38  ;;  %3072 = vmatprep.mubr.bf16.mxu1 %v5532_v39  ;;  %v5608_v39 = vld [vmem:[%s7463_s0 + $0x968] ss:$40 sps:$4 sm:$0xff]  }
 0x1cb   :  { %4582 = vmatprep.mubr.msk.bf16.mxu0 %vm2510_vm0, %v5534_v40 }
 0x1d1   :  { %3073 = vmatmul.mubr.bf16.gmra.mrb[72].mxu1 %v5536_v41  ;;  %v5609_v41 = vld [vmem:[%s7463_s0 + $0x480] ss:$40 sps:$4 sm:$0xff]  }
 0x1d2   :  { %3812 = vmatmul.mubr.bf16.gmra.mrb[8].mxu0 %v5537_v42  ;;  %3080 = vmatprep.mubr.bf16.mxu1 %v5538_v43  ;;  %v5610_v42 = vld [vmem:[%s7463_s0 + $0x9bc] ss:$40 sps:$4 sm:$0xff]  }
 0x1d3   :  { %4583 = vmatprep.mubr.msk.bf16.mxu0 %vm2510_vm0, %v5540_v44  ;;  %v5612_v44 = vld [vmem:[%s7463_s0 + $0x4d4] ss:$40 sps:$4 sm:$0xff]  }
 0x1d9   :  { %3081 = vmatmul.mubr.bf16.gmra.mrb[76].mxu1 %v5542_v45 }
 0x1da   :  { %3820 = vmatmul.mubr.bf16.gmra.mrb[12].mxu0 %v5543_v46  ;;  %3088 = vmatprep.mubr.bf16.mxu1 %v5544_v47  ;;  %v5614_v47 = vld [vmem:[%s7463_s0 + $0x9b8] ss:$40 sps:$4 sm:$0xff]  }
 0x1db   :  { %4584 = vmatprep.mubr.msk.bf16.mxu0 %vm2510_vm0, %v5546_v48 }
 0x1e1   :  { %3089 = vmatmul.mubr.bf16.gmra.mrb[80].mxu1 %v5548_v49  ;;  %v5615_v49 = vld [vmem:[%s7463_s0 + $0x4d0] ss:$40 sps:$4 sm:$0xff]  }
 0x1e2   :  { %3828 = vmatmul.mubr.bf16.gmra.mrb[16].mxu0 %v5549_v50  ;;  %3096 = vmatprep.mubr.bf16.mxu1 %v5550_v51  ;;  %v5618_v50 = vld [vmem:[%s7463_s0 + $0x514] ss:$40 sps:$4 sm:$0xff]  }
 0x1e3   :  { %4585 = vmatprep.mubr.msk.bf16.mxu0 %vm2510_vm0, %v5552_v52  ;;  %v5619_v52 = vld [vmem:[%s7463_s0 + $0x524] ss:$40 sps:$4 sm:$0xff]  }
 0x1e9   :  { %3097 = vmatmul.mubr.bf16.gmra.mrb[84].mxu1 %v5554_v53 }
 0x1ea   :  { %3836 = vmatmul.mubr.bf16.gmra.mrb[20].mxu0 %v5555_v54  ;;  %3104 = vmatprep.mubr.bf16.mxu1 %v5556_v55  ;;  %v5616_v55 = vld [vmem:[%s7463_s0 + $0x510] ss:$40 sps:$4 sm:$0xff]  }
 0x1eb   :  { %4586 = vmatprep.mubr.msk.bf16.mxu0 %vm2510_vm0, %v5558_v56 }
 0x1f1   :  { %3105 = vmatmul.mubr.bf16.gmra.mrb[88].mxu1 %v5560_v57  ;;  %v5621_v57 = vld [vmem:[%s7463_s0 + $0x520] ss:$40 sps:$4 sm:$0xff]  }
 0x1f2   :  { %3844 = vmatmul.mubr.bf16.gmra.mrb[24].mxu0 %v5561_v58  ;;  %3112 = vmatprep.mubr.bf16.mxu1 %v5562_v59  ;;  %v5622_v58 = vld [vmem:[%s7463_s0 + $0x564] ss:$40 sps:$4 sm:$0xff]  }
 0x1f3   :  { %4587 = vmatprep.mubr.msk.bf16.mxu0 %vm2510_vm0, %v5564_v60  ;;  %v5624_v60 = vld [vmem:[%s7463_s0 + $0x574] ss:$40 sps:$4 sm:$0xff]  }
 0x1f9   :  { %3113 = vmatmul.mubr.bf16.gmra.mrb[92].mxu1 %v5566_v61 }
 0x1fa   :  { %3852 = vmatmul.mubr.bf16.gmra.mrb[28].mxu0 %v5567_v62  ;;  %3120 = vmatprep.mubr.bf16.mxu1 %v5568_v63  ;;  %v5626_v63 = vld [vmem:[%s7463_s0 + $0x560] ss:$40 sps:$4 sm:$0xff]  }
 0x1fb   :  { %4588 = vmatprep.mubr.msk.bf16.mxu0 %vm2510_vm0, %v5570_v1 }
 0x201   :  { %3121 = vmatmul.mubr.bf16.gmra.mrb[96].mxu1 %v5572_v2  ;;  %v5627_v2 = vld [vmem:[%s7463_s0 + $0x570] ss:$40 sps:$4 sm:$0xff]  }
 0x202   :  { %3860 = vmatmul.mubr.bf16.gmra.mrb[32].mxu0 %v5573_v3  ;;  %3128 = vmatprep.mubr.bf16.mxu1 %v5574_v4  ;;  %v5628_v3 = vld [vmem:[%s7463_s0 + $0x5b4] ss:$40 sps:$4 sm:$0xff]  }
 0x203   :  { %4589 = vmatprep.mubr.msk.bf16.mxu0 %vm2510_vm0, %v5576_v0  ;;  %v5630_v0 = vld [vmem:[%s7463_s0 + $0x5c4] ss:$40 sps:$4 sm:$0xff]  }
 0x209   :  { %3129 = vmatmul.mubr.bf16.gmra.mrb[100].mxu1 %v5578_v5 }
 0x20a   :  { %3868 = vmatmul.mubr.bf16.gmra.mrb[36].mxu0 %v5579_v6  ;;  %3136 = vmatprep.mubr.bf16.mxu1 %v5580_v7  ;;  %v5632_v7 = vld [vmem:[%s7463_s0 + $0x5b0] ss:$40 sps:$4 sm:$0xff]  }
 0x20b   :  { %4590 = vmatprep.mubr.msk.bf16.mxu0 %vm2510_vm0, %v5582_v8 }
 0x211   :  { %3137 = vmatmul.mubr.bf16.gmra.mrb[104].mxu1 %v5584_v9  ;;  %v5633_v9 = vld [vmem:[%s7463_s0 + $0x5c0] ss:$40 sps:$4 sm:$0xff]  }
 0x212   :  { %3876 = vmatmul.mubr.bf16.gmra.mrb[40].mxu0 %v5585_v10  ;;  %3144 = vmatprep.mubr.bf16.mxu1 %v5586_v11  ;;  %v5634_v10 = vld [vmem:[%s7463_s0 + $0x604] ss:$40 sps:$4 sm:$0xff]  }
 0x213   :  { %4591 = vmatprep.mubr.msk.bf16.mxu0 %vm2510_vm0, %v5588_v12  ;;  %v5636_v12 = vld [vmem:[%s7463_s0 + $0x614] ss:$40 sps:$4 sm:$0xff]  }
 0x214   :  { %v6839_v13 = vpop.f32.mrb[0].mxu1 }
 0x215   :  { %v2932_v14 = vpop.f32.mrb[1].mxu1 }
 0x216   :  { %v6844_v16 = vpop.f32.mrb[2].mxu1 }
 0x217   :  { %v2935_v19 = vpop.f32.mrb[3].mxu1 }
 0x218   :  { %v5639_v19 = vld [vmem:[%s7463_s0 + $0x610] ss:$40 sps:$4 sm:$0xff]  }
 0x219   :  { %3145 = vmatmul.mubr.bf16.gmra.mrb[108].mxu1 %v5590_v15 }
 0x21a   :  { %3884 = vmatmul.mubr.bf16.gmra.mrb[44].mxu0 %v5591_v17  ;;  %3152 = vmatprep.mubr.bf16.mxu1 %v5592_v18  ;;  %v5638_v17 = vld [vmem:[%s7463_s0 + $0x600] ss:$40 sps:$4 sm:$0xff]  }
 0x21b   :  { %4592 = vmatprep.mubr.msk.bf16.mxu0 %vm2510_vm0, %v5594_v20  ;;  %v5640_v20 = vld [vmem:[%s7463_s0 + $0x654] ss:$40 sps:$4 sm:$0xff]  }
 0x21c   :  { %v6856_v21 = vpop.f32.mrb[4].mxu1 }
 0x21d   :  { %v2940_v22 = vpop.f32.mrb[5].mxu1 }
 0x21e   :  { %v6861_v24 = vpop.f32.mrb[6].mxu1 }
 0x21f   :  { %v2943_v27 = vpop.f32.mrb[7].mxu1 }
 0x220   :  { %v5644_v27 = vld [vmem:[%s7463_s0 + $0x650] ss:$40 sps:$4 sm:$0xff]  }
 0x221   :  { %3153 = vmatmul.mubr.bf16.gmra.mrb[112].mxu1 %v5596_v23  ;;  %v5642_v23 = vld [vmem:[%s7463_s0 + $0x664] ss:$40 sps:$4 sm:$0xff]  }
 0x222   :  { %3892 = vmatmul.mubr.bf16.gmra.mrb[48].mxu0 %v5597_v25  ;;  %3160 = vmatprep.mubr.bf16.mxu1 %v5598_v26 }
 0x223   :  { %4593 = vmatprep.mubr.msk.bf16.mxu0 %vm2510_vm0, %v5600_v28 }
 0x224   :  { %v6873_v29 = vpop.f32.mrb[8].mxu1 }
 0x225   :  { %v2948_v30 = vpop.f32.mrb[9].mxu1 }
 0x226   :  { %v6878_v32 = vpop.f32.mrb[10].mxu1  ;;  %v5645_v30 = vld [vmem:[%s7463_s0 + $0x660] ss:$40 sps:$4 sm:$0xff]  }
 0x227   :  { %v2951_v35 = vpop.f32.mrb[11].mxu1 }
 0x229   :  { %3161 = vmatmul.mubr.bf16.gmra.mrb[116].mxu1 %v5602_v31  ;;  %v5646_v31 = vld [vmem:[%s7463_s0 + $0x6a4] ss:$40 sps:$4 sm:$0xff]  }
 0x22a   :  { %3900 = vmatmul.mubr.bf16.gmra.mrb[52].mxu0 %v5603_v33  ;;  %3168 = vmatprep.mubr.bf16.mxu1 %v5604_v34  ;;  %v5648_v34 = vld [vmem:[%s7463_s0 + $0x6b4] ss:$40 sps:$4 sm:$0xff]  }
 0x22b   :  { %4594 = vmatprep.mubr.msk.bf16.mxu0 %vm2510_vm0, %v5606_v36 }
 0x22c   :  { %v6890_v37 = vpop.f32.mrb[12].mxu1 }
 0x22d   :  { %v2956_v38 = vpop.f32.mrb[13].mxu1 }
 0x22e   :  { %v6895_v40 = vpop.f32.mrb[14].mxu1  ;;  %v5650_v38 = vld [vmem:[%s7463_s0 + $0x6a0] ss:$40 sps:$4 sm:$0xff]  }
 0x22f   :  { %v2959_v43 = vpop.f32.mrb[15].mxu1 }
 0x231   :  { %3169 = vmatmul.mubr.bf16.gmra.mrb[120].mxu1 %v5608_v39 }
 0x232   :  { %3908 = vmatmul.mubr.bf16.gmra.mrb[56].mxu0 %v5609_v41  ;;  %3176 = vmatprep.mubr.bf16.mxu1 %v5610_v42  ;;  %v5651_v41 = vld [vmem:[%s7463_s0 + $0x6b0] ss:$40 sps:$4 sm:$0xff]   ;;  %v5652_v42 = vld [vmem:[%s7463_s0 + $0x6f4] ss:$40 sps:$4 sm:$0xff]  }
 0x233   :  { %4595 = vmatprep.mubr.msk.bf16.mxu0 %vm2510_vm0, %v5612_v44  ;;  %v5654_v44 = vld [vmem:[%s7463_s0 + $0x704] ss:$40 sps:$4 sm:$0xff]  }
 0x234   :  { %v6907_v45 = vpop.f32.mrb[16].mxu1 }
 0x235   :  { %v2964_v46 = vpop.f32.mrb[17].mxu1 }
 0x236   :  { %v6912_v48 = vpop.f32.mrb[18].mxu1 }
 0x237   :  { %v2967_v51 = vpop.f32.mrb[19].mxu1 }
 0x238   :  { %v5657_v51 = vld [vmem:[%s7463_s0 + $0x700] ss:$40 sps:$4 sm:$0xff]  }
 0x239   :  { %3177 = vmatmul.mubr.bf16.gmra.mrb[124].mxu1 %v5614_v47 }
 0x23a   :  { %3916 = vmatmul.mubr.bf16.gmra.mrb[60].mxu0 %v5615_v49  ;;  %3345 = vmatprep.mubr.bf16.mxu1 %v5618_v50  ;;  %v5656_v49 = vld [vmem:[%s7463_s0 + $0x6f0] ss:$40 sps:$4 sm:$0xff]  }
 0x23b   :  { %4596 = vmatprep.mubr.msk.bf16.mxu0 %vm2510_vm0, %v5619_v52  ;;  %v5658_v52 = vld [vmem:[%s7463_s0 + $0x744] ss:$40 sps:$4 sm:$0xff]  }
 0x23c   :  { %v6924_v53 = vpop.f32.mrb[20].mxu1 }
 0x23d   :  { %v2972_v54 = vpop.f32.mrb[21].mxu1 }
 0x23e   :  { %v6929_v56 = vpop.f32.mrb[22].mxu1 }
 0x23f   :  { %v2975_v59 = vpop.f32.mrb[23].mxu1 }
 0x240   :  { %v5662_v59 = vld [vmem:[%s7463_s0 + $0x740] ss:$40 sps:$4 sm:$0xff]  }
 0x241   :  { %3346 = vmatmul.mubr.bf16.vlgmr.msra.gmra.mrb[64].mxu1 %v5616_v55  ;;  %v5660_v55 = vld [vmem:[%s7463_s0 + $0x754] ss:$40 sps:$4 sm:$0xff]  }
 0x242   :  { %3924 = vmatmul.mubr.bf16.gmra.mrb[64].mxu0 %v5621_v57  ;;  %3353 = vmatprep.mubr.bf16.mxu1 %v5622_v58 }
 0x243   :  { %4597 = vmatprep.mubr.msk.bf16.mxu0 %vm2510_vm0, %v5624_v60 }
 0x244   :  { %v6941_v61 = vpop.f32.mrb[24].mxu1 }
 0x245   :  { %v2980_v62 = vpop.f32.mrb[25].mxu1 }
 0x246   :  { %v6946_v1 = vpop.f32.mrb[26].mxu1  ;;  %v5663_v62 = vld [vmem:[%s7463_s0 + $0x750] ss:$40 sps:$4 sm:$0xff]  }
 0x247   :  { %v2983_v4 = vpop.f32.mrb[27].mxu1 }
 0x249   :  { %3354 = vmatmul.mubr.bf16.gmra.mrb[68].mxu1 %v5626_v63  ;;  %v5664_v63 = vld [vmem:[%s7463_s0 + $0x794] ss:$40 sps:$4 sm:$0xff]  }
 0x24a   :  { %3932 = vmatmul.mubr.bf16.gmra.mrb[68].mxu0 %v5627_v2  ;;  %3361 = vmatprep.mubr.bf16.mxu1 %v5628_v3  ;;  %v5666_v3 = vld [vmem:[%s7463_s0 + $0x7a4] ss:$40 sps:$4 sm:$0xff]  }
 0x24b   :  { %4598 = vmatprep.mubr.msk.bf16.mxu0 %vm2510_vm0, %v5630_v0 }
 0x24c   :  { %v6958_v5 = vpop.f32.mrb[28].mxu1 }
 0x24d   :  { %v2988_v6 = vpop.f32.mrb[29].mxu1 }
 0x24e   :  { %v6963_v8 = vpop.f32.mrb[30].mxu1  ;;  %v5668_v6 = vld [vmem:[%s7463_s0 + $0x790] ss:$40 sps:$4 sm:$0xff]  }
 0x24f   :  { %v2991_v11 = vpop.f32.mrb[31].mxu1 }
 0x251   :  { %3362 = vmatmul.mubr.bf16.gmra.mrb[72].mxu1 %v5632_v7 }
 0x252   :  { %3940 = vmatmul.mubr.bf16.gmra.mrb[72].mxu0 %v5633_v9  ;;  %3369 = vmatprep.mubr.bf16.mxu1 %v5634_v10  ;;  %v5669_v9 = vld [vmem:[%s7463_s0 + $0x7a0] ss:$40 sps:$4 sm:$0xff]   ;;  %v5670_v10 = vld [vmem:[%s7463_s0 + $0x7e4] ss:$40 sps:$4 sm:$0xff]  }
 0x253   :  { %4599 = vmatprep.mubr.msk.bf16.mxu0 %vm2510_vm0, %v5636_v12  ;;  %v5672_v12 = vld [vmem:[%s7463_s0 + $0x7f4] ss:$40 sps:$4 sm:$0xff]  }
 0x254   :  { %v6975_v14 = vpop.f32.mrb[32].mxu1 }
 0x255   :  { %v2996_v15 = vpop.f32.mrb[33].mxu1 }
 0x256   :  { %v6980_v18 = vpop.f32.mrb[34].mxu1 }
 0x257   :  { %v2999_v22 = vpop.f32.mrb[35].mxu1 }
 0x258   :  { %v5675_v22 = vld [vmem:[%s7463_s0 + $0x7f0] ss:$40 sps:$4 sm:$0xff]  }
 0x259   :  { %3370 = vmatmul.mubr.bf16.gmra.mrb[76].mxu1 %v5638_v17 }
 0x25a   :  { %3948 = vmatmul.mubr.bf16.gmra.mrb[76].mxu0 %v5639_v19  ;;  %3377 = vmatprep.mubr.bf16.mxu1 %v5640_v20  ;;  %v5674_v19 = vld [vmem:[%s7463_s0 + $0x7e0] ss:$40 sps:$4 sm:$0xff]  }
 0x25b   :  { %4600 = vmatprep.mubr.msk.bf16.mxu0 %vm2510_vm0, %v5642_v23  ;;  %v5676_v23 = vld [vmem:[%s7463_s0 + $0x834] ss:$40 sps:$4 sm:$0xff]  }
 0x25c   :  { %v6992_v25 = vpop.f32.mrb[36].mxu1 }
 0x25d   :  { %v3004_v26 = vpop.f32.mrb[37].mxu1 }
 0x25e   :  { %v6997_v28 = vpop.f32.mrb[38].mxu1 }
 0x25f   :  { %v3007_v33 = vpop.f32.mrb[39].mxu1 }
 0x260   :  { %v5680_v33 = vld [vmem:[%s7463_s0 + $0x830] ss:$40 sps:$4 sm:$0xff]  }
 0x261   :  { %3378 = vmatmul.mubr.bf16.gmra.mrb[80].mxu1 %v5644_v27  ;;  %v5678_v27 = vld [vmem:[%s7463_s0 + $0x844] ss:$40 sps:$4 sm:$0xff]  }
 0x262   :  { %3956 = vmatmul.mubr.bf16.gmra.mrb[80].mxu0 %v5645_v30  ;;  %3385 = vmatprep.mubr.bf16.mxu1 %v5646_v31 }
 0x263   :  { %4601 = vmatprep.mubr.msk.bf16.mxu0 %vm2510_vm0, %v5648_v34 }
 0x264   :  { %v7009_v35 = vpop.f32.mrb[40].mxu1 }
 0x265   :  { %v3012_v36 = vpop.f32.mrb[41].mxu1 }
 0x266   :  { %v7014_v39 = vpop.f32.mrb[42].mxu1  ;;  %v5681_v36 = vld [vmem:[%s7463_s0 + $0x840] ss:$40 sps:$4 sm:$0xff]  }
 0x267   :  { %v3015_v43 = vpop.f32.mrb[43].mxu1 }
 0x268   :  { %v7113_v43 = vld [vmem:[%s7464_s2] ss:$0 sm:$0xff] }
 0x269   :  { %3386 = vmatmul.mubr.bf16.gmra.mrb[84].mxu1 %v5650_v38  ;;  %v5682_v38 = vld [vmem:[%s7463_s0 + $0x884] ss:$40 sps:$4 sm:$0xff]  }
 0x26a   :  { %3964 = vmatmul.mubr.bf16.gmra.mrb[84].mxu0 %v5651_v41  ;;  %3393 = vmatprep.mubr.bf16.mxu1 %v5652_v42  ;;  %v5684_v42 = vld [vmem:[%s7463_s0 + $0x894] ss:$40 sps:$4 sm:$0xff]  }
 0x26b   :  { %4602 = vmatprep.mubr.msk.bf16.mxu0 %vm2510_vm0, %v5654_v44  ;;  %v4644_v44 = vadd.f32 %v7113_v43, %v6839_v13  ;;  %v5690_v13 = vld [vmem:[%s7463_s0 + $0x8e4] ss:$40 sps:$4 sm:$0xff]  }
 0x26c   :  { %v7026_v46 = vpop.f32.mrb[44].mxu1 }
 0x26d   :  { %v3020_v47 = vpop.f32.mrb[45].mxu1 }
 0x26e   :  { %v7031_v50 = vpop.f32.mrb[46].mxu1 }
 0x26f   :  { %v3023_v54 = vpop.f32.mrb[47].mxu1 }
 0x271   :  { %3394 = vmatmul.mubr.bf16.gmra.mrb[88].mxu1 %v5656_v49  ;;  %v5686_v49 = vld [vmem:[%s7463_s0 + $0x880] ss:$40 sps:$4 sm:$0xff]  }
 0x272   :  { %3972 = vmatmul.mubr.bf16.gmra.mrb[88].mxu0 %v5657_v51  ;;  %3401 = vmatprep.mubr.bf16.mxu1 %v5658_v52  ;;  %v4646_v51 = vadd.f32 %v7113_v43, %v6844_v16 }
 0x273   :  { %4603 = vmatprep.mubr.msk.bf16.mxu0 %vm2510_vm0, %v5660_v55  ;;  %v5687_v55 = vld [vmem:[%s7463_s0 + $0x890] ss:$40 sps:$4 sm:$0xff]  }
 0x274   :  { %v7043_v57 = vpop.f32.mrb[48].mxu1 }
 0x275   :  { %v3028_v58 = vpop.f32.mrb[49].mxu1 }
 0x276   :  { %v7048_v60 = vpop.f32.mrb[50].mxu1  ;;  %v5688_v58 = vld [vmem:[%s7463_s0 + $0x8d4] ss:$40 sps:$4 sm:$0xff]  }
 0x277   :  { %v3031_v2 = vpop.f32.mrb[51].mxu1 }
 0x279   :  { %3402 = vmatmul.mubr.bf16.gmra.mrb[92].mxu1 %v5662_v59 }
 0x27a   :  { %3980 = vmatmul.mubr.bf16.gmra.mrb[92].mxu0 %v5663_v62  ;;  %3409 = vmatprep.mubr.bf16.mxu1 %v5664_v63 }
 0x27b   :  { %4604 = vmatprep.mubr.msk.bf16.mxu0 %vm2510_vm0, %v5666_v3  ;;  %v4648_v3 = vadd.f32 %v7113_v43, %v6856_v21  ;;  %v5694_v21 = vld [vmem:[%s7463_s0 + $0x924] ss:$40 sps:$4 sm:$0xff]  }
 0x27c   :  { %v7060_v4 = vpop.f32.mrb[52].mxu1 }
 0x27d   :  { %v3036_v0 = vpop.f32.mrb[53].mxu1 }
 0x27e   :  { %v7065_v7 = vpop.f32.mrb[54].mxu1 }
 0x27f   :  { %v3039_v11 = vpop.f32.mrb[55].mxu1 }
 0x281   :  { %3410 = vmatmul.mubr.bf16.gmra.mrb[96].mxu1 %v5668_v6  ;;  %v5692_v6 = vld [vmem:[%s7463_s0 + $0x8d0] ss:$40 sps:$4 sm:$0xff]  }
 0x282   :  { %3988 = vmatmul.mubr.bf16.gmra.mrb[96].mxu0 %v5669_v9  ;;  %3417 = vmatprep.mubr.bf16.mxu1 %v5670_v10  ;;  %v4650_v9 = vadd.f32 %v7113_v43, %v6861_v24 }
 0x283   :  { %4605 = vmatprep.mubr.msk.bf16.mxu0 %vm2510_vm0, %v5672_v12  ;;  %v5693_v12 = vld [vmem:[%s7463_s0 + $0x8e0] ss:$40 sps:$4 sm:$0xff]  }
 0x284   :  { %v7077_v15 = vpop.f32.mrb[56].mxu1 }
 0x285   :  { %v3044_v17 = vpop.f32.mrb[57].mxu1 }
 0x286   :  { %v7082_v20 = vpop.f32.mrb[58].mxu1 }
 0x287   :  { %v3047_v26 = vpop.f32.mrb[59].mxu1 }
 0x289   :  { %3418 = vmatmul.mubr.bf16.gmra.mrb[100].mxu1 %v5674_v19  ;;  %v5696_v19 = vld [vmem:[%s7463_s0 + $0x934] ss:$40 sps:$4 sm:$0xff]  }
 0x28a   :  { %3996 = vmatmul.mubr.bf16.gmra.mrb[100].mxu0 %v5675_v22  ;;  %3425 = vmatprep.mubr.bf16.mxu1 %v5676_v23 }
 0x28b   :  { %4606 = vmatprep.mubr.msk.bf16.mxu0 %vm2510_vm0, %v5678_v27  ;;  %v4652_v27 = vadd.f32 %v7113_v43, %v6873_v29  ;;  %v5700_v29 = vld [vmem:[%s7463_s0 + $0x974] ss:$40 sps:$4 sm:$0xff]  }
 0x28c   :  { %v7094_v30 = vpop.f32.mrb[60].mxu1 }
 0x28d   :  { %v3052_v31 = vpop.f32.mrb[61].mxu1 }
 0x28e   :  { %v7099_v34 = vpop.f32.mrb[62].mxu1 }
 0x28f   :  { %v3055_v41 = vpop.f32.mrb[63].mxu1 }
 0x291   :  { %3426 = vmatmul.mubr.bf16.gmra.mrb[104].mxu1 %v5680_v33  ;;  %v5698_v33 = vld [vmem:[%s7463_s0 + $0x920] ss:$40 sps:$4 sm:$0xff]  }
 0x292   :  { %4004 = vmatmul.mubr.bf16.gmra.mrb[104].mxu0 %v5681_v36  ;;  %3433 = vmatprep.mubr.bf16.mxu1 %v5682_v38  ;;  %v4654_v36 = vadd.f32 %v7113_v43, %v6878_v32 }
 0x293   :  { %4607 = vmatprep.mubr.msk.bf16.mxu0 %vm2510_vm0, %v5684_v42  ;;  %v5699_v42 = vld [vmem:[%s7463_s0 + $0x930] ss:$40 sps:$4 sm:$0xff]  }
 0x295   :  { %v3797_v47 = vpop.f32.mrb[0].mxu0 }
 0x296   :  { %v4645_v52 = vadd.f32 %v4644_v44, %v3797_v47  ;;  %v3799_v54 = vpop.f32.mrb[1].mxu0  ;;  %v5702_v47 = vld [vmem:[%s7463_s0 + $0x984] ss:$40 sps:$4 sm:$0xff]  }
 0x297   :  { %v3800_v59 = vpop.f32.mrb[2].mxu0  ;;  %v4656_v54 = vadd.f32 %v7113_v43, %v6890_v37  ;;  %v5706_v37 = vld [vmem:[%s7463_s0 + $0x9c4] ss:$40 sps:$4 sm:$0xff]  }
 0x298   :  { %v4052_v62 = vmax.f32 %v4645_v52, 0.0  ;;  %v4647_v63 = vadd.f32 %v4646_v51, %v3800_v59  ;;  %v3802_v2 = vpop.f32.mrb[3].mxu0  ;;  %v4658_v59 = vadd.f32 %v7113_v43, %v6895_v40 }
 0x299   :  { %3434 = vmatmul.mubr.bf16.gmra.mrb[108].mxu1 %v5686_v49 }
 0x29a   :  { %4116 = vst [vmem:[%s7465_s3] sm:$0xff] %v4052_v62  ;;  %v4053_v16 = vmax.f32 %v4647_v63, 0.0  ;;  %4012 = vmatmul.mubr.bf16.gmra.mrb[108].mxu0 %v5687_v55  ;;  %3441 = vmatprep.mubr.bf16.mxu1 %v5688_v58  ;;  %v5704_v58 = vld [vmem:[%s7463_s0 + $0x970] ss:$40 sps:$4 sm:$0xff]   ;;  %v5705_v63 = vld [vmem:[%s7463_s0 + $0x980] ss:$40 sps:$4 sm:$0xff]  }
 0x29b   :  { %4608 = vmatprep.mubr.msk.bf16.mxu0 %vm2510_vm0, %v5690_v13 }
 0x29c   :  { %4117 = vst [vmem:[%s7465_s3 + $0x8] sm:$0xff] %v4053_v16  ;;  %v5708_v16 = vld [vmem:[%s7463_s0 + $0x9d4] ss:$40 sps:$4 sm:$0xff]  }
 0x29d   :  { %v3805_v0 = vpop.f32.mrb[4].mxu0 }
 0x29e   :  { %v4649_v10 = vadd.f32 %v4648_v3, %v3805_v0  ;;  %v3807_v11 = vpop.f32.mrb[5].mxu0 }
 0x29f   :  { %v3808_v17 = vpop.f32.mrb[6].mxu0  ;;  %v5710_v11 = vld [vmem:[%s7463_s0 + $0x9c0] ss:$40 sps:$4 sm:$0xff]  }
 0x2a0   :  { %v4054_v22 = vmax.f32 %v4649_v10, 0.0  ;;  %v4651_v23 = vadd.f32 %v4650_v9, %v3808_v17  ;;  %v3810_v26 = vpop.f32.mrb[7].mxu0  ;;  %v4660_v9 = vadd.f32 %v7113_v43, %v6907_v45 }
 0x2a1   :  { %3442 = vmatmul.mubr.bf16.gmra.mrb[112].mxu1 %v5692_v6 }
 0x2a2   :  { %4118 = vst [vmem:[%s7465_s3 + $0x10] sm:$0xff] %v4054_v22  ;;  %v4055_v24 = vmax.f32 %v4651_v23, 0.0  ;;  %4020 = vmatmul.mubr.bf16.gmra.mrb[112].mxu0 %v5693_v12  ;;  %3449 = vmatprep.mubr.bf16.mxu1 %v5694_v21  ;;  %v4662_v12 = vadd.f32 %v7113_v43, %v6912_v48  ;;  %v4664_v48 = vadd.f32 %v7113_v43, %v6924_v53 }
 0x2a3   :  { %4609 = vmatprep.mubr.msk.bf16.mxu0 %vm2510_vm0, %v5696_v19  ;;  %v5711_v19 = vld [vmem:[%s7463_s0 + $0x9d0] ss:$40 sps:$4 sm:$0xff]   ;;  %v4668_v53 = vadd.f32 %v7113_v43, %v6941_v61  ;;  %v4672_v61 = vadd.f32 %v7113_v43, %v6958_v5  ;;  %v4676_v5 = vadd.f32 %v7113_v43, %v6975_v14  ;;  %v4680_v14 = vadd.f32 %v7113_v43, %v6992_v25 }
 0x2a4   :  { %4119 = vst [vmem:[%s7465_s3 + $0x18] sm:$0xff] %v4055_v24  ;;  %v4684_v25 = vadd.f32 %v7113_v43, %v7009_v35  ;;  %v4688_v35 = vadd.f32 %v7113_v43, %v7026_v46  ;;  %v4692_v46 = vadd.f32 %v7113_v43, %v7043_v57  ;;  %v4696_v57 = vadd.f32 %v7113_v43, %v7060_v4 }
 0x2a5   :  { %v3813_v31 = vpop.f32.mrb[8].mxu0  ;;  %v4700_v4 = vadd.f32 %v7113_v43, %v7077_v15  ;;  %v4704_v15 = vadd.f32 %v7113_v43, %v7094_v30 }
 0x2a6   :  { %v4653_v38 = vadd.f32 %v4652_v27, %v3813_v31  ;;  %v3815_v41 = vpop.f32.mrb[9].mxu0  ;;  %v4666_v31 = vadd.f32 %v7113_v43, %v6929_v56  ;;  %v4670_v56 = vadd.f32 %v7113_v43, %v6946_v1  ;;  %v4674_v1 = vadd.f32 %v7113_v43, %v6963_v8 }
 0x2a7   :  { %v3816_v44 = vpop.f32.mrb[10].mxu0  ;;  %v4678_v8 = vadd.f32 %v7113_v43, %v6980_v18  ;;  %v4682_v18 = vadd.f32 %v7113_v43, %v6997_v28  ;;  %v4686_v28 = vadd.f32 %v7113_v43, %v7014_v39  ;;  %v4690_v39 = vadd.f32 %v7113_v43, %v7031_v50 }
 0x2a8   :  { %v4056_v49 = vmax.f32 %v4653_v38, 0.0  ;;  %v4655_v51 = vadd.f32 %v4654_v36, %v3816_v44  ;;  %v3818_v52 = vpop.f32.mrb[11].mxu0  ;;  %v4694_v50 = vadd.f32 %v7113_v43, %v7048_v60  ;;  %v4698_v60 = vadd.f32 %v7113_v43, %v7065_v7 }
 0x2a9   :  { %3450 = vmatmul.mubr.bf16.gmra.mrb[116].mxu1 %v5698_v33  ;;  %v4702_v7 = vadd.f32 %v7113_v43, %v7082_v20  ;;  %v4706_v20 = vadd.f32 %v7113_v43, %v7099_v34 }
 0x2aa   :  { %4120 = vst [vmem:[%s7465_s3 + $0x20] sm:$0xff] %v4056_v49  ;;  %v4057_v32 = vmax.f32 %v4655_v51, 0.0  ;;  %4028 = vmatmul.mubr.bf16.gmra.mrb[116].mxu0 %v5699_v42  ;;  %3457 = vmatprep.mubr.bf16.mxu1 %v5700_v29 }
 0x2ab   :  { %4610 = vmatprep.mubr.msk.bf16.mxu0 %vm2510_vm0, %v5702_v47 }
 0x2ac   :  { %4121 = vst [vmem:[%s7465_s3 + $0x28] sm:$0xff] %v4057_v32 }
 0x2ad   :  { %v3821_v55 = vpop.f32.mrb[12].mxu0 }
 0x2ae   :  { %v4657_v13 = vadd.f32 %v4656_v54, %v3821_v55  ;;  %v3823_v62 = vpop.f32.mrb[13].mxu0 }
 0x2af   :  { %v3824_v2 = vpop.f32.mrb[14].mxu0 }
 0x2b0   :  { %v4058_v3 = vmax.f32 %v4657_v13, 0.0  ;;  %v4659_v0 = vadd.f32 %v4658_v59, %v3824_v2  ;;  %v3826_v6 = vpop.f32.mrb[15].mxu0 }
 0x2b1   :  { %3458 = vmatmul.mubr.bf16.gmra.mrb[120].mxu1 %v5704_v58 }
 0x2b2   :  { %4122 = vst [vmem:[%s7465_s3 + $0x30] sm:$0xff] %v4058_v3  ;;  %v4059_v40 = vmax.f32 %v4659_v0, 0.0  ;;  %4036 = vmatmul.mubr.bf16.gmra.mrb[120].mxu0 %v5705_v63  ;;  %3465 = vmatprep.mubr.bf16.mxu1 %v5706_v37 }
 0x2b3   :  { %4611 = vmatprep.mubr.msk.bf16.mxu0 %vm2510_vm0, %v5708_v16 }
 0x2b4   :  { %4123 = vst [vmem:[%s7465_s3 + $0x38] sm:$0xff] %v4059_v40 }
 0x2b5   :  { %v3829_v10 = vpop.f32.mrb[16].mxu0 }
 0x2b6   :  { %v4661_v21 = vadd.f32 %v4660_v9, %v3829_v10  ;;  %v3831_v17 = vpop.f32.mrb[17].mxu0 }
 0x2b7   :  { %v3832_v22 = vpop.f32.mrb[18].mxu0 }
 0x2b8   :  { %v4060_v45 = vmax.f32 %v4661_v21, 0.0  ;;  %v4663_v23 = vadd.f32 %v4662_v12, %v3832_v22  ;;  %v3834_v26 = vpop.f32.mrb[19].mxu0 }
 0x2b9   :  { %3466 = vmatmul.mubr.bf16.gmra.mrb[124].mxu1 %v5710_v11 }
 0x2ba   :  { %4124 = vst [vmem:[%s7465_s3 + $0x40] sm:$0xff] %v4060_v45  ;;  %v4061_v24 = vmax.f32 %v4663_v23, 0.0  ;;  %4044 = vmatmul.mubr.bf16.gmra.mrb[124].mxu0 %v5711_v19 }
 0x2bc   :  { %4125 = vst [vmem:[%s7465_s3 + $0x48] sm:$0xff] %v4061_v24 }
 0x2bd   :  { %v3837_v27 = vpop.f32.mrb[20].mxu0 }
 0x2be   :  { %v4665_v33 = vadd.f32 %v4664_v48, %v3837_v27  ;;  %v3839_v36 = vpop.f32.mrb[21].mxu0 }
 0x2bf   :  { %v3840_v38 = vpop.f32.mrb[22].mxu0 }
 0x2c0   :  { %v4062_v41 = vmax.f32 %v4665_v33, 0.0  ;;  %v4667_v42 = vadd.f32 %v4666_v31, %v3840_v38  ;;  %v3842_v29 = vpop.f32.mrb[23].mxu0 }
 0x2c2   :  { %4126 = vst [vmem:[%s7465_s3 + $0x50] sm:$0xff] %v4062_v41  ;;  %v4063_v44 = vmax.f32 %v4667_v42, 0.0 }
 0x2c4   :  { %4127 = vst [vmem:[%s7465_s3 + $0x58] sm:$0xff] %v4063_v44 }
 0x2c5   :  { %v3845_v47 = vpop.f32.mrb[24].mxu0 }
 0x2c6   :  { %v4669_v49 = vadd.f32 %v4668_v53, %v3845_v47  ;;  %v3847_v51 = vpop.f32.mrb[25].mxu0 }
 0x2c7   :  { %v3848_v52 = vpop.f32.mrb[26].mxu0 }
 0x2c8   :  { %v4064_v32 = vmax.f32 %v4669_v49, 0.0  ;;  %v4671_v54 = vadd.f32 %v4670_v56, %v3848_v52  ;;  %v3850_v55 = vpop.f32.mrb[27].mxu0 }
 0x2ca   :  { %4128 = vst [vmem:[%s7465_s3 + $0x60] sm:$0xff] %v4064_v32  ;;  %v4065_v58 = vmax.f32 %v4671_v54, 0.0 }
 0x2cc   :  { %4129 = vst [vmem:[%s7465_s3 + $0x68] sm:$0xff] %v4065_v58 }
 0x2cd   :  { %v3853_v59 = vpop.f32.mrb[28].mxu0 }
 0x2ce   :  { %v4673_v13 = vadd.f32 %v4672_v61, %v3853_v59  ;;  %v3855_v62 = vpop.f32.mrb[29].mxu0 }
 0x2cf   :  { %v3856_v63 = vpop.f32.mrb[30].mxu0 }
 0x2d0   :  { %v4066_v37 = vmax.f32 %v4673_v13, 0.0  ;;  %v4675_v2 = vadd.f32 %v4674_v1, %v3856_v63  ;;  %v3858_v16 = vpop.f32.mrb[31].mxu0 }
 0x2d2   :  { %4130 = vst [vmem:[%s7465_s3 + $0x70] sm:$0xff] %v4066_v37  ;;  %v4067_v3 = vmax.f32 %v4675_v2, 0.0 }
 0x2d4   :  { %4131 = vst [vmem:[%s7465_s3 + $0x78] sm:$0xff] %v4067_v3 }
 0x2d5   :  { %v3861_v0 = vpop.f32.mrb[32].mxu0 }
 0x2d6   :  { %v4677_v6 = vadd.f32 %v4676_v5, %v3861_v0  ;;  %v3863_v40 = vpop.f32.mrb[33].mxu0 }
 0x2d7   :  { %v3864_v9 = vpop.f32.mrb[34].mxu0 }
 0x2d8   :  { %v4068_v10 = vmax.f32 %v4677_v6, 0.0  ;;  %v4679_v11 = vadd.f32 %v4678_v8, %v3864_v9  ;;  %v3866_v12 = vpop.f32.mrb[35].mxu0 }
 0x2da   :  { %4132 = vst [vmem:[%s7465_s3 + $0x80] sm:$0xff] %v4068_v10  ;;  %v4069_v21 = vmax.f32 %v4679_v11, 0.0 }
 0x2dc   :  { %4133 = vst [vmem:[%s7465_s3 + $0x88] sm:$0xff] %v4069_v21 }
 0x2dd   :  { %v3869_v17 = vpop.f32.mrb[36].mxu0 }
 0x2de   :  { %v4681_v19 = vadd.f32 %v4680_v14, %v3869_v17  ;;  %v3871_v22 = vpop.f32.mrb[37].mxu0 }
 0x2df   :  { %v3872_v45 = vpop.f32.mrb[38].mxu0 }
 0x2e0   :  { %v4070_v23 = vmax.f32 %v4681_v19, 0.0  ;;  %v4683_v26 = vadd.f32 %v4682_v18, %v3872_v45  ;;  %v3874_v24 = vpop.f32.mrb[39].mxu0 }
 0x2e2   :  { %4134 = vst [vmem:[%s7465_s3 + $0x90] sm:$0xff] %v4070_v23  ;;  %v4071_v48 = vmax.f32 %v4683_v26, 0.0 }
 0x2e4   :  { %4135 = vst [vmem:[%s7465_s3 + $0x98] sm:$0xff] %v4071_v48 }
 0x2e5   :  { %v3877_v27 = vpop.f32.mrb[40].mxu0 }
 0x2e6   :  { %v4685_v31 = vadd.f32 %v4684_v25, %v3877_v27  ;;  %v3879_v33 = vpop.f32.mrb[41].mxu0 }
 0x2e7   :  { %v3880_v36 = vpop.f32.mrb[42].mxu0 }
 0x2e8   :  { %v4072_v38 = vmax.f32 %v4685_v31, 0.0  ;;  %v4687_v41 = vadd.f32 %v4686_v28, %v3880_v36  ;;  %v3882_v42 = vpop.f32.mrb[43].mxu0 }
 0x2ea   :  { %4136 = vst [vmem:[%s7465_s3 + $0xa0] sm:$0xff] %v4072_v38  ;;  %v4073_v29 = vmax.f32 %v4687_v41, 0.0 }
 0x2ec   :  { %4137 = vst [vmem:[%s7465_s3 + $0xa8] sm:$0xff] %v4073_v29 }
 0x2ed   :  { %v3885_v44 = vpop.f32.mrb[44].mxu0 }
 0x2ee   :  { %v4689_v53 = vadd.f32 %v4688_v35, %v3885_v44  ;;  %v3887_v47 = vpop.f32.mrb[45].mxu0 }
 0x2ef   :  { %v3888_v56 = vpop.f32.mrb[46].mxu0 }
 0x2f0   :  { %v4074_v49 = vmax.f32 %v4689_v53, 0.0  ;;  %v4691_v51 = vadd.f32 %v4690_v39, %v3888_v56  ;;  %v3890_v52 = vpop.f32.mrb[47].mxu0 }
 0x2f2   :  { %4138 = vst [vmem:[%s7465_s3 + $0xb0] sm:$0xff] %v4074_v49  ;;  %v4075_v32 = vmax.f32 %v4691_v51, 0.0 }
 0x2f4   :  { %4139 = vst [vmem:[%s7465_s3 + $0xb8] sm:$0xff] %v4075_v32 }
 0x2f5   :  { %v3893_v54 = vpop.f32.mrb[48].mxu0 }
 0x2f6   :  { %v4693_v55 = vadd.f32 %v4692_v46, %v3893_v54  ;;  %v3895_v58 = vpop.f32.mrb[49].mxu0 }
 0x2f7   :  { %v3896_v61 = vpop.f32.mrb[50].mxu0 }
 0x2f8   :  { %v4076_v59 = vmax.f32 %v4693_v55, 0.0  ;;  %v4695_v1 = vadd.f32 %v4694_v50, %v3896_v61  ;;  %v3898_v13 = vpop.f32.mrb[51].mxu0 }
 0x2fa   :  { %4140 = vst [vmem:[%s7465_s3 + $0xc0] sm:$0xff] %v4076_v59  ;;  %v4077_v62 = vmax.f32 %v4695_v1, 0.0 }
 0x2fc   :  { %4141 = vst [vmem:[%s7465_s3 + $0xc8] sm:$0xff] %v4077_v62 }
 0x2fd   :  { %v3901_v63 = vpop.f32.mrb[52].mxu0 }
 0x2fe   :  { %v4697_v37 = vadd.f32 %v4696_v57, %v3901_v63  ;;  %v3903_v2 = vpop.f32.mrb[53].mxu0 }
 0x2ff   :  { %v3904_v16 = vpop.f32.mrb[54].mxu0 }
 0x300   :  { %v4078_v3 = vmax.f32 %v4697_v37, 0.0  ;;  %v4699_v5 = vadd.f32 %v4698_v60, %v3904_v16  ;;  %v3906_v0 = vpop.f32.mrb[55].mxu0 }
 0x302   :  { %4142 = vst [vmem:[%s7465_s3 + $0xd0] sm:$0xff] %v4078_v3  ;;  %v4079_v8 = vmax.f32 %v4699_v5, 0.0 }
 0x304   :  { %4143 = vst [vmem:[%s7465_s3 + $0xd8] sm:$0xff] %v4079_v8 }
 0x305   :  { %v3909_v6 = vpop.f32.mrb[56].mxu0 }
 0x306   :  { %v4701_v40 = vadd.f32 %v4700_v4, %v3909_v6  ;;  %v3911_v9 = vpop.f32.mrb[57].mxu0 }
 0x307   :  { %v3912_v10 = vpop.f32.mrb[58].mxu0 }
 0x308   :  { %v4080_v11 = vmax.f32 %v4701_v40, 0.0  ;;  %v4703_v12 = vadd.f32 %v4702_v7, %v3912_v10  ;;  %v3914_v21 = vpop.f32.mrb[59].mxu0 }
 0x30a   :  { %4144 = vst [vmem:[%s7465_s3 + $0xe0] sm:$0xff] %v4080_v11  ;;  %v4081_v14 = vmax.f32 %v4703_v12, 0.0 }
 0x30c   :  { %4145 = vst [vmem:[%s7465_s3 + $0xe8] sm:$0xff] %v4081_v14 }
 0x30d   :  { %v3917_v17 = vpop.f32.mrb[60].mxu0 }
 0x30e   :  { %v4705_v18 = vadd.f32 %v4704_v15, %v3917_v17  ;;  %v3919_v19 = vpop.f32.mrb[61].mxu0 }
 0x30f   :  { %v3920_v22 = vpop.f32.mrb[62].mxu0 }
 0x310   :  { %v4082_v45 = vmax.f32 %v4705_v18, 0.0  ;;  %v4707_v23 = vadd.f32 %v4706_v20, %v3920_v22  ;;  %v3922_v26 = vpop.f32.mrb[63].mxu0 }
 0x312   :  { %4146 = vst [vmem:[%s7465_s3 + $0xf0] sm:$0xff] %v4082_v45  ;;  %v4083_v24 = vmax.f32 %v4707_v23, 0.0 }
 0x314   :  { %4147 = vst [vmem:[%s7465_s3 + $0xf8] sm:$0xff] %v4083_v24  ;;  %v3347_v30 = vpop.f32.mrb[64].mxu1 }
 0x315   :  { %v4708_v48 = vadd.f32 %v7113_v43, %v3347_v30  ;;  %v3925_v25 = vpop.f32.mrb[64].mxu0  ;;  %v3349_v34 = vpop.f32.mrb[65].mxu1 }
 0x316   :  { %v3927_v27 = vpop.f32.mrb[65].mxu0  ;;  %v3350_v28 = vpop.f32.mrb[66].mxu1 }
 0x317   :  { %v4709_v31 = vadd.f32 %v4708_v48, %v3925_v25  ;;  %v4710_v33 = vadd.f32 %v7113_v43, %v3350_v28  ;;  %v3928_v36 = vpop.f32.mrb[66].mxu0  ;;  %v3352_v38 = vpop.f32.mrb[67].mxu1 }
 0x318   :  { %v3930_v41 = vpop.f32.mrb[67].mxu0 }
 0x319   :  { %v4084_v42 = vmax.f32 %v4709_v31, 0.0  ;;  %v4711_v29 = vadd.f32 %v4710_v33, %v3928_v36 }
 0x31b   :  { %4148 = vst [vmem:[%s7465_s3 + $0x100] sm:$0xff] %v4084_v42  ;;  %v4085_v35 = vmax.f32 %v4711_v29, 0.0 }
 0x31c   :  { %v3355_v44 = vpop.f32.mrb[68].mxu1 }
 0x31d   :  { %4149 = vst [vmem:[%s7465_s3 + $0x108] sm:$0xff] %v4085_v35  ;;  %v4712_v39 = vadd.f32 %v7113_v43, %v3355_v44  ;;  %v3933_v53 = vpop.f32.mrb[68].mxu0  ;;  %v3357_v47 = vpop.f32.mrb[69].mxu1 }
 0x31e   :  { %v3935_v56 = vpop.f32.mrb[69].mxu0  ;;  %v3358_v49 = vpop.f32.mrb[70].mxu1 }
 0x31f   :  { %v4713_v51 = vadd.f32 %v4712_v39, %v3933_v53  ;;  %v4714_v52 = vadd.f32 %v7113_v43, %v3358_v49  ;;  %v3936_v32 = vpop.f32.mrb[70].mxu0  ;;  %v3360_v46 = vpop.f32.mrb[71].mxu1 }
 0x320   :  { %v3938_v54 = vpop.f32.mrb[71].mxu0 }
 0x321   :  { %v4086_v50 = vmax.f32 %v4713_v51, 0.0  ;;  %v4715_v55 = vadd.f32 %v4714_v52, %v3936_v32 }
 0x323   :  { %4150 = vst [vmem:[%s7465_s3 + $0x110] sm:$0xff] %v4086_v50  ;;  %v4087_v58 = vmax.f32 %v4715_v55, 0.0 }
 0x324   :  { %v3363_v61 = vpop.f32.mrb[72].mxu1 }
 0x325   :  { %4151 = vst [vmem:[%s7465_s3 + $0x118] sm:$0xff] %v4087_v58  ;;  %v4716_v59 = vadd.f32 %v7113_v43, %v3363_v61  ;;  %v3941_v1 = vpop.f32.mrb[72].mxu0  ;;  %v3365_v13 = vpop.f32.mrb[73].mxu1 }
 0x326   :  { %v3943_v62 = vpop.f32.mrb[73].mxu0  ;;  %v3366_v57 = vpop.f32.mrb[74].mxu1 }
 0x327   :  { %v4717_v63 = vadd.f32 %v4716_v59, %v3941_v1  ;;  %v4718_v60 = vadd.f32 %v7113_v43, %v3366_v57  ;;  %v3944_v37 = vpop.f32.mrb[74].mxu0  ;;  %v3368_v2 = vpop.f32.mrb[75].mxu1 }
 0x328   :  { %v3946_v16 = vpop.f32.mrb[75].mxu0 }
 0x329   :  { %v4088_v3 = vmax.f32 %v4717_v63, 0.0  ;;  %v4719_v5 = vadd.f32 %v4718_v60, %v3944_v37 }
 0x32b   :  { %4152 = vst [vmem:[%s7465_s3 + $0x120] sm:$0xff] %v4088_v3  ;;  %v4089_v0 = vmax.f32 %v4719_v5, 0.0 }
 0x32c   :  { %v3371_v8 = vpop.f32.mrb[76].mxu1 }
 0x32d   :  { %4153 = vst [vmem:[%s7465_s3 + $0x128] sm:$0xff] %v4089_v0  ;;  %v4720_v4 = vadd.f32 %v7113_v43, %v3371_v8  ;;  %v3949_v6 = vpop.f32.mrb[76].mxu0  ;;  %v3373_v7 = vpop.f32.mrb[77].mxu1 }
 0x32e   :  { %v3951_v40 = vpop.f32.mrb[77].mxu0  ;;  %v3374_v9 = vpop.f32.mrb[78].mxu1 }
 0x32f   :  { %v4721_v10 = vadd.f32 %v4720_v4, %v3949_v6  ;;  %v4722_v11 = vadd.f32 %v7113_v43, %v3374_v9  ;;  %v3952_v12 = vpop.f32.mrb[78].mxu0  ;;  %v3376_v21 = vpop.f32.mrb[79].mxu1 }
 0x330   :  { %v3954_v14 = vpop.f32.mrb[79].mxu0 }
 0x331   :  { %v4090_v15 = vmax.f32 %v4721_v10, 0.0  ;;  %v4723_v17 = vadd.f32 %v4722_v11, %v3952_v12 }
 0x333   :  { %4154 = vst [vmem:[%s7465_s3 + $0x130] sm:$0xff] %v4090_v15  ;;  %v4091_v20 = vmax.f32 %v4723_v17, 0.0 }
 0x334   :  { %v3379_v18 = vpop.f32.mrb[80].mxu1 }
 0x335   :  { %4155 = vst [vmem:[%s7465_s3 + $0x138] sm:$0xff] %v4091_v20  ;;  %v4724_v19 = vadd.f32 %v7113_v43, %v3379_v18  ;;  %v3957_v22 = vpop.f32.mrb[80].mxu0  ;;  %v3381_v45 = vpop.f32.mrb[81].mxu1 }
 0x336   :  { %v3959_v23 = vpop.f32.mrb[81].mxu0  ;;  %v3382_v26 = vpop.f32.mrb[82].mxu1 }
 0x337   :  { %v4725_v24 = vadd.f32 %v4724_v19, %v3957_v22  ;;  %v4726_v30 = vadd.f32 %v7113_v43, %v3382_v26  ;;  %v3960_v48 = vpop.f32.mrb[82].mxu0  ;;  %v3384_v25 = vpop.f32.mrb[83].mxu1 }
 0x338   :  { %v3962_v34 = vpop.f32.mrb[83].mxu0 }
 0x339   :  { %v4092_v27 = vmax.f32 %v4725_v24, 0.0  ;;  %v4727_v28 = vadd.f32 %v4726_v30, %v3960_v48 }
 0x33b   :  { %4156 = vst [vmem:[%s7465_s3 + $0x140] sm:$0xff] %v4092_v27  ;;  %v4093_v31 = vmax.f32 %v4727_v28, 0.0 }
 0x33c   :  { %v3387_v33 = vpop.f32.mrb[84].mxu1 }
 0x33d   :  { %4157 = vst [vmem:[%s7465_s3 + $0x148] sm:$0xff] %v4093_v31  ;;  %v4728_v36 = vadd.f32 %v7113_v43, %v3387_v33  ;;  %v3965_v38 = vpop.f32.mrb[84].mxu0  ;;  %v3389_v41 = vpop.f32.mrb[85].mxu1 }
 0x33e   :  { %v3967_v42 = vpop.f32.mrb[85].mxu0  ;;  %v3390_v29 = vpop.f32.mrb[86].mxu1 }
 0x33f   :  { %v4729_v35 = vadd.f32 %v4728_v36, %v3965_v38  ;;  %v4730_v44 = vadd.f32 %v7113_v43, %v3390_v29  ;;  %v3968_v39 = vpop.f32.mrb[86].mxu0  ;;  %v3392_v53 = vpop.f32.mrb[87].mxu1 }
 0x340   :  { %v3970_v47 = vpop.f32.mrb[87].mxu0 }
 0x341   :  { %v4094_v56 = vmax.f32 %v4729_v35, 0.0  ;;  %v4731_v49 = vadd.f32 %v4730_v44, %v3968_v39 }
 0x343   :  { %4158 = vst [vmem:[%s7465_s3 + $0x150] sm:$0xff] %v4094_v56  ;;  %v4095_v51 = vmax.f32 %v4731_v49, 0.0 }
 0x344   :  { %v3395_v52 = vpop.f32.mrb[88].mxu1 }
 0x345   :  { %4159 = vst [vmem:[%s7465_s3 + $0x158] sm:$0xff] %v4095_v51  ;;  %v4732_v32 = vadd.f32 %v7113_v43, %v3395_v52  ;;  %v3973_v46 = vpop.f32.mrb[88].mxu0  ;;  %v3397_v54 = vpop.f32.mrb[89].mxu1 }
 0x346   :  { %v3975_v50 = vpop.f32.mrb[89].mxu0  ;;  %v3398_v55 = vpop.f32.mrb[90].mxu1 }
 0x347   :  { %v4733_v58 = vadd.f32 %v4732_v32, %v3973_v46  ;;  %v4734_v61 = vadd.f32 %v7113_v43, %v3398_v55  ;;  %v3976_v59 = vpop.f32.mrb[90].mxu0  ;;  %v3400_v1 = vpop.f32.mrb[91].mxu1 }
 0x348   :  { %v3978_v13 = vpop.f32.mrb[91].mxu0 }
 0x349   :  { %v4096_v62 = vmax.f32 %v4733_v58, 0.0  ;;  %v4735_v57 = vadd.f32 %v4734_v61, %v3976_v59 }
 0x34b   :  { %4160 = vst [vmem:[%s7465_s3 + $0x160] sm:$0xff] %v4096_v62  ;;  %v4097_v63 = vmax.f32 %v4735_v57, 0.0 }
 0x34c   :  { %v3403_v60 = vpop.f32.mrb[92].mxu1 }
 0x34d   :  { %4161 = vst [vmem:[%s7465_s3 + $0x168] sm:$0xff] %v4097_v63  ;;  %v4736_v37 = vadd.f32 %v7113_v43, %v3403_v60  ;;  %v3981_v2 = vpop.f32.mrb[92].mxu0  ;;  %v3405_v16 = vpop.f32.mrb[93].mxu1 }
 0x34e   :  { %v3983_v3 = vpop.f32.mrb[93].mxu0  ;;  %v3406_v5 = vpop.f32.mrb[94].mxu1 }
 0x34f   :  { %v4737_v0 = vadd.f32 %v4736_v37, %v3981_v2  ;;  %v4738_v8 = vadd.f32 %v7113_v43, %v3406_v5  ;;  %v3984_v4 = vpop.f32.mrb[94].mxu0  ;;  %v3408_v6 = vpop.f32.mrb[95].mxu1 }
 0x350   :  { %v3986_v7 = vpop.f32.mrb[95].mxu0 }
 0x351   :  { %v4098_v40 = vmax.f32 %v4737_v0, 0.0  ;;  %v4739_v9 = vadd.f32 %v4738_v8, %v3984_v4 }
 0x353   :  { %4162 = vst [vmem:[%s7465_s3 + $0x170] sm:$0xff] %v4098_v40  ;;  %v4099_v10 = vmax.f32 %v4739_v9, 0.0 }
 0x354   :  { %v3411_v11 = vpop.f32.mrb[96].mxu1 }
 0x355   :  { %4163 = vst [vmem:[%s7465_s3 + $0x178] sm:$0xff] %v4099_v10  ;;  %v4740_v12 = vadd.f32 %v7113_v43, %v3411_v11  ;;  %v3989_v21 = vpop.f32.mrb[96].mxu0  ;;  %v3413_v14 = vpop.f32.mrb[97].mxu1 }
 0x356   :  { %v3991_v15 = vpop.f32.mrb[97].mxu0  ;;  %v3414_v17 = vpop.f32.mrb[98].mxu1 }
 0x357   :  { %v4741_v20 = vadd.f32 %v4740_v12, %v3989_v21  ;;  %v4742_v18 = vadd.f32 %v7113_v43, %v3414_v17  ;;  %v3992_v19 = vpop.f32.mrb[98].mxu0  ;;  %v3416_v22 = vpop.f32.mrb[99].mxu1 }
 0x358   :  { %v3994_v45 = vpop.f32.mrb[99].mxu0 }
 0x359   :  { %v4100_v23 = vmax.f32 %v4741_v20, 0.0  ;;  %v4743_v26 = vadd.f32 %v4742_v18, %v3992_v19 }
 0x35b   :  { %4164 = vst [vmem:[%s7465_s3 + $0x180] sm:$0xff] %v4100_v23  ;;  %v4101_v24 = vmax.f32 %v4743_v26, 0.0 }
 0x35c   :  { %v3419_v30 = vpop.f32.mrb[100].mxu1 }
 0x35d   :  { %4165 = vst [vmem:[%s7465_s3 + $0x188] sm:$0xff] %v4101_v24  ;;  %v4744_v48 = vadd.f32 %v7113_v43, %v3419_v30  ;;  %v3997_v25 = vpop.f32.mrb[100].mxu0  ;;  %v3421_v34 = vpop.f32.mrb[101].mxu1 }
 0x35e   :  { %v3999_v27 = vpop.f32.mrb[101].mxu0  ;;  %v3422_v28 = vpop.f32.mrb[102].mxu1 }
 0x35f   :  { %v4745_v31 = vadd.f32 %v4744_v48, %v3997_v25  ;;  %v4746_v33 = vadd.f32 %v7113_v43, %v3422_v28  ;;  %v4000_v36 = vpop.f32.mrb[102].mxu0  ;;  %v3424_v38 = vpop.f32.mrb[103].mxu1 }
 0x360   :  { %v4002_v41 = vpop.f32.mrb[103].mxu0 }
 0x361   :  { %v4102_v42 = vmax.f32 %v4745_v31, 0.0  ;;  %v4747_v29 = vadd.f32 %v4746_v33, %v4000_v36 }
 0x363   :  { %4166 = vst [vmem:[%s7465_s3 + $0x190] sm:$0xff] %v4102_v42  ;;  %v4103_v35 = vmax.f32 %v4747_v29, 0.0 }
 0x364   :  { %v3427_v44 = vpop.f32.mrb[104].mxu1 }
 0x365   :  { %4167 = vst [vmem:[%s7465_s3 + $0x198] sm:$0xff] %v4103_v35  ;;  %v4748_v39 = vadd.f32 %v7113_v43, %v3427_v44  ;;  %v4005_v53 = vpop.f32.mrb[104].mxu0  ;;  %v3429_v47 = vpop.f32.mrb[105].mxu1 }
 0x366   :  { %v4007_v56 = vpop.f32.mrb[105].mxu0  ;;  %v3430_v49 = vpop.f32.mrb[106].mxu1 }
 0x367   :  { %v4749_v51 = vadd.f32 %v4748_v39, %v4005_v53  ;;  %v4750_v52 = vadd.f32 %v7113_v43, %v3430_v49  ;;  %v4008_v32 = vpop.f32.mrb[106].mxu0  ;;  %v3432_v46 = vpop.f32.mrb[107].mxu1 }
 0x368   :  { %v4010_v54 = vpop.f32.mrb[107].mxu0 }
 0x369   :  { %v4104_v50 = vmax.f32 %v4749_v51, 0.0  ;;  %v4751_v55 = vadd.f32 %v4750_v52, %v4008_v32 }
 0x36b   :  { %4168 = vst [vmem:[%s7465_s3 + $0x1a0] sm:$0xff] %v4104_v50  ;;  %v4105_v58 = vmax.f32 %v4751_v55, 0.0 }
 0x36c   :  { %v3435_v61 = vpop.f32.mrb[108].mxu1 }
 0x36d   :  { %4169 = vst [vmem:[%s7465_s3 + $0x1a8] sm:$0xff] %v4105_v58  ;;  %v4752_v59 = vadd.f32 %v7113_v43, %v3435_v61  ;;  %v4013_v1 = vpop.f32.mrb[108].mxu0  ;;  %v3437_v13 = vpop.f32.mrb[109].mxu1 }
 0x36e   :  { %v4015_v62 = vpop.f32.mrb[109].mxu0  ;;  %v3438_v57 = vpop.f32.mrb[110].mxu1 }
 0x36f   :  { %v4753_v63 = vadd.f32 %v4752_v59, %v4013_v1  ;;  %v4754_v60 = vadd.f32 %v7113_v43, %v3438_v57  ;;  %v4016_v37 = vpop.f32.mrb[110].mxu0  ;;  %v3440_v2 = vpop.f32.mrb[111].mxu1 }
 0x370   :  { %v4018_v16 = vpop.f32.mrb[111].mxu0 }
 0x371   :  { %v4106_v3 = vmax.f32 %v4753_v63, 0.0  ;;  %v4755_v5 = vadd.f32 %v4754_v60, %v4016_v37 }
 0x373   :  { %4170 = vst [vmem:[%s7465_s3 + $0x1b0] sm:$0xff] %v4106_v3  ;;  %v4107_v0 = vmax.f32 %v4755_v5, 0.0 }
 0x374   :  { %v3443_v8 = vpop.f32.mrb[112].mxu1 }
 0x375   :  { %4171 = vst [vmem:[%s7465_s3 + $0x1b8] sm:$0xff] %v4107_v0  ;;  %v4756_v4 = vadd.f32 %v7113_v43, %v3443_v8  ;;  %v4021_v6 = vpop.f32.mrb[112].mxu0  ;;  %v3445_v7 = vpop.f32.mrb[113].mxu1 }
 0x376   :  { %v4023_v40 = vpop.f32.mrb[113].mxu0  ;;  %v3446_v9 = vpop.f32.mrb[114].mxu1 }
 0x377   :  { %v4757_v10 = vadd.f32 %v4756_v4, %v4021_v6  ;;  %v4758_v11 = vadd.f32 %v7113_v43, %v3446_v9  ;;  %v4024_v12 = vpop.f32.mrb[114].mxu0  ;;  %v3448_v21 = vpop.f32.mrb[115].mxu1 }
 0x378   :  { %v4026_v14 = vpop.f32.mrb[115].mxu0 }
 0x379   :  { %v4108_v15 = vmax.f32 %v4757_v10, 0.0  ;;  %v4759_v17 = vadd.f32 %v4758_v11, %v4024_v12 }
 0x37b   :  { %4172 = vst [vmem:[%s7465_s3 + $0x1c0] sm:$0xff] %v4108_v15  ;;  %v4109_v20 = vmax.f32 %v4759_v17, 0.0 }
 0x37c   :  { %v3451_v18 = vpop.f32.mrb[116].mxu1 }
 0x37d   :  { %4173 = vst [vmem:[%s7465_s3 + $0x1c8] sm:$0xff] %v4109_v20  ;;  %v4760_v19 = vadd.f32 %v7113_v43, %v3451_v18  ;;  %v4029_v22 = vpop.f32.mrb[116].mxu0  ;;  %v3453_v45 = vpop.f32.mrb[117].mxu1 }
 0x37e   :  { %v4031_v23 = vpop.f32.mrb[117].mxu0  ;;  %v3454_v26 = vpop.f32.mrb[118].mxu1 }
 0x37f   :  { %v4761_v24 = vadd.f32 %v4760_v19, %v4029_v22  ;;  %v4762_v30 = vadd.f32 %v7113_v43, %v3454_v26  ;;  %v4032_v48 = vpop.f32.mrb[118].mxu0  ;;  %v3456_v25 = vpop.f32.mrb[119].mxu1 }
 0x380   :  { %v4034_v34 = vpop.f32.mrb[119].mxu0 }
 0x381   :  { %v4110_v27 = vmax.f32 %v4761_v24, 0.0  ;;  %v4763_v28 = vadd.f32 %v4762_v30, %v4032_v48 }
 0x383   :  { %4174 = vst [vmem:[%s7465_s3 + $0x1d0] sm:$0xff] %v4110_v27  ;;  %v4111_v31 = vmax.f32 %v4763_v28, 0.0 }
 0x384   :  { %v3459_v33 = vpop.f32.mrb[120].mxu1 }
 0x385   :  { %4175 = vst [vmem:[%s7465_s3 + $0x1d8] sm:$0xff] %v4111_v31  ;;  %v4764_v36 = vadd.f32 %v7113_v43, %v3459_v33  ;;  %v4037_v38 = vpop.f32.mrb[120].mxu0  ;;  %v3461_v41 = vpop.f32.mrb[121].mxu1 }
 0x386   :  { %v4039_v42 = vpop.f32.mrb[121].mxu0  ;;  %v3462_v29 = vpop.f32.mrb[122].mxu1 }
 0x387   :  { %v4765_v35 = vadd.f32 %v4764_v36, %v4037_v38  ;;  %v4766_v44 = vadd.f32 %v7113_v43, %v3462_v29  ;;  %v4040_v39 = vpop.f32.mrb[122].mxu0  ;;  %v3464_v53 = vpop.f32.mrb[123].mxu1 }
 0x388   :  { %v4042_v47 = vpop.f32.mrb[123].mxu0 }
 0x389   :  { %v4112_v56 = vmax.f32 %v4765_v35, 0.0  ;;  %v4767_v49 = vadd.f32 %v4766_v44, %v4040_v39 }
 0x38b   :  { %4176 = vst [vmem:[%s7465_s3 + $0x1e0] sm:$0xff] %v4112_v56  ;;  %v4113_v51 = vmax.f32 %v4767_v49, 0.0 }
 0x38c   :  { %v3467_v52 = vpop.f32.mrb[124].mxu1 }
 0x38d   :  { %4177 = vst [vmem:[%s7465_s3 + $0x1e8] sm:$0xff] %v4113_v51  ;;  %v4768_v32 = vadd.f32 %v7113_v43, %v3467_v52  ;;  %v4045_v46 = vpop.f32.mrb[124].mxu0  ;;  %v3469_v54 = vpop.f32.mrb[125].mxu1 }
 0x38e   :  { %v4047_v50 = vpop.f32.mrb[125].mxu0  ;;  %v3470_v55 = vpop.f32.mrb[126].mxu1 }
 0x38f   :  { %v4769_v58 = vadd.f32 %v4768_v32, %v4045_v46  ;;  %v4770_v61 = vadd.f32 %v7113_v43, %v3470_v55  ;;  %v4048_v59 = vpop.f32.mrb[126].mxu0  ;;  %v3472_v1 = vpop.f32.mrb[127].mxu1 }
 0x390   :  { %v4050_v13 = vpop.f32.mrb[127].mxu0 }
 0x391   :  { %v4114_v62 = vmax.f32 %v4769_v58, 0.0  ;;  %v4771_v57 = vadd.f32 %v4770_v61, %v4048_v59 }
 0x393   :  { %4178 = vst [vmem:[%s7465_s3 + $0x1f0] sm:$0xff] %v4114_v62  ;;  %v4115_v63 = vmax.f32 %v4771_v57, 0.0 }
 0x395   :  { %4179 = vst [vmem:[%s7465_s3 + $0x1f8] sm:$0xff] %v4115_v63 }

// kernel: mixed5b_forward.7
= control target key start
LH: loop header
LB: loop body
LE: loop exit
PB: predicated region body
PF: predicated region fallthrough
CT: control target
= control target key end

     0   :  { %v3747_v0 = vmov 0   ;;  %vm1302_vm0 = vcmask 523264   ;;  %s4907_s1 = inlined_call_operand.vmem [shape: bf16[576,128], index: 1, kind: input, shape index: {}]   ;;  %s4908_s0 = inlined_call_operand.vmem [shape: bf16[512,576], index: 0, kind: input, shape index: {}]   ;;  %s4909_s2 = inlined_call_operand.vmem [shape: f32[1,128], index: 2, kind: input, shape index: {}]   ;;  %s4910_s3 = inlined_call_operand.vmem [shape: bf16[512,128], index: 3, kind: output, shape index: {}]  }
   0x1   :  { %1399 = vmatprep.subr.bf16.mxu0 %v3747_v0  ;;  %3310 = vmatprep.subr.bf16.mxu1 %v3747_v0  ;;  %v3487_v1 = vld [vmem:[%s4907_s1] sm:$0xff]   ;;  %v3488_v2 = vld [vmem:[%s4907_s1 + $0x8] sm:$0xff]   ;;  %v3489_v3 = vld [vmem:[%s4907_s1 + $0x10] sm:$0xff]  }
   0x2   :  { %1400 = vmatpush1.bf16.msra.mxu0 %v3487_v1  ;;  %3326 = vmatpush1.bf16.msra.mxu1 %v3487_v1  ;;  %v3490_v4 = vld [vmem:[%s4907_s1 + $0x18] sm:$0xff]   ;;  %v3491_v5 = vld [vmem:[%s4907_s1 + $0x20] sm:$0xff]   ;;  %v3492_v7 = vld [vmem:[%s4907_s1 + $0x28] sm:$0xff]  }
   0x3   :  { %1401 = vmatprep.subr.bf16.mxu0 %v3747_v0  ;;  %3311 = vmatprep.subr.bf16.mxu1 %v3747_v0  ;;  %v3505_v6 = vld [vmem:[%s4908_s0 + $0x4] ss:$20 sps:$4 sm:$0xff]   ;;  %v3493_v9 = vld [vmem:[%s4907_s1 + $0x30] sm:$0xff]   ;;  %v3496_v12 = vld [vmem:[%s4907_s1 + $0x48] sm:$0xff]  }
   0x4   :  { %v3508_v8 = vld [vmem:[%s4908_s0 + $0x144] ss:$20 sps:$4 sm:$0xff]   ;;  %1431 = vmatprep.mubr.bf16.mxu0 %v3505_v6  ;;  %v3497_v13 = vld [vmem:[%s4907_s1 + $0x50] sm:$0xff]   ;;  %v3500_v16 = vld [vmem:[%s4907_s1 + $0x68] sm:$0xff]  }
   0x5   :  { %1495 = vmatprep.mubr.bf16.mxu1 %v3508_v8  ;;  %v3494_v10 = vld [vmem:[%s4907_s1 + $0x38] sm:$0xff]   ;;  %v3495_v11 = vld [vmem:[%s4907_s1 + $0x40] sm:$0xff]   ;;  %v3501_v17 = vld [vmem:[%s4907_s1 + $0x70] sm:$0xff]  }
   0x6   :  { %1402 = vmatpush1.bf16.msra.mxu0 %v3488_v2  ;;  %3327 = vmatpush1.bf16.msra.mxu1 %v3488_v2  ;;  %v3498_v14 = vld [vmem:[%s4907_s1 + $0x58] sm:$0xff]   ;;  %v3499_v15 = vld [vmem:[%s4907_s1 + $0x60] sm:$0xff]   ;;  %v3559_v25 = vld [vmem:[%s4907_s1 + $0x108] sm:$0xff]  }
   0x7   :  { %1403 = vmatprep.subr.bf16.mxu0 %v3747_v0  ;;  %3312 = vmatprep.subr.bf16.mxu1 %v3747_v0  ;;  %v3502_v18 = vld [vmem:[%s4907_s1 + $0x78] sm:$0xff]   ;;  %v3510_v19 = vld [vmem:[%s4907_s1 + $0x100] sm:$0xff]   ;;  %v3511_v26 = vld [vmem:[%s4907_s1 + $0x88] sm:$0xff]  }
   0x8   :  { %v3503_v20 = vld [vmem:[%s4908_s0] ss:$20 sps:$4 sm:$0xff]   ;;  %v3516_v27 = vld [vmem:[%s4908_s0 + $0x28] ss:$20 sps:$4 sm:$0xff]   ;;  %v3524_v34 = vld [vmem:[%s4908_s0 + $0x50] ss:$20 sps:$4 sm:$0xff]  }
   0x9   :  { %v3506_v21 = vld [vmem:[%s4908_s0 + $0x140] ss:$20 sps:$4 sm:$0xff]   ;;  %v3517_v28 = vld [vmem:[%s4908_s0 + $0x168] ss:$20 sps:$4 sm:$0xff]   ;;  %v3525_v35 = vld [vmem:[%s4908_s0 + $0x190] ss:$20 sps:$4 sm:$0xff]  }
   0xa   :  { %1404 = vmatpush1.bf16.msra.mxu0 %v3489_v3  ;;  %3328 = vmatpush1.bf16.msra.mxu1 %v3489_v3  ;;  %v3509_v22 = vld [vmem:[%s4907_s1 + $0x80] sm:$0xff]   ;;  %v3518_v29 = vld [vmem:[%s4907_s1 + $0x90] sm:$0xff]   ;;  %v3519_v33 = vld [vmem:[%s4907_s1 + $0x98] sm:$0xff]  }
   0xb   :  { %1405 = vmatprep.subr.bf16.mxu0 %v3747_v0  ;;  %3313 = vmatprep.subr.bf16.mxu1 %v3747_v0  ;;  %v3512_v23 = vld [vmem:[%s4908_s0 + $0x2c] ss:$20 sps:$4 sm:$0xff]   ;;  %v3599_v30 = vld [vmem:[%s4907_s1 + $0x110] sm:$0xff]   ;;  %v3536_v43 = vld [vmem:[%s4908_s0 + $0xa4] ss:$20 sps:$4 sm:$0xff]  }
   0xc   :  { %v3514_v24 = vld [vmem:[%s4908_s0 + $0x16c] ss:$20 sps:$4 sm:$0xff]   ;;  %v3520_v31 = vld [vmem:[%s4908_s0 + $0x54] ss:$20 sps:$4 sm:$0xff]   ;;  %v3528_v37 = vld [vmem:[%s4908_s0 + $0x7c] ss:$20 sps:$4 sm:$0xff]  }
   0xd   :  { %v3522_v32 = vld [vmem:[%s4908_s0 + $0x194] ss:$20 sps:$4 sm:$0xff]   ;;  %v3526_v36 = vld [vmem:[%s4907_s1 + $0xa0] sm:$0xff]   ;;  %v3530_v38 = vld [vmem:[%s4908_s0 + $0x1bc] ss:$20 sps:$4 sm:$0xff]  }
   0xe   :  { %1406 = vmatpush1.bf16.msra.mxu0 %v3490_v4  ;;  %3329 = vmatpush1.bf16.msra.mxu1 %v3490_v4  ;;  %v3527_v39 = vld [vmem:[%s4907_s1 + $0xa8] sm:$0xff]   ;;  %v3534_v42 = vld [vmem:[%s4907_s1 + $0xb0] sm:$0xff]   ;;  %v3636_v44 = vld [vmem:[%s4907_s1 + $0x118] sm:$0xff]  }
   0xf   :  { %1407 = vmatprep.subr.bf16.mxu0 %v3747_v0  ;;  %3314 = vmatprep.subr.bf16.mxu1 %v3747_v0  ;;  %v3532_v40 = vld [vmem:[%s4908_s0 + $0x78] ss:$20 sps:$4 sm:$0xff]   ;;  %v3540_v47 = vld [vmem:[%s4908_s0 + $0xa0] ss:$20 sps:$4 sm:$0xff]   ;;  %v3548_v53 = vld [vmem:[%s4908_s0 + $0xc8] ss:$20 sps:$4 sm:$0xff]  }
  0x10   :  { %v3533_v41 = vld [vmem:[%s4908_s0 + $0x1b8] ss:$20 sps:$4 sm:$0xff]   ;;  %v3541_v48 = vld [vmem:[%s4908_s0 + $0x1e0] ss:$20 sps:$4 sm:$0xff]   ;;  %v3549_v54 = vld [vmem:[%s4908_s0 + $0x208] ss:$20 sps:$4 sm:$0xff]  }
  0x11   :  { %v3538_v45 = vld [vmem:[%s4908_s0 + $0x1e4] ss:$20 sps:$4 sm:$0xff]   ;;  %v3544_v50 = vld [vmem:[%s4908_s0 + $0xcc] ss:$20 sps:$4 sm:$0xff]   ;;  %v3550_v55 = vld [vmem:[%s4907_s1 + $0xd0] sm:$0xff]  }
  0x12   :  { %1408 = vmatpush1.bf16.msra.mxu0 %v3491_v5  ;;  %3330 = vmatpush1.bf16.msra.mxu1 %v3491_v5  ;;  %v3535_v46 = vld [vmem:[%s4907_s1 + $0xb8] sm:$0xff]   ;;  %v3542_v49 = vld [vmem:[%s4907_s1 + $0xc0] sm:$0xff]   ;;  %v3543_v52 = vld [vmem:[%s4907_s1 + $0xc8] sm:$0xff]  }
  0x13   :  { %1409 = vmatprep.subr.bf16.mxu0 %v3747_v0  ;;  %3315 = vmatprep.subr.bf16.mxu1 %v3747_v0  ;;  %v3546_v51 = vld [vmem:[%s4908_s0 + $0x20c] ss:$20 sps:$4 sm:$0xff]   ;;  %v3552_v56 = vld [vmem:[%s4908_s0 + $0xf4] ss:$20 sps:$4 sm:$0xff]   ;;  %v3551_v58 = vld [vmem:[%s4907_s1 + $0xd8] sm:$0xff]  }
  0x14   :  { %v3554_v57 = vld [vmem:[%s4908_s0 + $0x234] ss:$20 sps:$4 sm:$0xff]   ;;  %v3556_v59 = vld [vmem:[%s4908_s0 + $0xf0] ss:$20 sps:$4 sm:$0xff]   ;;  %v3565_v2 = vld [vmem:[%s4908_s0 + $0x118] ss:$20 sps:$4 sm:$0xff]  }
  0x15   :  { %v3557_v60 = vld [vmem:[%s4908_s0 + $0x230] ss:$20 sps:$4 sm:$0xff]   ;;  %v3560_v1 = vld [vmem:[%s4907_s1 + $0xe8] sm:$0xff]  }
  0x16   :  { %1410 = vmatpush1.bf16.msra.mxu0 %v3492_v7  ;;  %3331 = vmatpush1.bf16.msra.mxu1 %v3492_v7  ;;  %v3558_v61 = vld [vmem:[%s4907_s1 + $0xe0] sm:$0xff]   ;;  %v3561_v62 = vld [vmem:[%s4908_s0 + $0x11c] ss:$20 sps:$4 sm:$0xff]   ;;  %v3566_v3 = vld [vmem:[%s4908_s0 + $0x258] ss:$20 sps:$4 sm:$0xff]  }
  0x17   :  { %1411 = vmatprep.subr.bf16.mxu0 %v3747_v0  ;;  %3316 = vmatprep.subr.bf16.mxu1 %v3747_v0  ;;  %v3563_v63 = vld [vmem:[%s4908_s0 + $0x25c] ss:$20 sps:$4 sm:$0xff]   ;;  %v3569_v5 = vld [vmem:[%s4908_s0 + $0x284] ss:$20 sps:$4 sm:$0xff]   ;;  %v3573_v6 = vld [vmem:[%s4908_s0 + $0xc] ss:$20 sps:$4 sm:$0xff]  }
  0x18   :  { %v3567_v4 = vld [vmem:[%s4907_s1 + $0xf0] sm:$0xff]   ;;  %v3568_v7 = vld [vmem:[%s4907_s1 + $0xf8] sm:$0xff]  }
  0x19   :  { %v3571_v8 = vld [vmem:[%s4908_s0 + $0x8] ss:$20 sps:$4 sm:$0xff]  }
  0x1a   :  { %1412 = vmatpush1.bf16.msra.mxu0 %v3493_v9  ;;  %3332 = vmatpush1.bf16.msra.mxu1 %v3493_v9  ;;  %v3574_v9 = vld [vmem:[%s4908_s0 + $0x280] ss:$20 sps:$4 sm:$0xff]  }
  0x1b   :  { %1413 = vmatprep.subr.bf16.mxu0 %v3747_v0  ;;  %3317 = vmatprep.subr.bf16.mxu1 %v3747_v0 }
  0x1e   :  { %1414 = vmatpush1.bf16.msra.mxu0 %v3494_v10  ;;  %3333 = vmatpush1.bf16.msra.mxu1 %v3494_v10  ;;  %v3575_v10 = vld [vmem:[%s4908_s0 + $0x2ac] ss:$20 sps:$4 sm:$0xff]  }
  0x1f   :  { %1415 = vmatprep.subr.bf16.mxu0 %v3747_v0  ;;  %3318 = vmatprep.subr.bf16.mxu1 %v3747_v0 }
  0x22   :  { %1416 = vmatpush1.bf16.msra.mxu0 %v3495_v11  ;;  %3334 = vmatpush1.bf16.msra.mxu1 %v3495_v11  ;;  %v3577_v11 = vld [vmem:[%s4908_s0 + $0x34] ss:$20 sps:$4 sm:$0xff]  }
  0x23   :  { %1417 = vmatprep.subr.bf16.mxu0 %v3747_v0  ;;  %3319 = vmatprep.subr.bf16.mxu1 %v3747_v0 }
  0x26   :  { %1418 = vmatpush1.bf16.msra.mxu0 %v3496_v12  ;;  %3335 = vmatpush1.bf16.msra.mxu1 %v3496_v12  ;;  %v3580_v12 = vld [vmem:[%s4908_s0 + $0x30] ss:$20 sps:$4 sm:$0xff]  }
  0x27   :  { %1419 = vmatprep.subr.bf16.mxu0 %v3747_v0  ;;  %3320 = vmatprep.subr.bf16.mxu1 %v3747_v0 }
  0x2a   :  { %1420 = vmatpush1.bf16.msra.mxu0 %v3497_v13  ;;  %3336 = vmatpush1.bf16.msra.mxu1 %v3497_v13  ;;  %v3581_v13 = vld [vmem:[%s4908_s0 + $0x2d4] ss:$20 sps:$4 sm:$0xff]  }
  0x2b   :  { %1421 = vmatprep.subr.bf16.mxu0 %v3747_v0  ;;  %3321 = vmatprep.subr.bf16.mxu1 %v3747_v0 }
  0x2e   :  { %1422 = vmatpush1.bf16.msra.mxu0 %v3498_v14  ;;  %3337 = vmatpush1.bf16.msra.mxu1 %v3498_v14  ;;  %v3583_v14 = vld [vmem:[%s4908_s0 + $0x5c] ss:$20 sps:$4 sm:$0xff]  }
  0x2f   :  { %1423 = vmatprep.subr.bf16.mxu0 %v3747_v0  ;;  %3322 = vmatprep.subr.bf16.mxu1 %v3747_v0 }
  0x32   :  { %1424 = vmatpush1.bf16.msra.mxu0 %v3499_v15  ;;  %3338 = vmatpush1.bf16.msra.mxu1 %v3499_v15  ;;  %v3585_v15 = vld [vmem:[%s4908_s0 + $0x2d0] ss:$20 sps:$4 sm:$0xff]  }
  0x33   :  { %1425 = vmatprep.subr.bf16.mxu0 %v3747_v0  ;;  %3323 = vmatprep.subr.bf16.mxu1 %v3747_v0 }
  0x36   :  { %1426 = vmatpush1.bf16.msra.mxu0 %v3500_v16  ;;  %3339 = vmatpush1.bf16.msra.mxu1 %v3500_v16  ;;  %v3586_v16 = vld [vmem:[%s4908_s0 + $0x58] ss:$20 sps:$4 sm:$0xff]  }
  0x37   :  { %1427 = vmatprep.subr.bf16.mxu0 %v3747_v0  ;;  %3324 = vmatprep.subr.bf16.mxu1 %v3747_v0 }
  0x3a   :  { %1428 = vmatpush1.bf16.msra.mxu0 %v3501_v17  ;;  %3340 = vmatpush1.bf16.msra.mxu1 %v3501_v17  ;;  %v3587_v17 = vld [vmem:[%s4908_s0 + $0x2fc] ss:$20 sps:$4 sm:$0xff]  }
  0x3b   :  { %1429 = vmatprep.subr.bf16.mxu0 %v3747_v0  ;;  %3325 = vmatprep.subr.bf16.mxu1 %v3747_v0 }
  0x3e   :  { %1430 = vmatpush1.bf16.msra.mxu0 %v3502_v18  ;;  %3341 = vmatpush1.bf16.msra.mxu1 %v3502_v18  ;;  %v3589_v18 = vld [vmem:[%s4908_s0 + $0x84] ss:$20 sps:$4 sm:$0xff]  }
  0x3f   :  { %1688 = vmatprep.subr.bf16.mxu0 %v3747_v0  ;;  %3238 = vmatprep.subr.bf16.mxu1 %v3510_v19 }
  0x41   :  { %1432 = vmatmul.mubr.bf16.vlgmr.msra.gmra.mrb[0].mxu0 %v3503_v20  ;;  %1496 = vmatmul.mubr.bf16.vlgmr.msra.gmra.mrb[0].mxu1 %v3506_v21  ;;  %v3592_v20 = vld [vmem:[%s4908_s0 + $0x80] ss:$20 sps:$4 sm:$0xff]   ;;  %v3593_v21 = vld [vmem:[%s4908_s0 + $0x324] ss:$20 sps:$4 sm:$0xff]  }
  0x42   :  { %1689 = vmatpush1.bf16.msra.mxu0 %v3509_v22  ;;  %3239 = vmatpush3.bf16.msra.mxu1 %v3510_v19  ;;  %v3591_v19 = vld [vmem:[%s4908_s0 + $0x2f8] ss:$20 sps:$4 sm:$0xff]  }
  0x43   :  { %1690 = vmatprep.subr.bf16.mxu0 %v3747_v0  ;;  %1439 = vmatprep.mubr.bf16.mxu0 %v3512_v23  ;;  %v3595_v22 = vld [vmem:[%s4908_s0 + $0xac] ss:$20 sps:$4 sm:$0xff]  }
  0x44   :  { %1503 = vmatprep.mubr.bf16.mxu1 %v3514_v24  ;;  %3240 = vmatprep.subr.bf16.mxu1 %v3559_v25  ;;  %v3597_v23 = vld [vmem:[%s4908_s0 + $0x320] ss:$20 sps:$4 sm:$0xff]   ;;  %v3598_v24 = vld [vmem:[%s4908_s0 + $0xa8] ss:$20 sps:$4 sm:$0xff]  }
  0x46   :  { %1691 = vmatpush1.bf16.msra.mxu0 %v3511_v26  ;;  %3241 = vmatpush3.bf16.msra.mxu1 %v3559_v25  ;;  %v3600_v25 = vld [vmem:[%s4908_s0 + $0x34c] ss:$20 sps:$4 sm:$0xff]   ;;  %v3602_v26 = vld [vmem:[%s4908_s0 + $0xd4] ss:$20 sps:$4 sm:$0xff]  }
  0x47   :  { %1692 = vmatprep.subr.bf16.mxu0 %v3747_v0  ;;  %3242 = vmatprep.subr.bf16.mxu1 %v3599_v30 }
  0x49   :  { %1440 = vmatmul.mubr.bf16.gmra.mrb[4].mxu0 %v3516_v27  ;;  %1504 = vmatmul.mubr.bf16.gmra.mrb[4].mxu1 %v3517_v28  ;;  %v3604_v27 = vld [vmem:[%s4908_s0 + $0x348] ss:$20 sps:$4 sm:$0xff]   ;;  %v3605_v28 = vld [vmem:[%s4908_s0 + $0xd0] ss:$20 sps:$4 sm:$0xff]  }
  0x4a   :  { %1693 = vmatpush1.bf16.msra.mxu0 %v3518_v29  ;;  %1447 = vmatprep.mubr.bf16.mxu0 %v3520_v31  ;;  %v3606_v29 = vld [vmem:[%s4908_s0 + $0x374] ss:$20 sps:$4 sm:$0xff]   ;;  %v3610_v31 = vld [vmem:[%s4908_s0 + $0x370] ss:$20 sps:$4 sm:$0xff]  }
  0x4b   :  { %1694 = vmatprep.subr.bf16.mxu0 %v3747_v0  ;;  %1511 = vmatprep.mubr.bf16.mxu1 %v3522_v32  ;;  %v3611_v32 = vld [vmem:[%s4908_s0 + $0xf8] ss:$20 sps:$4 sm:$0xff]  }
  0x4c   :  { %3243 = vmatpush3.bf16.msra.mxu1 %v3599_v30  ;;  %v3608_v30 = vld [vmem:[%s4908_s0 + $0xfc] ss:$20 sps:$4 sm:$0xff]  }
  0x4d   :  { %3244 = vmatprep.subr.bf16.mxu1 %v3636_v44 }
  0x4e   :  { %1695 = vmatpush1.bf16.msra.mxu0 %v3519_v33  ;;  %v3612_v33 = vld [vmem:[%s4908_s0 + $0x39c] ss:$20 sps:$4 sm:$0xff]  }
  0x4f   :  { %1696 = vmatprep.subr.bf16.mxu0 %v3747_v0 }
  0x50   :  { %3245 = vmatpush3.bf16.msra.mxu1 %v3636_v44  ;;  %v3629_v44 = vld [vmem:[%s4908_s0 + $0x170] ss:$20 sps:$4 sm:$0xff]  }
  0x51   :  { %1448 = vmatmul.mubr.bf16.gmra.mrb[8].mxu0 %v3524_v34  ;;  %1512 = vmatmul.mubr.bf16.gmra.mrb[8].mxu1 %v3525_v35  ;;  %v3614_v34 = vld [vmem:[%s4908_s0 + $0x124] ss:$20 sps:$4 sm:$0xff]  }
  0x52   :  { %1697 = vmatpush1.bf16.msra.mxu0 %v3526_v36  ;;  %1455 = vmatprep.mubr.bf16.mxu0 %v3528_v37  ;;  %v3616_v35 = vld [vmem:[%s4908_s0 + $0x398] ss:$20 sps:$4 sm:$0xff]   ;;  %v3617_v36 = vld [vmem:[%s4908_s0 + $0x120] ss:$20 sps:$4 sm:$0xff]  }
  0x53   :  { %1698 = vmatprep.subr.bf16.mxu0 %v3747_v0  ;;  %1519 = vmatprep.mubr.bf16.mxu1 %v3530_v38  ;;  %v3618_v37 = vld [vmem:[%s4908_s0 + $0x3c4] ss:$20 sps:$4 sm:$0xff]   ;;  %v3620_v38 = vld [vmem:[%s4908_s0 + $0x14c] ss:$20 sps:$4 sm:$0xff]  }
  0x56   :  { %1699 = vmatpush1.bf16.msra.mxu0 %v3527_v39  ;;  %v3622_v39 = vld [vmem:[%s4908_s0 + $0x3c0] ss:$20 sps:$4 sm:$0xff]  }
  0x57   :  { %1700 = vmatprep.subr.bf16.mxu0 %v3747_v0 }
  0x59   :  { %1456 = vmatmul.mubr.bf16.gmra.mrb[12].mxu0 %v3532_v40  ;;  %1520 = vmatmul.mubr.bf16.gmra.mrb[12].mxu1 %v3533_v41  ;;  %v3623_v40 = vld [vmem:[%s4908_s0 + $0x148] ss:$20 sps:$4 sm:$0xff]   ;;  %v3624_v41 = vld [vmem:[%s4908_s0 + $0x3ec] ss:$20 sps:$4 sm:$0xff]  }
  0x5a   :  { %1701 = vmatpush1.bf16.msra.mxu0 %v3534_v42  ;;  %1463 = vmatprep.mubr.bf16.mxu0 %v3536_v43  ;;  %v3626_v42 = vld [vmem:[%s4908_s0 + $0x174] ss:$20 sps:$4 sm:$0xff]  }
  0x5b   :  { %1702 = vmatprep.subr.bf16.mxu0 %v3747_v0  ;;  %1527 = vmatprep.mubr.bf16.mxu1 %v3538_v45  ;;  %v3628_v43 = vld [vmem:[%s4908_s0 + $0x3e8] ss:$20 sps:$4 sm:$0xff]  }
  0x5c   :  { %v3630_v45 = vld [vmem:[%s4908_s0 + $0x414] ss:$20 sps:$4 sm:$0xff]  }
  0x5e   :  { %1703 = vmatpush1.bf16.msra.mxu0 %v3535_v46  ;;  %v3632_v46 = vld [vmem:[%s4908_s0 + $0x19c] ss:$20 sps:$4 sm:$0xff]  }
  0x5f   :  { %1704 = vmatprep.subr.bf16.mxu0 %v3747_v0 }
  0x61   :  { %1464 = vmatmul.mubr.bf16.gmra.mrb[16].mxu0 %v3540_v47  ;;  %1528 = vmatmul.mubr.bf16.gmra.mrb[16].mxu1 %v3541_v48  ;;  %v3634_v47 = vld [vmem:[%s4908_s0 + $0x410] ss:$20 sps:$4 sm:$0xff]   ;;  %v3635_v48 = vld [vmem:[%s4908_s0 + $0x198] ss:$20 sps:$4 sm:$0xff]  }
  0x62   :  { %1705 = vmatpush1.bf16.msra.mxu0 %v3542_v49  ;;  %1471 = vmatprep.mubr.bf16.mxu0 %v3544_v50  ;;  %v3637_v49 = vld [vmem:[%s4908_s0 + $0x43c] ss:$20 sps:$4 sm:$0xff]   ;;  %v3639_v50 = vld [vmem:[%s4908_s0 + $0x1c4] ss:$20 sps:$4 sm:$0xff]  }
  0x63   :  { %1706 = vmatprep.subr.bf16.mxu0 %v3747_v0  ;;  %1535 = vmatprep.mubr.bf16.mxu1 %v3546_v51  ;;  %v3641_v51 = vld [vmem:[%s4908_s0 + $0x438] ss:$20 sps:$4 sm:$0xff]  }
  0x66   :  { %1707 = vmatpush1.bf16.msra.mxu0 %v3543_v52  ;;  %v3642_v52 = vld [vmem:[%s4908_s0 + $0x1c0] ss:$20 sps:$4 sm:$0xff]  }
  0x67   :  { %1708 = vmatprep.subr.bf16.mxu0 %v3747_v0 }
  0x69   :  { %1472 = vmatmul.mubr.bf16.gmra.mrb[20].mxu0 %v3548_v53  ;;  %1536 = vmatmul.mubr.bf16.gmra.mrb[20].mxu1 %v3549_v54  ;;  %v3643_v53 = vld [vmem:[%s4908_s0 + $0x464] ss:$20 sps:$4 sm:$0xff]   ;;  %v3645_v54 = vld [vmem:[%s4908_s0 + $0x1ec] ss:$20 sps:$4 sm:$0xff]  }
  0x6a   :  { %1709 = vmatpush1.bf16.msra.mxu0 %v3550_v55  ;;  %1479 = vmatprep.mubr.bf16.mxu0 %v3552_v56  ;;  %v3647_v55 = vld [vmem:[%s4908_s0 + $0x460] ss:$20 sps:$4 sm:$0xff]   ;;  %v3648_v56 = vld [vmem:[%s4908_s0 + $0x1e8] ss:$20 sps:$4 sm:$0xff]  }
  0x6b   :  { %1710 = vmatprep.subr.bf16.mxu0 %v3747_v0  ;;  %1543 = vmatprep.mubr.bf16.mxu1 %v3554_v57  ;;  %v3649_v57 = vld [vmem:[%s4908_s0 + $0x48c] ss:$20 sps:$4 sm:$0xff]  }
  0x6e   :  { %1711 = vmatpush1.bf16.msra.mxu0 %v3551_v58  ;;  %v3651_v58 = vld [vmem:[%s4908_s0 + $0x214] ss:$20 sps:$4 sm:$0xff]  }
  0x6f   :  { %1712 = vmatprep.subr.bf16.mxu0 %v3747_v0 }
  0x71   :  { %1480 = vmatmul.mubr.bf16.gmra.mrb[24].mxu0 %v3556_v59  ;;  %1544 = vmatmul.mubr.bf16.gmra.mrb[24].mxu1 %v3557_v60  ;;  %v3653_v59 = vld [vmem:[%s4908_s0 + $0x488] ss:$20 sps:$4 sm:$0xff]   ;;  %v3654_v60 = vld [vmem:[%s4908_s0 + $0x210] ss:$20 sps:$4 sm:$0xff]  }
  0x72   :  { %1713 = vmatpush1.bf16.msra.mxu0 %v3558_v61  ;;  %1487 = vmatprep.mubr.bf16.mxu0 %v3561_v62  ;;  %v3655_v61 = vld [vmem:[%s4908_s0 + $0x4b4] ss:$20 sps:$4 sm:$0xff]   ;;  %v3657_v62 = vld [vmem:[%s4908_s0 + $0x23c] ss:$20 sps:$4 sm:$0xff]  }
  0x73   :  { %1714 = vmatprep.subr.bf16.mxu0 %v3747_v0  ;;  %1551 = vmatprep.mubr.bf16.mxu1 %v3563_v63  ;;  %v3659_v63 = vld [vmem:[%s4908_s0 + $0x4b0] ss:$20 sps:$4 sm:$0xff]  }
  0x76   :  { %1715 = vmatpush1.bf16.msra.mxu0 %v3560_v1  ;;  %v3660_v1 = vld [vmem:[%s4908_s0 + $0x238] ss:$20 sps:$4 sm:$0xff]  }
  0x77   :  { %1716 = vmatprep.subr.bf16.mxu0 %v3747_v0 }
  0x79   :  { %1488 = vmatmul.mubr.bf16.gmra.mrb[28].mxu0 %v3565_v2  ;;  %1552 = vmatmul.mubr.bf16.gmra.mrb[28].mxu1 %v3566_v3  ;;  %v3661_v2 = vld [vmem:[%s4908_s0 + $0x4dc] ss:$20 sps:$4 sm:$0xff]   ;;  %v3663_v3 = vld [vmem:[%s4908_s0 + $0x264] ss:$20 sps:$4 sm:$0xff]  }
  0x7a   :  { %1717 = vmatpush1.bf16.msra.mxu0 %v3567_v4  ;;  %1559 = vmatprep.mubr.bf16.mxu1 %v3569_v5  ;;  %v3665_v4 = vld [vmem:[%s4908_s0 + $0x4d8] ss:$20 sps:$4 sm:$0xff]   ;;  %v3666_v5 = vld [vmem:[%s4908_s0 + $0x260] ss:$20 sps:$4 sm:$0xff]  }
  0x7b   :  { %1718 = vmatprep.subr.bf16.mxu0 %v3747_v0  ;;  %1720 = vmatprep.mubr.bf16.mxu0 %v3573_v6  ;;  %v3579_v0 = vld [vmem:[%s4908_s0 + $0x2a8] ss:$20 sps:$4 sm:$0xff]   ;;  %v3667_v6 = vld [vmem:[%s4908_s0 + $0x28c] ss:$20 sps:$4 sm:$0xff]  }
  0x7e   :  { %1719 = vmatpush1.bf16.msra.mxu0 %v3568_v7  ;;  %v3669_v7 = vld [vmem:[%s4908_s0 + $0x10] ss:$20 sps:$4 sm:$0xff]  }
  0x81   :  { %1560 = vmatmul.mubr.bf16.gmra.mrb[32].mxu1 %v3574_v9  ;;  %1721 = vmatmul.mubr.bf16.vlgmr.msra.gmra.mrb[0].mxu0 %v3571_v8  ;;  %v3670_v8 = vld [vmem:[%s4908_s0 + $0x288] ss:$20 sps:$4 sm:$0xff]   ;;  %v3671_v9 = vld [vmem:[%s4908_s0 + $0x38] ss:$20 sps:$4 sm:$0xff]  }
  0x82   :  { %1567 = vmatprep.mubr.bf16.mxu1 %v3575_v10  ;;  %1728 = vmatprep.mubr.bf16.mxu0 %v3577_v11  ;;  %v3672_v10 = vld [vmem:[%s4908_s0 + $0x2b4] ss:$20 sps:$4 sm:$0xff]  }
  0x83   :  { %v3674_v11 = vld [vmem:[%s4908_s0 + $0x60] ss:$20 sps:$4 sm:$0xff]  }
  0x89   :  { %1568 = vmatmul.mubr.bf16.gmra.mrb[36].mxu1 %v3579_v0  ;;  %1729 = vmatmul.mubr.bf16.gmra.mrb[4].mxu0 %v3580_v12  ;;  %v3675_v0 = vld [vmem:[%s4908_s0 + $0x2b0] ss:$20 sps:$4 sm:$0xff]   ;;  %v3676_v12 = vld [vmem:[%s4908_s0 + $0x88] ss:$20 sps:$4 sm:$0xff]  }
  0x8a   :  { %1575 = vmatprep.mubr.bf16.mxu1 %v3581_v13  ;;  %1736 = vmatprep.mubr.bf16.mxu0 %v3583_v14  ;;  %v3677_v13 = vld [vmem:[%s4908_s0 + $0x2dc] ss:$20 sps:$4 sm:$0xff]  }
  0x8b   :  { %v3679_v14 = vld [vmem:[%s4908_s0 + $0xb0] ss:$20 sps:$4 sm:$0xff]  }
  0x91   :  { %1576 = vmatmul.mubr.bf16.gmra.mrb[40].mxu1 %v3585_v15  ;;  %1737 = vmatmul.mubr.bf16.gmra.mrb[8].mxu0 %v3586_v16  ;;  %v3680_v15 = vld [vmem:[%s4908_s0 + $0x2d8] ss:$20 sps:$4 sm:$0xff]  }
  0x92   :  { %1583 = vmatprep.mubr.bf16.mxu1 %v3587_v17  ;;  %1744 = vmatprep.mubr.bf16.mxu0 %v3589_v18  ;;  %v3681_v16 = vld [vmem:[%s4908_s0 + $0xd8] ss:$20 sps:$4 sm:$0xff]   ;;  %v3684_v18 = vld [vmem:[%s4908_s0 + $0x100] ss:$20 sps:$4 sm:$0xff]  }
  0x93   :  { %v3682_v17 = vld [vmem:[%s4908_s0 + $0x304] ss:$20 sps:$4 sm:$0xff]  }
  0x99   :  { %1584 = vmatmul.mubr.bf16.gmra.mrb[44].mxu1 %v3591_v19  ;;  %1745 = vmatmul.mubr.bf16.gmra.mrb[12].mxu0 %v3592_v20 }
  0x9a   :  { %1591 = vmatprep.mubr.bf16.mxu1 %v3593_v21  ;;  %1752 = vmatprep.mubr.bf16.mxu0 %v3595_v22  ;;  %v3685_v21 = vld [vmem:[%s4908_s0 + $0x300] ss:$20 sps:$4 sm:$0xff]   ;;  %v3686_v22 = vld [vmem:[%s4908_s0 + $0x128] ss:$20 sps:$4 sm:$0xff]  }
  0xa1   :  { %1592 = vmatmul.mubr.bf16.gmra.mrb[48].mxu1 %v3597_v23  ;;  %1753 = vmatmul.mubr.bf16.gmra.mrb[16].mxu0 %v3598_v24  ;;  %v3687_v24 = vld [vmem:[%s4908_s0 + $0x32c] ss:$20 sps:$4 sm:$0xff]  }
  0xa2   :  { %1599 = vmatprep.mubr.bf16.mxu1 %v3600_v25  ;;  %1760 = vmatprep.mubr.bf16.mxu0 %v3602_v26  ;;  %v3689_v25 = vld [vmem:[%s4908_s0 + $0x150] ss:$20 sps:$4 sm:$0xff]  }
  0xa9   :  { %1600 = vmatmul.mubr.bf16.gmra.mrb[52].mxu1 %v3604_v27  ;;  %1761 = vmatmul.mubr.bf16.gmra.mrb[20].mxu0 %v3605_v28 }
  0xaa   :  { %1607 = vmatprep.mubr.bf16.mxu1 %v3606_v29  ;;  %1768 = vmatprep.mubr.bf16.mxu0 %v3608_v30  ;;  %v3690_v29 = vld [vmem:[%s4908_s0 + $0x328] ss:$20 sps:$4 sm:$0xff]   ;;  %v3691_v30 = vld [vmem:[%s4908_s0 + $0x178] ss:$20 sps:$4 sm:$0xff]  }
  0xb1   :  { %1608 = vmatmul.mubr.bf16.gmra.mrb[56].mxu1 %v3610_v31  ;;  %1769 = vmatmul.mubr.bf16.gmra.mrb[24].mxu0 %v3611_v32  ;;  %v3692_v32 = vld [vmem:[%s4908_s0 + $0x354] ss:$20 sps:$4 sm:$0xff]  }
  0xb2   :  { %1615 = vmatprep.mubr.bf16.mxu1 %v3612_v33  ;;  %1776 = vmatprep.mubr.bf16.mxu0 %v3614_v34  ;;  %v3694_v33 = vld [vmem:[%s4908_s0 + $0x1a0] ss:$20 sps:$4 sm:$0xff]  }
  0xb9   :  { %1616 = vmatmul.mubr.bf16.gmra.mrb[60].mxu1 %v3616_v35  ;;  %1777 = vmatmul.mubr.bf16.gmra.mrb[28].mxu0 %v3617_v36 }
  0xba   :  { %1623 = vmatprep.mubr.bf16.mxu1 %v3618_v37  ;;  %1784 = vmatprep.mubr.bf16.mxu0 %v3620_v38  ;;  %v3695_v37 = vld [vmem:[%s4908_s0 + $0x350] ss:$20 sps:$4 sm:$0xff]   ;;  %v3696_v38 = vld [vmem:[%s4908_s0 + $0x1c8] ss:$20 sps:$4 sm:$0xff]  }
  0xc1   :  { %1624 = vmatmul.mubr.bf16.gmra.mrb[64].mxu1 %v3622_v39  ;;  %1785 = vmatmul.mubr.bf16.gmra.mrb[32].mxu0 %v3623_v40  ;;  %v3697_v40 = vld [vmem:[%s4908_s0 + $0x37c] ss:$20 sps:$4 sm:$0xff]  }
  0xc2   :  { %1631 = vmatprep.mubr.bf16.mxu1 %v3624_v41  ;;  %1792 = vmatprep.mubr.bf16.mxu0 %v3626_v42  ;;  %v3699_v41 = vld [vmem:[%s4908_s0 + $0x1f0] ss:$20 sps:$4 sm:$0xff]  }
  0xc9   :  { %1632 = vmatmul.mubr.bf16.gmra.mrb[68].mxu1 %v3628_v43  ;;  %1793 = vmatmul.mubr.bf16.gmra.mrb[36].mxu0 %v3629_v44 }
  0xca   :  { %1639 = vmatprep.mubr.bf16.mxu1 %v3630_v45  ;;  %1800 = vmatprep.mubr.bf16.mxu0 %v3632_v46  ;;  %v3700_v45 = vld [vmem:[%s4908_s0 + $0x378] ss:$20 sps:$4 sm:$0xff]  }
  0xcb   :  { %v3701_v46 = vld [vmem:[%s4908_s0 + $0x218] ss:$20 sps:$4 sm:$0xff]  }
  0xd1   :  { %1640 = vmatmul.mubr.bf16.gmra.mrb[72].mxu1 %v3634_v47  ;;  %1801 = vmatmul.mubr.bf16.gmra.mrb[40].mxu0 %v3635_v48  ;;  %v3702_v48 = vld [vmem:[%s4908_s0 + $0x3a4] ss:$20 sps:$4 sm:$0xff]  }
  0xd2   :  { %1647 = vmatprep.mubr.bf16.mxu1 %v3637_v49  ;;  %1808 = vmatprep.mubr.bf16.mxu0 %v3639_v50  ;;  %v3704_v49 = vld [vmem:[%s4908_s0 + $0x240] ss:$20 sps:$4 sm:$0xff]  }
  0xd9   :  { %1648 = vmatmul.mubr.bf16.gmra.mrb[76].mxu1 %v3641_v51  ;;  %1809 = vmatmul.mubr.bf16.gmra.mrb[44].mxu0 %v3642_v52 }
  0xda   :  { %1655 = vmatprep.mubr.bf16.mxu1 %v3643_v53  ;;  %1816 = vmatprep.mubr.bf16.mxu0 %v3645_v54  ;;  %v3705_v53 = vld [vmem:[%s4908_s0 + $0x3a0] ss:$20 sps:$4 sm:$0xff]   ;;  %v3706_v54 = vld [vmem:[%s4908_s0 + $0x268] ss:$20 sps:$4 sm:$0xff]  }
  0xe1   :  { %1656 = vmatmul.mubr.bf16.gmra.mrb[80].mxu1 %v3647_v55  ;;  %1817 = vmatmul.mubr.bf16.gmra.mrb[48].mxu0 %v3648_v56  ;;  %v3707_v56 = vld [vmem:[%s4908_s0 + $0x3cc] ss:$20 sps:$4 sm:$0xff]  }
  0xe2   :  { %1663 = vmatprep.mubr.bf16.mxu1 %v3649_v57  ;;  %1824 = vmatprep.mubr.bf16.mxu0 %v3651_v58  ;;  %v3709_v57 = vld [vmem:[%s4908_s0 + $0x290] ss:$20 sps:$4 sm:$0xff]  }
  0xe9   :  { %1664 = vmatmul.mubr.bf16.gmra.mrb[84].mxu1 %v3653_v59  ;;  %1825 = vmatmul.mubr.bf16.gmra.mrb[52].mxu0 %v3654_v60 }
  0xea   :  { %1671 = vmatprep.mubr.bf16.mxu1 %v3655_v61  ;;  %1832 = vmatprep.mubr.bf16.mxu0 %v3657_v62  ;;  %v3710_v61 = vld [vmem:[%s4908_s0 + $0x3c8] ss:$20 sps:$4 sm:$0xff]   ;;  %v3711_v62 = vld [vmem:[%s4908_s0 + $0x2b8] ss:$20 sps:$4 sm:$0xff]  }
  0xf1   :  { %1672 = vmatmul.mubr.bf16.gmra.mrb[88].mxu1 %v3659_v63  ;;  %1833 = vmatmul.mubr.bf16.gmra.mrb[56].mxu0 %v3660_v1  ;;  %v3712_v1 = vld [vmem:[%s4908_s0 + $0x3f4] ss:$20 sps:$4 sm:$0xff]  }
  0xf2   :  { %1679 = vmatprep.mubr.bf16.mxu1 %v3661_v2  ;;  %1840 = vmatprep.mubr.bf16.mxu0 %v3663_v3  ;;  %v3714_v2 = vld [vmem:[%s4908_s0 + $0x2e0] ss:$20 sps:$4 sm:$0xff]  }
  0xf9   :  { %1680 = vmatmul.mubr.bf16.gmra.mrb[92].mxu1 %v3665_v4  ;;  %1841 = vmatmul.mubr.bf16.gmra.mrb[60].mxu0 %v3666_v5 }
  0xfa   :  { %1848 = vmatprep.mubr.bf16.mxu0 %v3667_v6  ;;  %3246 = vmatprep.mubr.msk.bf16.mxu1 %vm1302_vm0, %v3669_v7  ;;  %v3715_v6 = vld [vmem:[%s4908_s0 + $0x3f0] ss:$20 sps:$4 sm:$0xff]   ;;  %v3716_v7 = vld [vmem:[%s4908_s0 + $0x308] ss:$20 sps:$4 sm:$0xff]  }
 0x101   :  { %1849 = vmatmul.mubr.bf16.gmra.mrb[64].mxu0 %v3670_v8  ;;  %3247 = vmatmul.mubr.msk.bf16.vlgmr.msra.gmra.mrb[96].mxu1 %vm1302_vm0, %v3671_v9  ;;  %v3717_v9 = vld [vmem:[%s4908_s0 + $0x41c] ss:$20 sps:$4 sm:$0xff]  }
 0x102   :  { %1856 = vmatprep.mubr.bf16.mxu0 %v3672_v10  ;;  %3250 = vmatprep.mubr.msk.bf16.mxu1 %vm1302_vm0, %v3674_v11  ;;  %v3719_v10 = vld [vmem:[%s4908_s0 + $0x330] ss:$20 sps:$4 sm:$0xff]  }
 0x109   :  { %1857 = vmatmul.mubr.bf16.gmra.mrb[68].mxu0 %v3675_v0  ;;  %3251 = vmatmul.mubr.msk.bf16.gmra.mrb[100].mxu1 %vm1302_vm0, %v3676_v12 }
 0x10a   :  { %1864 = vmatprep.mubr.bf16.mxu0 %v3677_v13  ;;  %3254 = vmatprep.mubr.msk.bf16.mxu1 %vm1302_vm0, %v3679_v14  ;;  %v3720_v13 = vld [vmem:[%s4908_s0 + $0x418] ss:$20 sps:$4 sm:$0xff]  }
 0x10b   :  { %v3721_v14 = vld [vmem:[%s4908_s0 + $0x358] ss:$20 sps:$4 sm:$0xff]  }
 0x111   :  { %1865 = vmatmul.mubr.bf16.gmra.mrb[72].mxu0 %v3680_v15  ;;  %3255 = vmatmul.mubr.msk.bf16.gmra.mrb[104].mxu1 %vm1302_vm0, %v3681_v16  ;;  %v3722_v16 = vld [vmem:[%s4908_s0 + $0x444] ss:$20 sps:$4 sm:$0xff]  }
 0x112   :  { %1872 = vmatprep.mubr.bf16.mxu0 %v3682_v17  ;;  %3258 = vmatprep.mubr.msk.bf16.mxu1 %vm1302_vm0, %v3684_v18  ;;  %v3724_v17 = vld [vmem:[%s4908_s0 + $0x380] ss:$20 sps:$4 sm:$0xff]  }
 0x114   :  { %v4261_v19 = vpop.f32.mrb[0].mxu1 }
 0x115   :  { %v1499_v20 = vpop.f32.mrb[1].mxu1 }
 0x116   :  { %v4269_v23 = vpop.f32.mrb[2].mxu1 }
 0x117   :  { %v1502_v26 = vpop.f32.mrb[3].mxu1 }
 0x118   :  { %v3726_v26 = vld [vmem:[%s4908_s0 + $0x3a8] ss:$20 sps:$4 sm:$0xff]  }
 0x119   :  { %1873 = vmatmul.mubr.bf16.gmra.mrb[76].mxu0 %v3685_v21  ;;  %3259 = vmatmul.mubr.msk.bf16.gmra.mrb[108].mxu1 %vm1302_vm0, %v3686_v22 }
 0x11a   :  { %1880 = vmatprep.mubr.bf16.mxu0 %v3687_v24  ;;  %3262 = vmatprep.mubr.msk.bf16.mxu1 %vm1302_vm0, %v3689_v25  ;;  %v3725_v25 = vld [vmem:[%s4908_s0 + $0x440] ss:$20 sps:$4 sm:$0xff]  }
 0x11c   :  { %v4279_v27 = vpop.f32.mrb[4].mxu1 }
 0x11d   :  { %v1507_v28 = vpop.f32.mrb[5].mxu1 }
 0x11e   :  { %v4287_v31 = vpop.f32.mrb[6].mxu1 }
 0x11f   :  { %v1510_v34 = vpop.f32.mrb[7].mxu1 }
 0x121   :  { %1881 = vmatmul.mubr.bf16.gmra.mrb[80].mxu0 %v3690_v29  ;;  %3263 = vmatmul.mubr.msk.bf16.gmra.mrb[112].mxu1 %vm1302_vm0, %v3691_v30  ;;  %v3727_v30 = vld [vmem:[%s4908_s0 + $0x46c] ss:$20 sps:$4 sm:$0xff]  }
 0x122   :  { %1888 = vmatprep.mubr.bf16.mxu0 %v3692_v32  ;;  %3266 = vmatprep.mubr.msk.bf16.mxu1 %vm1302_vm0, %v3694_v33  ;;  %v3729_v32 = vld [vmem:[%s4908_s0 + $0x3d0] ss:$20 sps:$4 sm:$0xff]  }
 0x124   :  { %v4297_v35 = vpop.f32.mrb[8].mxu1 }
 0x125   :  { %v1515_v36 = vpop.f32.mrb[9].mxu1 }
 0x126   :  { %v4305_v39 = vpop.f32.mrb[10].mxu1 }
 0x127   :  { %v1518_v42 = vpop.f32.mrb[11].mxu1 }
 0x128   :  { %v3731_v42 = vld [vmem:[%s4908_s0 + $0x3f8] ss:$20 sps:$4 sm:$0xff]  }
 0x129   :  { %1889 = vmatmul.mubr.bf16.gmra.mrb[84].mxu0 %v3695_v37  ;;  %3267 = vmatmul.mubr.msk.bf16.gmra.mrb[116].mxu1 %vm1302_vm0, %v3696_v38 }
 0x12a   :  { %1896 = vmatprep.mubr.bf16.mxu0 %v3697_v40  ;;  %3270 = vmatprep.mubr.msk.bf16.mxu1 %vm1302_vm0, %v3699_v41  ;;  %v3730_v41 = vld [vmem:[%s4908_s0 + $0x468] ss:$20 sps:$4 sm:$0xff]  }
 0x12c   :  { %v4315_v43 = vpop.f32.mrb[12].mxu1 }
 0x12d   :  { %v1523_v44 = vpop.f32.mrb[13].mxu1 }
 0x12e   :  { %v4323_v47 = vpop.f32.mrb[14].mxu1 }
 0x12f   :  { %v1526_v50 = vpop.f32.mrb[15].mxu1 }
 0x131   :  { %1897 = vmatmul.mubr.bf16.gmra.mrb[88].mxu0 %v3700_v45  ;;  %3271 = vmatmul.mubr.msk.bf16.gmra.mrb[120].mxu1 %vm1302_vm0, %v3701_v46  ;;  %v3732_v46 = vld [vmem:[%s4908_s0 + $0x494] ss:$20 sps:$4 sm:$0xff]  }
 0x132   :  { %1904 = vmatprep.mubr.bf16.mxu0 %v3702_v48  ;;  %3274 = vmatprep.mubr.msk.bf16.mxu1 %vm1302_vm0, %v3704_v49  ;;  %v3734_v48 = vld [vmem:[%s4908_s0 + $0x420] ss:$20 sps:$4 sm:$0xff]  }
 0x134   :  { %v4333_v51 = vpop.f32.mrb[16].mxu1 }
 0x135   :  { %v1531_v52 = vpop.f32.mrb[17].mxu1 }
 0x136   :  { %v4341_v55 = vpop.f32.mrb[18].mxu1 }
 0x137   :  { %v1534_v58 = vpop.f32.mrb[19].mxu1 }
 0x138   :  { %v3736_v58 = vld [vmem:[%s4908_s0 + $0x448] ss:$20 sps:$4 sm:$0xff]  }
 0x139   :  { %1905 = vmatmul.mubr.bf16.gmra.mrb[92].mxu0 %v3705_v53  ;;  %3275 = vmatmul.mubr.msk.bf16.gmra.mrb[124].mxu1 %vm1302_vm0, %v3706_v54 }
 0x13a   :  { %1912 = vmatprep.mubr.bf16.mxu0 %v3707_v56  ;;  %3278 = vmatprep.mubr.msk.bf16.mxu1 %vm1302_vm0, %v3709_v57  ;;  %v3735_v57 = vld [vmem:[%s4908_s0 + $0x490] ss:$20 sps:$4 sm:$0xff]  }
 0x13c   :  { %v4351_v59 = vpop.f32.mrb[20].mxu1 }
 0x13d   :  { %v1539_v60 = vpop.f32.mrb[21].mxu1 }
 0x13e   :  { %v4359_v63 = vpop.f32.mrb[22].mxu1 }
 0x13f   :  { %v1542_v3 = vpop.f32.mrb[23].mxu1 }
 0x141   :  { %1913 = vmatmul.mubr.bf16.gmra.mrb[96].mxu0 %v3710_v61  ;;  %3279 = vmatmul.mubr.msk.bf16.gmra.mrb[128].mxu1 %vm1302_vm0, %v3711_v62  ;;  %v3737_v62 = vld [vmem:[%s4908_s0 + $0x4bc] ss:$20 sps:$4 sm:$0xff]  }
 0x142   :  { %1920 = vmatprep.mubr.bf16.mxu0 %v3712_v1  ;;  %3282 = vmatprep.mubr.msk.bf16.mxu1 %vm1302_vm0, %v3714_v2  ;;  %v3739_v1 = vld [vmem:[%s4908_s0 + $0x470] ss:$20 sps:$4 sm:$0xff]  }
 0x144   :  { %v4369_v4 = vpop.f32.mrb[24].mxu1 }
 0x145   :  { %v1547_v5 = vpop.f32.mrb[25].mxu1 }
 0x146   :  { %v4377_v8 = vpop.f32.mrb[26].mxu1 }
 0x147   :  { %v1550_v11 = vpop.f32.mrb[27].mxu1 }
 0x148   :  { %v3741_v11 = vld [vmem:[%s4908_s0 + $0x498] ss:$20 sps:$4 sm:$0xff]  }
 0x149   :  { %1921 = vmatmul.mubr.bf16.gmra.mrb[100].mxu0 %v3715_v6  ;;  %3283 = vmatmul.mubr.msk.bf16.gmra.mrb[132].mxu1 %vm1302_vm0, %v3716_v7 }
 0x14a   :  { %1928 = vmatprep.mubr.bf16.mxu0 %v3717_v9  ;;  %3286 = vmatprep.mubr.msk.bf16.mxu1 %vm1302_vm0, %v3719_v10  ;;  %v3740_v10 = vld [vmem:[%s4908_s0 + $0x4b8] ss:$20 sps:$4 sm:$0xff]  }
 0x14c   :  { %v4387_v0 = vpop.f32.mrb[28].mxu1 }
 0x14d   :  { %v1555_v12 = vpop.f32.mrb[29].mxu1 }
 0x14e   :  { %v4395_v15 = vpop.f32.mrb[30].mxu1 }
 0x14f   :  { %v1558_v18 = vpop.f32.mrb[31].mxu1 }
 0x151   :  { %1929 = vmatmul.mubr.bf16.gmra.mrb[104].mxu0 %v3720_v13  ;;  %3287 = vmatmul.mubr.msk.bf16.gmra.mrb[136].mxu1 %vm1302_vm0, %v3721_v14  ;;  %v3742_v14 = vld [vmem:[%s4908_s0 + $0x4e4] ss:$20 sps:$4 sm:$0xff]  }
 0x152   :  { %1936 = vmatprep.mubr.bf16.mxu0 %v3722_v16  ;;  %3290 = vmatprep.mubr.msk.bf16.mxu1 %vm1302_vm0, %v3724_v17  ;;  %v3744_v16 = vld [vmem:[%s4908_s0 + $0x4c0] ss:$20 sps:$4 sm:$0xff]  }
 0x154   :  { %v4405_v20 = vpop.f32.mrb[32].mxu1  ;;  %v4407_v21 = vpop.f32.mrb[0].mxu0 }
 0x155   :  { %v1563_v22 = vpop.f32.mrb[33].mxu1  ;;  %v1724_v24 = vpop.f32.mrb[1].mxu0 }
 0x156   :  { %v4415_v28 = vpop.f32.mrb[34].mxu1  ;;  %v4417_v29 = vpop.f32.mrb[2].mxu0 }
 0x157   :  { %v1566_v33 = vpop.f32.mrb[35].mxu1  ;;  %v1727_v34 = vpop.f32.mrb[3].mxu0 }
 0x159   :  { %1937 = vmatmul.mubr.bf16.gmra.mrb[108].mxu0 %v3725_v25  ;;  %3291 = vmatmul.mubr.msk.bf16.gmra.mrb[140].mxu1 %vm1302_vm0, %v3726_v26 }
 0x15a   :  { %1944 = vmatprep.mubr.bf16.mxu0 %v3727_v30  ;;  %3294 = vmatprep.mubr.msk.bf16.mxu1 %vm1302_vm0, %v3729_v32  ;;  %v3745_v30 = vld [vmem:[%s4908_s0 + $0x4e0] ss:$20 sps:$4 sm:$0xff]   ;;  %v3746_v32 = vld [vmem:[%s4908_s0 + $0x4e8] ss:$20 sps:$4 sm:$0xff]  }
 0x15c   :  { %v4427_v36 = vpop.f32.mrb[36].mxu1  ;;  %v4429_v37 = vpop.f32.mrb[4].mxu0 }
 0x15d   :  { %v1571_v38 = vpop.f32.mrb[37].mxu1  ;;  %v1732_v40 = vpop.f32.mrb[5].mxu0 }
 0x15e   :  { %v4437_v44 = vpop.f32.mrb[38].mxu1  ;;  %v4439_v45 = vpop.f32.mrb[6].mxu0 }
 0x15f   :  { %v1574_v49 = vpop.f32.mrb[39].mxu1  ;;  %v1735_v50 = vpop.f32.mrb[7].mxu0 }
 0x161   :  { %1945 = vmatmul.mubr.bf16.gmra.mrb[112].mxu0 %v3730_v41  ;;  %3295 = vmatmul.mubr.msk.bf16.gmra.mrb[144].mxu1 %vm1302_vm0, %v3731_v42 }
 0x162   :  { %1952 = vmatprep.mubr.bf16.mxu0 %v3732_v46  ;;  %3298 = vmatprep.mubr.msk.bf16.mxu1 %vm1302_vm0, %v3734_v48 }
 0x164   :  { %v4449_v52 = vpop.f32.mrb[40].mxu1  ;;  %v4451_v53 = vpop.f32.mrb[8].mxu0 }
 0x165   :  { %v1579_v54 = vpop.f32.mrb[41].mxu1  ;;  %v1740_v56 = vpop.f32.mrb[9].mxu0 }
 0x166   :  { %v4459_v60 = vpop.f32.mrb[42].mxu1  ;;  %v4461_v61 = vpop.f32.mrb[10].mxu0 }
 0x167   :  { %v1582_v2 = vpop.f32.mrb[43].mxu1  ;;  %v1743_v3 = vpop.f32.mrb[11].mxu0 }
 0x169   :  { %1953 = vmatmul.mubr.bf16.gmra.mrb[116].mxu0 %v3735_v57  ;;  %3299 = vmatmul.mubr.msk.bf16.gmra.mrb[148].mxu1 %vm1302_vm0, %v3736_v58 }
 0x16a   :  { %1960 = vmatprep.mubr.bf16.mxu0 %v3737_v62  ;;  %3302 = vmatprep.mubr.msk.bf16.mxu1 %vm1302_vm0, %v3739_v1 }
 0x16c   :  { %v4471_v5 = vpop.f32.mrb[44].mxu1  ;;  %v4473_v6 = vpop.f32.mrb[12].mxu0 }
 0x16d   :  { %v1587_v7 = vpop.f32.mrb[45].mxu1  ;;  %v1748_v9 = vpop.f32.mrb[13].mxu0 }
 0x16e   :  { %v4481_v12 = vpop.f32.mrb[46].mxu1  ;;  %v4483_v13 = vpop.f32.mrb[14].mxu0 }
 0x16f   :  { %v1590_v17 = vpop.f32.mrb[47].mxu1  ;;  %v1751_v18 = vpop.f32.mrb[15].mxu0 }
 0x171   :  { %1961 = vmatmul.mubr.bf16.gmra.mrb[120].mxu0 %v3740_v10  ;;  %3303 = vmatmul.mubr.msk.bf16.gmra.mrb[152].mxu1 %vm1302_vm0, %v3741_v11 }
 0x172   :  { %1968 = vmatprep.mubr.bf16.mxu0 %v3742_v14  ;;  %3306 = vmatprep.mubr.msk.bf16.mxu1 %vm1302_vm0, %v3744_v16 }
 0x174   :  { %v4493_v22 = vpop.f32.mrb[48].mxu1  ;;  %v4495_v24 = vpop.f32.mrb[16].mxu0 }
 0x175   :  { %v1595_v25 = vpop.f32.mrb[49].mxu1  ;;  %v1756_v26 = vpop.f32.mrb[17].mxu0 }
 0x176   :  { %v4503_v33 = vpop.f32.mrb[50].mxu1  ;;  %v4505_v34 = vpop.f32.mrb[18].mxu0 }
 0x177   :  { %v1598_v38 = vpop.f32.mrb[51].mxu1  ;;  %v1759_v40 = vpop.f32.mrb[19].mxu0 }
 0x179   :  { %1969 = vmatmul.mubr.bf16.gmra.mrb[124].mxu0 %v3745_v30  ;;  %3307 = vmatmul.mubr.msk.bf16.gmra.mrb[156].mxu1 %vm1302_vm0, %v3746_v32  ;;  %v4535_v30 = vld [vmem:[%s4909_s2] ss:$0 sm:$0xff] }
 0x17a   :  { %v1498_v32 = vadd.f32 %v4535_v30, %v4261_v19  ;;  %v1506_v19 = vadd.f32 %v4535_v30, %v4279_v27  ;;  %v1514_v27 = vadd.f32 %v4535_v30, %v4297_v35  ;;  %v1522_v35 = vadd.f32 %v4535_v30, %v4315_v43 }
 0x17b   :  { %v1530_v43 = vadd.f32 %v4535_v30, %v4333_v51  ;;  %v1538_v51 = vadd.f32 %v4535_v30, %v4351_v59  ;;  %v1546_v59 = vadd.f32 %v4535_v30, %v4369_v4  ;;  %v1554_v4 = vadd.f32 %v4535_v30, %v4387_v0 }
 0x17c   :  { %v4508_v41 = vpop.f32.mrb[52].mxu1  ;;  %v4510_v42 = vpop.f32.mrb[20].mxu0  ;;  %v1562_v0 = vadd.f32 %v4535_v30, %v4405_v20  ;;  %v3343_v20 = vadd.f32 %v4535_v30, %v4417_v29 }
 0x17d   :  { %v1603_v46 = vpop.f32.mrb[53].mxu1  ;;  %v1764_v48 = vpop.f32.mrb[21].mxu0 }
 0x17e   :  { %v4512_v49 = vpop.f32.mrb[54].mxu1  ;;  %v4514_v50 = vpop.f32.mrb[22].mxu0  ;;  %v1501_v46 = vadd.f32 %v4535_v30, %v4269_v23  ;;  %v1509_v23 = vadd.f32 %v4535_v30, %v4287_v31  ;;  %v1517_v31 = vadd.f32 %v4535_v30, %v4305_v39  ;;  %v1525_v39 = vadd.f32 %v4535_v30, %v4323_v47 }
 0x17f   :  { %v1606_v54 = vpop.f32.mrb[55].mxu1  ;;  %v1767_v56 = vpop.f32.mrb[23].mxu0  ;;  %v1533_v47 = vadd.f32 %v4535_v30, %v4341_v55  ;;  %v1541_v55 = vadd.f32 %v4535_v30, %v4359_v63  ;;  %v1549_v63 = vadd.f32 %v4535_v30, %v4377_v8  ;;  %v1557_v8 = vadd.f32 %v4535_v30, %v4395_v15 }
 0x180   :  { %v3342_v15 = vadd.f32 %v4535_v30, %v4407_v21 }
 0x184   :  { %v4516_v57 = vpop.f32.mrb[56].mxu1  ;;  %v4518_v58 = vpop.f32.mrb[24].mxu0 }
 0x185   :  { %v1611_v62 = vpop.f32.mrb[57].mxu1  ;;  %v1772_v1 = vpop.f32.mrb[25].mxu0 }
 0x186   :  { %v4520_v2 = vpop.f32.mrb[58].mxu1  ;;  %v4522_v3 = vpop.f32.mrb[26].mxu0 }
 0x187   :  { %v1614_v7 = vpop.f32.mrb[59].mxu1  ;;  %v1775_v9 = vpop.f32.mrb[27].mxu0 }
 0x18c   :  { %v4524_v10 = vpop.f32.mrb[60].mxu1  ;;  %v4526_v11 = vpop.f32.mrb[28].mxu0 }
 0x18d   :  { %v1619_v14 = vpop.f32.mrb[61].mxu1  ;;  %v1780_v16 = vpop.f32.mrb[29].mxu0 }
 0x18e   :  { %v4528_v17 = vpop.f32.mrb[62].mxu1  ;;  %v4530_v18 = vpop.f32.mrb[30].mxu0 }
 0x18f   :  { %v1622_v25 = vpop.f32.mrb[63].mxu1  ;;  %v1783_v26 = vpop.f32.mrb[31].mxu0 }
 0x194   :  { %v4539_v38 = vpop.f32.mrb[64].mxu1  ;;  %v1786_v40 = vpop.f32.mrb[32].mxu0 }
 0x195   :  { %4911 = vst [vmem:[#allocation2_spill] sm:$0xff] %v4539_v38  ;;  %v4543_v48 = vadd.f32 %v1786_v40, %v1498_v32  ;;  %v1627_v54 = vpop.f32.mrb[65].mxu1  ;;  %v1788_v56 = vpop.f32.mrb[33].mxu0 }
 0x196   :  { %v4545_v62 = vpop.f32.mrb[66].mxu1  ;;  %v1789_v1 = vpop.f32.mrb[34].mxu0 }
 0x197   :  { %4912 = vst [vmem:[#allocation3_spill] sm:$0xff] %v4545_v62  ;;  %v4547_v7 = vadd.f32 %v1789_v1, %v1501_v46  ;;  %v1630_v9 = vpop.f32.mrb[67].mxu1  ;;  %v1791_v14 = vpop.f32.mrb[35].mxu0 }
 0x19c   :  { %v4551_v16 = vpop.f32.mrb[68].mxu1  ;;  %v1794_v25 = vpop.f32.mrb[36].mxu0 }
 0x19d   :  { %4913 = vst [vmem:[#allocation4_spill] sm:$0xff] %v4551_v16  ;;  %v4555_v26 = vadd.f32 %v1794_v25, %v1506_v19  ;;  %v1635_v32 = vpop.f32.mrb[69].mxu1  ;;  %v1796_v40 = vpop.f32.mrb[37].mxu0 }
 0x19e   :  { %v4557_v54 = vpop.f32.mrb[70].mxu1  ;;  %v1797_v56 = vpop.f32.mrb[38].mxu0 }
 0x19f   :  { %4914 = vst [vmem:[#allocation5_spill] sm:$0xff] %v4557_v54  ;;  %v4559_v46 = vadd.f32 %v1797_v56, %v1509_v23  ;;  %v1638_v1 = vpop.f32.mrb[71].mxu1  ;;  %v1799_v9 = vpop.f32.mrb[39].mxu0 }
 0x1a4   :  { %v4563_v14 = vpop.f32.mrb[72].mxu1  ;;  %v1802_v16 = vpop.f32.mrb[40].mxu0 }
 0x1a5   :  { %4915 = vst [vmem:[#allocation6_spill] sm:$0xff] %v4563_v14  ;;  %v4567_v19 = vadd.f32 %v1802_v16, %v1514_v27  ;;  %v1643_v25 = vpop.f32.mrb[73].mxu1  ;;  %v1804_v32 = vpop.f32.mrb[41].mxu0 }
 0x1a6   :  { %v4569_v40 = vpop.f32.mrb[74].mxu1  ;;  %v1805_v54 = vpop.f32.mrb[42].mxu0 }
 0x1a7   :  { %4916 = vst [vmem:[#allocation7_spill] sm:$0xff] %v4569_v40  ;;  %v4571_v23 = vadd.f32 %v1805_v54, %v1517_v31  ;;  %v1646_v56 = vpop.f32.mrb[75].mxu1  ;;  %v1807_v1 = vpop.f32.mrb[43].mxu0 }
 0x1ac   :  { %v4575_v9 = vpop.f32.mrb[76].mxu1  ;;  %v1810_v14 = vpop.f32.mrb[44].mxu0 }
 0x1ad   :  { %4917 = vst [vmem:[#allocation8_spill] sm:$0xff] %v4575_v9  ;;  %v4579_v16 = vadd.f32 %v1810_v14, %v1522_v35  ;;  %v1651_v27 = vpop.f32.mrb[77].mxu1  ;;  %v1812_v25 = vpop.f32.mrb[45].mxu0 }
 0x1ae   :  { %v4581_v32 = vpop.f32.mrb[78].mxu1  ;;  %v1813_v40 = vpop.f32.mrb[46].mxu0 }
 0x1af   :  { %4918 = vst [vmem:[#allocation9_spill] sm:$0xff] %v4581_v32  ;;  %v4583_v54 = vadd.f32 %v1813_v40, %v1525_v39  ;;  %v1654_v31 = vpop.f32.mrb[79].mxu1  ;;  %v1815_v56 = vpop.f32.mrb[47].mxu0 }
 0x1b4   :  { %v4587_v1 = vpop.f32.mrb[80].mxu1  ;;  %v1818_v9 = vpop.f32.mrb[48].mxu0 }
 0x1b5   :  { %4919 = vst [vmem:[#allocation10_spill] sm:$0xff] %v4587_v1  ;;  %v4591_v14 = vadd.f32 %v1818_v9, %v1530_v43  ;;  %v1659_v35 = vpop.f32.mrb[81].mxu1  ;;  %v1820_v27 = vpop.f32.mrb[49].mxu0 }
 0x1b6   :  { %v4593_v25 = vpop.f32.mrb[82].mxu1  ;;  %v1821_v32 = vpop.f32.mrb[50].mxu0 }
 0x1b7   :  { %4920 = vst [vmem:[#allocation11_spill] sm:$0xff] %v4593_v25  ;;  %v4595_v40 = vadd.f32 %v1821_v32, %v1533_v47  ;;  %v1662_v39 = vpop.f32.mrb[83].mxu1  ;;  %v1823_v31 = vpop.f32.mrb[51].mxu0 }
 0x1bc   :  { %v4599_v56 = vpop.f32.mrb[84].mxu1  ;;  %v1826_v1 = vpop.f32.mrb[52].mxu0 }
 0x1bd   :  { %4921 = vst [vmem:[#allocation12_spill] sm:$0xff] %v4599_v56  ;;  %v4603_v9 = vadd.f32 %v1826_v1, %v1538_v51  ;;  %v1667_v43 = vpop.f32.mrb[85].mxu1  ;;  %v1828_v35 = vpop.f32.mrb[53].mxu0 }
 0x1be   :  { %v4605_v27 = vpop.f32.mrb[86].mxu1  ;;  %v1829_v25 = vpop.f32.mrb[54].mxu0 }
 0x1bf   :  { %4922 = vst [vmem:[#allocation13_spill] sm:$0xff] %v4605_v27  ;;  %v4607_v32 = vadd.f32 %v1829_v25, %v1541_v55  ;;  %v1670_v47 = vpop.f32.mrb[87].mxu1  ;;  %v1831_v39 = vpop.f32.mrb[55].mxu0 }
 0x1c4   :  { %v4611_v31 = vpop.f32.mrb[88].mxu1  ;;  %v1834_v56 = vpop.f32.mrb[56].mxu0 }
 0x1c5   :  { %4923 = vst [vmem:[#allocation14_spill] sm:$0xff] %v4611_v31  ;;  %v4615_v1 = vadd.f32 %v1834_v56, %v1546_v59  ;;  %v1675_v51 = vpop.f32.mrb[89].mxu1  ;;  %v1836_v43 = vpop.f32.mrb[57].mxu0 }
 0x1c6   :  { %v4617_v35 = vpop.f32.mrb[90].mxu1  ;;  %v1837_v27 = vpop.f32.mrb[58].mxu0 }
 0x1c7   :  { %4924 = vst [vmem:[#allocation15_spill] sm:$0xff] %v4615_v1  ;;  %4925 = vst [vmem:[#allocation16_spill] sm:$0xff] %v4617_v35  ;;  %v4619_v25 = vadd.f32 %v1837_v27, %v1549_v63  ;;  %v1678_v55 = vpop.f32.mrb[91].mxu1  ;;  %v1839_v47 = vpop.f32.mrb[59].mxu0 }
 0x1c8   :  { %v3344_v47 = vadd.f32 %v4535_v30, %v4429_v37 }
 0x1c9   :  { %4926 = vst [vmem:[#allocation17_spill] sm:$0xff] %v4619_v25 }
 0x1cc   :  { %v4623_v39 = vpop.f32.mrb[92].mxu1  ;;  %v1842_v31 = vpop.f32.mrb[60].mxu0 }
 0x1cd   :  { %4927 = vst [vmem:[#allocation18_spill] sm:$0xff] %v4623_v39  ;;  %v4627_v56 = vadd.f32 %v1842_v31, %v1554_v4  ;;  %v1683_v59 = vpop.f32.mrb[93].mxu1  ;;  %v1844_v51 = vpop.f32.mrb[61].mxu0 }
 0x1ce   :  { %v4629_v43 = vpop.f32.mrb[94].mxu1  ;;  %v1845_v35 = vpop.f32.mrb[62].mxu0  ;;  %v1565_v59 = vadd.f32 %v4535_v30, %v4415_v28 }
 0x1cf   :  { %4928 = vst [vmem:[#allocation19_spill] sm:$0xff] %v4629_v43  ;;  %v4631_v27 = vadd.f32 %v1845_v35, %v1557_v8  ;;  %v1686_v63 = vpop.f32.mrb[95].mxu1  ;;  %v1847_v55 = vpop.f32.mrb[63].mxu0  ;;  %v3345_v35 = vadd.f32 %v4535_v30, %v4439_v45 }
 0x1d1   :  { %4929 = vst [vmem:[#allocation20_spill] sm:$0xff] %v4631_v27 }
 0x1d4   :  { %v1850_v31 = vpop.f32.mrb[64].mxu0  ;;  %v3248_v4 = vpop.f32.mrb[96].mxu1 }
 0x1d5   :  { %v4643_v8 = vadd.f32 %v1850_v31, %v1562_v0  ;;  %v2020_v51 = vadd.f32 %v3344_v47, %v3248_v4  ;;  %v1852_v63 = vpop.f32.mrb[65].mxu0  ;;  %v2011_v55 = vpop.f32.mrb[97].mxu1  ;;  %v1570_v47 = vadd.f32 %v4535_v30, %v4427_v36  ;;  %v3348_v31 = vadd.f32 %v4535_v30, %v4473_v6 }
 0x1d6   :  { %v2012_v37 = vadd.f32 %v3342_v15, %v2011_v55  ;;  %v1853_v43 = vpop.f32.mrb[66].mxu0  ;;  %v3249_v39 = vpop.f32.mrb[98].mxu1  ;;  %v3346_v15 = vadd.f32 %v4535_v30, %v4451_v53  ;;  %v3347_v53 = vadd.f32 %v4535_v30, %v4461_v61  ;;  %v1578_v61 = vadd.f32 %v4535_v30, %v4449_v52 }
 0x1d7   :  { %v4647_v21 = vadd.f32 %v1853_v43, %v1565_v59  ;;  %v2023_v62 = vadd.f32 %v3345_v35, %v3249_v39  ;;  %v1855_v38 = vpop.f32.mrb[67].mxu0  ;;  %v2014_v25 = vpop.f32.mrb[99].mxu1  ;;  %v2268_v27 = vmax.f32 %v2020_v51, 0.0 }
 0x1d8   :  { %v2015_v28 = vadd.f32 %v3343_v20, %v2014_v25  ;;  %v2266_v45 = vmax.f32 %v2012_v37, 0.0  ;;  %v1573_v38 = vadd.f32 %v4535_v30, %v4437_v44 }
 0x1d9   :  { %v2269_v1 = vmax.f32 %v2023_v62, 0.0  ;;  %v3349_v62 = vadd.f32 %v4535_v30, %v4483_v13 }
 0x1da   :  { %v2267_v0 = vmax.f32 %v2015_v28, 0.0 }
 0x1db   :  { %v3019_v29 = vpack.c.bf16 %v2269_v1, %v2268_v27 }
 0x1dc   :  { %v3014_v43 = vpack.c.bf16 %v2267_v0, %v2266_v45  ;;  %v1858_v4 = vpop.f32.mrb[68].mxu0  ;;  %v3252_v39 = vpop.f32.mrb[100].mxu1  ;;  %v3352_v0 = vadd.f32 %v4535_v30, %v4510_v42 }
 0x1dd   :  { %3171 = vst [vmem:[%s4910_s3 + $0x8] sm:$0xff] %v3019_v29   ;;  %v4662_v36 = vadd.f32 %v1858_v4, %v1570_v47  ;;  %v2036_v6 = vadd.f32 %v3348_v31, %v3252_v39  ;;  %v1860_v1 = vpop.f32.mrb[69].mxu0  ;;  %v2027_v25 = vpop.f32.mrb[101].mxu1  ;;  %v3350_v31 = vadd.f32 %v4535_v30, %v4495_v24  ;;  %v1581_v4 = vadd.f32 %v4535_v30, %v4459_v60 }
 0x1de   :  { %3015 = vst [vmem:[%s4910_s3] sm:$0xff] %v3014_v43   ;;  %v2028_v44 = vadd.f32 %v3346_v15, %v2027_v25  ;;  %v1861_v27 = vpop.f32.mrb[70].mxu0  ;;  %v3253_v59 = vpop.f32.mrb[102].mxu1  ;;  %v3353_v39 = vadd.f32 %v4535_v30, %v4514_v50  ;;  %v3351_v24 = vadd.f32 %v4535_v30, %v4505_v34  ;;  %v1586_v34 = vadd.f32 %v4535_v30, %v4471_v5 }
 0x1df   :  { %v4669_v13 = vadd.f32 %v1861_v27, %v1573_v38  ;;  %v2039_v35 = vadd.f32 %v3349_v62, %v3253_v59  ;;  %v1863_v51 = vpop.f32.mrb[71].mxu0  ;;  %v2030_v63 = vpop.f32.mrb[103].mxu1  ;;  %v2272_v20 = vmax.f32 %v2036_v6, 0.0 }
 0x1e0   :  { %v2031_v55 = vadd.f32 %v3347_v53, %v2030_v63  ;;  %v2270_v28 = vmax.f32 %v2028_v44, 0.0 }
 0x1e1   :  { %v2273_v37 = vmax.f32 %v2039_v35, 0.0 }
 0x1e2   :  { %v2271_v45 = vmax.f32 %v2031_v55, 0.0  ;;  %v3356_v55 = vadd.f32 %v4535_v30, %v4526_v11 }
 0x1e3   :  { %v3029_v47 = vpack.c.bf16 %v2273_v37, %v2272_v20  ;;  %v3354_v37 = vadd.f32 %v4535_v30, %v4518_v58  ;;  %v3355_v58 = vadd.f32 %v4535_v30, %v4522_v3  ;;  %v1594_v3 = vadd.f32 %v4535_v30, %v4493_v22 }
 0x1e4   :  { %v3024_v29 = vpack.c.bf16 %v2271_v45, %v2270_v28  ;;  %v1866_v15 = vpop.f32.mrb[72].mxu0  ;;  %v3256_v43 = vpop.f32.mrb[104].mxu1 }
 0x1e5   :  { %3173 = vst [vmem:[%s4910_s3 + $0x18] sm:$0xff] %v3029_v47   ;;  %v4684_v52 = vadd.f32 %v1866_v15, %v1578_v61  ;;  %v2052_v42 = vadd.f32 %v3352_v0, %v3256_v43  ;;  %v1868_v38 = vpop.f32.mrb[73].mxu0  ;;  %v2043_v62 = vpop.f32.mrb[105].mxu1  ;;  %v1589_v0 = vadd.f32 %v4535_v30, %v4481_v12  ;;  %v3357_v47 = vadd.f32 %v4535_v30, %v4530_v18 }
 0x1e6   :  { %3172 = vst [vmem:[%s4910_s3 + $0x10] sm:$0xff] %v3024_v29   ;;  %v2044_v60 = vadd.f32 %v3350_v31, %v2043_v62  ;;  %v1869_v6 = vpop.f32.mrb[74].mxu0  ;;  %v3257_v1 = vpop.f32.mrb[106].mxu1 }
 0x1e7   :  { %v4691_v50 = vadd.f32 %v1869_v6, %v1581_v4  ;;  %v2055_v25 = vadd.f32 %v3353_v39, %v3257_v1  ;;  %v1871_v53 = vpop.f32.mrb[75].mxu0  ;;  %v2046_v44 = vpop.f32.mrb[107].mxu1  ;;  %v2276_v59 = vmax.f32 %v2052_v42, 0.0 }
 0x1e8   :  { %v2047_v27 = vadd.f32 %v3351_v24, %v2046_v44  ;;  %v2274_v51 = vmax.f32 %v2044_v60, 0.0 }
 0x1e9   :  { %v2277_v35 = vmax.f32 %v2055_v25, 0.0 }
 0x1ea   :  { %v2275_v63 = vmax.f32 %v2047_v27, 0.0  ;;  %v1597_v27 = vadd.f32 %v4535_v30, %v4503_v33 }
 0x1eb   :  { %v3039_v20 = vpack.c.bf16 %v2277_v35, %v2276_v59 }
 0x1ec   :  { %v3034_v28 = vpack.c.bf16 %v2275_v63, %v2274_v51  ;;  %v1874_v45 = vpop.f32.mrb[76].mxu0  ;;  %v3260_v61 = vpop.f32.mrb[108].mxu1 }
 0x1ed   :  { %3175 = vst [vmem:[%s4910_s3 + $0x28] sm:$0xff] %v3039_v20   ;;  %v4706_v5 = vadd.f32 %v1874_v45, %v1586_v34  ;;  %v2068_v11 = vadd.f32 %v3356_v55, %v3260_v61  ;;  %v1876_v31 = vpop.f32.mrb[77].mxu0  ;;  %v2059_v29 = vpop.f32.mrb[109].mxu1 }
 0x1ee   :  { %3174 = vst [vmem:[%s4910_s3 + $0x20] sm:$0xff] %v3034_v28   ;;  %v2060_v12 = vadd.f32 %v3354_v37, %v2059_v29  ;;  %v1877_v15 = vpop.f32.mrb[78].mxu0  ;;  %v3261_v43 = vpop.f32.mrb[110].mxu1 }
 0x1ef   :  { %v4713_v18 = vadd.f32 %v1877_v15, %v1589_v0  ;;  %v2071_v4 = vadd.f32 %v3357_v47, %v3261_v43  ;;  %v1879_v39 = vpop.f32.mrb[79].mxu0  ;;  %v2062_v42 = vpop.f32.mrb[111].mxu1  ;;  %v2280_v62 = vmax.f32 %v2068_v11, 0.0  ;;  %v1602_v11 = vadd.f32 %v4535_v30, %v4508_v41 }
 0x1f0   :  { %v2063_v38 = vadd.f32 %v3355_v58, %v2062_v42  ;;  %v2278_v60 = vmax.f32 %v2060_v12, 0.0  ;;  %v1605_v12 = vadd.f32 %v4535_v30, %v4512_v49 }
 0x1f1   :  { %v2281_v24 = vmax.f32 %v2071_v4, 0.0 }
 0x1f2   :  { %v2279_v6 = vmax.f32 %v2063_v38, 0.0 }
 0x1f3   :  { %v3049_v1 = vpack.c.bf16 %v2281_v24, %v2280_v62 }
 0x1f4   :  { %v3044_v25 = vpack.c.bf16 %v2279_v6, %v2278_v60  ;;  %v1882_v53 = vpop.f32.mrb[80].mxu0  ;;  %v3264_v44 = vpop.f32.mrb[112].mxu1 }
 0x1f5   :  { %3177 = vst [vmem:[%s4910_s3 + $0x38] sm:$0xff] %v3049_v1   ;;  %v4722_v59 = vadd.f32 %v1882_v53, %v1594_v3  ;;  %v2084_v35 = vadd.f32 %v3264_v44, %v4555_v26  ;;  %v1884_v51 = vpop.f32.mrb[81].mxu0  ;;  %v2075_v63 = vpop.f32.mrb[113].mxu1  ;;  %v1610_v1 = vadd.f32 %v4535_v30, %v4516_v57 }
 0x1f6   :  { %3176 = vst [vmem:[%s4910_s3 + $0x30] sm:$0xff] %v3044_v25   ;;  %v2076_v22 = vadd.f32 %v2075_v63, %v4543_v48  ;;  %v1885_v34 = vpop.f32.mrb[82].mxu0  ;;  %v3265_v55 = vpop.f32.mrb[114].mxu1 }
 0x1f7   :  { %v4729_v20 = vadd.f32 %v1885_v34, %v1597_v27  ;;  %v2087_v33 = vadd.f32 %v3265_v55, %v4559_v46  ;;  %v1887_v37 = vpop.f32.mrb[83].mxu0  ;;  %v2078_v28 = vpop.f32.mrb[115].mxu1  ;;  %v2284_v61 = vmax.f32 %v2084_v35, 0.0  ;;  %v1613_v27 = vadd.f32 %v4535_v30, %v4520_v2 }
 0x1f8   :  { %v2079_v45 = vadd.f32 %v2078_v28, %v4547_v7  ;;  %v2282_v0 = vmax.f32 %v2076_v22, 0.0 }
 0x1f9   :  { %v2285_v26 = vmax.f32 %v2087_v33, 0.0 }
 0x1fa   :  { %v2283_v47 = vmax.f32 %v2079_v45, 0.0 }
 0x1fb   :  { %v3059_v31 = vpack.c.bf16 %v2285_v26, %v2284_v61  ;;  %v1618_v26 = vadd.f32 %v4535_v30, %v4524_v10  ;;  %v4930_v10 = vld [vmem:[#allocation15_spill] sm:$0xff] }
 0x1fc   :  { %v3054_v29 = vpack.c.bf16 %v2283_v47, %v2282_v0  ;;  %v1890_v48 = vpop.f32.mrb[84].mxu0  ;;  %v3268_v58 = vpop.f32.mrb[116].mxu1 }
 0x1fd   :  { %3179 = vst [vmem:[%s4910_s3 + $0x48] sm:$0xff] %v3059_v31   ;;  %v4740_v46 = vadd.f32 %v1890_v48, %v1602_v11  ;;  %v2100_v7 = vadd.f32 %v3268_v58, %v4579_v16  ;;  %v1892_v15 = vpop.f32.mrb[85].mxu0  ;;  %v2091_v43 = vpop.f32.mrb[117].mxu1  ;;  %v1621_v31 = vadd.f32 %v4535_v30, %v4528_v17  ;;  %v4931_v17 = vld [vmem:[#allocation20_spill] sm:$0xff] }
 0x1fe   :  { %3178 = vst [vmem:[%s4910_s3 + $0x40] sm:$0xff] %v3054_v29   ;;  %v2092_v41 = vadd.f32 %v2091_v43, %v4567_v19  ;;  %v1893_v4 = vpop.f32.mrb[86].mxu0  ;;  %v3269_v39 = vpop.f32.mrb[118].mxu1 }
 0x1ff   :  { %v4747_v42 = vadd.f32 %v1893_v4, %v1605_v12  ;;  %v2103_v49 = vadd.f32 %v3269_v39, %v4583_v54  ;;  %v1895_v38 = vpop.f32.mrb[87].mxu0  ;;  %v2094_v62 = vpop.f32.mrb[119].mxu1  ;;  %v2288_v60 = vmax.f32 %v2100_v7, 0.0  ;;  %v4932_v39 = vld [vmem:[#allocation17_spill] sm:$0xff] }
 0x200   :  { %v2095_v24 = vadd.f32 %v2094_v62, %v4571_v23  ;;  %v2286_v6 = vmax.f32 %v2092_v41, 0.0 }
 0x201   :  { %v2289_v16 = vmax.f32 %v2103_v49, 0.0 }
 0x202   :  { %v2287_v3 = vmax.f32 %v2095_v24, 0.0 }
 0x203   :  { %v3069_v25 = vpack.c.bf16 %v2289_v16, %v2288_v60  ;;  %v4933_v60 = vld [vmem:[#allocation2_spill] sm:$0xff] }
 0x204   :  { %v3064_v53 = vpack.c.bf16 %v2287_v3, %v2286_v6  ;;  %v1898_v19 = vpop.f32.mrb[88].mxu0  ;;  %v3272_v44 = vpop.f32.mrb[120].mxu1  ;;  %v1626_v16 = vadd.f32 %v4535_v30, %v4933_v60 }
 0x205   :  { %3181 = vst [vmem:[%s4910_s3 + $0x58] sm:$0xff] %v3069_v25   ;;  %v4758_v54 = vadd.f32 %v1898_v19, %v1610_v1  ;;  %v2116_v23 = vadd.f32 %v3272_v44, %v4603_v9  ;;  %v1900_v35 = vpop.f32.mrb[89].mxu0  ;;  %v2107_v51 = vpop.f32.mrb[121].mxu1 }
 0x206   :  { %3180 = vst [vmem:[%s4910_s3 + $0x50] sm:$0xff] %v3064_v53   ;;  %v2108_v57 = vadd.f32 %v2107_v51, %v4591_v14  ;;  %v1901_v63 = vpop.f32.mrb[90].mxu0  ;;  %v3273_v22 = vpop.f32.mrb[122].mxu1  ;;  %v4934_v53 = vld [vmem:[#allocation3_spill] sm:$0xff] }
 0x207   :  { %v4765_v34 = vadd.f32 %v1901_v63, %v1613_v27  ;;  %v2119_v2 = vadd.f32 %v3273_v22, %v4607_v32  ;;  %v1903_v55 = vpop.f32.mrb[91].mxu0  ;;  %v2110_v33 = vpop.f32.mrb[123].mxu1  ;;  %v2292_v28 = vmax.f32 %v2116_v23, 0.0  ;;  %v1629_v19 = vadd.f32 %v4535_v30, %v4934_v53 }
 0x208   :  { %v2111_v37 = vadd.f32 %v2110_v33, %v4595_v40  ;;  %v2290_v45 = vmax.f32 %v2108_v57, 0.0 }
 0x209   :  { %v2293_v9 = vmax.f32 %v2119_v2, 0.0 }
 0x20a   :  { %v2291_v61 = vmax.f32 %v2111_v37, 0.0 }
 0x20b   :  { %v3079_v0 = vpack.c.bf16 %v2293_v9, %v2292_v28 }
 0x20c   :  { %v3074_v47 = vpack.c.bf16 %v2291_v61, %v2290_v45  ;;  %v1906_v14 = vpop.f32.mrb[92].mxu0  ;;  %v3276_v11 = vpop.f32.mrb[124].mxu1  ;;  %v4935_v61 = vld [vmem:[#allocation4_spill] sm:$0xff] }
 0x20d   :  { %3183 = vst [vmem:[%s4910_s3 + $0x68] sm:$0xff] %v3079_v0   ;;  %v4776_v32 = vadd.f32 %v1906_v14, %v1618_v26  ;;  %v2132_v40 = vadd.f32 %v3276_v11, %v4627_v56  ;;  %v1908_v29 = vpop.f32.mrb[93].mxu0  ;;  %v2123_v48 = vpop.f32.mrb[125].mxu1  ;;  %v1634_v26 = vadd.f32 %v4535_v30, %v4935_v61  ;;  %v4936_v11 = vld [vmem:[#allocation5_spill] sm:$0xff] }
 0x20e   :  { %3182 = vst [vmem:[%s4910_s3 + $0x60] sm:$0xff] %v3074_v47   ;;  %v2124_v58 = vadd.f32 %v2123_v48, %v4930_v10  ;;  %v1909_v12 = vpop.f32.mrb[94].mxu0  ;;  %v3277_v7 = vpop.f32.mrb[126].mxu1 }
 0x20f   :  { %v4783_v15 = vadd.f32 %v1909_v12, %v1621_v31  ;;  %v2135_v43 = vadd.f32 %v3277_v7, %v4931_v17  ;;  %v1911_v41 = vpop.f32.mrb[95].mxu0  ;;  %v2126_v4 = vpop.f32.mrb[127].mxu1  ;;  %v2296_v38 = vmax.f32 %v2132_v40, 0.0  ;;  %v1637_v31 = vadd.f32 %v4535_v30, %v4936_v11 }
 0x210   :  { %v2127_v49 = vadd.f32 %v2126_v4, %v4932_v39  ;;  %v2294_v62 = vmax.f32 %v2124_v58, 0.0 }
 0x211   :  { %v2297_v56 = vmax.f32 %v2135_v43, 0.0 }
 0x212   :  { %v2295_v24 = vmax.f32 %v2127_v49, 0.0 }
 0x213   :  { %v3089_v6 = vpack.c.bf16 %v2297_v56, %v2296_v38  ;;  %v4937_v38 = vld [vmem:[#allocation6_spill] sm:$0xff] }
 0x214   :  { %v3084_v3 = vpack.c.bf16 %v2295_v24, %v2294_v62  ;;  %v1914_v1 = vpop.f32.mrb[96].mxu0  ;;  %v3280_v25 = vpop.f32.mrb[128].mxu1  ;;  %v1642_v56 = vadd.f32 %v4535_v30, %v4937_v38 }
 0x215   :  { %3185 = vst [vmem:[%s4910_s3 + $0x78] sm:$0xff] %v3089_v6   ;;  %v4794_v44 = vadd.f32 %v1914_v1, %v1626_v16  ;;  %v2148_v27 = vadd.f32 %v3280_v25, %v4662_v36  ;;  %v1916_v23 = vpop.f32.mrb[97].mxu0  ;;  %v2139_v35 = vpop.f32.mrb[129].mxu1  ;;  %v4938_v16 = vld [vmem:[#allocation7_spill] sm:$0xff] }
 0x216   :  { %3184 = vst [vmem:[%s4910_s3 + $0x70] sm:$0xff] %v3084_v3   ;;  %v2140_v51 = vadd.f32 %v2139_v35, %v4643_v8  ;;  %v1917_v57 = vpop.f32.mrb[98].mxu0  ;;  %v3281_v63 = vpop.f32.mrb[130].mxu1  ;;  %v1645_v6 = vadd.f32 %v4535_v30, %v4938_v16 }
 0x217   :  { %v4801_v22 = vadd.f32 %v1917_v57, %v1629_v19  ;;  %v2151_v2 = vadd.f32 %v3281_v63, %v4669_v13  ;;  %v1919_v55 = vpop.f32.mrb[99].mxu0  ;;  %v2142_v33 = vpop.f32.mrb[131].mxu1  ;;  %v2300_v28 = vmax.f32 %v2148_v27, 0.0 }
 0x218   :  { %v2143_v37 = vadd.f32 %v2142_v33, %v4647_v21  ;;  %v2298_v9 = vmax.f32 %v2140_v51, 0.0  ;;  %v4939_v33 = vld [vmem:[#allocation8_spill] sm:$0xff] }
 0x219   :  { %v2301_v36 = vmax.f32 %v2151_v2, 0.0 }
 0x21a   :  { %v2299_v45 = vmax.f32 %v2143_v37, 0.0  ;;  %v1650_v37 = vadd.f32 %v4535_v30, %v4939_v33 }
 0x21b   :  { %v3099_v0 = vpack.c.bf16 %v2301_v36, %v2300_v28 }
 0x21c   :  { %v3094_v47 = vpack.c.bf16 %v2299_v45, %v2298_v9  ;;  %v1922_v8 = vpop.f32.mrb[100].mxu0  ;;  %v3284_v14 = vpop.f32.mrb[132].mxu1  ;;  %v4940_v45 = vld [vmem:[#allocation9_spill] sm:$0xff] }
 0x21d   :  { %3187 = vst [vmem:[%s4910_s3 + $0x88] sm:$0xff] %v3099_v0   ;;  %v4812_v13 = vadd.f32 %v1922_v8, %v1634_v26  ;;  %v2164_v21 = vadd.f32 %v3284_v14, %v4706_v5  ;;  %v1924_v40 = vpop.f32.mrb[101].mxu0  ;;  %v2155_v29 = vpop.f32.mrb[133].mxu1  ;;  %v1653_v61 = vadd.f32 %v4535_v30, %v4940_v45 }
 0x21e   :  { %3186 = vst [vmem:[%s4910_s3 + $0x80] sm:$0xff] %v3094_v47   ;;  %v2156_v48 = vadd.f32 %v2155_v29, %v4684_v52  ;;  %v1925_v10 = vpop.f32.mrb[102].mxu0  ;;  %v3285_v58 = vpop.f32.mrb[134].mxu1 }
 0x21f   :  { %v4819_v12 = vadd.f32 %v1925_v10, %v1637_v31  ;;  %v2167_v7 = vadd.f32 %v3285_v58, %v4713_v18  ;;  %v1927_v17 = vpop.f32.mrb[103].mxu0  ;;  %v2158_v43 = vpop.f32.mrb[135].mxu1  ;;  %v2304_v4 = vmax.f32 %v2164_v21, 0.0 }
 0x220   :  { %v2159_v41 = vadd.f32 %v2158_v43, %v4691_v50  ;;  %v2302_v39 = vmax.f32 %v2156_v48, 0.0 }
 0x221   :  { %v2305_v5 = vmax.f32 %v2167_v7, 0.0  ;;  %v4941_v7 = vld [vmem:[#allocation10_spill] sm:$0xff] }
 0x222   :  { %v2303_v49 = vmax.f32 %v2159_v41, 0.0  ;;  %v1658_v17 = vadd.f32 %v4535_v30, %v4941_v7 }
 0x223   :  { %v3109_v62 = vpack.c.bf16 %v2305_v5, %v2304_v4  ;;  %v4942_v5 = vld [vmem:[#allocation11_spill] sm:$0xff] }
 0x224   :  { %v3104_v24 = vpack.c.bf16 %v2303_v49, %v2302_v39  ;;  %v1930_v52 = vpop.f32.mrb[104].mxu0  ;;  %v3288_v60 = vpop.f32.mrb[136].mxu1  ;;  %v1661_v39 = vadd.f32 %v4535_v30, %v4942_v5 }
 0x225   :  { %3189 = vst [vmem:[%s4910_s3 + $0x98] sm:$0xff] %v3109_v62   ;;  %v4830_v18 = vadd.f32 %v1930_v52, %v1642_v56  ;;  %v2180_v50 = vadd.f32 %v3288_v60, %v4740_v46  ;;  %v1932_v3 = vpop.f32.mrb[105].mxu0  ;;  %v2171_v1 = vpop.f32.mrb[137].mxu1 }
 0x226   :  { %3188 = vst [vmem:[%s4910_s3 + $0x90] sm:$0xff] %v3104_v24   ;;  %v2172_v25 = vadd.f32 %v2171_v1, %v4722_v59  ;;  %v1933_v53 = vpop.f32.mrb[106].mxu0  ;;  %v3289_v19 = vpop.f32.mrb[138].mxu1 }
 0x227   :  { %v4837_v27 = vadd.f32 %v1933_v53, %v1645_v6  ;;  %v2183_v23 = vadd.f32 %v3289_v19, %v4747_v42  ;;  %v1935_v35 = vpop.f32.mrb[107].mxu0  ;;  %v2174_v51 = vpop.f32.mrb[139].mxu1  ;;  %v2308_v63 = vmax.f32 %v2180_v50, 0.0  ;;  %v4943_v53 = vld [vmem:[#allocation12_spill] sm:$0xff] }
 0x228   :  { %v2175_v57 = vadd.f32 %v2174_v51, %v4729_v20  ;;  %v2306_v2 = vmax.f32 %v2172_v25, 0.0  ;;  %v1666_v19 = vadd.f32 %v4535_v30, %v4943_v53 }
 0x229   :  { %v2309_v46 = vmax.f32 %v2183_v23, 0.0 }
 0x22a   :  { %v2307_v55 = vmax.f32 %v2175_v57, 0.0  ;;  %v4944_v57 = vld [vmem:[#allocation13_spill] sm:$0xff] }
 0x22b   :  { %v3119_v28 = vpack.c.bf16 %v2309_v46, %v2308_v63  ;;  %v1669_v63 = vadd.f32 %v4535_v30, %v4944_v57 }
 0x22c   :  { %v3114_v36 = vpack.c.bf16 %v2307_v55, %v2306_v2  ;;  %v1938_v59 = vpop.f32.mrb[108].mxu0  ;;  %v3292_v9 = vpop.f32.mrb[140].mxu1 }
 0x22d   :  { %3191 = vst [vmem:[%s4910_s3 + $0xa8] sm:$0xff] %v3119_v28   ;;  %v1939_v42 = vadd.f32 %v1938_v59, %v1650_v37  ;;  %v2196_v20 = vadd.f32 %v3292_v9, %v4776_v32  ;;  %v1940_v26 = vpop.f32.mrb[109].mxu0  ;;  %v2187_v0 = vpop.f32.mrb[141].mxu1 }
 0x22e   :  { %3190 = vst [vmem:[%s4910_s3 + $0xa0] sm:$0xff] %v3114_v36   ;;  %v2188_v47 = vadd.f32 %v2187_v0, %v4758_v54  ;;  %v1941_v8 = vpop.f32.mrb[110].mxu0  ;;  %v3293_v14 = vpop.f32.mrb[142].mxu1  ;;  %v4945_v0 = vld [vmem:[#allocation14_spill] sm:$0xff] }
 0x22f   :  { %v1942_v11 = vadd.f32 %v1941_v8, %v1653_v61  ;;  %v2199_v31 = vadd.f32 %v3293_v14, %v4783_v15  ;;  %v1943_v21 = vpop.f32.mrb[111].mxu0  ;;  %v2190_v40 = vpop.f32.mrb[143].mxu1  ;;  %v2312_v48 = vmax.f32 %v2196_v20, 0.0 }
 0x230   :  { %v2191_v29 = vadd.f32 %v2190_v40, %v4765_v34  ;;  %v2310_v32 = vmax.f32 %v2188_v47, 0.0  ;;  %v1674_v47 = vadd.f32 %v4535_v30, %v4945_v0 }
 0x231   :  { %v2313_v10 = vmax.f32 %v2199_v31, 0.0 }
 0x232   :  { %v2311_v58 = vmax.f32 %v2191_v29, 0.0 }
 0x233   :  { %v3129_v43 = vpack.c.bf16 %v2313_v10, %v2312_v48 }
 0x234   :  { %v3124_v41 = vpack.c.bf16 %v2311_v58, %v2310_v32  ;;  %v1946_v4 = vpop.f32.mrb[112].mxu0  ;;  %v3296_v54 = vpop.f32.mrb[144].mxu1 }
 0x235   :  { %3193 = vst [vmem:[%s4910_s3 + $0xb8] sm:$0xff] %v3129_v43   ;;  %v1947_v15 = vadd.f32 %v1946_v4, %v1658_v17  ;;  %v2212_v34 = vadd.f32 %v3296_v54, %v4812_v13  ;;  %v1948_v49 = vpop.f32.mrb[113].mxu0  ;;  %v2203_v38 = vpop.f32.mrb[145].mxu1 }
 0x236   :  { %3192 = vst [vmem:[%s4910_s3 + $0xb0] sm:$0xff] %v3124_v41   ;;  %v2204_v56 = vadd.f32 %v2203_v38, %v4794_v44  ;;  %v1949_v62 = vpop.f32.mrb[114].mxu0  ;;  %v3297_v24 = vpop.f32.mrb[146].mxu1  ;;  %v4947_v49 = vld [vmem:[#allocation18_spill] sm:$0xff] }
 0x237   :  { %v1950_v52 = vadd.f32 %v1949_v62, %v1661_v39  ;;  %v2215_v60 = vadd.f32 %v3297_v24, %v4819_v12  ;;  %v1951_v16 = vpop.f32.mrb[115].mxu0  ;;  %v2206_v6 = vpop.f32.mrb[147].mxu1  ;;  %v2316_v3 = vmax.f32 %v2212_v34, 0.0  ;;  %v1682_v38 = vadd.f32 %v4535_v30, %v4947_v49 }
 0x238   :  { %v2207_v50 = vadd.f32 %v2206_v6, %v4801_v22  ;;  %v2314_v13 = vmax.f32 %v2204_v56, 0.0  ;;  %v4948_v16 = vld [vmem:[#allocation19_spill] sm:$0xff] }
 0x239   :  { %v2317_v1 = vmax.f32 %v2215_v60, 0.0 }
 0x23a   :  { %v2315_v25 = vmax.f32 %v2207_v50, 0.0 }
 0x23b   :  { %v3139_v23 = vpack.c.bf16 %v2317_v1, %v2316_v3 }
 0x23c   :  { %v3134_v35 = vpack.c.bf16 %v2315_v25, %v2314_v13  ;;  %v1954_v51 = vpop.f32.mrb[116].mxu0  ;;  %v3300_v44 = vpop.f32.mrb[148].mxu1 }
 0x23d   :  { %3195 = vst [vmem:[%s4910_s3 + $0xc8] sm:$0xff] %v3139_v23   ;;  %v1955_v12 = vadd.f32 %v1954_v51, %v1666_v19  ;;  %v2228_v22 = vadd.f32 %v3300_v44, %v1939_v42  ;;  %v1956_v46 = vpop.f32.mrb[117].mxu0  ;;  %v2219_v2 = vpop.f32.mrb[149].mxu1 }
 0x23e   :  { %3194 = vst [vmem:[%s4910_s3 + $0xc0] sm:$0xff] %v3134_v35   ;;  %v2220_v55 = vadd.f32 %v2219_v2, %v4830_v18  ;;  %v1957_v33 = vpop.f32.mrb[118].mxu0  ;;  %v3301_v37 = vpop.f32.mrb[150].mxu1  ;;  %v4946_v18 = vld [vmem:[#allocation16_spill] sm:$0xff] }
 0x23f   :  { %v1958_v28 = vadd.f32 %v1957_v33, %v1669_v63  ;;  %v2231_v36 = vadd.f32 %v3301_v37, %v1942_v11  ;;  %v1959_v59 = vpop.f32.mrb[119].mxu0  ;;  %v2222_v9 = vpop.f32.mrb[151].mxu1  ;;  %v2320_v61 = vmax.f32 %v2228_v22, 0.0  ;;  %v1677_v40 = vadd.f32 %v4535_v30, %v4946_v18 }
 0x240   :  { %v2223_v45 = vadd.f32 %v2222_v9, %v4837_v27  ;;  %v2318_v26 = vmax.f32 %v2220_v55, 0.0 }
 0x241   :  { %v2321_v20 = vmax.f32 %v2231_v36, 0.0 }
 0x242   :  { %v2319_v42 = vmax.f32 %v2223_v45, 0.0 }
 0x243   :  { %v3149_v8 = vpack.c.bf16 %v2321_v20, %v2320_v61 }
 0x244   :  { %v3144_v14 = vpack.c.bf16 %v2319_v42, %v2318_v26  ;;  %v1962_v31 = vpop.f32.mrb[120].mxu0  ;;  %v3304_v21 = vpop.f32.mrb[152].mxu1 }
 0x245   :  { %3197 = vst [vmem:[%s4910_s3 + $0xd8] sm:$0xff] %v3149_v8   ;;  %v1963_v11 = vadd.f32 %v1962_v31, %v1674_v47  ;;  %v2244_v27 = vadd.f32 %v3304_v21, %v1955_v12  ;;  %v1964_v29 = vpop.f32.mrb[121].mxu0  ;;  %v2235_v48 = vpop.f32.mrb[153].mxu1 }
 0x246   :  { %3196 = vst [vmem:[%s4910_s3 + $0xd0] sm:$0xff] %v3144_v14   ;;  %v2236_v10 = vadd.f32 %v2235_v48, %v1947_v15  ;;  %v1965_v32 = vpop.f32.mrb[122].mxu0  ;;  %v3305_v58 = vpop.f32.mrb[154].mxu1  ;;  %v1685_v15 = vadd.f32 %v4535_v30, %v4948_v16 }
 0x247   :  { %v1966_v7 = vadd.f32 %v1965_v32, %v1677_v40  ;;  %v2247_v17 = vadd.f32 %v3305_v58, %v1958_v28  ;;  %v1967_v43 = vpop.f32.mrb[123].mxu0  ;;  %v2238_v41 = vpop.f32.mrb[155].mxu1  ;;  %v2324_v54 = vmax.f32 %v2244_v27, 0.0 }
 0x248   :  { %v2239_v4 = vadd.f32 %v2238_v41, %v1950_v52  ;;  %v2322_v39 = vmax.f32 %v2236_v10, 0.0 }
 0x249   :  { %v2325_v5 = vmax.f32 %v2247_v17, 0.0 }
 0x24a   :  { %v2323_v34 = vmax.f32 %v2239_v4, 0.0 }
 0x24b   :  { %v3159_v56 = vpack.c.bf16 %v2325_v5, %v2324_v54 }
 0x24c   :  { %v3154_v62 = vpack.c.bf16 %v2323_v34, %v2322_v39  ;;  %v1970_v24 = vpop.f32.mrb[124].mxu0  ;;  %v3308_v60 = vpop.f32.mrb[156].mxu1 }
 0x24d   :  { %3199 = vst [vmem:[%s4910_s3 + $0xe8] sm:$0xff] %v3159_v56   ;;  %v1971_v6 = vadd.f32 %v1970_v24, %v1682_v38  ;;  %v1972_v52 = vpop.f32.mrb[125].mxu0  ;;  %v2251_v50 = vpop.f32.mrb[157].mxu1 }
 0x24e   :  { %3198 = vst [vmem:[%s4910_s3 + $0xe0] sm:$0xff] %v3154_v62   ;;  %v2252_v3 = vadd.f32 %v2251_v50, %v1963_v11  ;;  %v1973_v1 = vpop.f32.mrb[126].mxu0  ;;  %v3309_v13 = vpop.f32.mrb[158].mxu1 }
 0x24f   :  { %v2260_v25 = vadd.f32 %v3308_v60, %v1971_v6  ;;  %v1974_v53 = vadd.f32 %v1973_v1, %v1685_v15  ;;  %v1975_v19 = vpop.f32.mrb[127].mxu0  ;;  %v2254_v23 = vpop.f32.mrb[159].mxu1 }
 0x250   :  { %v2255_v35 = vadd.f32 %v2254_v23, %v1966_v7  ;;  %v2326_v51 = vmax.f32 %v2252_v3, 0.0 }
 0x251   :  { %v2263_v30 = vadd.f32 %v3309_v13, %v1974_v53  ;;  %v2328_v57 = vmax.f32 %v2260_v25, 0.0 }
 0x252   :  { %v2327_v44 = vmax.f32 %v2255_v35, 0.0 }
 0x253   :  { %v2329_v63 = vmax.f32 %v2263_v30, 0.0 }
 0x254   :  { %v3164_v12 = vpack.c.bf16 %v2327_v44, %v2326_v51 }
 0x255   :  { %v3169_v22 = vpack.c.bf16 %v2329_v63, %v2328_v57 }
 0x256   :  { %3200 = vst [vmem:[%s4910_s3 + $0xf0] sm:$0xff] %v3164_v12  }
 0x257   :  { %3201 = vst [vmem:[%s4910_s3 + $0xf8] sm:$0xff] %v3169_v22  }

// kernel: mixed5b_forward.9
= control target key start
LH: loop header
LB: loop body
LE: loop exit
PB: predicated region body
PF: predicated region fallthrough
CT: control target
= control target key end

     0   :  { %v1230_v0 = vmov 0   ;;  %vm470_vm0 = vcmask 523264   ;;  %s1796_s1 = inlined_call_operand.vmem [shape: bf16[192,128], index: 1, kind: input, shape index: {}]   ;;  %s1797_s0 = inlined_call_operand.vmem [shape: bf16[512,192], index: 0, kind: input, shape index: {}]   ;;  %s1798_s2 = inlined_call_operand.vmem [shape: f32[1,128], index: 2, kind: input, shape index: {}]   ;;  %s1799_s3 = inlined_call_operand.vmem [shape: f32[512,128], index: 3, kind: output, shape index: {}]  }
   0x1   :  { %567 = vmatprep.subr.bf16.mxu0 %v1230_v0  ;;  %1097 = vmatprep.subr.bf16.mxu1 %v1230_v0  ;;  %v1122_v1 = vld [vmem:[%s1796_s1] sm:$0xff]   ;;  %v1123_v2 = vld [vmem:[%s1796_s1 + $0x8] sm:$0xff]   ;;  %v1124_v3 = vld [vmem:[%s1796_s1 + $0x10] sm:$0xff]  }
   0x2   :  { %568 = vmatpush1.bf16.msra.mxu0 %v1122_v1  ;;  %1109 = vmatpush1.bf16.msra.mxu1 %v1122_v1  ;;  %v1125_v4 = vld [vmem:[%s1796_s1 + $0x18] sm:$0xff]   ;;  %v1136_v5 = vld [vmem:[%s1797_s0 + $0x4] ss:$8 sps:$4 sm:$0xff]   ;;  %v1128_v9 = vld [vmem:[%s1796_s1 + $0x30] sm:$0xff]  }
   0x3   :  { %569 = vmatprep.subr.bf16.mxu0 %v1230_v0  ;;  %1098 = vmatprep.subr.bf16.mxu1 %v1230_v0  ;;  %v1126_v6 = vld [vmem:[%s1796_s1 + $0x20] sm:$0xff]   ;;  %v1127_v8 = vld [vmem:[%s1796_s1 + $0x28] sm:$0xff]   ;;  %v1129_v10 = vld [vmem:[%s1796_s1 + $0x38] sm:$0xff]  }
   0x4   :  { %v1139_v7 = vld [vmem:[%s1797_s0 + $0x104] ss:$8 sps:$4 sm:$0xff]   ;;  %1065 = vmatprep.mubr.msk.bf16.mxu0 %vm470_vm0, %v1136_v5  ;;  %v1132_v13 = vld [vmem:[%s1796_s1 + $0x50] sm:$0xff]   ;;  %v1133_v14 = vld [vmem:[%s1796_s1 + $0x58] sm:$0xff]  }
   0x5   :  { %1081 = vmatprep.mubr.msk.bf16.mxu1 %vm470_vm0, %v1139_v7  ;;  %v1130_v11 = vld [vmem:[%s1796_s1 + $0x40] sm:$0xff]   ;;  %v1131_v12 = vld [vmem:[%s1796_s1 + $0x48] sm:$0xff]   ;;  %v1140_v17 = vld [vmem:[%s1797_s0 + $0x14] ss:$8 sps:$4 sm:$0xff]  }
   0x6   :  { %570 = vmatpush1.bf16.msra.mxu0 %v1123_v2  ;;  %1110 = vmatpush1.bf16.msra.mxu1 %v1123_v2  ;;  %v1134_v15 = vld [vmem:[%s1797_s0] ss:$8 sps:$4 sm:$0xff]   ;;  %v1142_v18 = vld [vmem:[%s1797_s0 + $0x114] ss:$8 sps:$4 sm:$0xff]   ;;  %v1144_v19 = vld [vmem:[%s1797_s0 + $0x10] ss:$8 sps:$4 sm:$0xff]  }
   0x7   :  { %571 = vmatprep.subr.bf16.mxu0 %v1230_v0  ;;  %1099 = vmatprep.subr.bf16.mxu1 %v1230_v0  ;;  %v1137_v16 = vld [vmem:[%s1797_s0 + $0x100] ss:$8 sps:$4 sm:$0xff]   ;;  %v1145_v20 = vld [vmem:[%s1797_s0 + $0x110] ss:$8 sps:$4 sm:$0xff]   ;;  %v1146_v21 = vld [vmem:[%s1797_s0 + $0x24] ss:$8 sps:$4 sm:$0xff]  }
   0x8   :  { %v1148_v22 = vld [vmem:[%s1797_s0 + $0x124] ss:$8 sps:$4 sm:$0xff]   ;;  %v1150_v23 = vld [vmem:[%s1797_s0 + $0x20] ss:$8 sps:$4 sm:$0xff]   ;;  %v1152_v25 = vld [vmem:[%s1797_s0 + $0x34] ss:$8 sps:$4 sm:$0xff]  }
   0x9   :  { %v1151_v24 = vld [vmem:[%s1797_s0 + $0x120] ss:$8 sps:$4 sm:$0xff]   ;;  %v1154_v26 = vld [vmem:[%s1797_s0 + $0x134] ss:$8 sps:$4 sm:$0xff]   ;;  %v1156_v27 = vld [vmem:[%s1797_s0 + $0x30] ss:$8 sps:$4 sm:$0xff]  }
   0xa   :  { %572 = vmatpush1.bf16.msra.mxu0 %v1124_v3  ;;  %1111 = vmatpush1.bf16.msra.mxu1 %v1124_v3  ;;  %v1157_v28 = vld [vmem:[%s1797_s0 + $0x130] ss:$8 sps:$4 sm:$0xff]   ;;  %v1158_v29 = vld [vmem:[%s1797_s0 + $0x44] ss:$8 sps:$4 sm:$0xff]   ;;  %v1162_v31 = vld [vmem:[%s1797_s0 + $0x40] ss:$8 sps:$4 sm:$0xff]  }
   0xb   :  { %573 = vmatprep.subr.bf16.mxu0 %v1230_v0  ;;  %1100 = vmatprep.subr.bf16.mxu1 %v1230_v0  ;;  %v1160_v30 = vld [vmem:[%s1797_s0 + $0x144] ss:$8 sps:$4 sm:$0xff]   ;;  %v1163_v32 = vld [vmem:[%s1797_s0 + $0x140] ss:$8 sps:$4 sm:$0xff]   ;;  %v1164_v33 = vld [vmem:[%s1797_s0 + $0x54] ss:$8 sps:$4 sm:$0xff]  }
   0xc   :  { %v1166_v34 = vld [vmem:[%s1797_s0 + $0x154] ss:$8 sps:$4 sm:$0xff]   ;;  %v1168_v35 = vld [vmem:[%s1797_s0 + $0x50] ss:$8 sps:$4 sm:$0xff]   ;;  %v1170_v37 = vld [vmem:[%s1797_s0 + $0x64] ss:$8 sps:$4 sm:$0xff]  }
   0xd   :  { %v1169_v36 = vld [vmem:[%s1797_s0 + $0x150] ss:$8 sps:$4 sm:$0xff]   ;;  %v1172_v38 = vld [vmem:[%s1797_s0 + $0x164] ss:$8 sps:$4 sm:$0xff]   ;;  %v1174_v39 = vld [vmem:[%s1797_s0 + $0x60] ss:$8 sps:$4 sm:$0xff]  }
   0xe   :  { %574 = vmatpush1.bf16.msra.mxu0 %v1125_v4  ;;  %1112 = vmatpush1.bf16.msra.mxu1 %v1125_v4  ;;  %v1175_v40 = vld [vmem:[%s1797_s0 + $0x160] ss:$8 sps:$4 sm:$0xff]   ;;  %v1176_v41 = vld [vmem:[%s1797_s0 + $0x74] ss:$8 sps:$4 sm:$0xff]   ;;  %v1180_v43 = vld [vmem:[%s1797_s0 + $0x70] ss:$8 sps:$4 sm:$0xff]  }
   0xf   :  { %575 = vmatprep.subr.bf16.mxu0 %v1230_v0  ;;  %1101 = vmatprep.subr.bf16.mxu1 %v1230_v0  ;;  %v1178_v42 = vld [vmem:[%s1797_s0 + $0x174] ss:$8 sps:$4 sm:$0xff]   ;;  %v1181_v44 = vld [vmem:[%s1797_s0 + $0x170] ss:$8 sps:$4 sm:$0xff]   ;;  %v1182_v45 = vld [vmem:[%s1797_s0 + $0x84] ss:$8 sps:$4 sm:$0xff]  }
  0x10   :  { %v1184_v46 = vld [vmem:[%s1797_s0 + $0x184] ss:$8 sps:$4 sm:$0xff]   ;;  %v1186_v47 = vld [vmem:[%s1797_s0 + $0x80] ss:$8 sps:$4 sm:$0xff]   ;;  %v1188_v49 = vld [vmem:[%s1797_s0 + $0x94] ss:$8 sps:$4 sm:$0xff]  }
  0x11   :  { %v1187_v48 = vld [vmem:[%s1797_s0 + $0x180] ss:$8 sps:$4 sm:$0xff]   ;;  %v1190_v50 = vld [vmem:[%s1797_s0 + $0x194] ss:$8 sps:$4 sm:$0xff]   ;;  %v1192_v51 = vld [vmem:[%s1797_s0 + $0x90] ss:$8 sps:$4 sm:$0xff]  }
  0x12   :  { %576 = vmatpush1.bf16.msra.mxu0 %v1126_v6  ;;  %1113 = vmatpush1.bf16.msra.mxu1 %v1126_v6  ;;  %v1193_v52 = vld [vmem:[%s1797_s0 + $0x190] ss:$8 sps:$4 sm:$0xff]   ;;  %v1194_v53 = vld [vmem:[%s1797_s0 + $0xa4] ss:$8 sps:$4 sm:$0xff]   ;;  %v1198_v55 = vld [vmem:[%s1797_s0 + $0xa0] ss:$8 sps:$4 sm:$0xff]  }
  0x13   :  { %577 = vmatprep.subr.bf16.mxu0 %v1230_v0  ;;  %1102 = vmatprep.subr.bf16.mxu1 %v1230_v0  ;;  %v1196_v54 = vld [vmem:[%s1797_s0 + $0x1a4] ss:$8 sps:$4 sm:$0xff]   ;;  %v1199_v56 = vld [vmem:[%s1797_s0 + $0x1a0] ss:$8 sps:$4 sm:$0xff]   ;;  %v1200_v57 = vld [vmem:[%s1797_s0 + $0xb4] ss:$8 sps:$4 sm:$0xff]  }
  0x14   :  { %v1202_v58 = vld [vmem:[%s1797_s0 + $0x1b4] ss:$8 sps:$4 sm:$0xff]   ;;  %v1204_v59 = vld [vmem:[%s1797_s0 + $0xb0] ss:$8 sps:$4 sm:$0xff]   ;;  %v1206_v61 = vld [vmem:[%s1797_s0 + $0xc4] ss:$8 sps:$4 sm:$0xff]  }
  0x15   :  { %v1205_v60 = vld [vmem:[%s1797_s0 + $0x1b0] ss:$8 sps:$4 sm:$0xff]   ;;  %v1208_v62 = vld [vmem:[%s1797_s0 + $0x1c4] ss:$8 sps:$4 sm:$0xff]   ;;  %v1210_v63 = vld [vmem:[%s1797_s0 + $0xc0] ss:$8 sps:$4 sm:$0xff]  }
  0x16   :  { %578 = vmatpush1.bf16.msra.mxu0 %v1127_v8  ;;  %1114 = vmatpush1.bf16.msra.mxu1 %v1127_v8  ;;  %v1212_v1 = vld [vmem:[%s1797_s0 + $0xd4] ss:$8 sps:$4 sm:$0xff]   ;;  %v1216_v3 = vld [vmem:[%s1797_s0 + $0xd0] ss:$8 sps:$4 sm:$0xff]   ;;  %v1218_v5 = vld [vmem:[%s1797_s0 + $0xe4] ss:$8 sps:$4 sm:$0xff]  }
  0x17   :  { %579 = vmatprep.subr.bf16.mxu0 %v1230_v0  ;;  %1103 = vmatprep.subr.bf16.mxu1 %v1230_v0  ;;  %v1214_v2 = vld [vmem:[%s1797_s0 + $0x1d4] ss:$8 sps:$4 sm:$0xff]   ;;  %v1217_v4 = vld [vmem:[%s1797_s0 + $0x1d0] ss:$8 sps:$4 sm:$0xff]   ;;  %v1220_v6 = vld [vmem:[%s1797_s0 + $0x1e4] ss:$8 sps:$4 sm:$0xff]  }
  0x18   :  { %v1222_v7 = vld [vmem:[%s1797_s0 + $0xe0] ss:$8 sps:$4 sm:$0xff]  }
  0x19   :  { %v1223_v8 = vld [vmem:[%s1797_s0 + $0x1e0] ss:$8 sps:$4 sm:$0xff]  }
  0x1a   :  { %580 = vmatpush1.bf16.msra.mxu0 %v1128_v9  ;;  %1115 = vmatpush1.bf16.msra.mxu1 %v1128_v9  ;;  %v1224_v9 = vld [vmem:[%s1797_s0 + $0xf4] ss:$8 sps:$4 sm:$0xff]  }
  0x1b   :  { %581 = vmatprep.subr.bf16.mxu0 %v1230_v0  ;;  %1104 = vmatprep.subr.bf16.mxu1 %v1230_v0 }
  0x1e   :  { %582 = vmatpush1.bf16.msra.mxu0 %v1129_v10  ;;  %1116 = vmatpush1.bf16.msra.mxu1 %v1129_v10  ;;  %v1226_v10 = vld [vmem:[%s1797_s0 + $0x1f4] ss:$8 sps:$4 sm:$0xff]  }
  0x1f   :  { %583 = vmatprep.subr.bf16.mxu0 %v1230_v0  ;;  %1105 = vmatprep.subr.bf16.mxu1 %v1230_v0 }
  0x22   :  { %584 = vmatpush1.bf16.msra.mxu0 %v1130_v11  ;;  %1117 = vmatpush1.bf16.msra.mxu1 %v1130_v11  ;;  %v1228_v11 = vld [vmem:[%s1797_s0 + $0xf0] ss:$8 sps:$4 sm:$0xff]  }
  0x23   :  { %585 = vmatprep.subr.bf16.mxu0 %v1230_v0  ;;  %1106 = vmatprep.subr.bf16.mxu1 %v1230_v0 }
  0x26   :  { %586 = vmatpush1.bf16.msra.mxu0 %v1131_v12  ;;  %1118 = vmatpush1.bf16.msra.mxu1 %v1131_v12  ;;  %v1229_v12 = vld [vmem:[%s1797_s0 + $0x1f0] ss:$8 sps:$4 sm:$0xff]  }
  0x27   :  { %587 = vmatprep.subr.bf16.mxu0 %v1230_v0  ;;  %1107 = vmatprep.subr.bf16.mxu1 %v1230_v0 }
  0x2a   :  { %588 = vmatpush1.bf16.msra.mxu0 %v1132_v13  ;;  %1119 = vmatpush1.bf16.msra.mxu1 %v1132_v13  ;;  %v1538_v13 = vld [vmem:[%s1798_s2] ss:$0 sm:$0xff] }
  0x2b   :  { %589 = vmatprep.subr.bf16.mxu0 %v1230_v0  ;;  %1108 = vmatprep.subr.bf16.mxu1 %v1230_v0  ;;  %v1211_v0 = vld [vmem:[%s1797_s0 + $0x1c0] ss:$8 sps:$4 sm:$0xff]  }
  0x2e   :  { %590 = vmatpush1.bf16.msra.mxu0 %v1133_v14  ;;  %1120 = vmatpush1.bf16.msra.mxu1 %v1133_v14 }
  0x31   :  { %600 = vmatmul.mubr.bf16.vlgmr.msra.gmra.mrb[0].mxu0 %v1134_v15  ;;  %728 = vmatmul.mubr.bf16.vlgmr.msra.gmra.mrb[0].mxu1 %v1137_v16 }
  0x32   :  { %1066 = vmatprep.mubr.msk.bf16.mxu0 %vm470_vm0, %v1140_v17  ;;  %1082 = vmatprep.mubr.msk.bf16.mxu1 %vm470_vm0, %v1142_v18 }
  0x39   :  { %608 = vmatmul.mubr.bf16.gmra.mrb[4].mxu0 %v1144_v19  ;;  %736 = vmatmul.mubr.bf16.gmra.mrb[4].mxu1 %v1145_v20 }
  0x3a   :  { %1067 = vmatprep.mubr.msk.bf16.mxu0 %vm470_vm0, %v1146_v21  ;;  %1083 = vmatprep.mubr.msk.bf16.mxu1 %vm470_vm0, %v1148_v22 }
  0x41   :  { %616 = vmatmul.mubr.bf16.gmra.mrb[8].mxu0 %v1150_v23  ;;  %744 = vmatmul.mubr.bf16.gmra.mrb[8].mxu1 %v1151_v24 }
  0x42   :  { %1068 = vmatprep.mubr.msk.bf16.mxu0 %vm470_vm0, %v1152_v25  ;;  %1084 = vmatprep.mubr.msk.bf16.mxu1 %vm470_vm0, %v1154_v26 }
  0x49   :  { %624 = vmatmul.mubr.bf16.gmra.mrb[12].mxu0 %v1156_v27  ;;  %752 = vmatmul.mubr.bf16.gmra.mrb[12].mxu1 %v1157_v28 }
  0x4a   :  { %1069 = vmatprep.mubr.msk.bf16.mxu0 %vm470_vm0, %v1158_v29  ;;  %1085 = vmatprep.mubr.msk.bf16.mxu1 %vm470_vm0, %v1160_v30 }
  0x51   :  { %632 = vmatmul.mubr.bf16.gmra.mrb[16].mxu0 %v1162_v31  ;;  %760 = vmatmul.mubr.bf16.gmra.mrb[16].mxu1 %v1163_v32 }
  0x52   :  { %1070 = vmatprep.mubr.msk.bf16.mxu0 %vm470_vm0, %v1164_v33  ;;  %1086 = vmatprep.mubr.msk.bf16.mxu1 %vm470_vm0, %v1166_v34 }
  0x59   :  { %640 = vmatmul.mubr.bf16.gmra.mrb[20].mxu0 %v1168_v35  ;;  %768 = vmatmul.mubr.bf16.gmra.mrb[20].mxu1 %v1169_v36 }
  0x5a   :  { %1071 = vmatprep.mubr.msk.bf16.mxu0 %vm470_vm0, %v1170_v37  ;;  %1087 = vmatprep.mubr.msk.bf16.mxu1 %vm470_vm0, %v1172_v38 }
  0x61   :  { %648 = vmatmul.mubr.bf16.gmra.mrb[24].mxu0 %v1174_v39  ;;  %776 = vmatmul.mubr.bf16.gmra.mrb[24].mxu1 %v1175_v40 }
  0x62   :  { %1072 = vmatprep.mubr.msk.bf16.mxu0 %vm470_vm0, %v1176_v41  ;;  %1088 = vmatprep.mubr.msk.bf16.mxu1 %vm470_vm0, %v1178_v42 }
  0x69   :  { %656 = vmatmul.mubr.bf16.gmra.mrb[28].mxu0 %v1180_v43  ;;  %784 = vmatmul.mubr.bf16.gmra.mrb[28].mxu1 %v1181_v44 }
  0x6a   :  { %1073 = vmatprep.mubr.msk.bf16.mxu0 %vm470_vm0, %v1182_v45  ;;  %1089 = vmatprep.mubr.msk.bf16.mxu1 %vm470_vm0, %v1184_v46 }
  0x71   :  { %664 = vmatmul.mubr.bf16.gmra.mrb[32].mxu0 %v1186_v47  ;;  %792 = vmatmul.mubr.bf16.gmra.mrb[32].mxu1 %v1187_v48 }
  0x72   :  { %1074 = vmatprep.mubr.msk.bf16.mxu0 %vm470_vm0, %v1188_v49  ;;  %1090 = vmatprep.mubr.msk.bf16.mxu1 %vm470_vm0, %v1190_v50 }
  0x79   :  { %672 = vmatmul.mubr.bf16.gmra.mrb[36].mxu0 %v1192_v51  ;;  %800 = vmatmul.mubr.bf16.gmra.mrb[36].mxu1 %v1193_v52 }
  0x7a   :  { %1075 = vmatprep.mubr.msk.bf16.mxu0 %vm470_vm0, %v1194_v53  ;;  %1091 = vmatprep.mubr.msk.bf16.mxu1 %vm470_vm0, %v1196_v54 }
  0x81   :  { %680 = vmatmul.mubr.bf16.gmra.mrb[40].mxu0 %v1198_v55  ;;  %808 = vmatmul.mubr.bf16.gmra.mrb[40].mxu1 %v1199_v56 }
  0x82   :  { %1076 = vmatprep.mubr.msk.bf16.mxu0 %vm470_vm0, %v1200_v57  ;;  %1092 = vmatprep.mubr.msk.bf16.mxu1 %vm470_vm0, %v1202_v58 }
  0x89   :  { %688 = vmatmul.mubr.bf16.gmra.mrb[44].mxu0 %v1204_v59  ;;  %816 = vmatmul.mubr.bf16.gmra.mrb[44].mxu1 %v1205_v60 }
  0x8a   :  { %1077 = vmatprep.mubr.msk.bf16.mxu0 %vm470_vm0, %v1206_v61  ;;  %1093 = vmatprep.mubr.msk.bf16.mxu1 %vm470_vm0, %v1208_v62 }
  0x91   :  { %696 = vmatmul.mubr.bf16.gmra.mrb[48].mxu0 %v1210_v63  ;;  %824 = vmatmul.mubr.bf16.gmra.mrb[48].mxu1 %v1211_v0 }
  0x92   :  { %1078 = vmatprep.mubr.msk.bf16.mxu0 %vm470_vm0, %v1212_v1  ;;  %1094 = vmatprep.mubr.msk.bf16.mxu1 %vm470_vm0, %v1214_v2 }
  0x99   :  { %704 = vmatmul.mubr.bf16.gmra.mrb[52].mxu0 %v1216_v3  ;;  %832 = vmatmul.mubr.bf16.gmra.mrb[52].mxu1 %v1217_v4 }
  0x9a   :  { %1079 = vmatprep.mubr.msk.bf16.mxu0 %vm470_vm0, %v1218_v5  ;;  %1095 = vmatprep.mubr.msk.bf16.mxu1 %vm470_vm0, %v1220_v6 }
  0xa1   :  { %712 = vmatmul.mubr.bf16.gmra.mrb[56].mxu0 %v1222_v7  ;;  %840 = vmatmul.mubr.bf16.gmra.mrb[56].mxu1 %v1223_v8 }
  0xa2   :  { %1080 = vmatprep.mubr.msk.bf16.mxu0 %vm470_vm0, %v1224_v9  ;;  %1096 = vmatprep.mubr.msk.bf16.mxu1 %vm470_vm0, %v1226_v10 }
  0xa9   :  { %720 = vmatmul.mubr.bf16.gmra.mrb[60].mxu0 %v1228_v11  ;;  %848 = vmatmul.mubr.bf16.gmra.mrb[60].mxu1 %v1229_v12 }
 0x104   :  { %v601_v14 = vpop.f32.mrb[0].mxu0  ;;  %v729_v15 = vpop.f32.mrb[0].mxu1 }
 0x105   :  { %v602_v16 = vadd.f32 %v1538_v13, %v601_v14  ;;  %v730_v17 = vadd.f32 %v1538_v13, %v729_v15  ;;  %v603_v18 = vpop.f32.mrb[1].mxu0  ;;  %v731_v19 = vpop.f32.mrb[1].mxu1 }
 0x106   :  { %v604_v20 = vpop.f32.mrb[2].mxu0  ;;  %v732_v21 = vpop.f32.mrb[2].mxu1 }
 0x107   :  { %v856_v22 = vmax.f32 %v602_v16, 0.0  ;;  %v888_v23 = vmax.f32 %v730_v17, 0.0  ;;  %v605_v24 = vadd.f32 %v1538_v13, %v604_v20  ;;  %v733_v25 = vadd.f32 %v1538_v13, %v732_v21  ;;  %v606_v26 = vpop.f32.mrb[3].mxu0  ;;  %v734_v27 = vpop.f32.mrb[3].mxu1 }
 0x109   :  { %920 = vst [vmem:[%s1799_s3] sm:$0xff] %v856_v22  ;;  %952 = vst [vmem:[%s1799_s3 + $0x100] sm:$0xff] %v888_v23  ;;  %v857_v28 = vmax.f32 %v605_v24, 0.0  ;;  %v889_v29 = vmax.f32 %v733_v25, 0.0 }
 0x10b   :  { %921 = vst [vmem:[%s1799_s3 + $0x8] sm:$0xff] %v857_v28  ;;  %953 = vst [vmem:[%s1799_s3 + $0x108] sm:$0xff] %v889_v29 }
 0x10c   :  { %v609_v30 = vpop.f32.mrb[4].mxu0  ;;  %v737_v31 = vpop.f32.mrb[4].mxu1 }
 0x10d   :  { %v610_v32 = vadd.f32 %v1538_v13, %v609_v30  ;;  %v738_v33 = vadd.f32 %v1538_v13, %v737_v31  ;;  %v611_v34 = vpop.f32.mrb[5].mxu0  ;;  %v739_v35 = vpop.f32.mrb[5].mxu1 }
 0x10e   :  { %v612_v36 = vpop.f32.mrb[6].mxu0  ;;  %v740_v37 = vpop.f32.mrb[6].mxu1 }
 0x10f   :  { %v858_v38 = vmax.f32 %v610_v32, 0.0  ;;  %v890_v39 = vmax.f32 %v738_v33, 0.0  ;;  %v613_v40 = vadd.f32 %v1538_v13, %v612_v36  ;;  %v741_v41 = vadd.f32 %v1538_v13, %v740_v37  ;;  %v614_v42 = vpop.f32.mrb[7].mxu0  ;;  %v742_v43 = vpop.f32.mrb[7].mxu1 }
 0x111   :  { %922 = vst [vmem:[%s1799_s3 + $0x10] sm:$0xff] %v858_v38  ;;  %954 = vst [vmem:[%s1799_s3 + $0x110] sm:$0xff] %v890_v39  ;;  %v859_v44 = vmax.f32 %v613_v40, 0.0  ;;  %v891_v45 = vmax.f32 %v741_v41, 0.0 }
 0x113   :  { %923 = vst [vmem:[%s1799_s3 + $0x18] sm:$0xff] %v859_v44  ;;  %955 = vst [vmem:[%s1799_s3 + $0x118] sm:$0xff] %v891_v45 }
 0x114   :  { %v617_v46 = vpop.f32.mrb[8].mxu0  ;;  %v745_v47 = vpop.f32.mrb[8].mxu1 }
 0x115   :  { %v618_v48 = vadd.f32 %v1538_v13, %v617_v46  ;;  %v746_v49 = vadd.f32 %v1538_v13, %v745_v47  ;;  %v619_v50 = vpop.f32.mrb[9].mxu0  ;;  %v747_v51 = vpop.f32.mrb[9].mxu1 }
 0x116   :  { %v620_v52 = vpop.f32.mrb[10].mxu0  ;;  %v748_v53 = vpop.f32.mrb[10].mxu1 }
 0x117   :  { %v860_v54 = vmax.f32 %v618_v48, 0.0  ;;  %v892_v55 = vmax.f32 %v746_v49, 0.0  ;;  %v621_v56 = vadd.f32 %v1538_v13, %v620_v52  ;;  %v749_v57 = vadd.f32 %v1538_v13, %v748_v53  ;;  %v622_v58 = vpop.f32.mrb[11].mxu0  ;;  %v750_v59 = vpop.f32.mrb[11].mxu1 }
 0x119   :  { %924 = vst [vmem:[%s1799_s3 + $0x20] sm:$0xff] %v860_v54  ;;  %956 = vst [vmem:[%s1799_s3 + $0x120] sm:$0xff] %v892_v55  ;;  %v861_v60 = vmax.f32 %v621_v56, 0.0  ;;  %v893_v61 = vmax.f32 %v749_v57, 0.0 }
 0x11b   :  { %925 = vst [vmem:[%s1799_s3 + $0x28] sm:$0xff] %v861_v60  ;;  %957 = vst [vmem:[%s1799_s3 + $0x128] sm:$0xff] %v893_v61 }
 0x11c   :  { %v625_v62 = vpop.f32.mrb[12].mxu0  ;;  %v753_v63 = vpop.f32.mrb[12].mxu1 }
 0x11d   :  { %v626_v0 = vadd.f32 %v1538_v13, %v625_v62  ;;  %v754_v1 = vadd.f32 %v1538_v13, %v753_v63  ;;  %v627_v2 = vpop.f32.mrb[13].mxu0  ;;  %v755_v3 = vpop.f32.mrb[13].mxu1 }
 0x11e   :  { %v628_v4 = vpop.f32.mrb[14].mxu0  ;;  %v756_v5 = vpop.f32.mrb[14].mxu1 }
 0x11f   :  { %v862_v6 = vmax.f32 %v626_v0, 0.0  ;;  %v894_v7 = vmax.f32 %v754_v1, 0.0  ;;  %v629_v8 = vadd.f32 %v1538_v13, %v628_v4  ;;  %v757_v9 = vadd.f32 %v1538_v13, %v756_v5  ;;  %v630_v10 = vpop.f32.mrb[15].mxu0  ;;  %v758_v11 = vpop.f32.mrb[15].mxu1 }
 0x121   :  { %926 = vst [vmem:[%s1799_s3 + $0x30] sm:$0xff] %v862_v6  ;;  %958 = vst [vmem:[%s1799_s3 + $0x130] sm:$0xff] %v894_v7  ;;  %v863_v12 = vmax.f32 %v629_v8, 0.0  ;;  %v895_v14 = vmax.f32 %v757_v9, 0.0 }
 0x123   :  { %927 = vst [vmem:[%s1799_s3 + $0x38] sm:$0xff] %v863_v12  ;;  %959 = vst [vmem:[%s1799_s3 + $0x138] sm:$0xff] %v895_v14 }
 0x124   :  { %v633_v15 = vpop.f32.mrb[16].mxu0  ;;  %v761_v16 = vpop.f32.mrb[16].mxu1 }
 0x125   :  { %v634_v17 = vadd.f32 %v1538_v13, %v633_v15  ;;  %v762_v18 = vadd.f32 %v1538_v13, %v761_v16  ;;  %v635_v19 = vpop.f32.mrb[17].mxu0  ;;  %v763_v20 = vpop.f32.mrb[17].mxu1 }
 0x126   :  { %v636_v21 = vpop.f32.mrb[18].mxu0  ;;  %v764_v22 = vpop.f32.mrb[18].mxu1 }
 0x127   :  { %v864_v23 = vmax.f32 %v634_v17, 0.0  ;;  %v896_v24 = vmax.f32 %v762_v18, 0.0  ;;  %v637_v25 = vadd.f32 %v1538_v13, %v636_v21  ;;  %v765_v26 = vadd.f32 %v1538_v13, %v764_v22  ;;  %v638_v27 = vpop.f32.mrb[19].mxu0  ;;  %v766_v28 = vpop.f32.mrb[19].mxu1 }
 0x129   :  { %928 = vst [vmem:[%s1799_s3 + $0x40] sm:$0xff] %v864_v23  ;;  %960 = vst [vmem:[%s1799_s3 + $0x140] sm:$0xff] %v896_v24  ;;  %v865_v29 = vmax.f32 %v637_v25, 0.0  ;;  %v897_v30 = vmax.f32 %v765_v26, 0.0 }
 0x12b   :  { %929 = vst [vmem:[%s1799_s3 + $0x48] sm:$0xff] %v865_v29  ;;  %961 = vst [vmem:[%s1799_s3 + $0x148] sm:$0xff] %v897_v30 }
 0x12c   :  { %v641_v31 = vpop.f32.mrb[20].mxu0  ;;  %v769_v32 = vpop.f32.mrb[20].mxu1 }
 0x12d   :  { %v642_v33 = vadd.f32 %v1538_v13, %v641_v31  ;;  %v770_v34 = vadd.f32 %v1538_v13, %v769_v32  ;;  %v643_v35 = vpop.f32.mrb[21].mxu0  ;;  %v771_v36 = vpop.f32.mrb[21].mxu1 }
 0x12e   :  { %v644_v37 = vpop.f32.mrb[22].mxu0  ;;  %v772_v38 = vpop.f32.mrb[22].mxu1 }
 0x12f   :  { %v866_v39 = vmax.f32 %v642_v33, 0.0  ;;  %v898_v40 = vmax.f32 %v770_v34, 0.0  ;;  %v645_v41 = vadd.f32 %v1538_v13, %v644_v37  ;;  %v773_v42 = vadd.f32 %v1538_v13, %v772_v38  ;;  %v646_v43 = vpop.f32.mrb[23].mxu0  ;;  %v774_v44 = vpop.f32.mrb[23].mxu1 }
 0x131   :  { %930 = vst [vmem:[%s1799_s3 + $0x50] sm:$0xff] %v866_v39  ;;  %962 = vst [vmem:[%s1799_s3 + $0x150] sm:$0xff] %v898_v40  ;;  %v867_v45 = vmax.f32 %v645_v41, 0.0  ;;  %v899_v46 = vmax.f32 %v773_v42, 0.0 }
 0x133   :  { %931 = vst [vmem:[%s1799_s3 + $0x58] sm:$0xff] %v867_v45  ;;  %963 = vst [vmem:[%s1799_s3 + $0x158] sm:$0xff] %v899_v46 }
 0x134   :  { %v649_v47 = vpop.f32.mrb[24].mxu0  ;;  %v777_v48 = vpop.f32.mrb[24].mxu1 }
 0x135   :  { %v650_v49 = vadd.f32 %v1538_v13, %v649_v47  ;;  %v778_v50 = vadd.f32 %v1538_v13, %v777_v48  ;;  %v651_v51 = vpop.f32.mrb[25].mxu0  ;;  %v779_v52 = vpop.f32.mrb[25].mxu1 }
 0x136   :  { %v652_v53 = vpop.f32.mrb[26].mxu0  ;;  %v780_v54 = vpop.f32.mrb[26].mxu1 }
 0x137   :  { %v868_v55 = vmax.f32 %v650_v49, 0.0  ;;  %v900_v56 = vmax.f32 %v778_v50, 0.0  ;;  %v653_v57 = vadd.f32 %v1538_v13, %v652_v53  ;;  %v781_v58 = vadd.f32 %v1538_v13, %v780_v54  ;;  %v654_v59 = vpop.f32.mrb[27].mxu0  ;;  %v782_v60 = vpop.f32.mrb[27].mxu1 }
 0x139   :  { %932 = vst [vmem:[%s1799_s3 + $0x60] sm:$0xff] %v868_v55  ;;  %964 = vst [vmem:[%s1799_s3 + $0x160] sm:$0xff] %v900_v56  ;;  %v869_v61 = vmax.f32 %v653_v57, 0.0  ;;  %v901_v62 = vmax.f32 %v781_v58, 0.0 }
 0x13b   :  { %933 = vst [vmem:[%s1799_s3 + $0x68] sm:$0xff] %v869_v61  ;;  %965 = vst [vmem:[%s1799_s3 + $0x168] sm:$0xff] %v901_v62 }
 0x13c   :  { %v657_v63 = vpop.f32.mrb[28].mxu0  ;;  %v785_v0 = vpop.f32.mrb[28].mxu1 }
 0x13d   :  { %v658_v1 = vadd.f32 %v1538_v13, %v657_v63  ;;  %v786_v2 = vadd.f32 %v1538_v13, %v785_v0  ;;  %v659_v3 = vpop.f32.mrb[29].mxu0  ;;  %v787_v4 = vpop.f32.mrb[29].mxu1 }
 0x13e   :  { %v660_v5 = vpop.f32.mrb[30].mxu0  ;;  %v788_v6 = vpop.f32.mrb[30].mxu1 }
 0x13f   :  { %v870_v7 = vmax.f32 %v658_v1, 0.0  ;;  %v902_v8 = vmax.f32 %v786_v2, 0.0  ;;  %v661_v9 = vadd.f32 %v1538_v13, %v660_v5  ;;  %v789_v10 = vadd.f32 %v1538_v13, %v788_v6  ;;  %v662_v11 = vpop.f32.mrb[31].mxu0  ;;  %v790_v12 = vpop.f32.mrb[31].mxu1 }
 0x141   :  { %934 = vst [vmem:[%s1799_s3 + $0x70] sm:$0xff] %v870_v7  ;;  %966 = vst [vmem:[%s1799_s3 + $0x170] sm:$0xff] %v902_v8  ;;  %v871_v14 = vmax.f32 %v661_v9, 0.0  ;;  %v903_v15 = vmax.f32 %v789_v10, 0.0 }
 0x143   :  { %935 = vst [vmem:[%s1799_s3 + $0x78] sm:$0xff] %v871_v14  ;;  %967 = vst [vmem:[%s1799_s3 + $0x178] sm:$0xff] %v903_v15 }
 0x144   :  { %v665_v16 = vpop.f32.mrb[32].mxu0  ;;  %v793_v17 = vpop.f32.mrb[32].mxu1 }
 0x145   :  { %v666_v18 = vadd.f32 %v1538_v13, %v665_v16  ;;  %v794_v19 = vadd.f32 %v1538_v13, %v793_v17  ;;  %v667_v20 = vpop.f32.mrb[33].mxu0  ;;  %v795_v21 = vpop.f32.mrb[33].mxu1 }
 0x146   :  { %v668_v22 = vpop.f32.mrb[34].mxu0  ;;  %v796_v23 = vpop.f32.mrb[34].mxu1 }
 0x147   :  { %v872_v24 = vmax.f32 %v666_v18, 0.0  ;;  %v904_v25 = vmax.f32 %v794_v19, 0.0  ;;  %v669_v26 = vadd.f32 %v1538_v13, %v668_v22  ;;  %v797_v27 = vadd.f32 %v1538_v13, %v796_v23  ;;  %v670_v28 = vpop.f32.mrb[35].mxu0  ;;  %v798_v29 = vpop.f32.mrb[35].mxu1 }
 0x149   :  { %936 = vst [vmem:[%s1799_s3 + $0x80] sm:$0xff] %v872_v24  ;;  %968 = vst [vmem:[%s1799_s3 + $0x180] sm:$0xff] %v904_v25  ;;  %v873_v30 = vmax.f32 %v669_v26, 0.0  ;;  %v905_v31 = vmax.f32 %v797_v27, 0.0 }
 0x14b   :  { %937 = vst [vmem:[%s1799_s3 + $0x88] sm:$0xff] %v873_v30  ;;  %969 = vst [vmem:[%s1799_s3 + $0x188] sm:$0xff] %v905_v31 }
 0x14c   :  { %v673_v32 = vpop.f32.mrb[36].mxu0  ;;  %v801_v33 = vpop.f32.mrb[36].mxu1 }
 0x14d   :  { %v674_v34 = vadd.f32 %v1538_v13, %v673_v32  ;;  %v802_v35 = vadd.f32 %v1538_v13, %v801_v33  ;;  %v675_v36 = vpop.f32.mrb[37].mxu0  ;;  %v803_v37 = vpop.f32.mrb[37].mxu1 }
 0x14e   :  { %v676_v38 = vpop.f32.mrb[38].mxu0  ;;  %v804_v39 = vpop.f32.mrb[38].mxu1 }
 0x14f   :  { %v874_v40 = vmax.f32 %v674_v34, 0.0  ;;  %v906_v41 = vmax.f32 %v802_v35, 0.0  ;;  %v677_v42 = vadd.f32 %v1538_v13, %v676_v38  ;;  %v805_v43 = vadd.f32 %v1538_v13, %v804_v39  ;;  %v678_v44 = vpop.f32.mrb[39].mxu0  ;;  %v806_v45 = vpop.f32.mrb[39].mxu1 }
 0x151   :  { %938 = vst [vmem:[%s1799_s3 + $0x90] sm:$0xff] %v874_v40  ;;  %970 = vst [vmem:[%s1799_s3 + $0x190] sm:$0xff] %v906_v41  ;;  %v875_v46 = vmax.f32 %v677_v42, 0.0  ;;  %v907_v47 = vmax.f32 %v805_v43, 0.0 }
 0x153   :  { %939 = vst [vmem:[%s1799_s3 + $0x98] sm:$0xff] %v875_v46  ;;  %971 = vst [vmem:[%s1799_s3 + $0x198] sm:$0xff] %v907_v47 }
 0x154   :  { %v681_v48 = vpop.f32.mrb[40].mxu0  ;;  %v809_v49 = vpop.f32.mrb[40].mxu1 }
 0x155   :  { %v682_v50 = vadd.f32 %v1538_v13, %v681_v48  ;;  %v810_v51 = vadd.f32 %v1538_v13, %v809_v49  ;;  %v683_v52 = vpop.f32.mrb[41].mxu0  ;;  %v811_v53 = vpop.f32.mrb[41].mxu1 }
 0x156   :  { %v684_v54 = vpop.f32.mrb[42].mxu0  ;;  %v812_v55 = vpop.f32.mrb[42].mxu1 }
 0x157   :  { %v876_v56 = vmax.f32 %v682_v50, 0.0  ;;  %v908_v57 = vmax.f32 %v810_v51, 0.0  ;;  %v685_v58 = vadd.f32 %v1538_v13, %v684_v54  ;;  %v813_v59 = vadd.f32 %v1538_v13, %v812_v55  ;;  %v686_v60 = vpop.f32.mrb[43].mxu0  ;;  %v814_v61 = vpop.f32.mrb[43].mxu1 }
 0x159   :  { %940 = vst [vmem:[%s1799_s3 + $0xa0] sm:$0xff] %v876_v56  ;;  %972 = vst [vmem:[%s1799_s3 + $0x1a0] sm:$0xff] %v908_v57  ;;  %v877_v62 = vmax.f32 %v685_v58, 0.0  ;;  %v909_v63 = vmax.f32 %v813_v59, 0.0 }
 0x15b   :  { %941 = vst [vmem:[%s1799_s3 + $0xa8] sm:$0xff] %v877_v62  ;;  %973 = vst [vmem:[%s1799_s3 + $0x1a8] sm:$0xff] %v909_v63 }
 0x15c   :  { %v689_v0 = vpop.f32.mrb[44].mxu0  ;;  %v817_v1 = vpop.f32.mrb[44].mxu1 }
 0x15d   :  { %v690_v2 = vadd.f32 %v1538_v13, %v689_v0  ;;  %v818_v3 = vadd.f32 %v1538_v13, %v817_v1  ;;  %v691_v4 = vpop.f32.mrb[45].mxu0  ;;  %v819_v5 = vpop.f32.mrb[45].mxu1 }
 0x15e   :  { %v692_v6 = vpop.f32.mrb[46].mxu0  ;;  %v820_v7 = vpop.f32.mrb[46].mxu1 }
 0x15f   :  { %v878_v8 = vmax.f32 %v690_v2, 0.0  ;;  %v910_v9 = vmax.f32 %v818_v3, 0.0  ;;  %v693_v10 = vadd.f32 %v1538_v13, %v692_v6  ;;  %v821_v11 = vadd.f32 %v1538_v13, %v820_v7  ;;  %v694_v12 = vpop.f32.mrb[47].mxu0  ;;  %v822_v14 = vpop.f32.mrb[47].mxu1 }
 0x161   :  { %942 = vst [vmem:[%s1799_s3 + $0xb0] sm:$0xff] %v878_v8  ;;  %974 = vst [vmem:[%s1799_s3 + $0x1b0] sm:$0xff] %v910_v9  ;;  %v879_v15 = vmax.f32 %v693_v10, 0.0  ;;  %v911_v16 = vmax.f32 %v821_v11, 0.0 }
 0x163   :  { %943 = vst [vmem:[%s1799_s3 + $0xb8] sm:$0xff] %v879_v15  ;;  %975 = vst [vmem:[%s1799_s3 + $0x1b8] sm:$0xff] %v911_v16 }
 0x164   :  { %v697_v17 = vpop.f32.mrb[48].mxu0  ;;  %v825_v18 = vpop.f32.mrb[48].mxu1 }
 0x165   :  { %v698_v19 = vadd.f32 %v1538_v13, %v697_v17  ;;  %v826_v20 = vadd.f32 %v1538_v13, %v825_v18  ;;  %v699_v21 = vpop.f32.mrb[49].mxu0  ;;  %v827_v22 = vpop.f32.mrb[49].mxu1 }
 0x166   :  { %v700_v23 = vpop.f32.mrb[50].mxu0  ;;  %v828_v24 = vpop.f32.mrb[50].mxu1 }
 0x167   :  { %v880_v25 = vmax.f32 %v698_v19, 0.0  ;;  %v912_v26 = vmax.f32 %v826_v20, 0.0  ;;  %v701_v27 = vadd.f32 %v1538_v13, %v700_v23  ;;  %v829_v28 = vadd.f32 %v1538_v13, %v828_v24  ;;  %v702_v29 = vpop.f32.mrb[51].mxu0  ;;  %v830_v30 = vpop.f32.mrb[51].mxu1 }
 0x169   :  { %944 = vst [vmem:[%s1799_s3 + $0xc0] sm:$0xff] %v880_v25  ;;  %976 = vst [vmem:[%s1799_s3 + $0x1c0] sm:$0xff] %v912_v26  ;;  %v881_v31 = vmax.f32 %v701_v27, 0.0  ;;  %v913_v32 = vmax.f32 %v829_v28, 0.0 }
 0x16b   :  { %945 = vst [vmem:[%s1799_s3 + $0xc8] sm:$0xff] %v881_v31  ;;  %977 = vst [vmem:[%s1799_s3 + $0x1c8] sm:$0xff] %v913_v32 }
 0x16c   :  { %v705_v33 = vpop.f32.mrb[52].mxu0  ;;  %v833_v34 = vpop.f32.mrb[52].mxu1 }
 0x16d   :  { %v706_v35 = vadd.f32 %v1538_v13, %v705_v33  ;;  %v834_v36 = vadd.f32 %v1538_v13, %v833_v34  ;;  %v707_v37 = vpop.f32.mrb[53].mxu0  ;;  %v835_v38 = vpop.f32.mrb[53].mxu1 }
 0x16e   :  { %v708_v39 = vpop.f32.mrb[54].mxu0  ;;  %v836_v40 = vpop.f32.mrb[54].mxu1 }
 0x16f   :  { %v882_v41 = vmax.f32 %v706_v35, 0.0  ;;  %v914_v42 = vmax.f32 %v834_v36, 0.0  ;;  %v709_v43 = vadd.f32 %v1538_v13, %v708_v39  ;;  %v837_v44 = vadd.f32 %v1538_v13, %v836_v40  ;;  %v710_v45 = vpop.f32.mrb[55].mxu0  ;;  %v838_v46 = vpop.f32.mrb[55].mxu1 }
 0x171   :  { %946 = vst [vmem:[%s1799_s3 + $0xd0] sm:$0xff] %v882_v41  ;;  %978 = vst [vmem:[%s1799_s3 + $0x1d0] sm:$0xff] %v914_v42  ;;  %v883_v47 = vmax.f32 %v709_v43, 0.0  ;;  %v915_v48 = vmax.f32 %v837_v44, 0.0 }
 0x173   :  { %947 = vst [vmem:[%s1799_s3 + $0xd8] sm:$0xff] %v883_v47  ;;  %979 = vst [vmem:[%s1799_s3 + $0x1d8] sm:$0xff] %v915_v48 }
 0x174   :  { %v713_v49 = vpop.f32.mrb[56].mxu0  ;;  %v841_v50 = vpop.f32.mrb[56].mxu1 }
 0x175   :  { %v714_v51 = vadd.f32 %v1538_v13, %v713_v49  ;;  %v842_v52 = vadd.f32 %v1538_v13, %v841_v50  ;;  %v715_v53 = vpop.f32.mrb[57].mxu0  ;;  %v843_v54 = vpop.f32.mrb[57].mxu1 }
 0x176   :  { %v716_v55 = vpop.f32.mrb[58].mxu0  ;;  %v844_v56 = vpop.f32.mrb[58].mxu1 }
 0x177   :  { %v884_v57 = vmax.f32 %v714_v51, 0.0  ;;  %v916_v58 = vmax.f32 %v842_v52, 0.0  ;;  %v717_v59 = vadd.f32 %v1538_v13, %v716_v55  ;;  %v845_v60 = vadd.f32 %v1538_v13, %v844_v56  ;;  %v718_v61 = vpop.f32.mrb[59].mxu0  ;;  %v846_v62 = vpop.f32.mrb[59].mxu1 }
 0x179   :  { %948 = vst [vmem:[%s1799_s3 + $0xe0] sm:$0xff] %v884_v57  ;;  %980 = vst [vmem:[%s1799_s3 + $0x1e0] sm:$0xff] %v916_v58  ;;  %v885_v63 = vmax.f32 %v717_v59, 0.0  ;;  %v917_v0 = vmax.f32 %v845_v60, 0.0 }
 0x17b   :  { %949 = vst [vmem:[%s1799_s3 + $0xe8] sm:$0xff] %v885_v63  ;;  %981 = vst [vmem:[%s1799_s3 + $0x1e8] sm:$0xff] %v917_v0 }
 0x17c   :  { %v721_v1 = vpop.f32.mrb[60].mxu0  ;;  %v849_v2 = vpop.f32.mrb[60].mxu1 }
 0x17d   :  { %v722_v3 = vadd.f32 %v1538_v13, %v721_v1  ;;  %v850_v4 = vadd.f32 %v1538_v13, %v849_v2  ;;  %v723_v5 = vpop.f32.mrb[61].mxu0  ;;  %v851_v6 = vpop.f32.mrb[61].mxu1 }
 0x17e   :  { %v724_v7 = vpop.f32.mrb[62].mxu0  ;;  %v852_v8 = vpop.f32.mrb[62].mxu1 }
 0x17f   :  { %v886_v9 = vmax.f32 %v722_v3, 0.0  ;;  %v918_v10 = vmax.f32 %v850_v4, 0.0  ;;  %v725_v11 = vadd.f32 %v1538_v13, %v724_v7  ;;  %v853_v12 = vadd.f32 %v1538_v13, %v852_v8  ;;  %v726_v14 = vpop.f32.mrb[63].mxu0  ;;  %v854_v15 = vpop.f32.mrb[63].mxu1 }
 0x181   :  { %950 = vst [vmem:[%s1799_s3 + $0xf0] sm:$0xff] %v886_v9  ;;  %982 = vst [vmem:[%s1799_s3 + $0x1f0] sm:$0xff] %v918_v10  ;;  %v887_v16 = vmax.f32 %v725_v11, 0.0  ;;  %v919_v17 = vmax.f32 %v853_v12, 0.0 }
 0x183   :  { %951 = vst [vmem:[%s1799_s3 + $0xf8] sm:$0xff] %v887_v16  ;;  %983 = vst [vmem:[%s1799_s3 + $0x1f8] sm:$0xff] %v919_v17 }

// kernel: mixed5b_forward.8
= control target key start
LH: loop header
LB: loop body
LE: loop exit
PB: predicated region body
PF: predicated region fallthrough
CT: control target
= control target key end

     0   :  { %v5354_v0 = vmov 0   ;;  %s7223_s1 = inlined_call_operand.vmem [shape: bf16[1152,128], index: 1, kind: input, shape index: {}]   ;;  %s7224_s0 = inlined_call_operand.vmem [shape: bf16[512,1152], index: 0, kind: input, shape index: {}]   ;;  %s7225_s2 = inlined_call_operand.vmem [shape: f32[1,128], index: 2, kind: input, shape index: {}]   ;;  %s7226_s3 = inlined_call_operand.vmem [shape: f32[512,128], index: 3, kind: output, shape index: {}]  }
   0x1   :  { %2390 = vmatprep.subr.bf16.mxu1 %v5354_v0  ;;  %2679 = vmatprep.subr.bf16.mxu0 %v5354_v0  ;;  %v4865_v1 = vld [vmem:[%s7223_s1] sm:$0xff]   ;;  %v4867_v3 = vld [vmem:[%s7223_s1 + $0x8] sm:$0xff]   ;;  %v4869_v5 = vld [vmem:[%s7223_s1 + $0x10] sm:$0xff]  }
   0x2   :  { %v5383_v2 = vld [vmem:[%s7223_s1 + $0x80] sm:$0xff]   ;;  %2391 = vmatpush1.bf16.msra.mxu1 %v4865_v1  ;;  %v5393_v4 = vld [vmem:[%s7223_s1 + $0x88] sm:$0xff]   ;;  %v5404_v6 = vld [vmem:[%s7223_s1 + $0x90] sm:$0xff]  }
   0x3   :  { %2680 = vmatpush1.bf16.msra.mxu0 %v5383_v2  ;;  %2392 = vmatprep.subr.bf16.mxu1 %v5354_v0  ;;  %v4871_v7 = vld [vmem:[%s7223_s1 + $0x18] sm:$0xff]   ;;  %v4873_v9 = vld [vmem:[%s7223_s1 + $0x20] sm:$0xff]   ;;  %v4875_v11 = vld [vmem:[%s7223_s1 + $0x28] sm:$0xff]  }
   0x4   :  { %2681 = vmatprep.subr.bf16.mxu0 %v5354_v0  ;;  %v5415_v8 = vld [vmem:[%s7223_s1 + $0x98] sm:$0xff]   ;;  %v5426_v10 = vld [vmem:[%s7223_s1 + $0xa0] sm:$0xff]   ;;  %v5437_v12 = vld [vmem:[%s7223_s1 + $0xa8] sm:$0xff]  }
   0x5   :  { %v4877_v13 = vld [vmem:[%s7223_s1 + $0x30] sm:$0xff]   ;;  %v4879_v15 = vld [vmem:[%s7223_s1 + $0x38] sm:$0xff]   ;;  %v4881_v17 = vld [vmem:[%s7223_s1 + $0x40] sm:$0xff]  }
   0x6   :  { %2393 = vmatpush1.bf16.msra.mxu1 %v4867_v3  ;;  %v5448_v14 = vld [vmem:[%s7223_s1 + $0xb0] sm:$0xff]   ;;  %v5459_v16 = vld [vmem:[%s7223_s1 + $0xb8] sm:$0xff]   ;;  %v5470_v18 = vld [vmem:[%s7223_s1 + $0xc0] sm:$0xff]  }
   0x7   :  { %2682 = vmatpush1.bf16.msra.mxu0 %v5393_v4  ;;  %2394 = vmatprep.subr.bf16.mxu1 %v5354_v0  ;;  %v4899_v19 = vld [vmem:[%s7224_s0 + $0x4] ss:$36 sps:$4 sm:$0xff]   ;;  %v4902_v21 = vld [vmem:[%s7224_s0 + $0xc] ss:$36 sps:$4 sm:$0xff]   ;;  %v4887_v25 = vld [vmem:[%s7223_s1 + $0x58] sm:$0xff]  }
   0x8   :  { %2683 = vmatprep.subr.bf16.mxu0 %v5354_v0  ;;  %v4883_v20 = vld [vmem:[%s7223_s1 + $0x48] sm:$0xff]   ;;  %2422 = vmatprep.mubr.bf16.mxu1 %v4899_v19  ;;  %v4885_v23 = vld [vmem:[%s7223_s1 + $0x50] sm:$0xff]   ;;  %v5509_v26 = vld [vmem:[%s7223_s1 + $0xd8] sm:$0xff]  }
   0x9   :  { %v5487_v22 = vld [vmem:[%s7223_s1 + $0xc8] sm:$0xff]   ;;  %2711 = vmatprep.mubr.bf16.mxu0 %v4902_v21  ;;  %v5498_v24 = vld [vmem:[%s7223_s1 + $0xd0] sm:$0xff]   ;;  %v4889_v27 = vld [vmem:[%s7223_s1 + $0x60] sm:$0xff]  }
   0xa   :  { %2395 = vmatpush1.bf16.msra.mxu1 %v4869_v5  ;;  %v5520_v28 = vld [vmem:[%s7223_s1 + $0xe0] sm:$0xff]   ;;  %v4891_v29 = vld [vmem:[%s7223_s1 + $0x68] sm:$0xff]   ;;  %v4893_v31 = vld [vmem:[%s7223_s1 + $0x70] sm:$0xff]  }
   0xb   :  { %2684 = vmatpush1.bf16.msra.mxu0 %v5404_v6  ;;  %2396 = vmatprep.subr.bf16.mxu1 %v5354_v0  ;;  %v5531_v30 = vld [vmem:[%s7223_s1 + $0xe8] sm:$0xff]   ;;  %v5542_v32 = vld [vmem:[%s7223_s1 + $0xf0] sm:$0xff]   ;;  %v4895_v33 = vld [vmem:[%s7223_s1 + $0x78] sm:$0xff]  }
   0xc   :  { %2685 = vmatprep.subr.bf16.mxu0 %v5354_v0  ;;  %v5553_v34 = vld [vmem:[%s7223_s1 + $0xf8] sm:$0xff]   ;;  %v4897_v35 = vld [vmem:[%s7224_s0] ss:$36 sps:$4 sm:$0xff]   ;;  %v4900_v36 = vld [vmem:[%s7224_s0 + $0x8] ss:$36 sps:$4 sm:$0xff]  }
   0xd   :  { %v4903_v37 = vld [vmem:[%s7223_s1 + $0x100] sm:$0xff]   ;;  %v4905_v38 = vld [vmem:[%s7224_s0 + $0x4c] ss:$36 sps:$4 sm:$0xff]   ;;  %v4907_v39 = vld [vmem:[%s7224_s0 + $0x54] ss:$36 sps:$4 sm:$0xff]  }
   0xe   :  { %2397 = vmatpush1.bf16.msra.mxu1 %v4871_v7  ;;  %v4904_v40 = vld [vmem:[%s7223_s1 + $0x108] sm:$0xff]   ;;  %v4910_v42 = vld [vmem:[%s7224_s0 + $0x50] ss:$36 sps:$4 sm:$0xff]   ;;  %v4915_v45 = vld [vmem:[%s7224_s0 + $0x9c] ss:$36 sps:$4 sm:$0xff]  }
   0xf   :  { %2686 = vmatpush1.bf16.msra.mxu0 %v5415_v8  ;;  %2398 = vmatprep.subr.bf16.mxu1 %v5354_v0  ;;  %v4909_v41 = vld [vmem:[%s7224_s0 + $0x48] ss:$36 sps:$4 sm:$0xff]   ;;  %v4913_v43 = vld [vmem:[%s7224_s0 + $0x94] ss:$36 sps:$4 sm:$0xff]   ;;  %v4919_v49 = vld [vmem:[%s7223_s1 + $0x120] sm:$0xff]  }
  0x10   :  { %2687 = vmatprep.subr.bf16.mxu0 %v5354_v0  ;;  %v4911_v44 = vld [vmem:[%s7223_s1 + $0x110] sm:$0xff]   ;;  %v4912_v46 = vld [vmem:[%s7223_s1 + $0x118] sm:$0xff]   ;;  %v4923_v51 = vld [vmem:[%s7224_s0 + $0xe4] ss:$36 sps:$4 sm:$0xff]  }
  0x11   :  { %v4917_v47 = vld [vmem:[%s7224_s0 + $0x90] ss:$36 sps:$4 sm:$0xff]   ;;  %v4918_v48 = vld [vmem:[%s7224_s0 + $0x98] ss:$36 sps:$4 sm:$0xff]   ;;  %v4920_v52 = vld [vmem:[%s7223_s1 + $0x128] sm:$0xff]  }
  0x12   :  { %2399 = vmatpush1.bf16.msra.mxu1 %v4873_v9  ;;  %v4921_v50 = vld [vmem:[%s7224_s0 + $0xdc] ss:$36 sps:$4 sm:$0xff]   ;;  %v4929_v55 = vld [vmem:[%s7224_s0 + $0x124] ss:$36 sps:$4 sm:$0xff]   ;;  %v4927_v56 = vld [vmem:[%s7223_s1 + $0x130] sm:$0xff]  }
  0x13   :  { %2688 = vmatpush1.bf16.msra.mxu0 %v5426_v10  ;;  %2400 = vmatprep.subr.bf16.mxu1 %v5354_v0  ;;  %v4925_v53 = vld [vmem:[%s7224_s0 + $0xd8] ss:$36 sps:$4 sm:$0xff]   ;;  %v4926_v54 = vld [vmem:[%s7224_s0 + $0xe0] ss:$36 sps:$4 sm:$0xff]   ;;  %v4931_v57 = vld [vmem:[%s7224_s0 + $0x12c] ss:$36 sps:$4 sm:$0xff]  }
  0x14   :  { %2689 = vmatprep.subr.bf16.mxu0 %v5354_v0  ;;  %v4928_v58 = vld [vmem:[%s7223_s1 + $0x138] sm:$0xff]   ;;  %v4933_v59 = vld [vmem:[%s7224_s0 + $0x120] ss:$36 sps:$4 sm:$0xff]   ;;  %v4934_v60 = vld [vmem:[%s7224_s0 + $0x128] ss:$36 sps:$4 sm:$0xff]  }
  0x15   :  { %v4935_v61 = vld [vmem:[%s7223_s1 + $0x140] sm:$0xff]   ;;  %v4937_v62 = vld [vmem:[%s7224_s0 + $0x16c] ss:$36 sps:$4 sm:$0xff]   ;;  %v4939_v63 = vld [vmem:[%s7224_s0 + $0x174] ss:$36 sps:$4 sm:$0xff]  }
  0x16   :  { %2401 = vmatpush1.bf16.msra.mxu1 %v4875_v11  ;;  %v4936_v1 = vld [vmem:[%s7223_s1 + $0x148] sm:$0xff]   ;;  %v4942_v3 = vld [vmem:[%s7224_s0 + $0x170] ss:$36 sps:$4 sm:$0xff]   ;;  %v4944_v7 = vld [vmem:[%s7223_s1 + $0x158] sm:$0xff]  }
  0x17   :  { %2690 = vmatpush1.bf16.msra.mxu0 %v5437_v12  ;;  %2402 = vmatprep.subr.bf16.mxu1 %v5354_v0  ;;  %v4943_v5 = vld [vmem:[%s7223_s1 + $0x150] sm:$0xff]   ;;  %v4950_v9 = vld [vmem:[%s7224_s0 + $0x1b8] ss:$36 sps:$4 sm:$0xff]  }
  0x18   :  { %2691 = vmatprep.subr.bf16.mxu0 %v5354_v0  ;;  %v4953_v11 = vld [vmem:[%s7224_s0 + $0x1fc] ss:$36 sps:$4 sm:$0xff]   ;;  %v4963_v21 = vld [vmem:[%s7224_s0 + $0x10] ss:$36 sps:$4 sm:$0xff]  }
  0x19   :  { %v4960_v19 = vld [vmem:[%s7223_s1 + $0x178] sm:$0xff]  }
  0x1a   :  { %2403 = vmatpush1.bf16.msra.mxu1 %v4877_v13  ;;  %v4952_v13 = vld [vmem:[%s7223_s1 + $0x168] sm:$0xff]  }
  0x1b   :  { %2692 = vmatpush1.bf16.msra.mxu0 %v5448_v14  ;;  %2404 = vmatprep.subr.bf16.mxu1 %v5354_v0 }
  0x1c   :  { %2693 = vmatprep.subr.bf16.mxu0 %v5354_v0 }
  0x1e   :  { %2405 = vmatpush1.bf16.msra.mxu1 %v4879_v15  ;;  %v4958_v15 = vld [vmem:[%s7224_s0 + $0x200] ss:$36 sps:$4 sm:$0xff]  }
  0x1f   :  { %2694 = vmatpush1.bf16.msra.mxu0 %v5459_v16  ;;  %2406 = vmatprep.subr.bf16.mxu1 %v5354_v0 }
  0x20   :  { %2695 = vmatprep.subr.bf16.mxu0 %v5354_v0 }
  0x22   :  { %2407 = vmatpush1.bf16.msra.mxu1 %v4881_v17  ;;  %v4959_v17 = vld [vmem:[%s7223_s1 + $0x170] sm:$0xff]  }
  0x23   :  { %2696 = vmatpush1.bf16.msra.mxu0 %v5470_v18  ;;  %2408 = vmatprep.subr.bf16.mxu1 %v5354_v0 }
  0x24   :  { %2697 = vmatprep.subr.bf16.mxu0 %v5354_v0 }
  0x26   :  { %2409 = vmatpush1.bf16.msra.mxu1 %v4883_v20  ;;  %v4966_v20 = vld [vmem:[%s7224_s0 + $0x240] ss:$36 sps:$4 sm:$0xff]  }
  0x27   :  { %2698 = vmatpush1.bf16.msra.mxu0 %v5487_v22  ;;  %2410 = vmatprep.subr.bf16.mxu1 %v5354_v0 }
  0x28   :  { %2699 = vmatprep.subr.bf16.mxu0 %v5354_v0 }
  0x2a   :  { %2411 = vmatpush1.bf16.msra.mxu1 %v4885_v23  ;;  %v4967_v23 = vld [vmem:[%s7223_s1 + $0x180] sm:$0xff]  }
  0x2b   :  { %2700 = vmatpush1.bf16.msra.mxu0 %v5498_v24  ;;  %2412 = vmatprep.subr.bf16.mxu1 %v5354_v0 }
  0x2c   :  { %2701 = vmatprep.subr.bf16.mxu0 %v5354_v0 }
  0x2e   :  { %2413 = vmatpush1.bf16.msra.mxu1 %v4887_v25  ;;  %v4972_v25 = vld [vmem:[%s7224_s0 + $0x288] ss:$36 sps:$4 sm:$0xff]  }
  0x2f   :  { %2702 = vmatpush1.bf16.msra.mxu0 %v5509_v26  ;;  %2414 = vmatprep.subr.bf16.mxu1 %v5354_v0 }
  0x30   :  { %2703 = vmatprep.subr.bf16.mxu0 %v5354_v0 }
  0x32   :  { %2415 = vmatpush1.bf16.msra.mxu1 %v4889_v27  ;;  %v4973_v27 = vld [vmem:[%s7224_s0 + $0x58] ss:$36 sps:$4 sm:$0xff]  }
  0x33   :  { %2704 = vmatpush1.bf16.msra.mxu0 %v5520_v28  ;;  %2416 = vmatprep.subr.bf16.mxu1 %v5354_v0 }
  0x34   :  { %2705 = vmatprep.subr.bf16.mxu0 %v5354_v0 }
  0x36   :  { %2417 = vmatpush1.bf16.msra.mxu1 %v4891_v29  ;;  %v4976_v29 = vld [vmem:[%s7224_s0 + $0xa4] ss:$36 sps:$4 sm:$0xff]  }
  0x37   :  { %2706 = vmatpush1.bf16.msra.mxu0 %v5531_v30  ;;  %2418 = vmatprep.subr.bf16.mxu1 %v5354_v0 }
  0x38   :  { %2707 = vmatprep.subr.bf16.mxu0 %v5354_v0 }
  0x3a   :  { %2419 = vmatpush1.bf16.msra.mxu1 %v4893_v31  ;;  %v4978_v31 = vld [vmem:[%s7224_s0 + $0x2d0] ss:$36 sps:$4 sm:$0xff]  }
  0x3b   :  { %2708 = vmatpush1.bf16.msra.mxu0 %v5542_v32  ;;  %2420 = vmatprep.subr.bf16.mxu1 %v5354_v0 }
  0x3c   :  { %2709 = vmatprep.subr.bf16.mxu0 %v5354_v0 }
  0x3e   :  { %2421 = vmatpush1.bf16.msra.mxu1 %v4895_v33  ;;  %v4979_v33 = vld [vmem:[%s7224_s0 + $0xa0] ss:$36 sps:$4 sm:$0xff]  }
  0x3f   :  { %2710 = vmatpush1.bf16.msra.mxu0 %v5553_v34  ;;  %4448 = vmatprep.subr.bf16.mxu1 %v5354_v0 }
  0x40   :  { %2968 = vmatprep.subr.bf16.mxu0 %v5354_v0 }
  0x41   :  { %2423 = vmatmul.mubr.bf16.vlgmr.msra.gmra.mrb[0].mxu1 %v4897_v35  ;;  %v4983_v35 = vld [vmem:[%s7224_s0 + $0xec] ss:$36 sps:$4 sm:$0xff]  }
  0x42   :  { %2712 = vmatmul.mubr.bf16.vlgmr.msra.gmra.mrb[0].mxu0 %v4900_v36  ;;  %4464 = vmatpush1.bf16.msra.mxu1 %v5383_v2  ;;  %v4941_v2 = vld [vmem:[%s7224_s0 + $0x168] ss:$36 sps:$4 sm:$0xff]   ;;  %v5019_v36 = vld [vmem:[%s7223_s1 + $0x1a0] sm:$0xff]  }
  0x43   :  { %2969 = vmatpush1.bf16.msra.mxu0 %v4903_v37  ;;  %2430 = vmatprep.mubr.bf16.mxu1 %v4905_v38  ;;  %v4985_v37 = vld [vmem:[%s7224_s0 + $0x318] ss:$36 sps:$4 sm:$0xff]   ;;  %v5032_v38 = vld [vmem:[%s7223_s1 + $0x1a8] sm:$0xff]  }
  0x44   :  { %2970 = vmatprep.subr.bf16.mxu0 %v5354_v0  ;;  %2719 = vmatprep.mubr.bf16.mxu0 %v4907_v39  ;;  %v4986_v39 = vld [vmem:[%s7224_s0 + $0xe8] ss:$36 sps:$4 sm:$0xff]  }
  0x45   :  { %4449 = vmatprep.subr.bf16.mxu1 %v5354_v0 }
  0x46   :  { %4465 = vmatpush1.bf16.msra.mxu1 %v5393_v4  ;;  %v4945_v4 = vld [vmem:[%s7224_s0 + $0x1b4] ss:$36 sps:$4 sm:$0xff]  }
  0x47   :  { %2971 = vmatpush1.bf16.msra.mxu0 %v4904_v40  ;;  %4450 = vmatprep.subr.bf16.mxu1 %v5354_v0  ;;  %v4987_v40 = vld [vmem:[%s7224_s0 + $0x364] ss:$36 sps:$4 sm:$0xff]  }
  0x48   :  { %2972 = vmatprep.subr.bf16.mxu0 %v5354_v0 }
  0x49   :  { %2431 = vmatmul.mubr.bf16.gmra.mrb[4].mxu1 %v4909_v41  ;;  %v4989_v41 = vld [vmem:[%s7224_s0 + $0x134] ss:$36 sps:$4 sm:$0xff]  }
  0x4a   :  { %2720 = vmatmul.mubr.bf16.gmra.mrb[4].mxu0 %v4910_v42  ;;  %2438 = vmatprep.mubr.bf16.mxu1 %v4913_v43  ;;  %v5045_v42 = vld [vmem:[%s7223_s1 + $0x1b0] sm:$0xff]   ;;  %v5058_v43 = vld [vmem:[%s7223_s1 + $0x1b8] sm:$0xff]  }
  0x4b   :  { %2973 = vmatpush1.bf16.msra.mxu0 %v4911_v44  ;;  %2727 = vmatprep.mubr.bf16.mxu0 %v4915_v45  ;;  %v4991_v44 = vld [vmem:[%s7224_s0 + $0x360] ss:$36 sps:$4 sm:$0xff]   ;;  %v4992_v45 = vld [vmem:[%s7224_s0 + $0x130] ss:$36 sps:$4 sm:$0xff]  }
  0x4c   :  { %2974 = vmatprep.subr.bf16.mxu0 %v5354_v0  ;;  %4466 = vmatpush1.bf16.msra.mxu1 %v5404_v6  ;;  %v4947_v6 = vld [vmem:[%s7224_s0 + $0x1bc] ss:$36 sps:$4 sm:$0xff]  }
  0x4d   :  { %4451 = vmatprep.subr.bf16.mxu1 %v5354_v0 }
  0x4f   :  { %2975 = vmatpush1.bf16.msra.mxu0 %v4912_v46  ;;  %v4994_v46 = vld [vmem:[%s7224_s0 + $0x3ac] ss:$36 sps:$4 sm:$0xff]  }
  0x50   :  { %2976 = vmatprep.subr.bf16.mxu0 %v5354_v0  ;;  %4467 = vmatpush1.bf16.msra.mxu1 %v5415_v8  ;;  %v4949_v8 = vld [vmem:[%s7224_s0 + $0x1b0] ss:$36 sps:$4 sm:$0xff]  }
  0x51   :  { %2439 = vmatmul.mubr.bf16.gmra.mrb[8].mxu1 %v4917_v47  ;;  %4452 = vmatprep.subr.bf16.mxu1 %v5354_v0  ;;  %v4996_v47 = vld [vmem:[%s7224_s0 + $0x17c] ss:$36 sps:$4 sm:$0xff]  }
  0x52   :  { %2728 = vmatmul.mubr.bf16.gmra.mrb[8].mxu0 %v4918_v48  ;;  %2446 = vmatprep.mubr.bf16.mxu1 %v4921_v50  ;;  %v5071_v48 = vld [vmem:[%s7223_s1 + $0x1c0] sm:$0xff]   ;;  %v4998_v50 = vld [vmem:[%s7224_s0 + $0x3a8] ss:$36 sps:$4 sm:$0xff]  }
  0x53   :  { %2977 = vmatpush1.bf16.msra.mxu0 %v4919_v49  ;;  %2735 = vmatprep.mubr.bf16.mxu0 %v4923_v51  ;;  %v5084_v49 = vld [vmem:[%s7223_s1 + $0x1c8] sm:$0xff]   ;;  %v4999_v51 = vld [vmem:[%s7224_s0 + $0x178] ss:$36 sps:$4 sm:$0xff]  }
  0x54   :  { %2978 = vmatprep.subr.bf16.mxu0 %v5354_v0  ;;  %4468 = vmatpush1.bf16.msra.mxu1 %v5426_v10  ;;  %v4951_v10 = vld [vmem:[%s7223_s1 + $0x160] sm:$0xff]  }
  0x55   :  { %4453 = vmatprep.subr.bf16.mxu1 %v5354_v0 }
  0x57   :  { %2979 = vmatpush1.bf16.msra.mxu0 %v4920_v52  ;;  %v5000_v52 = vld [vmem:[%s7224_s0 + $0x3f4] ss:$36 sps:$4 sm:$0xff]  }
  0x58   :  { %2980 = vmatprep.subr.bf16.mxu0 %v5354_v0  ;;  %4469 = vmatpush1.bf16.msra.mxu1 %v5437_v12  ;;  %v4955_v12 = vld [vmem:[%s7224_s0 + $0x204] ss:$36 sps:$4 sm:$0xff]  }
  0x59   :  { %2447 = vmatmul.mubr.bf16.gmra.mrb[12].mxu1 %v4925_v53  ;;  %4454 = vmatprep.subr.bf16.mxu1 %v5354_v0  ;;  %v5002_v53 = vld [vmem:[%s7224_s0 + $0x1c4] ss:$36 sps:$4 sm:$0xff]  }
  0x5a   :  { %2736 = vmatmul.mubr.bf16.gmra.mrb[12].mxu0 %v4926_v54  ;;  %2454 = vmatprep.mubr.bf16.mxu1 %v4929_v55  ;;  %v5097_v54 = vld [vmem:[%s7223_s1 + $0x1d0] sm:$0xff]  }
  0x5b   :  { %2981 = vmatpush1.bf16.msra.mxu0 %v4927_v56  ;;  %2743 = vmatprep.mubr.bf16.mxu0 %v4931_v57  ;;  %v5004_v55 = vld [vmem:[%s7224_s0 + $0x3f0] ss:$36 sps:$4 sm:$0xff]   ;;  %v5005_v56 = vld [vmem:[%s7224_s0 + $0x1c0] ss:$36 sps:$4 sm:$0xff]  }
  0x5c   :  { %2982 = vmatprep.subr.bf16.mxu0 %v5354_v0  ;;  %4470 = vmatpush1.bf16.msra.mxu1 %v5448_v14  ;;  %v4957_v14 = vld [vmem:[%s7224_s0 + $0x1f8] ss:$36 sps:$4 sm:$0xff]  }
  0x5d   :  { %4455 = vmatprep.subr.bf16.mxu1 %v5354_v0  ;;  %v5007_v57 = vld [vmem:[%s7224_s0 + $0x43c] ss:$36 sps:$4 sm:$0xff]  }
  0x5f   :  { %2983 = vmatpush1.bf16.msra.mxu0 %v4928_v58  ;;  %v5009_v58 = vld [vmem:[%s7224_s0 + $0x20c] ss:$36 sps:$4 sm:$0xff]  }
  0x60   :  { %2984 = vmatprep.subr.bf16.mxu0 %v5354_v0  ;;  %4471 = vmatpush1.bf16.msra.mxu1 %v5459_v16  ;;  %v4961_v16 = vld [vmem:[%s7224_s0 + $0x244] ss:$36 sps:$4 sm:$0xff]  }
  0x61   :  { %2455 = vmatmul.mubr.bf16.gmra.mrb[16].mxu1 %v4933_v59  ;;  %4456 = vmatprep.subr.bf16.mxu1 %v5354_v0  ;;  %v5110_v59 = vld [vmem:[%s7223_s1 + $0x1d8] sm:$0xff]  }
  0x62   :  { %2744 = vmatmul.mubr.bf16.gmra.mrb[16].mxu0 %v4934_v60  ;;  %2462 = vmatprep.mubr.bf16.mxu1 %v4937_v62  ;;  %v5011_v60 = vld [vmem:[%s7224_s0 + $0x438] ss:$36 sps:$4 sm:$0xff]   ;;  %v5013_v62 = vld [vmem:[%s7224_s0 + $0x484] ss:$36 sps:$4 sm:$0xff]  }
  0x63   :  { %2985 = vmatpush1.bf16.msra.mxu0 %v4935_v61  ;;  %2751 = vmatprep.mubr.bf16.mxu0 %v4939_v63  ;;  %v5012_v61 = vld [vmem:[%s7224_s0 + $0x208] ss:$36 sps:$4 sm:$0xff]   ;;  %v5015_v63 = vld [vmem:[%s7224_s0 + $0x254] ss:$36 sps:$4 sm:$0xff]  }
  0x64   :  { %2986 = vmatprep.subr.bf16.mxu0 %v5354_v0  ;;  %4472 = vmatpush1.bf16.msra.mxu1 %v5470_v18  ;;  %v4965_v18 = vld [vmem:[%s7224_s0 + $0x14] ss:$36 sps:$4 sm:$0xff]  }
  0x65   :  { %4457 = vmatprep.subr.bf16.mxu1 %v5354_v0 }
  0x67   :  { %2987 = vmatpush1.bf16.msra.mxu0 %v4936_v1  ;;  %v5017_v1 = vld [vmem:[%s7224_s0 + $0x480] ss:$36 sps:$4 sm:$0xff]  }
  0x68   :  { %2988 = vmatprep.subr.bf16.mxu0 %v5354_v0  ;;  %4473 = vmatpush1.bf16.msra.mxu1 %v5487_v22  ;;  %v4968_v22 = vld [vmem:[%s7224_s0 + $0x28c] ss:$36 sps:$4 sm:$0xff]  }
  0x69   :  { %2463 = vmatmul.mubr.bf16.gmra.mrb[20].mxu1 %v4941_v2  ;;  %4458 = vmatprep.subr.bf16.mxu1 %v5354_v0  ;;  %v5018_v2 = vld [vmem:[%s7224_s0 + $0x250] ss:$36 sps:$4 sm:$0xff]  }
  0x6a   :  { %2752 = vmatmul.mubr.bf16.gmra.mrb[20].mxu0 %v4942_v3  ;;  %2470 = vmatprep.mubr.bf16.mxu1 %v4945_v4  ;;  %v5020_v3 = vld [vmem:[%s7224_s0 + $0x4cc] ss:$36 sps:$4 sm:$0xff]   ;;  %v5022_v4 = vld [vmem:[%s7224_s0 + $0x29c] ss:$36 sps:$4 sm:$0xff]  }
  0x6b   :  { %2989 = vmatpush1.bf16.msra.mxu0 %v4943_v5  ;;  %2759 = vmatprep.mubr.bf16.mxu0 %v4947_v6  ;;  %v5123_v5 = vld [vmem:[%s7223_s1 + $0x1e0] sm:$0xff]  }
  0x6c   :  { %2990 = vmatprep.subr.bf16.mxu0 %v5354_v0  ;;  %4474 = vmatpush1.bf16.msra.mxu1 %v5498_v24  ;;  %v4970_v24 = vld [vmem:[%s7224_s0 + $0x5c] ss:$36 sps:$4 sm:$0xff]  }
  0x6d   :  { %4459 = vmatprep.subr.bf16.mxu1 %v5354_v0  ;;  %v5912_v6 = vld [vmem:[%s7223_s1 + $0x200] sm:$0xff]  }
  0x6f   :  { %2991 = vmatpush1.bf16.msra.mxu0 %v4944_v7  ;;  %v5024_v7 = vld [vmem:[%s7224_s0 + $0x4c8] ss:$36 sps:$4 sm:$0xff]  }
  0x70   :  { %2992 = vmatprep.subr.bf16.mxu0 %v5354_v0  ;;  %4475 = vmatpush1.bf16.msra.mxu1 %v5509_v26  ;;  %v4980_v26 = vld [vmem:[%s7223_s1 + $0x188] sm:$0xff]  }
  0x71   :  { %2471 = vmatmul.mubr.bf16.gmra.mrb[24].mxu1 %v4949_v8  ;;  %4460 = vmatprep.subr.bf16.mxu1 %v5354_v0  ;;  %v5025_v8 = vld [vmem:[%s7224_s0 + $0x298] ss:$36 sps:$4 sm:$0xff]  }
  0x72   :  { %2760 = vmatmul.mubr.bf16.gmra.mrb[24].mxu0 %v4950_v9  ;;  %2478 = vmatprep.mubr.bf16.mxu1 %v4953_v11  ;;  %v5026_v9 = vld [vmem:[%s7224_s0 + $0x514] ss:$36 sps:$4 sm:$0xff]  }
  0x73   :  { %2993 = vmatpush1.bf16.msra.mxu0 %v4951_v10  ;;  %2767 = vmatprep.mubr.bf16.mxu0 %v4955_v12  ;;  %v5028_v10 = vld [vmem:[%s7224_s0 + $0x2e4] ss:$36 sps:$4 sm:$0xff]   ;;  %v5030_v11 = vld [vmem:[%s7224_s0 + $0x510] ss:$36 sps:$4 sm:$0xff]  }
  0x74   :  { %2994 = vmatprep.subr.bf16.mxu0 %v5354_v0  ;;  %4476 = vmatpush1.bf16.msra.mxu1 %v5520_v28  ;;  %v4974_v28 = vld [vmem:[%s7224_s0 + $0x2d4] ss:$36 sps:$4 sm:$0xff]   ;;  %v5031_v12 = vld [vmem:[%s7224_s0 + $0x2e0] ss:$36 sps:$4 sm:$0xff]  }
  0x75   :  { %4461 = vmatprep.subr.bf16.mxu1 %v5354_v0 }
  0x77   :  { %2995 = vmatpush1.bf16.msra.mxu0 %v4952_v13  ;;  %v5033_v13 = vld [vmem:[%s7224_s0 + $0x55c] ss:$36 sps:$4 sm:$0xff]  }
  0x78   :  { %2996 = vmatprep.subr.bf16.mxu0 %v5354_v0  ;;  %4477 = vmatpush1.bf16.msra.mxu1 %v5531_v30  ;;  %v4993_v30 = vld [vmem:[%s7223_s1 + $0x190] sm:$0xff]  }
  0x79   :  { %2479 = vmatmul.mubr.bf16.gmra.mrb[28].mxu1 %v4957_v14  ;;  %4462 = vmatprep.subr.bf16.mxu1 %v5354_v0  ;;  %v5035_v14 = vld [vmem:[%s7224_s0 + $0x32c] ss:$36 sps:$4 sm:$0xff]  }
  0x7a   :  { %2768 = vmatmul.mubr.bf16.gmra.mrb[28].mxu0 %v4958_v15  ;;  %2486 = vmatprep.mubr.bf16.mxu1 %v4961_v16  ;;  %v5137_v15 = vld [vmem:[%s7223_s1 + $0x1e8] sm:$0xff]   ;;  %v5037_v16 = vld [vmem:[%s7224_s0 + $0x558] ss:$36 sps:$4 sm:$0xff]  }
  0x7b   :  { %2997 = vmatpush1.bf16.msra.mxu0 %v4959_v17  ;;  %3000 = vmatprep.mubr.bf16.mxu0 %v4965_v18  ;;  %v5038_v17 = vld [vmem:[%s7224_s0 + $0x328] ss:$36 sps:$4 sm:$0xff]  }
  0x7c   :  { %2998 = vmatprep.subr.bf16.mxu0 %v5354_v0  ;;  %4478 = vmatpush1.bf16.msra.mxu1 %v5542_v32  ;;  %v5006_v32 = vld [vmem:[%s7223_s1 + $0x198] sm:$0xff]   ;;  %v5039_v18 = vld [vmem:[%s7224_s0 + $0x5a4] ss:$36 sps:$4 sm:$0xff]  }
  0x7d   :  { %4463 = vmatprep.subr.bf16.mxu1 %v5354_v0 }
  0x7f   :  { %2999 = vmatpush1.bf16.msra.mxu0 %v4960_v19  ;;  %v5041_v19 = vld [vmem:[%s7224_s0 + $0x374] ss:$36 sps:$4 sm:$0xff]  }
  0x80   :  { %3257 = vmatprep.subr.bf16.mxu0 %v5354_v0  ;;  %4479 = vmatpush1.bf16.msra.mxu1 %v5553_v34  ;;  %v4981_v34 = vld [vmem:[%s7224_s0 + $0x31c] ss:$36 sps:$4 sm:$0xff]  }
  0x81   :  { %2487 = vmatmul.mubr.bf16.gmra.mrb[32].mxu1 %v4966_v20  ;;  %4368 = vmatprep.subr.bf16.mxu1 %v5912_v6  ;;  %v5043_v20 = vld [vmem:[%s7224_s0 + $0x5a0] ss:$36 sps:$4 sm:$0xff]  }
  0x82   :  { %3001 = vmatmul.mubr.bf16.vlgmr.msra.gmra.mrb[0].mxu0 %v4963_v21  ;;  %2494 = vmatprep.mubr.bf16.mxu1 %v4968_v22  ;;  %v5044_v21 = vld [vmem:[%s7224_s0 + $0x370] ss:$36 sps:$4 sm:$0xff]  }
  0x83   :  { %3258 = vmatpush1.bf16.msra.mxu0 %v4967_v23  ;;  %3008 = vmatprep.mubr.bf16.mxu0 %v4970_v24  ;;  %v5046_v22 = vld [vmem:[%s7224_s0 + $0x5ec] ss:$36 sps:$4 sm:$0xff]   ;;  %v5048_v23 = vld [vmem:[%s7224_s0 + $0x3bc] ss:$36 sps:$4 sm:$0xff]  }
  0x84   :  { %3259 = vmatprep.subr.bf16.mxu0 %v5354_v0  ;;  %v5151_v24 = vld [vmem:[%s7223_s1 + $0x1f0] sm:$0xff]  }
  0x87   :  { %3260 = vmatpush1.bf16.msra.mxu0 %v4980_v26  ;;  %v5051_v26 = vld [vmem:[%s7224_s0 + $0x3b8] ss:$36 sps:$4 sm:$0xff]  }
  0x88   :  { %3261 = vmatprep.subr.bf16.mxu0 %v5354_v0 }
  0x89   :  { %2495 = vmatmul.mubr.bf16.gmra.mrb[36].mxu1 %v4972_v25  ;;  %v5050_v25 = vld [vmem:[%s7224_s0 + $0x5e8] ss:$36 sps:$4 sm:$0xff]  }
  0x8a   :  { %3009 = vmatmul.mubr.bf16.gmra.mrb[4].mxu0 %v4973_v27  ;;  %2502 = vmatprep.mubr.bf16.mxu1 %v4974_v28  ;;  %v5052_v27 = vld [vmem:[%s7224_s0 + $0x634] ss:$36 sps:$4 sm:$0xff]   ;;  %v5054_v28 = vld [vmem:[%s7224_s0 + $0x404] ss:$36 sps:$4 sm:$0xff]  }
  0x8b   :  { %3016 = vmatprep.mubr.bf16.mxu0 %v4976_v29  ;;  %3262 = vmatpush1.bf16.msra.mxu0 %v4993_v30  ;;  %v5057_v29 = vld [vmem:[%s7224_s0 + $0x400] ss:$36 sps:$4 sm:$0xff]  }
  0x8c   :  { %3263 = vmatprep.subr.bf16.mxu0 %v5354_v0  ;;  %v5059_v30 = vld [vmem:[%s7224_s0 + $0x67c] ss:$36 sps:$4 sm:$0xff]  }
  0x8f   :  { %3264 = vmatpush1.bf16.msra.mxu0 %v5006_v32  ;;  %v5164_v32 = vld [vmem:[%s7223_s1 + $0x1f8] sm:$0xff]  }
  0x90   :  { %3265 = vmatprep.subr.bf16.mxu0 %v5354_v0 }
  0x91   :  { %2503 = vmatmul.mubr.bf16.gmra.mrb[40].mxu1 %v4978_v31  ;;  %v5061_v31 = vld [vmem:[%s7224_s0 + $0x44c] ss:$36 sps:$4 sm:$0xff]  }
  0x92   :  { %3017 = vmatmul.mubr.bf16.gmra.mrb[8].mxu0 %v4979_v33  ;;  %2510 = vmatprep.mubr.bf16.mxu1 %v4981_v34  ;;  %v5063_v33 = vld [vmem:[%s7224_s0 + $0x678] ss:$36 sps:$4 sm:$0xff]   ;;  %v5064_v34 = vld [vmem:[%s7224_s0 + $0x448] ss:$36 sps:$4 sm:$0xff]  }
  0x93   :  { %3024 = vmatprep.mubr.bf16.mxu0 %v4983_v35  ;;  %3266 = vmatpush1.bf16.msra.mxu0 %v5019_v36  ;;  %v5065_v35 = vld [vmem:[%s7224_s0 + $0x6c4] ss:$36 sps:$4 sm:$0xff]   ;;  %v5067_v36 = vld [vmem:[%s7224_s0 + $0x494] ss:$36 sps:$4 sm:$0xff]  }
  0x94   :  { %3267 = vmatprep.subr.bf16.mxu0 %v5354_v0 }
  0x97   :  { %3268 = vmatpush1.bf16.msra.mxu0 %v5032_v38  ;;  %v5070_v38 = vld [vmem:[%s7224_s0 + $0x490] ss:$36 sps:$4 sm:$0xff]  }
  0x98   :  { %3269 = vmatprep.subr.bf16.mxu0 %v5354_v0 }
  0x99   :  { %2511 = vmatmul.mubr.bf16.gmra.mrb[44].mxu1 %v4985_v37  ;;  %v5069_v37 = vld [vmem:[%s7224_s0 + $0x6c0] ss:$36 sps:$4 sm:$0xff]  }
  0x9a   :  { %3025 = vmatmul.mubr.bf16.gmra.mrb[12].mxu0 %v4986_v39  ;;  %2518 = vmatprep.mubr.bf16.mxu1 %v4987_v40  ;;  %v5072_v39 = vld [vmem:[%s7224_s0 + $0x70c] ss:$36 sps:$4 sm:$0xff]   ;;  %v5074_v40 = vld [vmem:[%s7224_s0 + $0x4dc] ss:$36 sps:$4 sm:$0xff]  }
  0x9b   :  { %3032 = vmatprep.mubr.bf16.mxu0 %v4989_v41  ;;  %3270 = vmatpush1.bf16.msra.mxu0 %v5045_v42  ;;  %v5076_v41 = vld [vmem:[%s7224_s0 + $0x708] ss:$36 sps:$4 sm:$0xff]   ;;  %v5077_v42 = vld [vmem:[%s7224_s0 + $0x4d8] ss:$36 sps:$4 sm:$0xff]  }
  0x9c   :  { %3271 = vmatprep.subr.bf16.mxu0 %v5354_v0 }
  0x9f   :  { %3272 = vmatpush1.bf16.msra.mxu0 %v5058_v43  ;;  %v5078_v43 = vld [vmem:[%s7224_s0 + $0x754] ss:$36 sps:$4 sm:$0xff]  }
  0xa0   :  { %3273 = vmatprep.subr.bf16.mxu0 %v5354_v0 }
  0xa1   :  { %2519 = vmatmul.mubr.bf16.gmra.mrb[48].mxu1 %v4991_v44  ;;  %v5080_v44 = vld [vmem:[%s7224_s0 + $0x524] ss:$36 sps:$4 sm:$0xff]  }
  0xa2   :  { %3033 = vmatmul.mubr.bf16.gmra.mrb[16].mxu0 %v4992_v45  ;;  %2526 = vmatprep.mubr.bf16.mxu1 %v4994_v46  ;;  %v5082_v45 = vld [vmem:[%s7224_s0 + $0x750] ss:$36 sps:$4 sm:$0xff]   ;;  %v5083_v46 = vld [vmem:[%s7224_s0 + $0x520] ss:$36 sps:$4 sm:$0xff]  }
  0xa3   :  { %3040 = vmatprep.mubr.bf16.mxu0 %v4996_v47  ;;  %3274 = vmatpush1.bf16.msra.mxu0 %v5071_v48  ;;  %v5085_v47 = vld [vmem:[%s7224_s0 + $0x79c] ss:$36 sps:$4 sm:$0xff]   ;;  %v5087_v48 = vld [vmem:[%s7224_s0 + $0x56c] ss:$36 sps:$4 sm:$0xff]  }
  0xa4   :  { %3275 = vmatprep.subr.bf16.mxu0 %v5354_v0 }
  0xa7   :  { %3276 = vmatpush1.bf16.msra.mxu0 %v5084_v49 }
  0xa8   :  { %3277 = vmatprep.subr.bf16.mxu0 %v5354_v0 }
  0xa9   :  { %2527 = vmatmul.mubr.bf16.gmra.mrb[52].mxu1 %v4998_v50 }
  0xaa   :  { %3041 = vmatmul.mubr.bf16.gmra.mrb[20].mxu0 %v4999_v51  ;;  %2534 = vmatprep.mubr.bf16.mxu1 %v5000_v52  ;;  %v5089_v51 = vld [vmem:[%s7224_s0 + $0x798] ss:$36 sps:$4 sm:$0xff]  }
  0xab   :  { %3048 = vmatprep.mubr.bf16.mxu0 %v5002_v53  ;;  %3278 = vmatpush1.bf16.msra.mxu0 %v5097_v54  ;;  %v5090_v53 = vld [vmem:[%s7224_s0 + $0x568] ss:$36 sps:$4 sm:$0xff]  }
  0xac   :  { %3279 = vmatprep.subr.bf16.mxu0 %v5354_v0  ;;  %v5091_v54 = vld [vmem:[%s7224_s0 + $0x7e4] ss:$36 sps:$4 sm:$0xff]  }
  0xaf   :  { %3280 = vmatpush1.bf16.msra.mxu0 %v5110_v59  ;;  %v5095_v59 = vld [vmem:[%s7224_s0 + $0x7e0] ss:$36 sps:$4 sm:$0xff]  }
  0xb0   :  { %3281 = vmatprep.subr.bf16.mxu0 %v5354_v0 }
  0xb1   :  { %2535 = vmatmul.mubr.bf16.gmra.mrb[56].mxu1 %v5004_v55 }
  0xb2   :  { %3049 = vmatmul.mubr.bf16.gmra.mrb[24].mxu0 %v5005_v56  ;;  %2542 = vmatprep.mubr.bf16.mxu1 %v5007_v57  ;;  %v5093_v56 = vld [vmem:[%s7224_s0 + $0x5b4] ss:$36 sps:$4 sm:$0xff]  }
  0xb3   :  { %3056 = vmatprep.mubr.bf16.mxu0 %v5009_v58  ;;  %3282 = vmatpush1.bf16.msra.mxu0 %v5123_v5 }
  0xb4   :  { %3283 = vmatprep.subr.bf16.mxu0 %v5354_v0 }
  0xb7   :  { %3284 = vmatpush1.bf16.msra.mxu0 %v5137_v15  ;;  %v5109_v15 = vld [vmem:[%s7224_s0 + $0x640] ss:$36 sps:$4 sm:$0xff]  }
  0xb8   :  { %3285 = vmatprep.subr.bf16.mxu0 %v5354_v0 }
  0xb9   :  { %2543 = vmatmul.mubr.bf16.gmra.mrb[60].mxu1 %v5011_v60 }
  0xba   :  { %3057 = vmatmul.mubr.bf16.gmra.mrb[28].mxu0 %v5012_v61  ;;  %2550 = vmatprep.mubr.bf16.mxu1 %v5013_v62  ;;  %v5096_v61 = vld [vmem:[%s7224_s0 + $0x5b0] ss:$36 sps:$4 sm:$0xff]  }
  0xbb   :  { %3064 = vmatprep.mubr.bf16.mxu0 %v5015_v63  ;;  %3286 = vmatpush1.bf16.msra.mxu0 %v5151_v24  ;;  %v5098_v62 = vld [vmem:[%s7224_s0 + $0x82c] ss:$36 sps:$4 sm:$0xff]  }
  0xbc   :  { %3287 = vmatprep.subr.bf16.mxu0 %v5354_v0  ;;  %v5056_v0 = vld [vmem:[%s7224_s0 + $0x630] ss:$36 sps:$4 sm:$0xff]  }
  0xbd   :  { %v5119_v24 = vld [vmem:[%s7224_s0 + $0x24c] ss:$36 sps:$4 sm:$0xff]  }
  0xbf   :  { %3288 = vmatpush1.bf16.msra.mxu0 %v5164_v32  ;;  %v5125_v32 = vld [vmem:[%s7224_s0 + $0x294] ss:$36 sps:$4 sm:$0xff]  }
  0xc1   :  { %2551 = vmatmul.mubr.bf16.gmra.mrb[64].mxu1 %v5017_v1  ;;  %v5100_v1 = vld [vmem:[%s7224_s0 + $0x5fc] ss:$36 sps:$4 sm:$0xff]  }
  0xc2   :  { %3065 = vmatmul.mubr.bf16.gmra.mrb[32].mxu0 %v5018_v2  ;;  %2558 = vmatprep.mubr.bf16.mxu1 %v5020_v3 }
  0xc3   :  { %3072 = vmatprep.mubr.bf16.mxu0 %v5022_v4  ;;  %v5102_v4 = vld [vmem:[%s7224_s0 + $0x828] ss:$36 sps:$4 sm:$0xff]  }
  0xc9   :  { %2559 = vmatmul.mubr.bf16.gmra.mrb[68].mxu1 %v5024_v7  ;;  %v5103_v7 = vld [vmem:[%s7224_s0 + $0x5f8] ss:$36 sps:$4 sm:$0xff]  }
  0xca   :  { %3073 = vmatmul.mubr.bf16.gmra.mrb[36].mxu0 %v5025_v8  ;;  %2566 = vmatprep.mubr.bf16.mxu1 %v5026_v9  ;;  %v5104_v8 = vld [vmem:[%s7224_s0 + $0x874] ss:$36 sps:$4 sm:$0xff]  }
  0xcb   :  { %3080 = vmatprep.mubr.bf16.mxu0 %v5028_v10  ;;  %v5106_v10 = vld [vmem:[%s7224_s0 + $0x644] ss:$36 sps:$4 sm:$0xff]  }
  0xd1   :  { %2567 = vmatmul.mubr.bf16.gmra.mrb[72].mxu1 %v5030_v11 }
  0xd2   :  { %3081 = vmatmul.mubr.bf16.gmra.mrb[40].mxu0 %v5031_v12  ;;  %2574 = vmatprep.mubr.bf16.mxu1 %v5033_v13  ;;  %v5108_v13 = vld [vmem:[%s7224_s0 + $0x870] ss:$36 sps:$4 sm:$0xff]  }
  0xd3   :  { %3088 = vmatprep.mubr.bf16.mxu0 %v5035_v14 }
  0xd9   :  { %2575 = vmatmul.mubr.bf16.gmra.mrb[76].mxu1 %v5037_v16  ;;  %v5111_v16 = vld [vmem:[%s7224_s0 + $0x8bc] ss:$36 sps:$4 sm:$0xff]  }
  0xda   :  { %3089 = vmatmul.mubr.bf16.gmra.mrb[44].mxu0 %v5038_v17  ;;  %2582 = vmatprep.mubr.bf16.mxu1 %v5039_v18  ;;  %v5113_v18 = vld [vmem:[%s7224_s0 + $0x68c] ss:$36 sps:$4 sm:$0xff]  }
  0xdb   :  { %3096 = vmatprep.mubr.bf16.mxu0 %v5041_v19 }
  0xe1   :  { %2583 = vmatmul.mubr.bf16.gmra.mrb[80].mxu1 %v5043_v20 }
  0xe2   :  { %3097 = vmatmul.mubr.bf16.gmra.mrb[48].mxu0 %v5044_v21  ;;  %2590 = vmatprep.mubr.bf16.mxu1 %v5046_v22  ;;  %v5115_v21 = vld [vmem:[%s7224_s0 + $0x8b8] ss:$36 sps:$4 sm:$0xff]  }
  0xe3   :  { %3104 = vmatprep.mubr.bf16.mxu0 %v5048_v23  ;;  %v5116_v23 = vld [vmem:[%s7224_s0 + $0x688] ss:$36 sps:$4 sm:$0xff]  }
  0xe9   :  { %2591 = vmatmul.mubr.bf16.gmra.mrb[84].mxu1 %v5050_v25 }
  0xea   :  { %3105 = vmatmul.mubr.bf16.gmra.mrb[52].mxu0 %v5051_v26  ;;  %2598 = vmatprep.mubr.bf16.mxu1 %v5052_v27  ;;  %v5120_v26 = vld [vmem:[%s7224_s0 + $0x6d4] ss:$36 sps:$4 sm:$0xff]  }
  0xeb   :  { %3112 = vmatprep.mubr.bf16.mxu0 %v5054_v28 }
  0xf1   :  { %2599 = vmatmul.mubr.bf16.gmra.mrb[88].mxu1 %v5056_v0  ;;  %v5117_v0 = vld [vmem:[%s7224_s0 + $0x248] ss:$36 sps:$4 sm:$0xff]  }
  0xf2   :  { %3113 = vmatmul.mubr.bf16.gmra.mrb[56].mxu0 %v5057_v29  ;;  %2606 = vmatprep.mubr.bf16.mxu1 %v5059_v30  ;;  %v5122_v30 = vld [vmem:[%s7224_s0 + $0x6d0] ss:$36 sps:$4 sm:$0xff]  }
  0xf3   :  { %3120 = vmatprep.mubr.bf16.mxu0 %v5061_v31 }
  0xf9   :  { %2607 = vmatmul.mubr.bf16.gmra.mrb[92].mxu1 %v5063_v33  ;;  %v5127_v33 = vld [vmem:[%s7224_s0 + $0x71c] ss:$36 sps:$4 sm:$0xff]  }
  0xfa   :  { %3121 = vmatmul.mubr.bf16.gmra.mrb[60].mxu0 %v5064_v34  ;;  %2614 = vmatprep.mubr.bf16.mxu1 %v5065_v35  ;;  %v5144_v34 = vld [vmem:[%s7223_s1 + $0x208] sm:$0xff]   ;;  %v5165_v35 = vld [vmem:[%s7223_s1 + $0x210] sm:$0xff]  }
  0xfb   :  { %3128 = vmatprep.mubr.bf16.mxu0 %v5067_v36 }
 0x101   :  { %2615 = vmatmul.mubr.bf16.gmra.mrb[96].mxu1 %v5069_v37 }
 0x102   :  { %3129 = vmatmul.mubr.bf16.gmra.mrb[64].mxu0 %v5070_v38  ;;  %2622 = vmatprep.mubr.bf16.mxu1 %v5072_v39  ;;  %v5129_v38 = vld [vmem:[%s7224_s0 + $0x290] ss:$36 sps:$4 sm:$0xff]  }
 0x103   :  { %3136 = vmatprep.mubr.bf16.mxu0 %v5074_v40  ;;  %v5131_v40 = vld [vmem:[%s7224_s0 + $0x2dc] ss:$36 sps:$4 sm:$0xff]  }
 0x109   :  { %2623 = vmatmul.mubr.bf16.gmra.mrb[100].mxu1 %v5076_v41 }
 0x10a   :  { %3137 = vmatmul.mubr.bf16.gmra.mrb[68].mxu0 %v5077_v42  ;;  %2630 = vmatprep.mubr.bf16.mxu1 %v5078_v43  ;;  %v5133_v42 = vld [vmem:[%s7224_s0 + $0x764] ss:$36 sps:$4 sm:$0xff]   ;;  %v5184_v43 = vld [vmem:[%s7223_s1 + $0x218] sm:$0xff]  }
 0x10b   :  { %3144 = vmatprep.mubr.bf16.mxu0 %v5080_v44 }
 0x111   :  { %2631 = vmatmul.mubr.bf16.gmra.mrb[104].mxu1 %v5082_v45  ;;  %v5203_v45 = vld [vmem:[%s7223_s1 + $0x220] sm:$0xff]  }
 0x112   :  { %3145 = vmatmul.mubr.bf16.gmra.mrb[72].mxu0 %v5083_v46  ;;  %2638 = vmatprep.mubr.bf16.mxu1 %v5085_v47  ;;  %v5135_v47 = vld [vmem:[%s7224_s0 + $0x2d8] ss:$36 sps:$4 sm:$0xff]  }
 0x113   :  { %3152 = vmatprep.mubr.bf16.mxu0 %v5087_v48 }
 0x114   :  { %v6047_v49 = vpop.f32.mrb[0].mxu1 }
 0x115   :  { %v2426_v50 = vpop.f32.mrb[1].mxu1 }
 0x116   :  { %v6052_v52 = vpop.f32.mrb[2].mxu1  ;;  %v5136_v50 = vld [vmem:[%s7224_s0 + $0x760] ss:$36 sps:$4 sm:$0xff]  }
 0x117   :  { %v2429_v55 = vpop.f32.mrb[3].mxu1 }
 0x118   :  { %v5222_v55 = vld [vmem:[%s7223_s1 + $0x228] sm:$0xff]  }
 0x119   :  { %2639 = vmatmul.mubr.bf16.gmra.mrb[108].mxu1 %v5089_v51  ;;  %v5138_v51 = vld [vmem:[%s7224_s0 + $0x324] ss:$36 sps:$4 sm:$0xff]  }
 0x11a   :  { %3153 = vmatmul.mubr.bf16.gmra.mrb[76].mxu0 %v5090_v53  ;;  %2646 = vmatprep.mubr.bf16.mxu1 %v5091_v54  ;;  %v5140_v54 = vld [vmem:[%s7224_s0 + $0x7ac] ss:$36 sps:$4 sm:$0xff]  }
 0x11b   :  { %3160 = vmatprep.mubr.bf16.mxu0 %v5093_v56  ;;  %v5241_v56 = vld [vmem:[%s7223_s1 + $0x230] sm:$0xff]  }
 0x11c   :  { %v6063_v57 = vpop.f32.mrb[4].mxu1 }
 0x11d   :  { %v2434_v58 = vpop.f32.mrb[5].mxu1 }
 0x11e   :  { %v6068_v60 = vpop.f32.mrb[6].mxu1  ;;  %v5142_v58 = vld [vmem:[%s7224_s0 + $0x320] ss:$36 sps:$4 sm:$0xff]  }
 0x11f   :  { %v2437_v63 = vpop.f32.mrb[7].mxu1 }
 0x120   :  { %v5149_v63 = vld [vmem:[%s7224_s0 + $0x368] ss:$36 sps:$4 sm:$0xff]  }
 0x121   :  { %2647 = vmatmul.mubr.bf16.gmra.mrb[112].mxu1 %v5095_v59  ;;  %v5143_v59 = vld [vmem:[%s7224_s0 + $0x7a8] ss:$36 sps:$4 sm:$0xff]  }
 0x122   :  { %3161 = vmatmul.mubr.bf16.gmra.mrb[80].mxu0 %v5096_v61  ;;  %2654 = vmatprep.mubr.bf16.mxu1 %v5098_v62  ;;  %v5145_v61 = vld [vmem:[%s7224_s0 + $0x36c] ss:$36 sps:$4 sm:$0xff]   ;;  %v5147_v62 = vld [vmem:[%s7224_s0 + $0x7f4] ss:$36 sps:$4 sm:$0xff]  }
 0x123   :  { %3168 = vmatprep.mubr.bf16.mxu0 %v5100_v1  ;;  %v5150_v1 = vld [vmem:[%s7224_s0 + $0x7f0] ss:$36 sps:$4 sm:$0xff]  }
 0x124   :  { %v6079_v2 = vpop.f32.mrb[8].mxu1 }
 0x125   :  { %v2442_v3 = vpop.f32.mrb[9].mxu1 }
 0x126   :  { %v6084_v5 = vpop.f32.mrb[10].mxu1  ;;  %v5152_v3 = vld [vmem:[%s7224_s0 + $0x3b4] ss:$36 sps:$4 sm:$0xff]  }
 0x127   :  { %v2445_v9 = vpop.f32.mrb[11].mxu1 }
 0x128   :  { %v5158_v9 = vld [vmem:[%s7224_s0 + $0x3fc] ss:$36 sps:$4 sm:$0xff]  }
 0x129   :  { %2655 = vmatmul.mubr.bf16.gmra.mrb[116].mxu1 %v5102_v4  ;;  %v5154_v4 = vld [vmem:[%s7224_s0 + $0x83c] ss:$36 sps:$4 sm:$0xff]  }
 0x12a   :  { %3169 = vmatmul.mubr.bf16.gmra.mrb[84].mxu0 %v5103_v7  ;;  %2662 = vmatprep.mubr.bf16.mxu1 %v5104_v8  ;;  %v5156_v7 = vld [vmem:[%s7224_s0 + $0x3b0] ss:$36 sps:$4 sm:$0xff]   ;;  %v5157_v8 = vld [vmem:[%s7224_s0 + $0x838] ss:$36 sps:$4 sm:$0xff]  }
 0x12b   :  { %3176 = vmatprep.mubr.bf16.mxu0 %v5106_v10  ;;  %v5160_v10 = vld [vmem:[%s7224_s0 + $0x884] ss:$36 sps:$4 sm:$0xff]  }
 0x12c   :  { %v6095_v11 = vpop.f32.mrb[12].mxu1 }
 0x12d   :  { %v2450_v12 = vpop.f32.mrb[13].mxu1 }
 0x12e   :  { %v6100_v14 = vpop.f32.mrb[14].mxu1  ;;  %v5260_v12 = vld [vmem:[%s7223_s1 + $0x238] sm:$0xff]  }
 0x12f   :  { %v2453_v17 = vpop.f32.mrb[15].mxu1 }
 0x130   :  { %v5168_v17 = vld [vmem:[%s7224_s0 + $0x8cc] ss:$36 sps:$4 sm:$0xff]  }
 0x131   :  { %2663 = vmatmul.mubr.bf16.gmra.mrb[120].mxu1 %v5108_v13  ;;  %v5162_v13 = vld [vmem:[%s7224_s0 + $0x3f8] ss:$36 sps:$4 sm:$0xff]  }
 0x132   :  { %3177 = vmatmul.mubr.bf16.gmra.mrb[88].mxu0 %v5109_v15  ;;  %2670 = vmatprep.mubr.bf16.mxu1 %v5111_v16  ;;  %v5163_v15 = vld [vmem:[%s7224_s0 + $0x880] ss:$36 sps:$4 sm:$0xff]  }
 0x133   :  { %3184 = vmatprep.mubr.bf16.mxu0 %v5113_v18  ;;  %v5166_v16 = vld [vmem:[%s7224_s0 + $0x444] ss:$36 sps:$4 sm:$0xff]  }
 0x134   :  { %v6111_v19 = vpop.f32.mrb[16].mxu1  ;;  %v5170_v18 = vld [vmem:[%s7224_s0 + $0x440] ss:$36 sps:$4 sm:$0xff]  }
 0x135   :  { %v2458_v20 = vpop.f32.mrb[17].mxu1 }
 0x136   :  { %v6116_v22 = vpop.f32.mrb[18].mxu1  ;;  %v5171_v20 = vld [vmem:[%s7224_s0 + $0x8c8] ss:$36 sps:$4 sm:$0xff]  }
 0x137   :  { %v2461_v25 = vpop.f32.mrb[19].mxu1 }
 0x138   :  { %v5174_v25 = vld [vmem:[%s7224_s0 + $0x18] ss:$36 sps:$4 sm:$0xff]  }
 0x139   :  { %2671 = vmatmul.mubr.bf16.gmra.mrb[124].mxu1 %v5115_v21  ;;  %v5172_v21 = vld [vmem:[%s7224_s0 + $0x48c] ss:$36 sps:$4 sm:$0xff]  }
 0x13a   :  { %3185 = vmatmul.mubr.bf16.gmra.mrb[92].mxu0 %v5116_v23  ;;  %2775 = vmatprep.mubr.bf16.mxu1 %v5119_v24  ;;  %v5176_v23 = vld [vmem:[%s7224_s0 + $0x1c] ss:$36 sps:$4 sm:$0xff]   ;;  %v5177_v24 = vld [vmem:[%s7224_s0 + $0x488] ss:$36 sps:$4 sm:$0xff]  }
 0x13b   :  { %3192 = vmatprep.mubr.bf16.mxu0 %v5120_v26  ;;  %v5178_v26 = vld [vmem:[%s7224_s0 + $0x4d4] ss:$36 sps:$4 sm:$0xff]  }
 0x13c   :  { %v6127_v27 = vpop.f32.mrb[20].mxu1 }
 0x13d   :  { %v2466_v28 = vpop.f32.mrb[21].mxu1 }
 0x13e   :  { %v6132_v29 = vpop.f32.mrb[22].mxu1  ;;  %v5180_v28 = vld [vmem:[%s7224_s0 + $0x64] ss:$36 sps:$4 sm:$0xff]  }
 0x13f   :  { %v2469_v31 = vpop.f32.mrb[23].mxu1 }
 0x140   :  { %v5185_v31 = vld [vmem:[%s7224_s0 + $0x51c] ss:$36 sps:$4 sm:$0xff]  }
 0x141   :  { %2776 = vmatmul.mubr.bf16.vlgmr.msra.gmra.mrb[32].mxu1 %v5117_v0  ;;  %v5182_v0 = vld [vmem:[%s7224_s0 + $0x4d0] ss:$36 sps:$4 sm:$0xff]  }
 0x142   :  { %3193 = vmatmul.mubr.bf16.gmra.mrb[96].mxu0 %v5122_v30  ;;  %4369 = vmatpush3.bf16.msra.mxu1 %v5912_v6  ;;  %v5130_v6 = vld [vmem:[%s7224_s0 + $0x718] ss:$36 sps:$4 sm:$0xff]   ;;  %v5183_v30 = vld [vmem:[%s7224_s0 + $0x60] ss:$36 sps:$4 sm:$0xff]  }
 0x143   :  { %2783 = vmatprep.mubr.bf16.mxu1 %v5125_v32  ;;  %3200 = vmatprep.mubr.bf16.mxu0 %v5127_v33  ;;  %v5187_v32 = vld [vmem:[%s7224_s0 + $0xac] ss:$36 sps:$4 sm:$0xff]   ;;  %v5189_v33 = vld [vmem:[%s7224_s0 + $0x518] ss:$36 sps:$4 sm:$0xff]  }
 0x144   :  { %v6150_v36 = vpop.f32.mrb[24].mxu1  ;;  %4370 = vmatprep.subr.bf16.mxu1 %v5144_v34 }
 0x145   :  { %v2474_v37 = vpop.f32.mrb[25].mxu1 }
 0x146   :  { %v6155_v39 = vpop.f32.mrb[26].mxu1  ;;  %4371 = vmatpush3.bf16.msra.mxu1 %v5144_v34  ;;  %v5190_v34 = vld [vmem:[%s7224_s0 + $0xa8] ss:$36 sps:$4 sm:$0xff]   ;;  %v5193_v37 = vld [vmem:[%s7224_s0 + $0xf4] ss:$36 sps:$4 sm:$0xff]  }
 0x147   :  { %v2477_v41 = vpop.f32.mrb[27].mxu1  ;;  %4372 = vmatprep.subr.bf16.mxu1 %v5165_v35 }
 0x148   :  { %v5199_v41 = vld [vmem:[%s7224_s0 + $0x13c] ss:$36 sps:$4 sm:$0xff]  }
 0x149   :  { %2784 = vmatmul.mubr.bf16.gmra.mrb[36].mxu1 %v5129_v38  ;;  %v5195_v38 = vld [vmem:[%s7224_s0 + $0x560] ss:$36 sps:$4 sm:$0xff]  }
 0x14a   :  { %3201 = vmatmul.mubr.bf16.gmra.mrb[100].mxu0 %v5130_v6  ;;  %2791 = vmatprep.mubr.bf16.mxu1 %v5131_v40  ;;  %v5196_v6 = vld [vmem:[%s7224_s0 + $0xf0] ss:$36 sps:$4 sm:$0xff]  }
 0x14b   :  { %3208 = vmatprep.mubr.bf16.mxu0 %v5133_v42  ;;  %4373 = vmatpush3.bf16.msra.mxu1 %v5165_v35  ;;  %v5191_v35 = vld [vmem:[%s7224_s0 + $0x564] ss:$36 sps:$4 sm:$0xff]   ;;  %v5197_v40 = vld [vmem:[%s7224_s0 + $0x5ac] ss:$36 sps:$4 sm:$0xff]  }
 0x14c   :  { %v6169_v44 = vpop.f32.mrb[28].mxu1  ;;  %4374 = vmatprep.subr.bf16.mxu1 %v5184_v43  ;;  %v5201_v42 = vld [vmem:[%s7224_s0 + $0x5a8] ss:$36 sps:$4 sm:$0xff]  }
 0x14d   :  { %v2482_v46 = vpop.f32.mrb[29].mxu1 }
 0x14e   :  { %v6177_v48 = vpop.f32.mrb[30].mxu1  ;;  %v5206_v46 = vld [vmem:[%s7224_s0 + $0x184] ss:$36 sps:$4 sm:$0xff]  }
 0x14f   :  { %v2485_v53 = vpop.f32.mrb[31].mxu1  ;;  %4375 = vmatpush3.bf16.msra.mxu1 %v5184_v43  ;;  %v5202_v43 = vld [vmem:[%s7224_s0 + $0x138] ss:$36 sps:$4 sm:$0xff]  }
 0x150   :  { %4376 = vmatprep.subr.bf16.mxu1 %v5203_v45  ;;  %v5212_v53 = vld [vmem:[%s7224_s0 + $0x1cc] ss:$36 sps:$4 sm:$0xff]  }
 0x151   :  { %2792 = vmatmul.mubr.bf16.gmra.mrb[40].mxu1 %v5135_v47  ;;  %v5208_v47 = vld [vmem:[%s7224_s0 + $0x5f0] ss:$36 sps:$4 sm:$0xff]  }
 0x152   :  { %3209 = vmatmul.mubr.bf16.gmra.mrb[104].mxu0 %v5136_v50  ;;  %2799 = vmatprep.mubr.bf16.mxu1 %v5138_v51  ;;  %v5209_v50 = vld [vmem:[%s7224_s0 + $0x180] ss:$36 sps:$4 sm:$0xff]  }
 0x153   :  { %3216 = vmatprep.mubr.bf16.mxu0 %v5140_v54  ;;  %4377 = vmatpush3.bf16.msra.mxu1 %v5203_v45  ;;  %v5204_v45 = vld [vmem:[%s7224_s0 + $0x5f4] ss:$36 sps:$4 sm:$0xff]   ;;  %v5210_v51 = vld [vmem:[%s7224_s0 + $0x63c] ss:$36 sps:$4 sm:$0xff]  }
 0x154   :  { %4378 = vmatprep.subr.bf16.mxu1 %v5222_v55  ;;  %v5214_v54 = vld [vmem:[%s7224_s0 + $0x638] ss:$36 sps:$4 sm:$0xff]  }
 0x157   :  { %4379 = vmatpush3.bf16.msra.mxu1 %v5222_v55  ;;  %v5215_v55 = vld [vmem:[%s7224_s0 + $0x1c8] ss:$36 sps:$4 sm:$0xff]  }
 0x158   :  { %4380 = vmatprep.subr.bf16.mxu1 %v5241_v56 }
 0x159   :  { %2800 = vmatmul.mubr.bf16.gmra.mrb[44].mxu1 %v5142_v58  ;;  %v5218_v58 = vld [vmem:[%s7224_s0 + $0x214] ss:$36 sps:$4 sm:$0xff]  }
 0x15a   :  { %3217 = vmatmul.mubr.bf16.gmra.mrb[108].mxu0 %v5143_v59  ;;  %2807 = vmatprep.mubr.bf16.mxu1 %v5145_v61  ;;  %v5220_v59 = vld [vmem:[%s7224_s0 + $0x680] ss:$36 sps:$4 sm:$0xff]   ;;  %v5221_v61 = vld [vmem:[%s7224_s0 + $0x210] ss:$36 sps:$4 sm:$0xff]  }
 0x15b   :  { %3224 = vmatprep.mubr.bf16.mxu0 %v5147_v62  ;;  %4381 = vmatpush3.bf16.msra.mxu1 %v5241_v56  ;;  %v5216_v56 = vld [vmem:[%s7224_s0 + $0x684] ss:$36 sps:$4 sm:$0xff]   ;;  %v5223_v62 = vld [vmem:[%s7224_s0 + $0x6cc] ss:$36 sps:$4 sm:$0xff]  }
 0x15c   :  { %4382 = vmatprep.subr.bf16.mxu1 %v5260_v12 }
 0x15f   :  { %4383 = vmatpush3.bf16.msra.mxu1 %v5260_v12  ;;  %v5237_v12 = vld [vmem:[%s7224_s0 + $0x2ec] ss:$36 sps:$4 sm:$0xff]  }
 0x161   :  { %2808 = vmatmul.mubr.bf16.gmra.mrb[48].mxu1 %v5149_v63  ;;  %v5225_v63 = vld [vmem:[%s7224_s0 + $0x25c] ss:$36 sps:$4 sm:$0xff]  }
 0x162   :  { %3225 = vmatmul.mubr.bf16.gmra.mrb[112].mxu0 %v5150_v1  ;;  %2815 = vmatprep.mubr.bf16.mxu1 %v5152_v3  ;;  %v5227_v1 = vld [vmem:[%s7224_s0 + $0x6c8] ss:$36 sps:$4 sm:$0xff]   ;;  %v5228_v3 = vld [vmem:[%s7224_s0 + $0x258] ss:$36 sps:$4 sm:$0xff]  }
 0x163   :  { %3232 = vmatprep.mubr.bf16.mxu0 %v5154_v4  ;;  %v5229_v4 = vld [vmem:[%s7224_s0 + $0x714] ss:$36 sps:$4 sm:$0xff]  }
 0x169   :  { %2816 = vmatmul.mubr.bf16.gmra.mrb[52].mxu1 %v5156_v7  ;;  %v5231_v7 = vld [vmem:[%s7224_s0 + $0x2a4] ss:$36 sps:$4 sm:$0xff]  }
 0x16a   :  { %3233 = vmatmul.mubr.bf16.gmra.mrb[116].mxu0 %v5157_v8  ;;  %2823 = vmatprep.mubr.bf16.mxu1 %v5158_v9  ;;  %v5233_v8 = vld [vmem:[%s7224_s0 + $0x710] ss:$36 sps:$4 sm:$0xff]   ;;  %v5234_v9 = vld [vmem:[%s7224_s0 + $0x2a0] ss:$36 sps:$4 sm:$0xff]  }
 0x16b   :  { %3240 = vmatprep.mubr.bf16.mxu0 %v5160_v10  ;;  %v5235_v10 = vld [vmem:[%s7224_s0 + $0x75c] ss:$36 sps:$4 sm:$0xff]  }
 0x171   :  { %2824 = vmatmul.mubr.bf16.gmra.mrb[56].mxu1 %v5162_v13  ;;  %v5239_v13 = vld [vmem:[%s7224_s0 + $0x758] ss:$36 sps:$4 sm:$0xff]  }
 0x172   :  { %3241 = vmatmul.mubr.bf16.gmra.mrb[120].mxu0 %v5163_v15  ;;  %2831 = vmatprep.mubr.bf16.mxu1 %v5166_v16  ;;  %v5240_v15 = vld [vmem:[%s7224_s0 + $0x2e8] ss:$36 sps:$4 sm:$0xff]  }
 0x173   :  { %3248 = vmatprep.mubr.bf16.mxu0 %v5168_v17  ;;  %v5242_v16 = vld [vmem:[%s7224_s0 + $0x7a4] ss:$36 sps:$4 sm:$0xff]   ;;  %v5244_v17 = vld [vmem:[%s7224_s0 + $0x334] ss:$36 sps:$4 sm:$0xff]  }
 0x179   :  { %2832 = vmatmul.mubr.bf16.gmra.mrb[60].mxu1 %v5170_v18  ;;  %v5246_v18 = vld [vmem:[%s7224_s0 + $0x7a0] ss:$36 sps:$4 sm:$0xff]  }
 0x17a   :  { %3249 = vmatmul.mubr.bf16.gmra.mrb[124].mxu0 %v5171_v20  ;;  %2839 = vmatprep.mubr.bf16.mxu1 %v5172_v21  ;;  %v5247_v20 = vld [vmem:[%s7224_s0 + $0x330] ss:$36 sps:$4 sm:$0xff]  }
 0x17b   :  { %3289 = vmatprep.mubr.bf16.mxu0 %v5176_v23  ;;  %v5248_v21 = vld [vmem:[%s7224_s0 + $0x7ec] ss:$36 sps:$4 sm:$0xff]   ;;  %v5250_v23 = vld [vmem:[%s7224_s0 + $0x37c] ss:$36 sps:$4 sm:$0xff]  }
 0x181   :  { %2840 = vmatmul.mubr.bf16.gmra.mrb[64].mxu1 %v5177_v24  ;;  %v5252_v24 = vld [vmem:[%s7224_s0 + $0x7e8] ss:$36 sps:$4 sm:$0xff]  }
 0x182   :  { %3290 = vmatmul.mubr.bf16.vlgmr.msra.gmra.mrb[0].mxu0 %v5174_v25  ;;  %2847 = vmatprep.mubr.bf16.mxu1 %v5178_v26  ;;  %v5253_v25 = vld [vmem:[%s7224_s0 + $0x378] ss:$36 sps:$4 sm:$0xff]  }
 0x183   :  { %3297 = vmatprep.mubr.bf16.mxu0 %v5180_v28  ;;  %v5254_v26 = vld [vmem:[%s7224_s0 + $0x834] ss:$36 sps:$4 sm:$0xff]   ;;  %v5256_v28 = vld [vmem:[%s7224_s0 + $0x3c4] ss:$36 sps:$4 sm:$0xff]  }
 0x189   :  { %2848 = vmatmul.mubr.bf16.gmra.mrb[68].mxu1 %v5182_v0  ;;  %v5258_v0 = vld [vmem:[%s7224_s0 + $0x830] ss:$36 sps:$4 sm:$0xff]  }
 0x18a   :  { %3298 = vmatmul.mubr.bf16.gmra.mrb[4].mxu0 %v5183_v30  ;;  %2855 = vmatprep.mubr.bf16.mxu1 %v5185_v31  ;;  %v5259_v30 = vld [vmem:[%s7224_s0 + $0x3c0] ss:$36 sps:$4 sm:$0xff]  }
 0x18b   :  { %3305 = vmatprep.mubr.bf16.mxu0 %v5187_v32  ;;  %v5261_v31 = vld [vmem:[%s7224_s0 + $0x87c] ss:$36 sps:$4 sm:$0xff]   ;;  %v5263_v32 = vld [vmem:[%s7224_s0 + $0x40c] ss:$36 sps:$4 sm:$0xff]  }
 0x191   :  { %2856 = vmatmul.mubr.bf16.gmra.mrb[72].mxu1 %v5189_v33  ;;  %v5265_v33 = vld [vmem:[%s7224_s0 + $0x878] ss:$36 sps:$4 sm:$0xff]  }
 0x192   :  { %3306 = vmatmul.mubr.bf16.gmra.mrb[8].mxu0 %v5190_v34  ;;  %2863 = vmatprep.mubr.bf16.mxu1 %v5191_v35  ;;  %v5266_v34 = vld [vmem:[%s7224_s0 + $0x408] ss:$36 sps:$4 sm:$0xff]  }
 0x193   :  { %3313 = vmatprep.mubr.bf16.mxu0 %v5193_v37  ;;  %v5267_v35 = vld [vmem:[%s7224_s0 + $0x8c4] ss:$36 sps:$4 sm:$0xff]   ;;  %v5269_v37 = vld [vmem:[%s7224_s0 + $0x454] ss:$36 sps:$4 sm:$0xff]  }
 0x199   :  { %2864 = vmatmul.mubr.bf16.gmra.mrb[76].mxu1 %v5195_v38  ;;  %v5271_v38 = vld [vmem:[%s7224_s0 + $0x8c0] ss:$36 sps:$4 sm:$0xff]  }
 0x19a   :  { %3314 = vmatmul.mubr.bf16.gmra.mrb[12].mxu0 %v5196_v6  ;;  %2871 = vmatprep.mubr.bf16.mxu1 %v5197_v40  ;;  %v5272_v6 = vld [vmem:[%s7224_s0 + $0x450] ss:$36 sps:$4 sm:$0xff]   ;;  %v5275_v40 = vld [vmem:[%s7224_s0 + $0x20] ss:$36 sps:$4 sm:$0xff]  }
 0x19b   :  { %3321 = vmatprep.mubr.bf16.mxu0 %v5199_v41  ;;  %v5273_v41 = vld [vmem:[%s7224_s0 + $0x49c] ss:$36 sps:$4 sm:$0xff]  }
 0x1a1   :  { %2872 = vmatmul.mubr.bf16.gmra.mrb[80].mxu1 %v5201_v42  ;;  %v5277_v42 = vld [vmem:[%s7224_s0 + $0x68] ss:$36 sps:$4 sm:$0xff]  }
 0x1a2   :  { %3322 = vmatmul.mubr.bf16.gmra.mrb[16].mxu0 %v5202_v43  ;;  %2879 = vmatprep.mubr.bf16.mxu1 %v5204_v45  ;;  %v5276_v43 = vld [vmem:[%s7224_s0 + $0x498] ss:$36 sps:$4 sm:$0xff]   ;;  %v5280_v45 = vld [vmem:[%s7224_s0 + $0xb0] ss:$36 sps:$4 sm:$0xff]  }
 0x1a3   :  { %3329 = vmatprep.mubr.bf16.mxu0 %v5206_v46  ;;  %v5278_v46 = vld [vmem:[%s7224_s0 + $0x4e4] ss:$36 sps:$4 sm:$0xff]  }
 0x1a9   :  { %2880 = vmatmul.mubr.bf16.gmra.mrb[84].mxu1 %v5208_v47  ;;  %v5282_v47 = vld [vmem:[%s7224_s0 + $0xf8] ss:$36 sps:$4 sm:$0xff]  }
 0x1aa   :  { %3330 = vmatmul.mubr.bf16.gmra.mrb[20].mxu0 %v5209_v50  ;;  %2887 = vmatprep.mubr.bf16.mxu1 %v5210_v51  ;;  %v5281_v50 = vld [vmem:[%s7224_s0 + $0x4e0] ss:$36 sps:$4 sm:$0xff]  }
 0x1ab   :  { %3337 = vmatprep.mubr.bf16.mxu0 %v5212_v53  ;;  %v5285_v51 = vld [vmem:[%s7224_s0 + $0x140] ss:$36 sps:$4 sm:$0xff]   ;;  %v5283_v53 = vld [vmem:[%s7224_s0 + $0x52c] ss:$36 sps:$4 sm:$0xff]  }
 0x1b1   :  { %2888 = vmatmul.mubr.bf16.gmra.mrb[88].mxu1 %v5214_v54  ;;  %v5287_v54 = vld [vmem:[%s7224_s0 + $0x188] ss:$36 sps:$4 sm:$0xff]  }
 0x1b2   :  { %3338 = vmatmul.mubr.bf16.gmra.mrb[24].mxu0 %v5215_v55  ;;  %2895 = vmatprep.mubr.bf16.mxu1 %v5216_v56  ;;  %v5286_v55 = vld [vmem:[%s7224_s0 + $0x528] ss:$36 sps:$4 sm:$0xff]   ;;  %v5290_v56 = vld [vmem:[%s7224_s0 + $0x1d0] ss:$36 sps:$4 sm:$0xff]  }
 0x1b3   :  { %3345 = vmatprep.mubr.bf16.mxu0 %v5218_v58  ;;  %v5288_v58 = vld [vmem:[%s7224_s0 + $0x574] ss:$36 sps:$4 sm:$0xff]  }
 0x1b9   :  { %2896 = vmatmul.mubr.bf16.gmra.mrb[92].mxu1 %v5220_v59 }
 0x1ba   :  { %3346 = vmatmul.mubr.bf16.gmra.mrb[28].mxu0 %v5221_v61  ;;  %2903 = vmatprep.mubr.bf16.mxu1 %v5223_v62  ;;  %v5292_v62 = vld [vmem:[%s7224_s0 + $0x218] ss:$36 sps:$4 sm:$0xff]  }
 0x1bb   :  { %3353 = vmatprep.mubr.bf16.mxu0 %v5225_v63 }
 0x1c1   :  { %2904 = vmatmul.mubr.bf16.gmra.mrb[96].mxu1 %v5227_v1  ;;  %v5291_v1 = vld [vmem:[%s7224_s0 + $0x570] ss:$36 sps:$4 sm:$0xff]  }
 0x1c2   :  { %3354 = vmatmul.mubr.bf16.gmra.mrb[32].mxu0 %v5228_v3  ;;  %2911 = vmatprep.mubr.bf16.mxu1 %v5229_v4  ;;  %v5295_v3 = vld [vmem:[%s7224_s0 + $0x260] ss:$36 sps:$4 sm:$0xff]  }
 0x1c3   :  { %3361 = vmatprep.mubr.bf16.mxu0 %v5231_v7  ;;  %v5293_v7 = vld [vmem:[%s7224_s0 + $0x5bc] ss:$36 sps:$4 sm:$0xff]  }
 0x1c9   :  { %2912 = vmatmul.mubr.bf16.gmra.mrb[100].mxu1 %v5233_v8 }
 0x1ca   :  { %3362 = vmatmul.mubr.bf16.gmra.mrb[36].mxu0 %v5234_v9  ;;  %2919 = vmatprep.mubr.bf16.mxu1 %v5235_v10  ;;  %v5297_v10 = vld [vmem:[%s7224_s0 + $0x2a8] ss:$36 sps:$4 sm:$0xff]  }
 0x1cb   :  { %3369 = vmatprep.mubr.bf16.mxu0 %v5237_v12 }
 0x1d1   :  { %2920 = vmatmul.mubr.bf16.gmra.mrb[104].mxu1 %v5239_v13  ;;  %v5296_v13 = vld [vmem:[%s7224_s0 + $0x5b8] ss:$36 sps:$4 sm:$0xff]  }
 0x1d2   :  { %3370 = vmatmul.mubr.bf16.gmra.mrb[40].mxu0 %v5240_v15  ;;  %2927 = vmatprep.mubr.bf16.mxu1 %v5242_v16  ;;  %v5300_v15 = vld [vmem:[%s7224_s0 + $0x2f0] ss:$36 sps:$4 sm:$0xff]  }
 0x1d3   :  { %3377 = vmatprep.mubr.bf16.mxu0 %v5244_v17  ;;  %v5298_v17 = vld [vmem:[%s7224_s0 + $0x604] ss:$36 sps:$4 sm:$0xff]  }
 0x1d9   :  { %2928 = vmatmul.mubr.bf16.gmra.mrb[108].mxu1 %v5246_v18 }
 0x1da   :  { %3378 = vmatmul.mubr.bf16.gmra.mrb[44].mxu0 %v5247_v20  ;;  %2935 = vmatprep.mubr.bf16.mxu1 %v5248_v21  ;;  %v5302_v21 = vld [vmem:[%s7224_s0 + $0x338] ss:$36 sps:$4 sm:$0xff]  }
 0x1db   :  { %3385 = vmatprep.mubr.bf16.mxu0 %v5250_v23 }
 0x1e1   :  { %2936 = vmatmul.mubr.bf16.gmra.mrb[112].mxu1 %v5252_v24  ;;  %v5301_v24 = vld [vmem:[%s7224_s0 + $0x600] ss:$36 sps:$4 sm:$0xff]  }
 0x1e2   :  { %3386 = vmatmul.mubr.bf16.gmra.mrb[48].mxu0 %v5253_v25  ;;  %2943 = vmatprep.mubr.bf16.mxu1 %v5254_v26  ;;  %v5305_v25 = vld [vmem:[%s7224_s0 + $0x380] ss:$36 sps:$4 sm:$0xff]  }
 0x1e3   :  { %3393 = vmatprep.mubr.bf16.mxu0 %v5256_v28  ;;  %v5303_v28 = vld [vmem:[%s7224_s0 + $0x64c] ss:$36 sps:$4 sm:$0xff]  }
 0x1e9   :  { %2944 = vmatmul.mubr.bf16.gmra.mrb[116].mxu1 %v5258_v0 }
 0x1ea   :  { %3394 = vmatmul.mubr.bf16.gmra.mrb[52].mxu0 %v5259_v30  ;;  %2951 = vmatprep.mubr.bf16.mxu1 %v5261_v31  ;;  %v5307_v31 = vld [vmem:[%s7224_s0 + $0x3c8] ss:$36 sps:$4 sm:$0xff]  }
 0x1eb   :  { %3401 = vmatprep.mubr.bf16.mxu0 %v5263_v32 }
 0x1f1   :  { %2952 = vmatmul.mubr.bf16.gmra.mrb[120].mxu1 %v5265_v33  ;;  %v5306_v33 = vld [vmem:[%s7224_s0 + $0x648] ss:$36 sps:$4 sm:$0xff]  }
 0x1f2   :  { %3402 = vmatmul.mubr.bf16.gmra.mrb[56].mxu0 %v5266_v34  ;;  %2959 = vmatprep.mubr.bf16.mxu1 %v5267_v35  ;;  %v5310_v34 = vld [vmem:[%s7224_s0 + $0x410] ss:$36 sps:$4 sm:$0xff]  }
 0x1f3   :  { %3409 = vmatprep.mubr.bf16.mxu0 %v5269_v37  ;;  %v5308_v37 = vld [vmem:[%s7224_s0 + $0x694] ss:$36 sps:$4 sm:$0xff]  }
 0x1f9   :  { %2960 = vmatmul.mubr.bf16.gmra.mrb[124].mxu1 %v5271_v38 }
 0x1fa   :  { %3410 = vmatmul.mubr.bf16.gmra.mrb[60].mxu0 %v5272_v6  ;;  %4384 = vmatprep.mubr.bf16.mxu1 %v5275_v40  ;;  %v5312_v40 = vld [vmem:[%s7224_s0 + $0x458] ss:$36 sps:$4 sm:$0xff]  }
 0x1fb   :  { %3417 = vmatprep.mubr.bf16.mxu0 %v5273_v41 }
 0x201   :  { %4385 = vmatmul.mubr.bf16.vlgmr.msra.gmra.mrb[128].mxu1 %v5277_v42  ;;  %v5311_v42 = vld [vmem:[%s7224_s0 + $0x690] ss:$36 sps:$4 sm:$0xff]  }
 0x202   :  { %3418 = vmatmul.mubr.bf16.gmra.mrb[64].mxu0 %v5276_v43  ;;  %4388 = vmatprep.mubr.bf16.mxu1 %v5280_v45  ;;  %v5315_v43 = vld [vmem:[%s7224_s0 + $0x4a0] ss:$36 sps:$4 sm:$0xff]  }
 0x203   :  { %3425 = vmatprep.mubr.bf16.mxu0 %v5278_v46  ;;  %v5313_v46 = vld [vmem:[%s7224_s0 + $0x6dc] ss:$36 sps:$4 sm:$0xff]  }
 0x209   :  { %4389 = vmatmul.mubr.bf16.gmra.mrb[132].mxu1 %v5282_v47 }
 0x20a   :  { %3426 = vmatmul.mubr.bf16.gmra.mrb[68].mxu0 %v5281_v50  ;;  %4392 = vmatprep.mubr.bf16.mxu1 %v5285_v51  ;;  %v5317_v51 = vld [vmem:[%s7224_s0 + $0x4e8] ss:$36 sps:$4 sm:$0xff]  }
 0x20b   :  { %3433 = vmatprep.mubr.bf16.mxu0 %v5283_v53 }
 0x211   :  { %4393 = vmatmul.mubr.bf16.gmra.mrb[136].mxu1 %v5287_v54  ;;  %v5316_v54 = vld [vmem:[%s7224_s0 + $0x6d8] ss:$36 sps:$4 sm:$0xff]  }
 0x212   :  { %3434 = vmatmul.mubr.bf16.gmra.mrb[72].mxu0 %v5286_v55  ;;  %4396 = vmatprep.mubr.bf16.mxu1 %v5290_v56  ;;  %v5320_v55 = vld [vmem:[%s7224_s0 + $0x530] ss:$36 sps:$4 sm:$0xff]  }
 0x213   :  { %3441 = vmatprep.mubr.bf16.mxu0 %v5288_v58  ;;  %v5318_v58 = vld [vmem:[%s7224_s0 + $0x724] ss:$36 sps:$4 sm:$0xff]  }
 0x214   :  { %v6485_v59 = vpop.f32.mrb[32].mxu1 }
 0x215   :  { %v2779_v61 = vpop.f32.mrb[33].mxu1 }
 0x216   :  { %v6490_v63 = vpop.f32.mrb[34].mxu1 }
 0x217   :  { %v2782_v4 = vpop.f32.mrb[35].mxu1 }
 0x218   :  { %v5321_v4 = vld [vmem:[%s7224_s0 + $0x720] ss:$36 sps:$4 sm:$0xff]  }
 0x219   :  { %4397 = vmatmul.mubr.bf16.gmra.mrb[140].mxu1 %v5292_v62 }
 0x21a   :  { %3442 = vmatmul.mubr.bf16.gmra.mrb[76].mxu0 %v5291_v1  ;;  %4400 = vmatprep.mubr.bf16.mxu1 %v5295_v3  ;;  %v5322_v1 = vld [vmem:[%s7224_s0 + $0x578] ss:$36 sps:$4 sm:$0xff]  }
 0x21b   :  { %3449 = vmatprep.mubr.bf16.mxu0 %v5293_v7  ;;  %v5325_v7 = vld [vmem:[%s7224_s0 + $0x5c0] ss:$36 sps:$4 sm:$0xff]  }
 0x21c   :  { %v6501_v8 = vpop.f32.mrb[36].mxu1 }
 0x21d   :  { %v2787_v9 = vpop.f32.mrb[37].mxu1 }
 0x21e   :  { %v6506_v12 = vpop.f32.mrb[38].mxu1 }
 0x21f   :  { %v2790_v16 = vpop.f32.mrb[39].mxu1 }
 0x220   :  { %v5327_v16 = vld [vmem:[%s7224_s0 + $0x608] ss:$36 sps:$4 sm:$0xff]  }
 0x221   :  { %4401 = vmatmul.mubr.bf16.gmra.mrb[144].mxu1 %v5297_v10  ;;  %v5323_v10 = vld [vmem:[%s7224_s0 + $0x76c] ss:$36 sps:$4 sm:$0xff]  }
 0x222   :  { %3450 = vmatmul.mubr.bf16.gmra.mrb[80].mxu0 %v5296_v13  ;;  %4404 = vmatprep.mubr.bf16.mxu1 %v5300_v15 }
 0x223   :  { %3457 = vmatprep.mubr.bf16.mxu0 %v5298_v17 }
 0x224   :  { %v6517_v18 = vpop.f32.mrb[40].mxu1 }
 0x225   :  { %v2795_v20 = vpop.f32.mrb[41].mxu1 }
 0x226   :  { %v6522_v23 = vpop.f32.mrb[42].mxu1  ;;  %v5326_v20 = vld [vmem:[%s7224_s0 + $0x768] ss:$36 sps:$4 sm:$0xff]  }
 0x227   :  { %v2798_v26 = vpop.f32.mrb[43].mxu1 }
 0x228   :  { %v6616_v26 = vld [vmem:[%s7225_s2] ss:$0 sm:$0xff] }
 0x229   :  { %4405 = vmatmul.mubr.bf16.gmra.mrb[148].mxu1 %v5302_v21  ;;  %v5330_v21 = vld [vmem:[%s7224_s0 + $0x650] ss:$36 sps:$4 sm:$0xff]  }
 0x22a   :  { %3458 = vmatmul.mubr.bf16.gmra.mrb[84].mxu0 %v5301_v24  ;;  %4408 = vmatprep.mubr.bf16.mxu1 %v5305_v25  ;;  %v5328_v25 = vld [vmem:[%s7224_s0 + $0x7b4] ss:$36 sps:$4 sm:$0xff]  }
 0x22b   :  { %3465 = vmatprep.mubr.bf16.mxu0 %v5303_v28  ;;  %v2425_v28 = vadd.f32 %v6616_v26, %v6047_v49  ;;  %v5331_v49 = vld [vmem:[%s7224_s0 + $0x7b0] ss:$36 sps:$4 sm:$0xff]  }
 0x22c   :  { %v6533_v0 = vpop.f32.mrb[44].mxu1 }
 0x22d   :  { %v2803_v30 = vpop.f32.mrb[45].mxu1 }
 0x22e   :  { %v6538_v32 = vpop.f32.mrb[46].mxu1 }
 0x22f   :  { %v2806_v35 = vpop.f32.mrb[47].mxu1 }
 0x230   :  { %v2428_v35 = vadd.f32 %v6616_v26, %v6052_v52 }
 0x231   :  { %4409 = vmatmul.mubr.bf16.gmra.mrb[152].mxu1 %v5307_v31 }
 0x232   :  { %3466 = vmatmul.mubr.bf16.gmra.mrb[88].mxu0 %v5306_v33  ;;  %4412 = vmatprep.mubr.bf16.mxu1 %v5310_v34  ;;  %v5332_v34 = vld [vmem:[%s7224_s0 + $0x698] ss:$36 sps:$4 sm:$0xff]  }
 0x233   :  { %3473 = vmatprep.mubr.bf16.mxu0 %v5308_v37 }
 0x234   :  { %v6549_v38 = vpop.f32.mrb[48].mxu1 }
 0x235   :  { %v2811_v6 = vpop.f32.mrb[49].mxu1 }
 0x236   :  { %v6554_v41 = vpop.f32.mrb[50].mxu1 }
 0x237   :  { %v2814_v45 = vpop.f32.mrb[51].mxu1 }
 0x239   :  { %4413 = vmatmul.mubr.bf16.gmra.mrb[156].mxu1 %v5312_v40 }
 0x23a   :  { %3474 = vmatmul.mubr.bf16.gmra.mrb[92].mxu0 %v5311_v42  ;;  %4416 = vmatprep.mubr.bf16.mxu1 %v5315_v43  ;;  %v5335_v42 = vld [vmem:[%s7224_s0 + $0x6e0] ss:$36 sps:$4 sm:$0xff]  }
 0x23b   :  { %3481 = vmatprep.mubr.bf16.mxu0 %v5313_v46  ;;  %v5333_v46 = vld [vmem:[%s7224_s0 + $0x7fc] ss:$36 sps:$4 sm:$0xff]  }
 0x23c   :  { %v6565_v47 = vpop.f32.mrb[52].mxu1 }
 0x23d   :  { %v2819_v50 = vpop.f32.mrb[53].mxu1 }
 0x23e   :  { %v6570_v53 = vpop.f32.mrb[54].mxu1 }
 0x23f   :  { %v2822_v56 = vpop.f32.mrb[55].mxu1 }
 0x241   :  { %4417 = vmatmul.mubr.bf16.gmra.mrb[160].mxu1 %v5317_v51  ;;  %v2433_v51 = vadd.f32 %v6616_v26, %v6063_v57  ;;  %v5336_v57 = vld [vmem:[%s7224_s0 + $0x7f8] ss:$36 sps:$4 sm:$0xff]  }
 0x242   :  { %3482 = vmatmul.mubr.bf16.gmra.mrb[96].mxu0 %v5316_v54  ;;  %4420 = vmatprep.mubr.bf16.mxu1 %v5320_v55 }
 0x243   :  { %3489 = vmatprep.mubr.bf16.mxu0 %v5318_v58  ;;  %v5337_v58 = vld [vmem:[%s7224_s0 + $0x728] ss:$36 sps:$4 sm:$0xff]  }
 0x244   :  { %v6581_v61 = vpop.f32.mrb[56].mxu1 }
 0x245   :  { %v2827_v62 = vpop.f32.mrb[57].mxu1 }
 0x246   :  { %v6586_v3 = vpop.f32.mrb[58].mxu1  ;;  %v2436_v62 = vadd.f32 %v6616_v26, %v6068_v60 }
 0x247   :  { %v2830_v9 = vpop.f32.mrb[59].mxu1 }
 0x248   :  { %v5340_v9 = vld [vmem:[%s7224_s0 + $0x770] ss:$36 sps:$4 sm:$0xff]  }
 0x249   :  { %4421 = vmatmul.mubr.bf16.gmra.mrb[164].mxu1 %v5322_v1 }
 0x24a   :  { %3490 = vmatmul.mubr.bf16.gmra.mrb[100].mxu0 %v5321_v4  ;;  %4424 = vmatprep.mubr.bf16.mxu1 %v5325_v7 }
 0x24b   :  { %3497 = vmatprep.mubr.bf16.mxu0 %v5323_v10 }
 0x24c   :  { %v6597_v13 = vpop.f32.mrb[60].mxu1 }
 0x24d   :  { %v2835_v15 = vpop.f32.mrb[61].mxu1 }
 0x24e   :  { %v6602_v17 = vpop.f32.mrb[62].mxu1 }
 0x24f   :  { %v2838_v24 = vpop.f32.mrb[63].mxu1 }
 0x251   :  { %4425 = vmatmul.mubr.bf16.gmra.mrb[168].mxu1 %v5327_v16  ;;  %v5338_v16 = vld [vmem:[%s7224_s0 + $0x844] ss:$36 sps:$4 sm:$0xff]  }
 0x252   :  { %3498 = vmatmul.mubr.bf16.gmra.mrb[104].mxu0 %v5326_v20  ;;  %4428 = vmatprep.mubr.bf16.mxu1 %v5330_v21  ;;  %v2441_v21 = vadd.f32 %v6616_v26, %v6079_v2  ;;  %v5341_v2 = vld [vmem:[%s7224_s0 + $0x840] ss:$36 sps:$4 sm:$0xff]  }
 0x253   :  { %3505 = vmatprep.mubr.bf16.mxu0 %v5328_v25 }
 0x254   :  { %v6620_v30 = vpop.f32.mrb[64].mxu1 }
 0x255   :  { %v3291_v31 = vpop.f32.mrb[0].mxu0  ;;  %v2843_v33 = vpop.f32.mrb[65].mxu1 }
 0x256   :  { %v6627_v37 = vadd.f32 %v3291_v31, %v2425_v28  ;;  %v3293_v6 = vpop.f32.mrb[1].mxu0  ;;  %v6629_v40 = vpop.f32.mrb[66].mxu1  ;;  %v5342_v31 = vld [vmem:[%s7224_s0 + $0x7b8] ss:$36 sps:$4 sm:$0xff]   ;;  %v2444_v33 = vadd.f32 %v6616_v26, %v6084_v5 }
 0x257   :  { %v3294_v43 = vpop.f32.mrb[2].mxu0  ;;  %v2846_v45 = vpop.f32.mrb[67].mxu1 }
 0x258   :  { %v6640_v52 = vadd.f32 %v3294_v43, %v2428_v35  ;;  %v3296_v50 = vpop.f32.mrb[3].mxu0  ;;  %v5343_v45 = vld [vmem:[%s7224_s0 + $0x88c] ss:$36 sps:$4 sm:$0xff]  }
 0x259   :  { %4429 = vmatmul.mubr.bf16.gmra.mrb[172].mxu1 %v5332_v34  ;;  %v2449_v50 = vadd.f32 %v6616_v26, %v6095_v11  ;;  %v5346_v11 = vld [vmem:[%s7224_s0 + $0x888] ss:$36 sps:$4 sm:$0xff]  }
 0x25a   :  { %3506 = vmatmul.mubr.bf16.gmra.mrb[108].mxu0 %v5331_v49  ;;  %4432 = vmatprep.mubr.bf16.mxu1 %v5335_v42  ;;  %v5345_v49 = vld [vmem:[%s7224_s0 + $0x800] ss:$36 sps:$4 sm:$0xff]  }
 0x25b   :  { %3513 = vmatprep.mubr.bf16.mxu0 %v5333_v46 }
 0x25c   :  { %v6644_v54 = vpop.f32.mrb[68].mxu1 }
 0x25d   :  { %v3299_v55 = vpop.f32.mrb[4].mxu0  ;;  %v2851_v56 = vpop.f32.mrb[69].mxu1 }
 0x25e   :  { %v6651_v1 = vadd.f32 %v3299_v55, %v2433_v51  ;;  %v3301_v4 = vpop.f32.mrb[5].mxu0  ;;  %v6653_v7 = vpop.f32.mrb[70].mxu1 }
 0x25f   :  { %v3302_v10 = vpop.f32.mrb[6].mxu0  ;;  %v2854_v15 = vpop.f32.mrb[71].mxu1 }
 0x260   :  { %v6664_v60 = vadd.f32 %v3302_v10, %v2436_v62  ;;  %v3304_v20 = vpop.f32.mrb[7].mxu0  ;;  %v2452_v62 = vadd.f32 %v6616_v26, %v6100_v14  ;;  %v5350_v10 = vld [vmem:[%s7224_s0 + $0x890] ss:$36 sps:$4 sm:$0xff]  }
 0x261   :  { %4433 = vmatmul.mubr.bf16.gmra.mrb[176].mxu1 %v5337_v58  ;;  %v5347_v58 = vld [vmem:[%s7224_s0 + $0x848] ss:$36 sps:$4 sm:$0xff]   ;;  %v5348_v20 = vld [vmem:[%s7224_s0 + $0x8d4] ss:$36 sps:$4 sm:$0xff]  }
 0x262   :  { %3514 = vmatmul.mubr.bf16.gmra.mrb[112].mxu0 %v5336_v57  ;;  %4436 = vmatprep.mubr.bf16.mxu1 %v5340_v9 }
 0x263   :  { %3521 = vmatprep.mubr.bf16.mxu0 %v5338_v16 }
 0x264   :  { %v6668_v24 = vpop.f32.mrb[72].mxu1 }
 0x265   :  { %v3307_v25 = vpop.f32.mrb[8].mxu0  ;;  %v2859_v28 = vpop.f32.mrb[73].mxu1 }
 0x266   :  { %v6675_v34 = vadd.f32 %v3307_v25, %v2441_v21  ;;  %v3309_v35 = vpop.f32.mrb[9].mxu0  ;;  %v6677_v6 = vpop.f32.mrb[74].mxu1  ;;  %v2457_v25 = vadd.f32 %v6616_v26, %v6111_v19  ;;  %v5351_v19 = vld [vmem:[%s7224_s0 + $0x8d0] ss:$36 sps:$4 sm:$0xff]  }
 0x267   :  { %v3310_v42 = vpop.f32.mrb[10].mxu0  ;;  %v2862_v43 = vpop.f32.mrb[75].mxu1  ;;  %v5352_v35 = vld [vmem:[%s7224_s0 + $0x8d8] ss:$36 sps:$4 sm:$0xff]  }
 0x268   :  { %v6688_v5 = vadd.f32 %v3310_v42, %v2444_v33  ;;  %v3312_v46 = vpop.f32.mrb[11].mxu0 }
 0x269   :  { %4437 = vmatmul.mubr.bf16.gmra.mrb[180].mxu1 %v5342_v31 }
 0x26a   :  { %3522 = vmatmul.mubr.bf16.gmra.mrb[116].mxu0 %v5341_v2  ;;  %4440 = vmatprep.mubr.bf16.mxu1 %v5345_v49  ;;  %v2460_v2 = vadd.f32 %v6616_v26, %v6116_v22 }
 0x26b   :  { %3529 = vmatprep.mubr.bf16.mxu0 %v5343_v45 }
 0x26c   :  { %v6692_v51 = vpop.f32.mrb[76].mxu1 }
 0x26d   :  { %v3315_v55 = vpop.f32.mrb[12].mxu0  ;;  %v2867_v56 = vpop.f32.mrb[77].mxu1 }
 0x26e   :  { %v6699_v4 = vadd.f32 %v3315_v55, %v2449_v50  ;;  %v3317_v57 = vpop.f32.mrb[13].mxu0  ;;  %v6701_v9 = vpop.f32.mrb[78].mxu1  ;;  %v2465_v56 = vadd.f32 %v6616_v26, %v6127_v27  ;;  %v2473_v27 = vadd.f32 %v6616_v26, %v6150_v36  ;;  %v2481_v36 = vadd.f32 %v6616_v26, %v6169_v44 }
 0x26f   :  { %v3318_v15 = vpop.f32.mrb[14].mxu0  ;;  %v2870_v16 = vpop.f32.mrb[79].mxu1  ;;  %v2468_v57 = vadd.f32 %v6616_v26, %v6132_v29  ;;  %v2476_v29 = vadd.f32 %v6616_v26, %v6155_v39  ;;  %v2484_v39 = vadd.f32 %v6616_v26, %v6177_v48  ;;  %v4512_v44 = vadd.f32 %v6616_v26, %v6485_v59 }
 0x270   :  { %v6712_v14 = vadd.f32 %v3318_v15, %v2452_v62  ;;  %v3320_v21 = vpop.f32.mrb[15].mxu0  ;;  %v4514_v48 = vadd.f32 %v6616_v26, %v6490_v63  ;;  %v4516_v59 = vadd.f32 %v6616_v26, %v6501_v8  ;;  %v4518_v63 = vadd.f32 %v6616_v26, %v6506_v12 }
 0x271   :  { %4441 = vmatmul.mubr.bf16.gmra.mrb[184].mxu1 %v5347_v58  ;;  %v4520_v8 = vadd.f32 %v6616_v26, %v6517_v18  ;;  %v4522_v12 = vadd.f32 %v6616_v26, %v6522_v23  ;;  %v4524_v18 = vadd.f32 %v6616_v26, %v6533_v0  ;;  %v4526_v23 = vadd.f32 %v6616_v26, %v6538_v32 }
 0x272   :  { %3530 = vmatmul.mubr.bf16.gmra.mrb[120].mxu0 %v5346_v11  ;;  %4444 = vmatprep.mubr.bf16.mxu1 %v5350_v10  ;;  %v4528_v0 = vadd.f32 %v6616_v26, %v6549_v38  ;;  %v4530_v32 = vadd.f32 %v6616_v26, %v6554_v41  ;;  %v4532_v38 = vadd.f32 %v6616_v26, %v6565_v47 }
 0x273   :  { %3537 = vmatprep.mubr.bf16.mxu0 %v5348_v20  ;;  %v4534_v41 = vadd.f32 %v6616_v26, %v6570_v53  ;;  %v4536_v47 = vadd.f32 %v6616_v26, %v6581_v61  ;;  %v4538_v53 = vadd.f32 %v6616_v26, %v6586_v3  ;;  %v4540_v61 = vadd.f32 %v6616_v26, %v6597_v13 }
 0x274   :  { %v6716_v28 = vpop.f32.mrb[80].mxu1  ;;  %v4542_v3 = vadd.f32 %v6616_v26, %v6602_v17  ;;  %v4544_v13 = vadd.f32 %v6616_v26, %v6620_v30  ;;  %v4546_v17 = vadd.f32 %v6616_v26, %v6629_v40 }
 0x275   :  { %v3323_v31 = vpop.f32.mrb[16].mxu0  ;;  %v2875_v33 = vpop.f32.mrb[81].mxu1 }
 0x276   :  { %v6723_v49 = vadd.f32 %v3323_v31, %v2457_v25  ;;  %v3325_v42 = vpop.f32.mrb[17].mxu0  ;;  %v6725_v43 = vpop.f32.mrb[82].mxu1 }
 0x277   :  { %v3326_v45 = vpop.f32.mrb[18].mxu0  ;;  %v2878_v46 = vpop.f32.mrb[83].mxu1 }
 0x278   :  { %v6730_v50 = vadd.f32 %v3326_v45, %v2460_v2  ;;  %v3328_v55 = vpop.f32.mrb[19].mxu0 }
 0x279   :  { %4445 = vmatmul.mubr.bf16.gmra.mrb[188].mxu1 %v5352_v35 }
 0x27a   :  { %3538 = vmatmul.mubr.bf16.gmra.mrb[124].mxu0 %v5351_v19 }
 0x27c   :  { %v6734_v22 = vpop.f32.mrb[84].mxu1 }
 0x27d   :  { %v3331_v58 = vpop.f32.mrb[20].mxu0  ;;  %v2883_v62 = vpop.f32.mrb[85].mxu1 }
 0x27e   :  { %v6738_v11 = vadd.f32 %v3331_v58, %v2465_v56  ;;  %v3333_v10 = vpop.f32.mrb[21].mxu0  ;;  %v6740_v15 = vpop.f32.mrb[86].mxu1 }
 0x27f   :  { %v3334_v16 = vpop.f32.mrb[22].mxu0  ;;  %v2886_v20 = vpop.f32.mrb[87].mxu1 }
 0x280   :  { %v6742_v21 = vadd.f32 %v3334_v16, %v2468_v57  ;;  %v3336_v25 = vpop.f32.mrb[23].mxu0 }
 0x284   :  { %v6746_v31 = vpop.f32.mrb[88].mxu1 }
 0x285   :  { %v3339_v33 = vpop.f32.mrb[24].mxu0  ;;  %v2891_v35 = vpop.f32.mrb[89].mxu1 }
 0x286   :  { %v6750_v2 = vadd.f32 %v3339_v33, %v2473_v27  ;;  %v3341_v42 = vpop.f32.mrb[25].mxu0  ;;  %v6752_v19 = vpop.f32.mrb[90].mxu1 }
 0x287   :  { %v3342_v45 = vpop.f32.mrb[26].mxu0  ;;  %v2894_v46 = vpop.f32.mrb[91].mxu1 }
 0x288   :  { %v6754_v55 = vadd.f32 %v3342_v45, %v2476_v29  ;;  %v3344_v56 = vpop.f32.mrb[27].mxu0 }
 0x28c   :  { %v6758_v58 = vpop.f32.mrb[92].mxu1 }
 0x28d   :  { %v3347_v62 = vpop.f32.mrb[28].mxu0  ;;  %v2899_v57 = vpop.f32.mrb[93].mxu1 }
 0x28e   :  { %v6762_v10 = vadd.f32 %v3347_v62, %v2481_v36  ;;  %v3349_v16 = vpop.f32.mrb[29].mxu0  ;;  %v6764_v20 = vpop.f32.mrb[94].mxu1 }
 0x28f   :  { %v3350_v25 = vpop.f32.mrb[30].mxu0  ;;  %v2902_v27 = vpop.f32.mrb[95].mxu1 }
 0x290   :  { %v6766_v33 = vadd.f32 %v3350_v25, %v2484_v39  ;;  %v3352_v35 = vpop.f32.mrb[31].mxu0 }
 0x294   :  { %v6770_v29 = vpop.f32.mrb[96].mxu1 }
 0x295   :  { %7227 = vst [vmem:[#allocation2_spill] sm:$0xff] %v6770_v29  ;;  %v3355_v42 = vpop.f32.mrb[32].mxu0  ;;  %v2907_v45 = vpop.f32.mrb[97].mxu1 }
 0x296   :  { %v6774_v46 = vadd.f32 %v4512_v44, %v3355_v42  ;;  %v3357_v56 = vpop.f32.mrb[33].mxu0  ;;  %v6776_v36 = vpop.f32.mrb[98].mxu1 }
 0x297   :  { %7228 = vst [vmem:[#allocation3_spill] sm:$0xff] %v6776_v36  ;;  %v3358_v62 = vpop.f32.mrb[34].mxu0  ;;  %v2910_v57 = vpop.f32.mrb[99].mxu1 }
 0x298   :  { %v6778_v39 = vadd.f32 %v4514_v48, %v3358_v62  ;;  %v3360_v16 = vpop.f32.mrb[35].mxu0 }
 0x29c   :  { %v6782_v25 = vpop.f32.mrb[100].mxu1 }
 0x29d   :  { %7229 = vst [vmem:[#allocation4_spill] sm:$0xff] %v6782_v25  ;;  %v3363_v27 = vpop.f32.mrb[36].mxu0  ;;  %v2915_v35 = vpop.f32.mrb[101].mxu1 }
 0x29e   :  { %v6786_v44 = vadd.f32 %v4516_v59, %v3363_v27  ;;  %v3365_v42 = vpop.f32.mrb[37].mxu0  ;;  %v6788_v45 = vpop.f32.mrb[102].mxu1 }
 0x29f   :  { %7230 = vst [vmem:[#allocation5_spill] sm:$0xff] %v6788_v45  ;;  %v3366_v56 = vpop.f32.mrb[38].mxu0  ;;  %v2918_v57 = vpop.f32.mrb[103].mxu1 }
 0x2a0   :  { %v6790_v48 = vadd.f32 %v4518_v63, %v3366_v56  ;;  %v3368_v62 = vpop.f32.mrb[39].mxu0 }
 0x2a4   :  { %v6794_v16 = vpop.f32.mrb[104].mxu1 }
 0x2a5   :  { %7231 = vst [vmem:[#allocation6_spill] sm:$0xff] %v6794_v16  ;;  %v3371_v25 = vpop.f32.mrb[40].mxu0  ;;  %v2923_v35 = vpop.f32.mrb[105].mxu1 }
 0x2a6   :  { %v6798_v59 = vadd.f32 %v4520_v8, %v3371_v25  ;;  %v3373_v27 = vpop.f32.mrb[41].mxu0  ;;  %v6800_v42 = vpop.f32.mrb[106].mxu1 }
 0x2a7   :  { %7232 = vst [vmem:[#allocation7_spill] sm:$0xff] %v6800_v42  ;;  %v3374_v45 = vpop.f32.mrb[42].mxu0  ;;  %v2926_v57 = vpop.f32.mrb[107].mxu1 }
 0x2a8   :  { %v6802_v63 = vadd.f32 %v4522_v12, %v3374_v45  ;;  %v3376_v56 = vpop.f32.mrb[43].mxu0 }
 0x2ac   :  { %v6806_v62 = vpop.f32.mrb[108].mxu1 }
 0x2ad   :  { %7233 = vst [vmem:[#allocation8_spill] sm:$0xff] %v6806_v62  ;;  %v3379_v16 = vpop.f32.mrb[44].mxu0  ;;  %v2931_v35 = vpop.f32.mrb[109].mxu1 }
 0x2ae   :  { %v6810_v25 = vadd.f32 %v4524_v18, %v3379_v16  ;;  %v3381_v8 = vpop.f32.mrb[45].mxu0  ;;  %v6812_v27 = vpop.f32.mrb[110].mxu1 }
 0x2af   :  { %7234 = vst [vmem:[#allocation9_spill] sm:$0xff] %v6812_v27  ;;  %v3382_v42 = vpop.f32.mrb[46].mxu0  ;;  %v2934_v57 = vpop.f32.mrb[111].mxu1 }
 0x2b0   :  { %v6814_v45 = vadd.f32 %v4526_v23, %v3382_v42  ;;  %v3384_v12 = vpop.f32.mrb[47].mxu0 }
 0x2b4   :  { %v6818_v56 = vpop.f32.mrb[112].mxu1 }
 0x2b5   :  { %7235 = vst [vmem:[#allocation10_spill] sm:$0xff] %v6818_v56  ;;  %v3387_v62 = vpop.f32.mrb[48].mxu0  ;;  %v2939_v35 = vpop.f32.mrb[113].mxu1 }
 0x2b6   :  { %v6822_v16 = vadd.f32 %v4528_v0, %v3387_v62  ;;  %v3389_v18 = vpop.f32.mrb[49].mxu0  ;;  %v6824_v8 = vpop.f32.mrb[114].mxu1 }
 0x2b7   :  { %7236 = vst [vmem:[#allocation11_spill] sm:$0xff] %v6824_v8  ;;  %v3390_v27 = vpop.f32.mrb[50].mxu0  ;;  %v2942_v57 = vpop.f32.mrb[115].mxu1 }
 0x2b8   :  { %v6826_v42 = vadd.f32 %v4530_v32, %v3390_v27  ;;  %v3392_v23 = vpop.f32.mrb[51].mxu0 }
 0x2bc   :  { %v6830_v12 = vpop.f32.mrb[116].mxu1 }
 0x2bd   :  { %7237 = vst [vmem:[#allocation12_spill] sm:$0xff] %v6830_v12  ;;  %v3395_v56 = vpop.f32.mrb[52].mxu0  ;;  %v2947_v35 = vpop.f32.mrb[117].mxu1 }
 0x2be   :  { %v6834_v62 = vadd.f32 %v4532_v38, %v3395_v56  ;;  %v3397_v0 = vpop.f32.mrb[53].mxu0  ;;  %v6836_v18 = vpop.f32.mrb[118].mxu1 }
 0x2bf   :  { %7238 = vst [vmem:[#allocation13_spill] sm:$0xff] %v6836_v18  ;;  %v3398_v8 = vpop.f32.mrb[54].mxu0  ;;  %v2950_v57 = vpop.f32.mrb[119].mxu1 }
 0x2c0   :  { %v6838_v27 = vadd.f32 %v4534_v41, %v3398_v8  ;;  %v3400_v32 = vpop.f32.mrb[55].mxu0 }
 0x2c4   :  { %v6842_v23 = vpop.f32.mrb[120].mxu1 }
 0x2c5   :  { %7239 = vst [vmem:[#allocation14_spill] sm:$0xff] %v6842_v23  ;;  %v3403_v12 = vpop.f32.mrb[56].mxu0  ;;  %v2955_v35 = vpop.f32.mrb[121].mxu1 }
 0x2c6   :  { %v6846_v56 = vadd.f32 %v4536_v47, %v3403_v12  ;;  %v3405_v38 = vpop.f32.mrb[57].mxu0  ;;  %v6848_v0 = vpop.f32.mrb[122].mxu1 }
 0x2c7   :  { %7240 = vst [vmem:[#allocation15_spill] sm:$0xff] %v6848_v0  ;;  %v3406_v18 = vpop.f32.mrb[58].mxu0  ;;  %v2958_v57 = vpop.f32.mrb[123].mxu1 }
 0x2c8   :  { %v6850_v8 = vadd.f32 %v4538_v53, %v3406_v18  ;;  %v3408_v41 = vpop.f32.mrb[59].mxu0 }
 0x2ca   :  { %7241 = vst [vmem:[#allocation16_spill] sm:$0xff] %v6850_v8 }
 0x2cc   :  { %v6854_v32 = vpop.f32.mrb[124].mxu1 }
 0x2cd   :  { %7242 = vst [vmem:[#allocation17_spill] sm:$0xff] %v6854_v32  ;;  %v3411_v23 = vpop.f32.mrb[60].mxu0  ;;  %v2963_v35 = vpop.f32.mrb[125].mxu1 }
 0x2ce   :  { %v6858_v12 = vadd.f32 %v4540_v61, %v3411_v23  ;;  %v3413_v47 = vpop.f32.mrb[61].mxu0  ;;  %v6860_v38 = vpop.f32.mrb[126].mxu1 }
 0x2cf   :  { %7243 = vst [vmem:[#allocation18_spill] sm:$0xff] %v6860_v38  ;;  %v3414_v0 = vpop.f32.mrb[62].mxu0  ;;  %v2966_v57 = vpop.f32.mrb[127].mxu1 }
 0x2d0   :  { %v6862_v18 = vadd.f32 %v4542_v3, %v3414_v0  ;;  %v3416_v53 = vpop.f32.mrb[63].mxu0 }
 0x2d4   :  { %v4386_v41 = vpop.f32.mrb[128].mxu1 }
 0x2d5   :  { %v3419_v32 = vpop.f32.mrb[64].mxu0  ;;  %v3589_v35 = vadd.f32 %v6651_v1, %v4386_v41  ;;  %v3580_v36 = vpop.f32.mrb[129].mxu1 }
 0x2d6   :  { %v6869_v23 = vadd.f32 %v4544_v13, %v3419_v32  ;;  %v3421_v61 = vpop.f32.mrb[65].mxu0  ;;  %v3581_v47 = vadd.f32 %v6627_v37, %v3580_v36  ;;  %v4387_v57 = vpop.f32.mrb[130].mxu1 }
 0x2d7   :  { %v3837_v0 = vmax.f32 %v3589_v35, 0.0  ;;  %v3422_v3 = vpop.f32.mrb[66].mxu0  ;;  %v3592_v53 = vadd.f32 %v6664_v60, %v4387_v57  ;;  %v3583_v38 = vpop.f32.mrb[131].mxu1  ;;  %v4548_v60 = vadd.f32 %v6616_v26, %v6644_v54 }
 0x2d8   :  { %v3835_v30 = vmax.f32 %v3581_v47, 0.0  ;;  %v6873_v29 = vadd.f32 %v4546_v17, %v3422_v3  ;;  %v3424_v8 = vpop.f32.mrb[67].mxu0  ;;  %v3584_v1 = vadd.f32 %v6640_v52, %v3583_v38  ;;  %v4550_v38 = vadd.f32 %v6616_v26, %v6653_v7 }
 0x2d9   :  { %3901 = vst [vmem:[%s7226_s3 + $0x10] sm:$0xff] %v3837_v0  ;;  %v3838_v40 = vmax.f32 %v3592_v53, 0.0 }
 0x2da   :  { %3899 = vst [vmem:[%s7226_s3] sm:$0xff] %v3835_v30  ;;  %v3836_v37 = vmax.f32 %v3584_v1, 0.0 }
 0x2db   :  { %3902 = vst [vmem:[%s7226_s3 + $0x18] sm:$0xff] %v3838_v40 }
 0x2dc   :  { %3900 = vst [vmem:[%s7226_s3 + $0x8] sm:$0xff] %v3836_v37  ;;  %v4390_v52 = vpop.f32.mrb[132].mxu1  ;;  %v4554_v37 = vadd.f32 %v6616_v26, %v6677_v6 }
 0x2dd   :  { %v3427_v36 = vpop.f32.mrb[68].mxu0  ;;  %v3605_v8 = vadd.f32 %v6699_v4, %v4390_v52  ;;  %v3596_v32 = vpop.f32.mrb[133].mxu1 }
 0x2de   :  { %v6893_v13 = vadd.f32 %v4548_v60, %v3427_v36  ;;  %v3429_v41 = vpop.f32.mrb[69].mxu0  ;;  %v3597_v35 = vadd.f32 %v6675_v34, %v3596_v32  ;;  %v4391_v17 = vpop.f32.mrb[134].mxu1 }
 0x2df   :  { %v3841_v61 = vmax.f32 %v3605_v8, 0.0  ;;  %v3430_v54 = vpop.f32.mrb[70].mxu0  ;;  %v3608_v47 = vadd.f32 %v6712_v14, %v4391_v17  ;;  %v3599_v57 = vpop.f32.mrb[135].mxu1  ;;  %v4552_v14 = vadd.f32 %v6616_v26, %v6668_v24 }
 0x2e0   :  { %v3839_v0 = vmax.f32 %v3597_v35, 0.0  ;;  %v6897_v3 = vadd.f32 %v4550_v38, %v3430_v54  ;;  %v3432_v53 = vpop.f32.mrb[71].mxu0  ;;  %v3600_v4 = vadd.f32 %v6688_v5, %v3599_v57 }
 0x2e1   :  { %3905 = vst [vmem:[%s7226_s3 + $0x30] sm:$0xff] %v3841_v61  ;;  %v3842_v7 = vmax.f32 %v3608_v47, 0.0 }
 0x2e2   :  { %3903 = vst [vmem:[%s7226_s3 + $0x20] sm:$0xff] %v3839_v0  ;;  %v3840_v34 = vmax.f32 %v3600_v4, 0.0  ;;  %v4558_v0 = vadd.f32 %v6616_v26, %v6701_v9 }
 0x2e3   :  { %3906 = vst [vmem:[%s7226_s3 + $0x38] sm:$0xff] %v3842_v7 }
 0x2e4   :  { %3904 = vst [vmem:[%s7226_s3 + $0x28] sm:$0xff] %v3840_v34  ;;  %v4394_v5 = vpop.f32.mrb[136].mxu1 }
 0x2e5   :  { %v3435_v30 = vpop.f32.mrb[72].mxu0  ;;  %v3621_v1 = vadd.f32 %v6738_v11, %v4394_v5  ;;  %v3612_v40 = vpop.f32.mrb[137].mxu1 }
 0x2e6   :  { %v6917_v60 = vadd.f32 %v4552_v14, %v3435_v30  ;;  %v3437_v52 = vpop.f32.mrb[73].mxu0  ;;  %v3613_v36 = vadd.f32 %v6723_v49, %v3612_v40  ;;  %v4395_v8 = vpop.f32.mrb[138].mxu1 }
 0x2e7   :  { %v3845_v32 = vmax.f32 %v3621_v1, 0.0  ;;  %v3438_v24 = vpop.f32.mrb[74].mxu0  ;;  %v3624_v38 = vadd.f32 %v6742_v21, %v4395_v8  ;;  %v3615_v41 = vpop.f32.mrb[139].mxu1  ;;  %v4556_v21 = vadd.f32 %v6616_v26, %v6692_v51 }
 0x2e8   :  { %v3843_v35 = vmax.f32 %v3613_v36, 0.0  ;;  %v6921_v17 = vadd.f32 %v4554_v37, %v3438_v24  ;;  %v3440_v61 = vpop.f32.mrb[75].mxu0  ;;  %v3616_v11 = vadd.f32 %v6730_v50, %v3615_v41 }
 0x2e9   :  { %3909 = vst [vmem:[%s7226_s3 + $0x50] sm:$0xff] %v3845_v32  ;;  %v3846_v6 = vmax.f32 %v3624_v38, 0.0  ;;  %v4562_v32 = vadd.f32 %v6616_v26, %v6725_v43 }
 0x2ea   :  { %3907 = vst [vmem:[%s7226_s3 + $0x40] sm:$0xff] %v3843_v35  ;;  %v3844_v49 = vmax.f32 %v3616_v11, 0.0 }
 0x2eb   :  { %3910 = vst [vmem:[%s7226_s3 + $0x58] sm:$0xff] %v3846_v6 }
 0x2ec   :  { %3908 = vst [vmem:[%s7226_s3 + $0x48] sm:$0xff] %v3844_v49  ;;  %v4398_v50 = vpop.f32.mrb[140].mxu1 }
 0x2ed   :  { %v3443_v54 = vpop.f32.mrb[76].mxu0  ;;  %v3637_v47 = vadd.f32 %v6762_v10, %v4398_v50  ;;  %v3628_v57 = vpop.f32.mrb[141].mxu1 }
 0x2ee   :  { %v6941_v53 = vadd.f32 %v4556_v21, %v3443_v54  ;;  %v3445_v4 = vpop.f32.mrb[77].mxu0  ;;  %v3629_v7 = vadd.f32 %v6750_v2, %v3628_v57  ;;  %v4399_v34 = vpop.f32.mrb[142].mxu1 }
 0x2ef   :  { %v3849_v14 = vmax.f32 %v3637_v47, 0.0  ;;  %v3446_v51 = vpop.f32.mrb[78].mxu0  ;;  %v3640_v5 = vadd.f32 %v6766_v33, %v4399_v34  ;;  %v3631_v30 = vpop.f32.mrb[143].mxu1  ;;  %v4560_v33 = vadd.f32 %v6616_v26, %v6716_v28 }
 0x2f0   :  { %v3847_v1 = vmax.f32 %v3629_v7, 0.0  ;;  %v6945_v40 = vadd.f32 %v4558_v0, %v3446_v51  ;;  %v3448_v37 = vpop.f32.mrb[79].mxu0  ;;  %v3632_v10 = vadd.f32 %v6754_v55, %v3631_v30  ;;  %v4566_v0 = vadd.f32 %v6616_v26, %v6740_v15 }
 0x2f1   :  { %3913 = vst [vmem:[%s7226_s3 + $0x70] sm:$0xff] %v3849_v14  ;;  %v3850_v9 = vmax.f32 %v3640_v5, 0.0 }
 0x2f2   :  { %3911 = vst [vmem:[%s7226_s3 + $0x60] sm:$0xff] %v3847_v1  ;;  %v3848_v2 = vmax.f32 %v3632_v10, 0.0 }
 0x2f3   :  { %3914 = vst [vmem:[%s7226_s3 + $0x78] sm:$0xff] %v3850_v9 }
 0x2f4   :  { %3912 = vst [vmem:[%s7226_s3 + $0x68] sm:$0xff] %v3848_v2  ;;  %v4402_v55 = vpop.f32.mrb[144].mxu1 }
 0x2f5   :  { %v3451_v52 = vpop.f32.mrb[80].mxu0  ;;  %v3653_v36 = vadd.f32 %v6786_v44, %v4402_v55  ;;  %v3644_v8 = vpop.f32.mrb[145].mxu1  ;;  %v4570_v55 = vadd.f32 %v6616_v26, %v6752_v19 }
 0x2f6   :  { %v6965_v24 = vadd.f32 %v4560_v33, %v3451_v52  ;;  %v3453_v38 = vpop.f32.mrb[81].mxu0  ;;  %v3645_v41 = vadd.f32 %v6774_v46, %v3644_v8  ;;  %v4403_v35 = vpop.f32.mrb[146].mxu1 }
 0x2f7   :  { %v3853_v61 = vmax.f32 %v3653_v36, 0.0  ;;  %v3454_v28 = vpop.f32.mrb[82].mxu0  ;;  %v3656_v11 = vadd.f32 %v6790_v48, %v4403_v35  ;;  %v3647_v6 = vpop.f32.mrb[147].mxu1  ;;  %v4564_v48 = vadd.f32 %v6616_v26, %v6734_v22 }
 0x2f8   :  { %v3851_v49 = vmax.f32 %v3645_v41, 0.0  ;;  %v6969_v21 = vadd.f32 %v4562_v32, %v3454_v28  ;;  %v3456_v50 = vpop.f32.mrb[83].mxu0  ;;  %v3648_v44 = vadd.f32 %v6778_v39, %v3647_v6 }
 0x2f9   :  { %3917 = vst [vmem:[%s7226_s3 + $0x90] sm:$0xff] %v3853_v61  ;;  %v3854_v43 = vmax.f32 %v3656_v11, 0.0 }
 0x2fa   :  { %3915 = vst [vmem:[%s7226_s3 + $0x80] sm:$0xff] %v3851_v49  ;;  %v3852_v46 = vmax.f32 %v3648_v44, 0.0  ;;  %v4574_v44 = vadd.f32 %v6616_v26, %v6764_v20 }
 0x2fb   :  { %3918 = vst [vmem:[%s7226_s3 + $0x98] sm:$0xff] %v3854_v43 }
 0x2fc   :  { %3916 = vst [vmem:[%s7226_s3 + $0x88] sm:$0xff] %v3852_v46  ;;  %v4406_v39 = vpop.f32.mrb[148].mxu1 }
 0x2fd   :  { %v3459_v54 = vpop.f32.mrb[84].mxu0  ;;  %v3669_v47 = vadd.f32 %v6810_v25, %v4406_v39  ;;  %v3660_v57 = vpop.f32.mrb[149].mxu1 }
 0x2fe   :  { %v6989_v4 = vadd.f32 %v4564_v48, %v3459_v54  ;;  %v3461_v7 = vpop.f32.mrb[85].mxu0  ;;  %v3661_v34 = vadd.f32 %v6798_v59, %v3660_v57  ;;  %v4407_v14 = vpop.f32.mrb[150].mxu1 }
 0x2ff   :  { %v3857_v51 = vmax.f32 %v3669_v47, 0.0  ;;  %v3462_v22 = vpop.f32.mrb[86].mxu0  ;;  %v3672_v5 = vadd.f32 %v6814_v45, %v4407_v14  ;;  %v3663_v30 = vpop.f32.mrb[151].mxu1  ;;  %v4568_v45 = vadd.f32 %v6616_v26, %v6746_v31 }
 0x300   :  { %v3855_v1 = vmax.f32 %v3661_v34, 0.0  ;;  %v6993_v37 = vadd.f32 %v4566_v0, %v3462_v22  ;;  %v3464_v10 = vpop.f32.mrb[87].mxu0  ;;  %v3664_v25 = vadd.f32 %v6802_v63, %v3663_v30 }
 0x301   :  { %3921 = vst [vmem:[%s7226_s3 + $0xb0] sm:$0xff] %v3857_v51  ;;  %v3858_v15 = vmax.f32 %v3672_v5, 0.0  ;;  %v7246_v10 = vld [vmem:[#allocation3_spill] sm:$0xff] }
 0x302   :  { %3919 = vst [vmem:[%s7226_s3 + $0xa0] sm:$0xff] %v3855_v1  ;;  %v3856_v59 = vmax.f32 %v3664_v25, 0.0  ;;  %v4578_v25 = vadd.f32 %v6616_v26, %v7246_v10 }
 0x303   :  { %3922 = vst [vmem:[%s7226_s3 + $0xb8] sm:$0xff] %v3858_v15 }
 0x304   :  { %3920 = vst [vmem:[%s7226_s3 + $0xa8] sm:$0xff] %v3856_v59  ;;  %v4410_v63 = vpop.f32.mrb[152].mxu1 }
 0x305   :  { %v3467_v9 = vpop.f32.mrb[88].mxu0  ;;  %v3685_v2 = vadd.f32 %v6834_v62, %v4410_v63  ;;  %v3676_v33 = vpop.f32.mrb[153].mxu1 }
 0x306   :  { %v7013_v52 = vadd.f32 %v4568_v45, %v3467_v9  ;;  %v3469_v36 = vpop.f32.mrb[89].mxu0  ;;  %v3677_v8 = vadd.f32 %v6822_v16, %v3676_v33  ;;  %v4411_v32 = vpop.f32.mrb[154].mxu1 }
 0x307   :  { %v3861_v38 = vmax.f32 %v3685_v2, 0.0  ;;  %v3470_v31 = vpop.f32.mrb[90].mxu0  ;;  %v3688_v41 = vadd.f32 %v6838_v27, %v4411_v32  ;;  %v3679_v35 = vpop.f32.mrb[155].mxu1  ;;  %v4572_v27 = vadd.f32 %v6616_v26, %v6758_v58 }
 0x308   :  { %v3859_v61 = vmax.f32 %v3677_v8, 0.0  ;;  %v7017_v28 = vadd.f32 %v4570_v55, %v3470_v31  ;;  %v3472_v11 = vpop.f32.mrb[91].mxu0  ;;  %v3680_v62 = vadd.f32 %v6826_v42, %v3679_v35 }
 0x309   :  { %3925 = vst [vmem:[%s7226_s3 + $0xd0] sm:$0xff] %v3861_v38  ;;  %v3862_v19 = vmax.f32 %v3688_v41, 0.0  ;;  %v7248_v11 = vld [vmem:[#allocation5_spill] sm:$0xff] }
 0x30a   :  { %3923 = vst [vmem:[%s7226_s3 + $0xc0] sm:$0xff] %v3859_v61  ;;  %v3860_v16 = vmax.f32 %v3680_v62, 0.0  ;;  %v4582_v62 = vadd.f32 %v6616_v26, %v7248_v11 }
 0x30b   :  { %3926 = vst [vmem:[%s7226_s3 + $0xd8] sm:$0xff] %v3862_v19 }
 0x30c   :  { %3924 = vst [vmem:[%s7226_s3 + $0xc8] sm:$0xff] %v3860_v16  ;;  %v4414_v42 = vpop.f32.mrb[156].mxu1 }
 0x30d   :  { %v3475_v6 = vpop.f32.mrb[92].mxu0  ;;  %v3701_v49 = vadd.f32 %v6858_v12, %v4414_v42  ;;  %v3692_v50 = vpop.f32.mrb[157].mxu1  ;;  %v7244_v12 = vld [vmem:[#allocation16_spill] sm:$0xff] }
 0x30e   :  { %v7037_v43 = vadd.f32 %v4572_v27, %v3475_v6  ;;  %v3477_v46 = vpop.f32.mrb[93].mxu0  ;;  %v3693_v48 = vadd.f32 %v6846_v56, %v3692_v50  ;;  %v4415_v39 = vpop.f32.mrb[158].mxu1 }
 0x30f   :  { %v3865_v54 = vmax.f32 %v3701_v49, 0.0  ;;  %v3478_v58 = vpop.f32.mrb[94].mxu0  ;;  %v3704_v47 = vadd.f32 %v6862_v18, %v4415_v39  ;;  %v3695_v57 = vpop.f32.mrb[159].mxu1  ;;  %v7245_v18 = vld [vmem:[#allocation2_spill] sm:$0xff] }
 0x310   :  { %v3863_v0 = vmax.f32 %v3693_v48, 0.0  ;;  %v7041_v7 = vadd.f32 %v4574_v44, %v3478_v58  ;;  %v3480_v34 = vpop.f32.mrb[95].mxu0  ;;  %v3696_v14 = vadd.f32 %v7244_v12, %v3695_v57  ;;  %v4576_v51 = vadd.f32 %v6616_v26, %v7245_v18 }
 0x311   :  { %3929 = vst [vmem:[%s7226_s3 + $0xf0] sm:$0xff] %v3865_v54  ;;  %v3866_v20 = vmax.f32 %v3704_v47, 0.0  ;;  %v7250_v34 = vld [vmem:[#allocation7_spill] sm:$0xff] }
 0x312   :  { %3927 = vst [vmem:[%s7226_s3 + $0xe0] sm:$0xff] %v3863_v0  ;;  %v3864_v56 = vmax.f32 %v3696_v14, 0.0  ;;  %v4586_v12 = vadd.f32 %v6616_v26, %v7250_v34 }
 0x313   :  { %3930 = vst [vmem:[%s7226_s3 + $0xf8] sm:$0xff] %v3866_v20 }
 0x314   :  { %3928 = vst [vmem:[%s7226_s3 + $0xe8] sm:$0xff] %v3864_v56  ;;  %v4418_v22 = vpop.f32.mrb[160].mxu1 }
 0x315   :  { %v3483_v5 = vpop.f32.mrb[96].mxu0  ;;  %v3717_v30 = vadd.f32 %v6893_v13, %v4418_v22  ;;  %v3708_v1 = vpop.f32.mrb[161].mxu1 }
 0x316   :  { %v7061_v15 = vadd.f32 %v4576_v51, %v3483_v5  ;;  %v3485_v59 = vpop.f32.mrb[97].mxu0  ;;  %v3709_v45 = vadd.f32 %v6869_v23, %v3708_v1  ;;  %v4419_v63 = vpop.f32.mrb[162].mxu1 }
 0x317   :  { %v3869_v9 = vmax.f32 %v3717_v30, 0.0  ;;  %v3486_v2 = vpop.f32.mrb[98].mxu0  ;;  %v3720_v33 = vadd.f32 %v6897_v3, %v4419_v63  ;;  %v3711_v55 = vpop.f32.mrb[163].mxu1  ;;  %v7247_v3 = vld [vmem:[#allocation4_spill] sm:$0xff] }
 0x318   :  { %v3867_v36 = vmax.f32 %v3709_v45, 0.0  ;;  %v7065_v8 = vadd.f32 %v4578_v25, %v3486_v2  ;;  %v3488_v32 = vpop.f32.mrb[99].mxu0  ;;  %v3712_v13 = vadd.f32 %v6873_v29, %v3711_v55  ;;  %v4580_v31 = vadd.f32 %v6616_v26, %v7247_v3 }
 0x319   :  { %3933 = vst [vmem:[%s7226_s3 + $0x110] sm:$0xff] %v3869_v9  ;;  %v3870_v38 = vmax.f32 %v3720_v33, 0.0  ;;  %v7252_v33 = vld [vmem:[#allocation9_spill] sm:$0xff] }
 0x31a   :  { %3931 = vst [vmem:[%s7226_s3 + $0x100] sm:$0xff] %v3867_v36  ;;  %v3868_v23 = vmax.f32 %v3712_v13, 0.0  ;;  %v4590_v55 = vadd.f32 %v6616_v26, %v7252_v33 }
 0x31b   :  { %3934 = vst [vmem:[%s7226_s3 + $0x118] sm:$0xff] %v3870_v38 }
 0x31c   :  { %3932 = vst [vmem:[%s7226_s3 + $0x108] sm:$0xff] %v3868_v23  ;;  %v4422_v29 = vpop.f32.mrb[164].mxu1 }
 0x31d   :  { %v3491_v41 = vpop.f32.mrb[100].mxu0  ;;  %v3733_v35 = vadd.f32 %v6941_v53, %v4422_v29  ;;  %v3724_v61 = vpop.f32.mrb[165].mxu1 }
 0x31e   :  { %v7085_v19 = vadd.f32 %v4580_v31, %v3491_v41  ;;  %v3493_v16 = vpop.f32.mrb[101].mxu0  ;;  %v3725_v27 = vadd.f32 %v6917_v60, %v3724_v61  ;;  %v4423_v42 = vpop.f32.mrb[166].mxu1 }
 0x31f   :  { %v3873_v6 = vmax.f32 %v3733_v35, 0.0  ;;  %v3494_v49 = vpop.f32.mrb[102].mxu0  ;;  %v3736_v50 = vadd.f32 %v6945_v40, %v4423_v42  ;;  %v3727_v44 = vpop.f32.mrb[167].mxu1  ;;  %v7249_v40 = vld [vmem:[#allocation6_spill] sm:$0xff] }
 0x320   :  { %v3871_v46 = vmax.f32 %v3725_v27, 0.0  ;;  %v7089_v48 = vadd.f32 %v4582_v62, %v3494_v49  ;;  %v3496_v39 = vpop.f32.mrb[103].mxu0  ;;  %v3728_v53 = vadd.f32 %v6921_v17, %v3727_v44  ;;  %v4584_v58 = vadd.f32 %v6616_v26, %v7249_v40 }
 0x321   :  { %3937 = vst [vmem:[%s7226_s3 + $0x130] sm:$0xff] %v3873_v6  ;;  %v3874_v54 = vmax.f32 %v3736_v50, 0.0  ;;  %v7254_v6 = vld [vmem:[#allocation11_spill] sm:$0xff] }
 0x322   :  { %3935 = vst [vmem:[%s7226_s3 + $0x120] sm:$0xff] %v3871_v46  ;;  %v3872_v60 = vmax.f32 %v3728_v53, 0.0 }
 0x323   :  { %3938 = vst [vmem:[%s7226_s3 + $0x138] sm:$0xff] %v3874_v54 }
 0x324   :  { %3936 = vst [vmem:[%s7226_s3 + $0x128] sm:$0xff] %v3872_v60  ;;  %v4426_v17 = vpop.f32.mrb[168].mxu1 }
 0x325   :  { %v3499_v47 = vpop.f32.mrb[104].mxu0  ;;  %v3749_v57 = vadd.f32 %v6989_v4, %v4426_v17  ;;  %v3740_v0 = vpop.f32.mrb[169].mxu1 }
 0x326   :  { %v7109_v14 = vadd.f32 %v4584_v58, %v3499_v47  ;;  %v3501_v20 = vpop.f32.mrb[105].mxu0  ;;  %v3741_v56 = vadd.f32 %v6965_v24, %v3740_v0  ;;  %v4427_v18 = vpop.f32.mrb[170].mxu1 }
 0x327   :  { %v3877_v51 = vmax.f32 %v3749_v57, 0.0  ;;  %v3502_v22 = vpop.f32.mrb[106].mxu0  ;;  %v3752_v5 = vadd.f32 %v6993_v37, %v4427_v18  ;;  %v3743_v30 = vpop.f32.mrb[171].mxu1  ;;  %v7251_v37 = vld [vmem:[#allocation8_spill] sm:$0xff] }
 0x328   :  { %v3875_v1 = vmax.f32 %v3741_v56, 0.0  ;;  %v7113_v10 = vadd.f32 %v4586_v12, %v3502_v22  ;;  %v3504_v25 = vpop.f32.mrb[107].mxu0  ;;  %v3744_v4 = vadd.f32 %v6969_v21, %v3743_v30  ;;  %v4588_v45 = vadd.f32 %v6616_v26, %v7251_v37  ;;  %v7256_v56 = vld [vmem:[#allocation13_spill] sm:$0xff] }
 0x329   :  { %3941 = vst [vmem:[%s7226_s3 + $0x150] sm:$0xff] %v3877_v51  ;;  %v3878_v59 = vmax.f32 %v3752_v5, 0.0 }
 0x32a   :  { %3939 = vst [vmem:[%s7226_s3 + $0x140] sm:$0xff] %v3875_v1  ;;  %v3876_v24 = vmax.f32 %v3744_v4, 0.0 }
 0x32b   :  { %3942 = vst [vmem:[%s7226_s3 + $0x158] sm:$0xff] %v3878_v59 }
 0x32c   :  { %3940 = vst [vmem:[%s7226_s3 + $0x148] sm:$0xff] %v3876_v24  ;;  %v4430_v21 = vpop.f32.mrb[172].mxu1 }
 0x32d   :  { %v3507_v63 = vpop.f32.mrb[108].mxu0  ;;  %v3765_v9 = vadd.f32 %v7037_v43, %v4430_v21  ;;  %v3756_v2 = vpop.f32.mrb[173].mxu1  ;;  %v7148_v43 = vld [vmem:[%s7225_s2] ss:$0 sm:$0xff] }
 0x32e   :  { %v4589_v36 = vadd.f32 %v4588_v45, %v3507_v63  ;;  %v3509_v32 = vpop.f32.mrb[109].mxu0  ;;  %v3757_v13 = vadd.f32 %v7013_v52, %v3756_v2  ;;  %v4431_v38 = vpop.f32.mrb[174].mxu1  ;;  %v4594_v49 = vadd.f32 %v7148_v43, %v7254_v6  ;;  %v4598_v18 = vadd.f32 %v7148_v43, %v7256_v56 }
 0x32f   :  { %v3881_v23 = vmax.f32 %v3765_v9, 0.0  ;;  %v3510_v3 = vpop.f32.mrb[110].mxu0  ;;  %v3768_v31 = vadd.f32 %v7041_v7, %v4431_v38  ;;  %v3759_v29 = vpop.f32.mrb[175].mxu1  ;;  %v7257_v9 = vld [vmem:[#allocation14_spill] sm:$0xff]  ;;  %v7258_v32 = vld [vmem:[#allocation15_spill] sm:$0xff] }
 0x330   :  { %v3879_v41 = vmax.f32 %v3757_v13, 0.0  ;;  %v4591_v35 = vadd.f32 %v4590_v55, %v3510_v3  ;;  %v3512_v61 = vpop.f32.mrb[111].mxu0  ;;  %v3760_v11 = vadd.f32 %v7017_v28, %v3759_v29  ;;  %v7253_v28 = vld [vmem:[#allocation10_spill] sm:$0xff]  ;;  %v4600_v2 = vadd.f32 %v7148_v43, %v7257_v9 }
 0x331   :  { %3945 = vst [vmem:[%s7226_s3 + $0x170] sm:$0xff] %v3881_v23  ;;  %v3882_v26 = vmax.f32 %v3768_v31, 0.0  ;;  %v4592_v7 = vadd.f32 %v7148_v43, %v7253_v28  ;;  %v4602_v13 = vadd.f32 %v7148_v43, %v7258_v32 }
 0x332   :  { %3943 = vst [vmem:[%s7226_s3 + $0x160] sm:$0xff] %v3879_v41  ;;  %v3880_v52 = vmax.f32 %v3760_v11, 0.0 }
 0x333   :  { %3946 = vst [vmem:[%s7226_s3 + $0x178] sm:$0xff] %v3882_v26 }
 0x334   :  { %3944 = vst [vmem:[%s7226_s3 + $0x168] sm:$0xff] %v3880_v52  ;;  %v4434_v62 = vpop.f32.mrb[176].mxu1 }
 0x335   :  { %v3515_v16 = vpop.f32.mrb[112].mxu0  ;;  %v3781_v27 = vadd.f32 %v7085_v19, %v4434_v62  ;;  %v3772_v42 = vpop.f32.mrb[177].mxu1 }
 0x336   :  { %v4593_v50 = vadd.f32 %v4592_v7, %v3515_v16  ;;  %v3517_v44 = vpop.f32.mrb[113].mxu0  ;;  %v3773_v46 = vadd.f32 %v7061_v15, %v3772_v42  ;;  %v4435_v39 = vpop.f32.mrb[178].mxu1  ;;  %v7259_v16 = vld [vmem:[#allocation17_spill] sm:$0xff] }
 0x337   :  { %v3885_v53 = vmax.f32 %v3781_v27, 0.0  ;;  %v3518_v54 = vpop.f32.mrb[114].mxu0  ;;  %v3784_v60 = vadd.f32 %v7089_v48, %v4435_v39  ;;  %v3775_v40 = vpop.f32.mrb[179].mxu1  ;;  %v7255_v48 = vld [vmem:[#allocation12_spill] sm:$0xff]  ;;  %v4604_v27 = vadd.f32 %v7148_v43, %v7259_v16 }
 0x338   :  { %v3883_v58 = vmax.f32 %v3773_v46, 0.0  ;;  %v4595_v17 = vadd.f32 %v4594_v49, %v3518_v54  ;;  %v3520_v47 = vpop.f32.mrb[115].mxu0  ;;  %v3776_v57 = vadd.f32 %v7065_v8, %v3775_v40  ;;  %v4596_v0 = vadd.f32 %v7148_v43, %v7255_v48 }
 0x339   :  { %3949 = vst [vmem:[%s7226_s3 + $0x190] sm:$0xff] %v3885_v53  ;;  %v3886_v19 = vmax.f32 %v3784_v60, 0.0 }
 0x33a   :  { %3947 = vst [vmem:[%s7226_s3 + $0x180] sm:$0xff] %v3883_v58  ;;  %v3884_v15 = vmax.f32 %v3776_v57, 0.0 }
 0x33b   :  { %3950 = vst [vmem:[%s7226_s3 + $0x198] sm:$0xff] %v3886_v19 }
 0x33c   :  { %3948 = vst [vmem:[%s7226_s3 + $0x188] sm:$0xff] %v3884_v15  ;;  %v4438_v8 = vpop.f32.mrb[180].mxu1 }
 0x33d   :  { %v3523_v34 = vpop.f32.mrb[116].mxu0  ;;  %v3797_v12 = vadd.f32 %v4589_v36, %v4438_v8  ;;  %v3788_v20 = vpop.f32.mrb[181].mxu1 }
 0x33e   :  { %v4597_v51 = vadd.f32 %v4596_v0, %v3523_v34  ;;  %v3525_v22 = vpop.f32.mrb[117].mxu0  ;;  %v3789_v5 = vadd.f32 %v7109_v14, %v3788_v20  ;;  %v4439_v30 = vpop.f32.mrb[182].mxu1 }
 0x33f   :  { %v3889_v1 = vmax.f32 %v3797_v12, 0.0  ;;  %v3526_v25 = vpop.f32.mrb[118].mxu0  ;;  %v3800_v4 = vadd.f32 %v4591_v35, %v4439_v30  ;;  %v3791_v59 = vpop.f32.mrb[183].mxu1 }
 0x340   :  { %v3887_v24 = vmax.f32 %v3789_v5, 0.0  ;;  %v4599_v37 = vadd.f32 %v4598_v18, %v3526_v25  ;;  %v3528_v45 = vpop.f32.mrb[119].mxu0  ;;  %v3792_v21 = vadd.f32 %v7113_v10, %v3791_v59 }
 0x341   :  { %3953 = vst [vmem:[%s7226_s3 + $0x1b0] sm:$0xff] %v3889_v1  ;;  %v3890_v63 = vmax.f32 %v3800_v4, 0.0 }
 0x342   :  { %3951 = vst [vmem:[%s7226_s3 + $0x1a0] sm:$0xff] %v3887_v24  ;;  %v3888_v14 = vmax.f32 %v3792_v21, 0.0 }
 0x343   :  { %3954 = vst [vmem:[%s7226_s3 + $0x1b8] sm:$0xff] %v3890_v63 }
 0x344   :  { %3952 = vst [vmem:[%s7226_s3 + $0x1a8] sm:$0xff] %v3888_v14  ;;  %v4442_v10 = vpop.f32.mrb[184].mxu1 }
 0x345   :  { %v3531_v33 = vpop.f32.mrb[120].mxu0  ;;  %v3813_v55 = vadd.f32 %v4597_v51, %v4442_v10  ;;  %v3804_v36 = vpop.f32.mrb[185].mxu1 }
 0x346   :  { %v4601_v38 = vadd.f32 %v4600_v2, %v3531_v33  ;;  %v3533_v23 = vpop.f32.mrb[121].mxu0  ;;  %v3805_v3 = vadd.f32 %v4593_v50, %v3804_v36  ;;  %v4443_v31 = vpop.f32.mrb[186].mxu1  ;;  %v7260_v50 = vld [vmem:[#allocation18_spill] sm:$0xff] }
 0x347   :  { %v3893_v29 = vmax.f32 %v3813_v55, 0.0  ;;  %v3534_v41 = vpop.f32.mrb[122].mxu0  ;;  %v3816_v35 = vadd.f32 %v4599_v37, %v4443_v31  ;;  %v3807_v61 = vpop.f32.mrb[187].mxu1  ;;  %v4606_v44 = vadd.f32 %v7148_v43, %v7260_v50 }
 0x348   :  { %v3891_v11 = vmax.f32 %v3805_v3, 0.0  ;;  %v4603_v26 = vadd.f32 %v4602_v13, %v3534_v41  ;;  %v3536_v52 = vpop.f32.mrb[123].mxu0  ;;  %v3808_v28 = vadd.f32 %v4595_v17, %v3807_v61 }
 0x349   :  { %3957 = vst [vmem:[%s7226_s3 + $0x1d0] sm:$0xff] %v3893_v29  ;;  %v3894_v7 = vmax.f32 %v3816_v35, 0.0 }
 0x34a   :  { %3955 = vst [vmem:[%s7226_s3 + $0x1c0] sm:$0xff] %v3891_v11  ;;  %v3892_v62 = vmax.f32 %v3808_v28, 0.0 }
 0x34b   :  { %3958 = vst [vmem:[%s7226_s3 + $0x1d8] sm:$0xff] %v3894_v7 }
 0x34c   :  { %3956 = vst [vmem:[%s7226_s3 + $0x1c8] sm:$0xff] %v3892_v62  ;;  %v4446_v42 = vpop.f32.mrb[188].mxu1 }
 0x34d   :  { %v3539_v6 = vpop.f32.mrb[124].mxu0  ;;  %v3820_v49 = vpop.f32.mrb[189].mxu1 }
 0x34e   :  { %v4605_v46 = vadd.f32 %v4604_v27, %v3539_v6  ;;  %v3541_v39 = vpop.f32.mrb[125].mxu0  ;;  %v3821_v53 = vadd.f32 %v4601_v38, %v3820_v49  ;;  %v4447_v54 = vpop.f32.mrb[190].mxu1 }
 0x34f   :  { %v3542_v60 = vpop.f32.mrb[126].mxu0  ;;  %v3823_v40 = vpop.f32.mrb[191].mxu1 }
 0x350   :  { %v3829_v58 = vadd.f32 %v4605_v46, %v4446_v42  ;;  %v3895_v17 = vmax.f32 %v3821_v53, 0.0  ;;  %v4607_v47 = vadd.f32 %v4606_v44, %v3542_v60  ;;  %v3544_v57 = vpop.f32.mrb[127].mxu0  ;;  %v3824_v19 = vadd.f32 %v4603_v26, %v3823_v40 }
 0x352   :  { %v3897_v15 = vmax.f32 %v3829_v58, 0.0  ;;  %3959 = vst [vmem:[%s7226_s3 + $0x1e0] sm:$0xff] %v3895_v17  ;;  %v3832_v48 = vadd.f32 %v4607_v47, %v4447_v54  ;;  %v3896_v0 = vmax.f32 %v3824_v19, 0.0 }
 0x354   :  { %3961 = vst [vmem:[%s7226_s3 + $0x1f0] sm:$0xff] %v3897_v15  ;;  %v3898_v43 = vmax.f32 %v3832_v48, 0.0  ;;  %3960 = vst [vmem:[%s7226_s3 + $0x1e8] sm:$0xff] %v3896_v0 }
 0x356   :  { %3962 = vst [vmem:[%s7226_s3 + $0x1f8] sm:$0xff] %v3898_v43 }

</bundles_post_ra>
